<compile_context>
chip_gen: v5e
topology: v5e:2x2
jax: 0.10.0
libtpu: 0.0.40
codegen_flags: <defaults>
</compile_context>

<pallas_src>
import functools

import jax
import jax.numpy as jnp
from jax.experimental import pallas as pl
from jax.experimental.pallas import tpu as pltpu


def _round_up(x, m):
    return (x + m - 1) // m * m


def _decom_kernel(x_ref, m_ref, w1_ref, b1_ref, w2_ref, b2_ref, w3_ref,
                  b3_ref, w4_ref, b4_ref, out_ref, *, W, lanes):
    """Fused 4-layer 3x3-conv network for one batch tile.

    Layout: channels on sublanes, (batch_tile * H * W) on lanes.
      x_ref:   (Cin0_pad, lanes)         padded input activations
      m_ref:   (8, lanes)                f32 border masks (one row per
                                         non-center tap, tap-loop order)
      wN_ref:  (9, CoutN_pad, CinN_pad)  bf16 per-tap weights (tap = ky*3+kx)
      bN_ref:  (CoutN_pad, 1)            f32 biases
      out_ref: (Cout_last_pad, lanes)    output (padded), sliced outside
    """
    f32 = jnp.float32
    bf16 = jnp.bfloat16

    # Hoisted: the 8 border masks are loaded once and reused by all 4 layers.
    mask_rows = [m_ref[i:i + 1, :] for i in range(8)]

    def conv3x3(act, w_ref, b_ref, leaky_slope):
        """(Cin, lanes) f32 -> (Cout, lanes) f32: 3x3 same-conv + act."""
        cout = w_ref.shape[1]
        acc = jnp.zeros((cout, lanes), f32)
        mrow = 0
        for oy in (-1, 0, 1):
            for ox in (-1, 0, 1):
                t = (oy + 1) * 3 + (ox + 1)
                if oy == 0 and ox == 0:
                    tap = act
                else:
                    d = oy * W + ox                       # flat source offset
                    # shifted[p] = act[(p + d) mod lanes]; wraps (image
                    # borders AND cross-image leakage) are killed by the mask.
                    shifted = pltpu.roll(act, (-d) % lanes, 1)
                    tap = shifted * mask_rows[mrow]
                    mrow += 1
                # bf16 operands, f32 accumulation on the MXU.
                acc = acc + jnp.dot(w_ref[t], tap.astype(bf16),
                                    preferred_element_type=f32)
        acc = acc + b_ref[...]                            # (Cout, 1) broadcast
        if leaky_slope is None:
            return jnp.maximum(acc, 0.0)                  # ReLU (last layer)
        return jnp.where(acc >= 0, acc, leaky_slope * acc)  # LeakyReLU(0.2)

    act = x_ref[...].astype(f32)                          # (Cin0_pad, lanes)
    act = conv3x3(act, w1_ref, b1_ref, 0.2)
    act = conv3x3(act, w2_ref, b2_ref, 0.2)
    act = conv3x3(act, w3_ref, b3_ref, 0.2)
    act = conv3x3(act, w4_ref, b4_ref, None)
    out_ref[...] = act.astype(out_ref.dtype)              # lane-dense store


def _pack_weight_taps(w_oihw):
    """(Cout, Cin, 3, 3) OIHW -> (9, Cout_pad, Cin_pad) bf16, tap = ky*3+kx."""
    cout, cin, kh, kw = w_oihw.shape
    cout_pad = _round_up(cout, 8)
    cin_pad = _round_up(cin, 8)
    w = jnp.pad(w_oihw, ((0, cout_pad - cout), (0, cin_pad - cin),
                         (0, 0), (0, 0)))
    w = jnp.transpose(w, (2, 3, 0, 1)).reshape(kh * kw, cout_pad, cin_pad)
    return w.astype(jnp.bfloat16)


def _pack_bias(b, cout_pad):
    return jnp.pad(b, (0, cout_pad - b.shape[0])).reshape(-1, 1).astype(
        jnp.float32)


def decom_forward(params, x_nchw, *, batch_tile=None):
    """Reproduces Decom.forward: returns (R, L) in NCHW like PyTorch."""
    N, C, H, W = x_nchw.shape
    HW = H * W

    # Pack several images onto the lane axis (small-image regime).
    if batch_tile is None:
        batch_tile = max(1, min(N, max(1, 4096 // HW)))
    n_pad = _round_up(N, batch_tile)
    lanes = batch_tile * HW

    cin0_pad = _round_up(C, 8)
    # Pad channels 3->8 and batch to a tile multiple; channels -> sublanes,
    # (batch, H, W) -> lanes.  These are one-time HBM-side XLA reshapes.
    x = jnp.pad(x_nchw, ((0, n_pad - N), (0, cin0_pad - C), (0, 0), (0, 0)))
    x_flat = jnp.transpose(x, (1, 0, 2, 3)).reshape(cin0_pad, n_pad * HW)

    # Precomputed per-tap zero-padding border masks, identical for every
    # image in a tile -> tiled along lanes, passed as a resident input.
    yy = jnp.arange(H, dtype=jnp.int32).reshape(H, 1)
    xx = jnp.arange(W, dtype=jnp.int32).reshape(1, W)
    mask_list = []
    for oy in (-1, 0, 1):
        for ox in (-1, 0, 1):
            if oy == 0 and ox == 0:
                continue
            valid = ((yy + oy >= 0) & (yy + oy < H) &
                     (xx + ox >= 0) & (xx + ox < W))
            mask_list.append(valid)
    masks = jnp.stack(mask_list).astype(jnp.float32).reshape(8, HW)
    masks = jnp.tile(masks, (1, batch_tile))                    # (8, lanes)

    flat_params = [masks]
    for w, b in params:
        wp = _pack_weight_taps(w)
        flat_params.append(wp)
        flat_params.append(_pack_bias(b, wp.shape[1]))
    cout_last = params[-1][0].shape[0]                          # 4
    cout_last_pad = _round_up(cout_last, 8)                     # 8

    def resident_spec(arr):
        return pl.BlockSpec(arr.shape, lambda n: (0,) * arr.ndim)

    kernel = functools.partial(_decom_kernel, W=W, lanes=lanes)
    out_flat = pl.pallas_call(
        kernel,
        out_shape=jax.ShapeDtypeStruct((cout_last_pad, n_pad * HW),
                                       x_nchw.dtype),
        grid_spec=pltpu.PrefetchScalarGridSpec(
            num_scalar_prefetch=0,
            grid=(n_pad // batch_tile,),
            in_specs=[pl.BlockSpec((cin0_pad, lanes), lambda n: (0, n))]
                     + [resident_spec(p) for p in flat_params],
            out_specs=pl.BlockSpec((cout_last_pad, lanes), lambda n: (0, n)),
        ),
        compiler_params=pltpu.CompilerParams(
            dimension_semantics=("parallel",)),
    )(x_flat, *flat_params)

    out = jnp.transpose(out_flat.reshape(cout_last_pad, n_pad, H, W),
                        (1, 0, 2, 3))[:N]                        # (N, 8, H, W)
    R = out[:, 0:3, :, :]
    L = out[:, 3:4, :, :]
    return R, L


def init_decom_params(key):
    """Synthetic params matching nn.Conv2d shapes of Decom (OIHW + bias).

    Channel plan: 3->32, 32->32, 32->32, 32->4 (k=3, s=1, p=1); PyTorch-style
    uniform(-1/sqrt(fan_in), 1/sqrt(fan_in)) init.
    """
    specs = [(3, 32), (32, 32), (32, 32), (32, 4)]
    params = []
    for i, (cin, cout) in enumerate(specs):
        kw_key, kb_key = jax.random.split(jax.random.fold_in(key, i))
        bound = 1.0 / ((cin * 9) ** 0.5)
        w = jax.random.uniform(kw_key, (cout, cin, 3, 3), jnp.float32,
                               -bound, bound)
        b = jax.random.uniform(kb_key, (cout,), jnp.float32, -bound, bound)
        params.append((w, b))
    return params


def decom_reference(params, x_nchw):
    """Pure-XLA f32 reference of the same network (Conv2d + LeakyReLU/ReLU)."""
    act = x_nchw
    n = len(params)
    for i, (w, b) in enumerate(params):
        act = jax.lax.conv_general_dilated(
            act, w, window_strides=(1, 1), padding=((1, 1), (1, 1)),
            dimension_numbers=("NCHW", "OIHW", "NCHW"),
            precision=jax.lax.Precision.HIGHEST)
        act = act + b.reshape(1, -1, 1, 1)
        act = (jnp.maximum(act, 0.0) if i == n - 1
               else jnp.where(act >= 0, act, 0.2 * act))
    return act[:, 0:3, :, :], act[:, 3:4, :, :]


if __name__ == "__main__":
    key = jax.random.PRNGKey(0)
    x_key, p_key = jax.random.split(key)

    # Small shapes consistent with the module: RGB input, batch=2, 16x16.
    x = jax.random.normal(x_key, (2, 3, 16, 16), dtype=jnp.float32)
    params = init_decom_params(p_key)

    fwd = jax.jit(decom_forward)
    R, L = fwd(params, x)
    jax.block_until_ready((R, L))

    assert R.shape == (2, 3, 16, 16), R.shape
    assert L.shape == (2, 1, 16, 16), L.shape
    # Final layer is ReLU -> outputs must be non-negative.
    assert bool(jnp.all(R >= 0)) and bool(jnp.all(L >= 0))

    # Numerical sanity check against the pure-XLA f32 reference (bf16 MXU
    # operands with f32 accumulation stay well within this tolerance).
    R_ref, L_ref = decom_reference(params, x)
    assert bool(jnp.allclose(R, R_ref, rtol=2e-2, atol=2e-2)), \
        float(jnp.max(jnp.abs(R - R_ref)))
    assert bool(jnp.allclose(L, L_ref, rtol=2e-2, atol=2e-2)), \
        float(jnp.max(jnp.abs(L - L_ref)))

    print("KERNEL_OK")
</pallas_src>

<mosaic_0001>
module attributes {stable_mosaic.version = 11 : i64} {
  func.func @_decom_kernel(%arg0: i32, %arg1: memref<8x512xf32, #tpu.memory_space<vmem>>, %arg2: memref<8x512xf32, #tpu.memory_space<vmem>>, %arg3: memref<9x32x8xbf16, #tpu.memory_space<vmem>>, %arg4: memref<32x1xf32, #tpu.memory_space<vmem>>, %arg5: memref<9x32x32xbf16, #tpu.memory_space<vmem>>, %arg6: memref<32x1xf32, #tpu.memory_space<vmem>>, %arg7: memref<9x32x32xbf16, #tpu.memory_space<vmem>>, %arg8: memref<32x1xf32, #tpu.memory_space<vmem>>, %arg9: memref<9x8x32xbf16, #tpu.memory_space<vmem>>, %arg10: memref<8x1xf32, #tpu.memory_space<vmem>>, %arg11: memref<8x512xf32, #tpu.memory_space<vmem>>) attributes {dimension_semantics = [#tpu.dimension_semantics<parallel>], iteration_bounds = array<i64: 1>, scalar_prefetch = 0 : i64, scratch_operands = 0 : i64, tpu.core_type = #tpu.core_type<tc>, window_params = [{transform_indices = @transform_0, window_bounds = array<i64: 8, 512>}, {pipeline_mode = #tpu.pipeline_mode<synchronous>, transform_indices = @transform_1, window_bounds = array<i64: 8, 512>}, {pipeline_mode = #tpu.pipeline_mode<synchronous>, transform_indices = @transform_2, window_bounds = array<i64: 9, 32, 8>}, {pipeline_mode = #tpu.pipeline_mode<synchronous>, transform_indices = @transform_3, window_bounds = array<i64: 32, 1>}, {pipeline_mode = #tpu.pipeline_mode<synchronous>, transform_indices = @transform_4, window_bounds = array<i64: 9, 32, 32>}, {pipeline_mode = #tpu.pipeline_mode<synchronous>, transform_indices = @transform_5, window_bounds = array<i64: 32, 1>}, {pipeline_mode = #tpu.pipeline_mode<synchronous>, transform_indices = @transform_6, window_bounds = array<i64: 9, 32, 32>}, {pipeline_mode = #tpu.pipeline_mode<synchronous>, transform_indices = @transform_7, window_bounds = array<i64: 32, 1>}, {pipeline_mode = #tpu.pipeline_mode<synchronous>, transform_indices = @transform_8, window_bounds = array<i64: 9, 8, 32>}, {pipeline_mode = #tpu.pipeline_mode<synchronous>, transform_indices = @transform_9, window_bounds = array<i64: 8, 1>}, {transform_indices = @transform_10, window_bounds = array<i64: 8, 512>}]} {
    %c0 = arith.constant 0 : index
    %c0_0 = arith.constant 0 : index
    %0 = vector.load %arg2[%c0, %c0_0] : memref<8x512xf32, #tpu.memory_space<vmem>>, vector<1x512xf32>
    %c1 = arith.constant 1 : index
    %c0_1 = arith.constant 0 : index
    %1 = vector.load %arg2[%c1, %c0_1] : memref<8x512xf32, #tpu.memory_space<vmem>>, vector<1x512xf32>
    %c2 = arith.constant 2 : index
    %c0_2 = arith.constant 0 : index
    %2 = vector.load %arg2[%c2, %c0_2] : memref<8x512xf32, #tpu.memory_space<vmem>>, vector<1x512xf32>
    %c3 = arith.constant 3 : index
    %c0_3 = arith.constant 0 : index
    %3 = vector.load %arg2[%c3, %c0_3] : memref<8x512xf32, #tpu.memory_space<vmem>>, vector<1x512xf32>
    %c4 = arith.constant 4 : index
    %c0_4 = arith.constant 0 : index
    %4 = vector.load %arg2[%c4, %c0_4] : memref<8x512xf32, #tpu.memory_space<vmem>>, vector<1x512xf32>
    %c5 = arith.constant 5 : index
    %c0_5 = arith.constant 0 : index
    %5 = vector.load %arg2[%c5, %c0_5] : memref<8x512xf32, #tpu.memory_space<vmem>>, vector<1x512xf32>
    %c6 = arith.constant 6 : index
    %c0_6 = arith.constant 0 : index
    %6 = vector.load %arg2[%c6, %c0_6] : memref<8x512xf32, #tpu.memory_space<vmem>>, vector<1x512xf32>
    %c7 = arith.constant 7 : index
    %c0_7 = arith.constant 0 : index
    %7 = vector.load %arg2[%c7, %c0_7] : memref<8x512xf32, #tpu.memory_space<vmem>>, vector<1x512xf32>
    %c0_8 = arith.constant 0 : index
    %c0_9 = arith.constant 0 : index
    %8 = vector.load %arg1[%c0_8, %c0_9] : memref<8x512xf32, #tpu.memory_space<vmem>>, vector<8x512xf32>
    %cst = arith.constant 0.000000e+00 : f32
    %9 = vector.broadcast %cst : f32 to vector<32x512xf32>
    %c17_i32 = arith.constant 17 : i32
    %10 = tpu.dynamic_rotate %8 by %c17_i32 dim 1 : vector<8x512xf32>, i32 -> vector<8x512xf32>
    %11 = vector.broadcast %0 : vector<1x512xf32> to vector<8x512xf32>
    %12 = arith.mulf %10, %11 : vector<8x512xf32>
    %c0_10 = arith.constant 0 : index
    %c0_11 = arith.constant 0 : index
    %c0_12 = arith.constant 0 : index
    %13 = vector.load %arg3[%c0_10, %c0_11, %c0_12] : memref<9x32x8xbf16, #tpu.memory_space<vmem>>, vector<1x32x8xbf16>
    %14 = vector.shape_cast %13 : vector<1x32x8xbf16> to vector<32x8xbf16>
    %15 = arith.truncf %12 : vector<8x512xf32> to vector<8x512xbf16>
    %cst_13 = arith.constant dense<0.000000e+00> : vector<32x512xf32>
    %16 = tpu.matmul %14, %15, %cst_13 {dimension_numbers = #tpu.dot_dimension_numbers<[1], [0], [0], [1], [0, 0, 1, 1], [], []>} : vector<32x8xbf16>, vector<8x512xbf16>, vector<32x512xf32> -> vector<32x512xf32>
    %17 = arith.addf %9, %16 : vector<32x512xf32>
    %c16_i32 = arith.constant 16 : i32
    %18 = tpu.dynamic_rotate %8 by %c16_i32 dim 1 : vector<8x512xf32>, i32 -> vector<8x512xf32>
    %19 = vector.broadcast %1 : vector<1x512xf32> to vector<8x512xf32>
    %20 = arith.mulf %18, %19 : vector<8x512xf32>
    %c1_14 = arith.constant 1 : index
    %c0_15 = arith.constant 0 : index
    %c0_16 = arith.constant 0 : index
    %21 = vector.load %arg3[%c1_14, %c0_15, %c0_16] : memref<9x32x8xbf16, #tpu.memory_space<vmem>>, vector<1x32x8xbf16>
    %22 = vector.shape_cast %21 : vector<1x32x8xbf16> to vector<32x8xbf16>
    %23 = arith.truncf %20 : vector<8x512xf32> to vector<8x512xbf16>
    %cst_17 = arith.constant dense<0.000000e+00> : vector<32x512xf32>
    %24 = tpu.matmul %22, %23, %cst_17 {dimension_numbers = #tpu.dot_dimension_numbers<[1], [0], [0], [1], [0, 0, 1, 1], [], []>} : vector<32x8xbf16>, vector<8x512xbf16>, vector<32x512xf32> -> vector<32x512xf32>
    %25 = arith.addf %17, %24 : vector<32x512xf32>
    %c15_i32 = arith.constant 15 : i32
    %26 = tpu.dynamic_rotate %8 by %c15_i32 dim 1 : vector<8x512xf32>, i32 -> vector<8x512xf32>
    %27 = vector.broadcast %2 : vector<1x512xf32> to vector<8x512xf32>
    %28 = arith.mulf %26, %27 : vector<8x512xf32>
    %c2_18 = arith.constant 2 : index
    %c0_19 = arith.constant 0 : index
    %c0_20 = arith.constant 0 : index
    %29 = vector.load %arg3[%c2_18, %c0_19, %c0_20] : memref<9x32x8xbf16, #tpu.memory_space<vmem>>, vector<1x32x8xbf16>
    %30 = vector.shape_cast %29 : vector<1x32x8xbf16> to vector<32x8xbf16>
    %31 = arith.truncf %28 : vector<8x512xf32> to vector<8x512xbf16>
    %cst_21 = arith.constant dense<0.000000e+00> : vector<32x512xf32>
    %32 = tpu.matmul %30, %31, %cst_21 {dimension_numbers = #tpu.dot_dimension_numbers<[1], [0], [0], [1], [0, 0, 1, 1], [], []>} : vector<32x8xbf16>, vector<8x512xbf16>, vector<32x512xf32> -> vector<32x512xf32>
    %33 = arith.addf %25, %32 : vector<32x512xf32>
    %c1_i32 = arith.constant 1 : i32
    %34 = tpu.dynamic_rotate %8 by %c1_i32 dim 1 : vector<8x512xf32>, i32 -> vector<8x512xf32>
    %35 = vector.broadcast %3 : vector<1x512xf32> to vector<8x512xf32>
    %36 = arith.mulf %34, %35 : vector<8x512xf32>
    %c3_22 = arith.constant 3 : index
    %c0_23 = arith.constant 0 : index
    %c0_24 = arith.constant 0 : index
    %37 = vector.load %arg3[%c3_22, %c0_23, %c0_24] : memref<9x32x8xbf16, #tpu.memory_space<vmem>>, vector<1x32x8xbf16>
    %38 = vector.shape_cast %37 : vector<1x32x8xbf16> to vector<32x8xbf16>
    %39 = arith.truncf %36 : vector<8x512xf32> to vector<8x512xbf16>
    %cst_25 = arith.constant dense<0.000000e+00> : vector<32x512xf32>
    %40 = tpu.matmul %38, %39, %cst_25 {dimension_numbers = #tpu.dot_dimension_numbers<[1], [0], [0], [1], [0, 0, 1, 1], [], []>} : vector<32x8xbf16>, vector<8x512xbf16>, vector<32x512xf32> -> vector<32x512xf32>
    %41 = arith.addf %33, %40 : vector<32x512xf32>
    %c4_26 = arith.constant 4 : index
    %c0_27 = arith.constant 0 : index
    %c0_28 = arith.constant 0 : index
    %42 = vector.load %arg3[%c4_26, %c0_27, %c0_28] : memref<9x32x8xbf16, #tpu.memory_space<vmem>>, vector<1x32x8xbf16>
    %43 = vector.shape_cast %42 : vector<1x32x8xbf16> to vector<32x8xbf16>
    %44 = arith.truncf %8 : vector<8x512xf32> to vector<8x512xbf16>
    %cst_29 = arith.constant dense<0.000000e+00> : vector<32x512xf32>
    %45 = tpu.matmul %43, %44, %cst_29 {dimension_numbers = #tpu.dot_dimension_numbers<[1], [0], [0], [1], [0, 0, 1, 1], [], []>} : vector<32x8xbf16>, vector<8x512xbf16>, vector<32x512xf32> -> vector<32x512xf32>
    %46 = arith.addf %41, %45 : vector<32x512xf32>
    %c511_i32 = arith.constant 511 : i32
    %47 = tpu.dynamic_rotate %8 by %c511_i32 dim 1 : vector<8x512xf32>, i32 -> vector<8x512xf32>
    %48 = vector.broadcast %4 : vector<1x512xf32> to vector<8x512xf32>
    %49 = arith.mulf %47, %48 : vector<8x512xf32>
    %c5_30 = arith.constant 5 : index
    %c0_31 = arith.constant 0 : index
    %c0_32 = arith.constant 0 : index
    %50 = vector.load %arg3[%c5_30, %c0_31, %c0_32] : memref<9x32x8xbf16, #tpu.memory_space<vmem>>, vector<1x32x8xbf16>
    %51 = vector.shape_cast %50 : vector<1x32x8xbf16> to vector<32x8xbf16>
    %52 = arith.truncf %49 : vector<8x512xf32> to vector<8x512xbf16>
    %cst_33 = arith.constant dense<0.000000e+00> : vector<32x512xf32>
    %53 = tpu.matmul %51, %52, %cst_33 {dimension_numbers = #tpu.dot_dimension_numbers<[1], [0], [0], [1], [0, 0, 1, 1], [], []>} : vector<32x8xbf16>, vector<8x512xbf16>, vector<32x512xf32> -> vector<32x512xf32>
    %54 = arith.addf %46, %53 : vector<32x512xf32>
    %c497_i32 = arith.constant 497 : i32
    %55 = tpu.dynamic_rotate %8 by %c497_i32 dim 1 : vector<8x512xf32>, i32 -> vector<8x512xf32>
    %56 = vector.broadcast %5 : vector<1x512xf32> to vector<8x512xf32>
    %57 = arith.mulf %55, %56 : vector<8x512xf32>
    %c6_34 = arith.constant 6 : index
    %c0_35 = arith.constant 0 : index
    %c0_36 = arith.constant 0 : index
    %58 = vector.load %arg3[%c6_34, %c0_35, %c0_36] : memref<9x32x8xbf16, #tpu.memory_space<vmem>>, vector<1x32x8xbf16>
    %59 = vector.shape_cast %58 : vector<1x32x8xbf16> to vector<32x8xbf16>
    %60 = arith.truncf %57 : vector<8x512xf32> to vector<8x512xbf16>
    %cst_37 = arith.constant dense<0.000000e+00> : vector<32x512xf32>
    %61 = tpu.matmul %59, %60, %cst_37 {dimension_numbers = #tpu.dot_dimension_numbers<[1], [0], [0], [1], [0, 0, 1, 1], [], []>} : vector<32x8xbf16>, vector<8x512xbf16>, vector<32x512xf32> -> vector<32x512xf32>
    %62 = arith.addf %54, %61 : vector<32x512xf32>
    %c496_i32 = arith.constant 496 : i32
    %63 = tpu.dynamic_rotate %8 by %c496_i32 dim 1 : vector<8x512xf32>, i32 -> vector<8x512xf32>
    %64 = vector.broadcast %6 : vector<1x512xf32> to vector<8x512xf32>
    %65 = arith.mulf %63, %64 : vector<8x512xf32>
    %c7_38 = arith.constant 7 : index
    %c0_39 = arith.constant 0 : index
    %c0_40 = arith.constant 0 : index
    %66 = vector.load %arg3[%c7_38, %c0_39, %c0_40] : memref<9x32x8xbf16, #tpu.memory_space<vmem>>, vector<1x32x8xbf16>
    %67 = vector.shape_cast %66 : vector<1x32x8xbf16> to vector<32x8xbf16>
    %68 = arith.truncf %65 : vector<8x512xf32> to vector<8x512xbf16>
    %cst_41 = arith.constant dense<0.000000e+00> : vector<32x512xf32>
    %69 = tpu.matmul %67, %68, %cst_41 {dimension_numbers = #tpu.dot_dimension_numbers<[1], [0], [0], [1], [0, 0, 1, 1], [], []>} : vector<32x8xbf16>, vector<8x512xbf16>, vector<32x512xf32> -> vector<32x512xf32>
    %70 = arith.addf %62, %69 : vector<32x512xf32>
    %c495_i32 = arith.constant 495 : i32
    %71 = tpu.dynamic_rotate %8 by %c495_i32 dim 1 : vector<8x512xf32>, i32 -> vector<8x512xf32>
    %72 = vector.broadcast %7 : vector<1x512xf32> to vector<8x512xf32>
    %73 = arith.mulf %71, %72 : vector<8x512xf32>
    %c8 = arith.constant 8 : index
    %c0_42 = arith.constant 0 : index
    %c0_43 = arith.constant 0 : index
    %74 = vector.load %arg3[%c8, %c0_42, %c0_43] : memref<9x32x8xbf16, #tpu.memory_space<vmem>>, vector<1x32x8xbf16>
    %75 = vector.shape_cast %74 : vector<1x32x8xbf16> to vector<32x8xbf16>
    %76 = arith.truncf %73 : vector<8x512xf32> to vector<8x512xbf16>
    %cst_44 = arith.constant dense<0.000000e+00> : vector<32x512xf32>
    %77 = tpu.matmul %75, %76, %cst_44 {dimension_numbers = #tpu.dot_dimension_numbers<[1], [0], [0], [1], [0, 0, 1, 1], [], []>} : vector<32x8xbf16>, vector<8x512xbf16>, vector<32x512xf32> -> vector<32x512xf32>
    %78 = arith.addf %70, %77 : vector<32x512xf32>
    %c0_45 = arith.constant 0 : index
    %c0_46 = arith.constant 0 : index
    %79 = vector.load %arg4[%c0_45, %c0_46] : memref<32x1xf32, #tpu.memory_space<vmem>>, vector<32x1xf32>
    %80 = vector.broadcast %79 : vector<32x1xf32> to vector<32x512xf32>
    %81 = arith.addf %78, %80 : vector<32x512xf32>
    %cst_47 = arith.constant 0.000000e+00 : f32
    %82 = vector.broadcast %cst_47 : f32 to vector<32x512xf32>
    %83 = arith.cmpf oge, %81, %82 : vector<32x512xf32>
    %cst_48 = arith.constant 2.000000e-01 : f32
    %84 = vector.broadcast %cst_48 : f32 to vector<32x512xf32>
    %85 = arith.mulf %84, %81 : vector<32x512xf32>
    %86 = arith.select %83, %81, %85 : vector<32x512xi1>, vector<32x512xf32>
    %cst_49 = arith.constant 0.000000e+00 : f32
    %87 = vector.broadcast %cst_49 : f32 to vector<32x512xf32>
    %c17_i32_50 = arith.constant 17 : i32
    %88 = tpu.dynamic_rotate %86 by %c17_i32_50 dim 1 : vector<32x512xf32>, i32 -> vector<32x512xf32>
    %89 = vector.broadcast %0 : vector<1x512xf32> to vector<32x512xf32>
    %90 = arith.mulf %88, %89 : vector<32x512xf32>
    %c0_51 = arith.constant 0 : index
    %c0_52 = arith.constant 0 : index
    %c0_53 = arith.constant 0 : index
    %91 = vector.load %arg5[%c0_51, %c0_52, %c0_53] : memref<9x32x32xbf16, #tpu.memory_space<vmem>>, vector<1x32x32xbf16>
    %92 = vector.shape_cast %91 : vector<1x32x32xbf16> to vector<32x32xbf16>
    %93 = arith.truncf %90 : vector<32x512xf32> to vector<32x512xbf16>
    %cst_54 = arith.constant dense<0.000000e+00> : vector<32x512xf32>
    %94 = tpu.matmul %92, %93, %cst_54 {dimension_numbers = #tpu.dot_dimension_numbers<[1], [0], [0], [1], [0, 0, 1, 1], [], []>} : vector<32x32xbf16>, vector<32x512xbf16>, vector<32x512xf32> -> vector<32x512xf32>
    %95 = arith.addf %87, %94 : vector<32x512xf32>
    %c16_i32_55 = arith.constant 16 : i32
    %96 = tpu.dynamic_rotate %86 by %c16_i32_55 dim 1 : vector<32x512xf32>, i32 -> vector<32x512xf32>
    %97 = vector.broadcast %1 : vector<1x512xf32> to vector<32x512xf32>
    %98 = arith.mulf %96, %97 : vector<32x512xf32>
    %c1_56 = arith.constant 1 : index
    %c0_57 = arith.constant 0 : index
    %c0_58 = arith.constant 0 : index
    %99 = vector.load %arg5[%c1_56, %c0_57, %c0_58] : memref<9x32x32xbf16, #tpu.memory_space<vmem>>, vector<1x32x32xbf16>
    %100 = vector.shape_cast %99 : vector<1x32x32xbf16> to vector<32x32xbf16>
    %101 = arith.truncf %98 : vector<32x512xf32> to vector<32x512xbf16>
    %cst_59 = arith.constant dense<0.000000e+00> : vector<32x512xf32>
    %102 = tpu.matmul %100, %101, %cst_59 {dimension_numbers = #tpu.dot_dimension_numbers<[1], [0], [0], [1], [0, 0, 1, 1], [], []>} : vector<32x32xbf16>, vector<32x512xbf16>, vector<32x512xf32> -> vector<32x512xf32>
    %103 = arith.addf %95, %102 : vector<32x512xf32>
    %c15_i32_60 = arith.constant 15 : i32
    %104 = tpu.dynamic_rotate %86 by %c15_i32_60 dim 1 : vector<32x512xf32>, i32 -> vector<32x512xf32>
    %105 = vector.broadcast %2 : vector<1x512xf32> to vector<32x512xf32>
    %106 = arith.mulf %104, %105 : vector<32x512xf32>
    %c2_61 = arith.constant 2 : index
    %c0_62 = arith.constant 0 : index
    %c0_63 = arith.constant 0 : index
    %107 = vector.load %arg5[%c2_61, %c0_62, %c0_63] : memref<9x32x32xbf16, #tpu.memory_space<vmem>>, vector<1x32x32xbf16>
    %108 = vector.shape_cast %107 : vector<1x32x32xbf16> to vector<32x32xbf16>
    %109 = arith.truncf %106 : vector<32x512xf32> to vector<32x512xbf16>
    %cst_64 = arith.constant dense<0.000000e+00> : vector<32x512xf32>
    %110 = tpu.matmul %108, %109, %cst_64 {dimension_numbers = #tpu.dot_dimension_numbers<[1], [0], [0], [1], [0, 0, 1, 1], [], []>} : vector<32x32xbf16>, vector<32x512xbf16>, vector<32x512xf32> -> vector<32x512xf32>
    %111 = arith.addf %103, %110 : vector<32x512xf32>
    %c1_i32_65 = arith.constant 1 : i32
    %112 = tpu.dynamic_rotate %86 by %c1_i32_65 dim 1 : vector<32x512xf32>, i32 -> vector<32x512xf32>
    %113 = vector.broadcast %3 : vector<1x512xf32> to vector<32x512xf32>
    %114 = arith.mulf %112, %113 : vector<32x512xf32>
    %c3_66 = arith.constant 3 : index
    %c0_67 = arith.constant 0 : index
    %c0_68 = arith.constant 0 : index
    %115 = vector.load %arg5[%c3_66, %c0_67, %c0_68] : memref<9x32x32xbf16, #tpu.memory_space<vmem>>, vector<1x32x32xbf16>
    %116 = vector.shape_cast %115 : vector<1x32x32xbf16> to vector<32x32xbf16>
    %117 = arith.truncf %114 : vector<32x512xf32> to vector<32x512xbf16>
    %cst_69 = arith.constant dense<0.000000e+00> : vector<32x512xf32>
    %118 = tpu.matmul %116, %117, %cst_69 {dimension_numbers = #tpu.dot_dimension_numbers<[1], [0], [0], [1], [0, 0, 1, 1], [], []>} : vector<32x32xbf16>, vector<32x512xbf16>, vector<32x512xf32> -> vector<32x512xf32>
    %119 = arith.addf %111, %118 : vector<32x512xf32>
    %c4_70 = arith.constant 4 : index
    %c0_71 = arith.constant 0 : index
    %c0_72 = arith.constant 0 : index
    %120 = vector.load %arg5[%c4_70, %c0_71, %c0_72] : memref<9x32x32xbf16, #tpu.memory_space<vmem>>, vector<1x32x32xbf16>
    %121 = vector.shape_cast %120 : vector<1x32x32xbf16> to vector<32x32xbf16>
    %122 = arith.truncf %86 : vector<32x512xf32> to vector<32x512xbf16>
    %cst_73 = arith.constant dense<0.000000e+00> : vector<32x512xf32>
    %123 = tpu.matmul %121, %122, %cst_73 {dimension_numbers = #tpu.dot_dimension_numbers<[1], [0], [0], [1], [0, 0, 1, 1], [], []>} : vector<32x32xbf16>, vector<32x512xbf16>, vector<32x512xf32> -> vector<32x512xf32>
    %124 = arith.addf %119, %123 : vector<32x512xf32>
    %c511_i32_74 = arith.constant 511 : i32
    %125 = tpu.dynamic_rotate %86 by %c511_i32_74 dim 1 : vector<32x512xf32>, i32 -> vector<32x512xf32>
    %126 = vector.broadcast %4 : vector<1x512xf32> to vector<32x512xf32>
    %127 = arith.mulf %125, %126 : vector<32x512xf32>
    %c5_75 = arith.constant 5 : index
    %c0_76 = arith.constant 0 : index
    %c0_77 = arith.constant 0 : index
    %128 = vector.load %arg5[%c5_75, %c0_76, %c0_77] : memref<9x32x32xbf16, #tpu.memory_space<vmem>>, vector<1x32x32xbf16>
    %129 = vector.shape_cast %128 : vector<1x32x32xbf16> to vector<32x32xbf16>
    %130 = arith.truncf %127 : vector<32x512xf32> to vector<32x512xbf16>
    %cst_78 = arith.constant dense<0.000000e+00> : vector<32x512xf32>
    %131 = tpu.matmul %129, %130, %cst_78 {dimension_numbers = #tpu.dot_dimension_numbers<[1], [0], [0], [1], [0, 0, 1, 1], [], []>} : vector<32x32xbf16>, vector<32x512xbf16>, vector<32x512xf32> -> vector<32x512xf32>
    %132 = arith.addf %124, %131 : vector<32x512xf32>
    %c497_i32_79 = arith.constant 497 : i32
    %133 = tpu.dynamic_rotate %86 by %c497_i32_79 dim 1 : vector<32x512xf32>, i32 -> vector<32x512xf32>
    %134 = vector.broadcast %5 : vector<1x512xf32> to vector<32x512xf32>
    %135 = arith.mulf %133, %134 : vector<32x512xf32>
    %c6_80 = arith.constant 6 : index
    %c0_81 = arith.constant 0 : index
    %c0_82 = arith.constant 0 : index
    %136 = vector.load %arg5[%c6_80, %c0_81, %c0_82] : memref<9x32x32xbf16, #tpu.memory_space<vmem>>, vector<1x32x32xbf16>
    %137 = vector.shape_cast %136 : vector<1x32x32xbf16> to vector<32x32xbf16>
    %138 = arith.truncf %135 : vector<32x512xf32> to vector<32x512xbf16>
    %cst_83 = arith.constant dense<0.000000e+00> : vector<32x512xf32>
    %139 = tpu.matmul %137, %138, %cst_83 {dimension_numbers = #tpu.dot_dimension_numbers<[1], [0], [0], [1], [0, 0, 1, 1], [], []>} : vector<32x32xbf16>, vector<32x512xbf16>, vector<32x512xf32> -> vector<32x512xf32>
    %140 = arith.addf %132, %139 : vector<32x512xf32>
    %c496_i32_84 = arith.constant 496 : i32
    %141 = tpu.dynamic_rotate %86 by %c496_i32_84 dim 1 : vector<32x512xf32>, i32 -> vector<32x512xf32>
    %142 = vector.broadcast %6 : vector<1x512xf32> to vector<32x512xf32>
    %143 = arith.mulf %141, %142 : vector<32x512xf32>
    %c7_85 = arith.constant 7 : index
    %c0_86 = arith.constant 0 : index
    %c0_87 = arith.constant 0 : index
    %144 = vector.load %arg5[%c7_85, %c0_86, %c0_87] : memref<9x32x32xbf16, #tpu.memory_space<vmem>>, vector<1x32x32xbf16>
    %145 = vector.shape_cast %144 : vector<1x32x32xbf16> to vector<32x32xbf16>
    %146 = arith.truncf %143 : vector<32x512xf32> to vector<32x512xbf16>
    %cst_88 = arith.constant dense<0.000000e+00> : vector<32x512xf32>
    %147 = tpu.matmul %145, %146, %cst_88 {dimension_numbers = #tpu.dot_dimension_numbers<[1], [0], [0], [1], [0, 0, 1, 1], [], []>} : vector<32x32xbf16>, vector<32x512xbf16>, vector<32x512xf32> -> vector<32x512xf32>
    %148 = arith.addf %140, %147 : vector<32x512xf32>
    %c495_i32_89 = arith.constant 495 : i32
    %149 = tpu.dynamic_rotate %86 by %c495_i32_89 dim 1 : vector<32x512xf32>, i32 -> vector<32x512xf32>
    %150 = vector.broadcast %7 : vector<1x512xf32> to vector<32x512xf32>
    %151 = arith.mulf %149, %150 : vector<32x512xf32>
    %c8_90 = arith.constant 8 : index
    %c0_91 = arith.constant 0 : index
    %c0_92 = arith.constant 0 : index
    %152 = vector.load %arg5[%c8_90, %c0_91, %c0_92] : memref<9x32x32xbf16, #tpu.memory_space<vmem>>, vector<1x32x32xbf16>
    %153 = vector.shape_cast %152 : vector<1x32x32xbf16> to vector<32x32xbf16>
    %154 = arith.truncf %151 : vector<32x512xf32> to vector<32x512xbf16>
    %cst_93 = arith.constant dense<0.000000e+00> : vector<32x512xf32>
    %155 = tpu.matmul %153, %154, %cst_93 {dimension_numbers = #tpu.dot_dimension_numbers<[1], [0], [0], [1], [0, 0, 1, 1], [], []>} : vector<32x32xbf16>, vector<32x512xbf16>, vector<32x512xf32> -> vector<32x512xf32>
    %156 = arith.addf %148, %155 : vector<32x512xf32>
    %c0_94 = arith.constant 0 : index
    %c0_95 = arith.constant 0 : index
    %157 = vector.load %arg6[%c0_94, %c0_95] : memref<32x1xf32, #tpu.memory_space<vmem>>, vector<32x1xf32>
    %158 = vector.broadcast %157 : vector<32x1xf32> to vector<32x512xf32>
    %159 = arith.addf %156, %158 : vector<32x512xf32>
    %cst_96 = arith.constant 0.000000e+00 : f32
    %160 = vector.broadcast %cst_96 : f32 to vector<32x512xf32>
    %161 = arith.cmpf oge, %159, %160 : vector<32x512xf32>
    %cst_97 = arith.constant 2.000000e-01 : f32
    %162 = vector.broadcast %cst_97 : f32 to vector<32x512xf32>
    %163 = arith.mulf %162, %159 : vector<32x512xf32>
    %164 = arith.select %161, %159, %163 : vector<32x512xi1>, vector<32x512xf32>
    %cst_98 = arith.constant 0.000000e+00 : f32
    %165 = vector.broadcast %cst_98 : f32 to vector<32x512xf32>
    %c17_i32_99 = arith.constant 17 : i32
    %166 = tpu.dynamic_rotate %164 by %c17_i32_99 dim 1 : vector<32x512xf32>, i32 -> vector<32x512xf32>
    %167 = vector.broadcast %0 : vector<1x512xf32> to vector<32x512xf32>
    %168 = arith.mulf %166, %167 : vector<32x512xf32>
    %c0_100 = arith.constant 0 : index
    %c0_101 = arith.constant 0 : index
    %c0_102 = arith.constant 0 : index
    %169 = vector.load %arg7[%c0_100, %c0_101, %c0_102] : memref<9x32x32xbf16, #tpu.memory_space<vmem>>, vector<1x32x32xbf16>
    %170 = vector.shape_cast %169 : vector<1x32x32xbf16> to vector<32x32xbf16>
    %171 = arith.truncf %168 : vector<32x512xf32> to vector<32x512xbf16>
    %cst_103 = arith.constant dense<0.000000e+00> : vector<32x512xf32>
    %172 = tpu.matmul %170, %171, %cst_103 {dimension_numbers = #tpu.dot_dimension_numbers<[1], [0], [0], [1], [0, 0, 1, 1], [], []>} : vector<32x32xbf16>, vector<32x512xbf16>, vector<32x512xf32> -> vector<32x512xf32>
    %173 = arith.addf %165, %172 : vector<32x512xf32>
    %c16_i32_104 = arith.constant 16 : i32
    %174 = tpu.dynamic_rotate %164 by %c16_i32_104 dim 1 : vector<32x512xf32>, i32 -> vector<32x512xf32>
    %175 = vector.broadcast %1 : vector<1x512xf32> to vector<32x512xf32>
    %176 = arith.mulf %174, %175 : vector<32x512xf32>
    %c1_105 = arith.constant 1 : index
    %c0_106 = arith.constant 0 : index
    %c0_107 = arith.constant 0 : index
    %177 = vector.load %arg7[%c1_105, %c0_106, %c0_107] : memref<9x32x32xbf16, #tpu.memory_space<vmem>>, vector<1x32x32xbf16>
    %178 = vector.shape_cast %177 : vector<1x32x32xbf16> to vector<32x32xbf16>
    %179 = arith.truncf %176 : vector<32x512xf32> to vector<32x512xbf16>
    %cst_108 = arith.constant dense<0.000000e+00> : vector<32x512xf32>
    %180 = tpu.matmul %178, %179, %cst_108 {dimension_numbers = #tpu.dot_dimension_numbers<[1], [0], [0], [1], [0, 0, 1, 1], [], []>} : vector<32x32xbf16>, vector<32x512xbf16>, vector<32x512xf32> -> vector<32x512xf32>
    %181 = arith.addf %173, %180 : vector<32x512xf32>
    %c15_i32_109 = arith.constant 15 : i32
    %182 = tpu.dynamic_rotate %164 by %c15_i32_109 dim 1 : vector<32x512xf32>, i32 -> vector<32x512xf32>
    %183 = vector.broadcast %2 : vector<1x512xf32> to vector<32x512xf32>
    %184 = arith.mulf %182, %183 : vector<32x512xf32>
    %c2_110 = arith.constant 2 : index
    %c0_111 = arith.constant 0 : index
    %c0_112 = arith.constant 0 : index
    %185 = vector.load %arg7[%c2_110, %c0_111, %c0_112] : memref<9x32x32xbf16, #tpu.memory_space<vmem>>, vector<1x32x32xbf16>
    %186 = vector.shape_cast %185 : vector<1x32x32xbf16> to vector<32x32xbf16>
    %187 = arith.truncf %184 : vector<32x512xf32> to vector<32x512xbf16>
    %cst_113 = arith.constant dense<0.000000e+00> : vector<32x512xf32>
    %188 = tpu.matmul %186, %187, %cst_113 {dimension_numbers = #tpu.dot_dimension_numbers<[1], [0], [0], [1], [0, 0, 1, 1], [], []>} : vector<32x32xbf16>, vector<32x512xbf16>, vector<32x512xf32> -> vector<32x512xf32>
    %189 = arith.addf %181, %188 : vector<32x512xf32>
    %c1_i32_114 = arith.constant 1 : i32
    %190 = tpu.dynamic_rotate %164 by %c1_i32_114 dim 1 : vector<32x512xf32>, i32 -> vector<32x512xf32>
    %191 = vector.broadcast %3 : vector<1x512xf32> to vector<32x512xf32>
    %192 = arith.mulf %190, %191 : vector<32x512xf32>
    %c3_115 = arith.constant 3 : index
    %c0_116 = arith.constant 0 : index
    %c0_117 = arith.constant 0 : index
    %193 = vector.load %arg7[%c3_115, %c0_116, %c0_117] : memref<9x32x32xbf16, #tpu.memory_space<vmem>>, vector<1x32x32xbf16>
    %194 = vector.shape_cast %193 : vector<1x32x32xbf16> to vector<32x32xbf16>
    %195 = arith.truncf %192 : vector<32x512xf32> to vector<32x512xbf16>
    %cst_118 = arith.constant dense<0.000000e+00> : vector<32x512xf32>
    %196 = tpu.matmul %194, %195, %cst_118 {dimension_numbers = #tpu.dot_dimension_numbers<[1], [0], [0], [1], [0, 0, 1, 1], [], []>} : vector<32x32xbf16>, vector<32x512xbf16>, vector<32x512xf32> -> vector<32x512xf32>
    %197 = arith.addf %189, %196 : vector<32x512xf32>
    %c4_119 = arith.constant 4 : index
    %c0_120 = arith.constant 0 : index
    %c0_121 = arith.constant 0 : index
    %198 = vector.load %arg7[%c4_119, %c0_120, %c0_121] : memref<9x32x32xbf16, #tpu.memory_space<vmem>>, vector<1x32x32xbf16>
    %199 = vector.shape_cast %198 : vector<1x32x32xbf16> to vector<32x32xbf16>
    %200 = arith.truncf %164 : vector<32x512xf32> to vector<32x512xbf16>
    %cst_122 = arith.constant dense<0.000000e+00> : vector<32x512xf32>
    %201 = tpu.matmul %199, %200, %cst_122 {dimension_numbers = #tpu.dot_dimension_numbers<[1], [0], [0], [1], [0, 0, 1, 1], [], []>} : vector<32x32xbf16>, vector<32x512xbf16>, vector<32x512xf32> -> vector<32x512xf32>
    %202 = arith.addf %197, %201 : vector<32x512xf32>
    %c511_i32_123 = arith.constant 511 : i32
    %203 = tpu.dynamic_rotate %164 by %c511_i32_123 dim 1 : vector<32x512xf32>, i32 -> vector<32x512xf32>
    %204 = vector.broadcast %4 : vector<1x512xf32> to vector<32x512xf32>
    %205 = arith.mulf %203, %204 : vector<32x512xf32>
    %c5_124 = arith.constant 5 : index
    %c0_125 = arith.constant 0 : index
    %c0_126 = arith.constant 0 : index
    %206 = vector.load %arg7[%c5_124, %c0_125, %c0_126] : memref<9x32x32xbf16, #tpu.memory_space<vmem>>, vector<1x32x32xbf16>
    %207 = vector.shape_cast %206 : vector<1x32x32xbf16> to vector<32x32xbf16>
    %208 = arith.truncf %205 : vector<32x512xf32> to vector<32x512xbf16>
    %cst_127 = arith.constant dense<0.000000e+00> : vector<32x512xf32>
    %209 = tpu.matmul %207, %208, %cst_127 {dimension_numbers = #tpu.dot_dimension_numbers<[1], [0], [0], [1], [0, 0, 1, 1], [], []>} : vector<32x32xbf16>, vector<32x512xbf16>, vector<32x512xf32> -> vector<32x512xf32>
    %210 = arith.addf %202, %209 : vector<32x512xf32>
    %c497_i32_128 = arith.constant 497 : i32
    %211 = tpu.dynamic_rotate %164 by %c497_i32_128 dim 1 : vector<32x512xf32>, i32 -> vector<32x512xf32>
    %212 = vector.broadcast %5 : vector<1x512xf32> to vector<32x512xf32>
    %213 = arith.mulf %211, %212 : vector<32x512xf32>
    %c6_129 = arith.constant 6 : index
    %c0_130 = arith.constant 0 : index
    %c0_131 = arith.constant 0 : index
    %214 = vector.load %arg7[%c6_129, %c0_130, %c0_131] : memref<9x32x32xbf16, #tpu.memory_space<vmem>>, vector<1x32x32xbf16>
    %215 = vector.shape_cast %214 : vector<1x32x32xbf16> to vector<32x32xbf16>
    %216 = arith.truncf %213 : vector<32x512xf32> to vector<32x512xbf16>
    %cst_132 = arith.constant dense<0.000000e+00> : vector<32x512xf32>
    %217 = tpu.matmul %215, %216, %cst_132 {dimension_numbers = #tpu.dot_dimension_numbers<[1], [0], [0], [1], [0, 0, 1, 1], [], []>} : vector<32x32xbf16>, vector<32x512xbf16>, vector<32x512xf32> -> vector<32x512xf32>
    %218 = arith.addf %210, %217 : vector<32x512xf32>
    %c496_i32_133 = arith.constant 496 : i32
    %219 = tpu.dynamic_rotate %164 by %c496_i32_133 dim 1 : vector<32x512xf32>, i32 -> vector<32x512xf32>
    %220 = vector.broadcast %6 : vector<1x512xf32> to vector<32x512xf32>
    %221 = arith.mulf %219, %220 : vector<32x512xf32>
    %c7_134 = arith.constant 7 : index
    %c0_135 = arith.constant 0 : index
    %c0_136 = arith.constant 0 : index
    %222 = vector.load %arg7[%c7_134, %c0_135, %c0_136] : memref<9x32x32xbf16, #tpu.memory_space<vmem>>, vector<1x32x32xbf16>
    %223 = vector.shape_cast %222 : vector<1x32x32xbf16> to vector<32x32xbf16>
    %224 = arith.truncf %221 : vector<32x512xf32> to vector<32x512xbf16>
    %cst_137 = arith.constant dense<0.000000e+00> : vector<32x512xf32>
    %225 = tpu.matmul %223, %224, %cst_137 {dimension_numbers = #tpu.dot_dimension_numbers<[1], [0], [0], [1], [0, 0, 1, 1], [], []>} : vector<32x32xbf16>, vector<32x512xbf16>, vector<32x512xf32> -> vector<32x512xf32>
    %226 = arith.addf %218, %225 : vector<32x512xf32>
    %c495_i32_138 = arith.constant 495 : i32
    %227 = tpu.dynamic_rotate %164 by %c495_i32_138 dim 1 : vector<32x512xf32>, i32 -> vector<32x512xf32>
    %228 = vector.broadcast %7 : vector<1x512xf32> to vector<32x512xf32>
    %229 = arith.mulf %227, %228 : vector<32x512xf32>
    %c8_139 = arith.constant 8 : index
    %c0_140 = arith.constant 0 : index
    %c0_141 = arith.constant 0 : index
    %230 = vector.load %arg7[%c8_139, %c0_140, %c0_141] : memref<9x32x32xbf16, #tpu.memory_space<vmem>>, vector<1x32x32xbf16>
    %231 = vector.shape_cast %230 : vector<1x32x32xbf16> to vector<32x32xbf16>
    %232 = arith.truncf %229 : vector<32x512xf32> to vector<32x512xbf16>
    %cst_142 = arith.constant dense<0.000000e+00> : vector<32x512xf32>
    %233 = tpu.matmul %231, %232, %cst_142 {dimension_numbers = #tpu.dot_dimension_numbers<[1], [0], [0], [1], [0, 0, 1, 1], [], []>} : vector<32x32xbf16>, vector<32x512xbf16>, vector<32x512xf32> -> vector<32x512xf32>
    %234 = arith.addf %226, %233 : vector<32x512xf32>
    %c0_143 = arith.constant 0 : index
    %c0_144 = arith.constant 0 : index
    %235 = vector.load %arg8[%c0_143, %c0_144] : memref<32x1xf32, #tpu.memory_space<vmem>>, vector<32x1xf32>
    %236 = vector.broadcast %235 : vector<32x1xf32> to vector<32x512xf32>
    %237 = arith.addf %234, %236 : vector<32x512xf32>
    %cst_145 = arith.constant 0.000000e+00 : f32
    %238 = vector.broadcast %cst_145 : f32 to vector<32x512xf32>
    %239 = arith.cmpf oge, %237, %238 : vector<32x512xf32>
    %cst_146 = arith.constant 2.000000e-01 : f32
    %240 = vector.broadcast %cst_146 : f32 to vector<32x512xf32>
    %241 = arith.mulf %240, %237 : vector<32x512xf32>
    %242 = arith.select %239, %237, %241 : vector<32x512xi1>, vector<32x512xf32>
    %cst_147 = arith.constant 0.000000e+00 : f32
    %243 = vector.broadcast %cst_147 : f32 to vector<8x512xf32>
    %c17_i32_148 = arith.constant 17 : i32
    %244 = tpu.dynamic_rotate %242 by %c17_i32_148 dim 1 : vector<32x512xf32>, i32 -> vector<32x512xf32>
    %245 = vector.broadcast %0 : vector<1x512xf32> to vector<32x512xf32>
    %246 = arith.mulf %244, %245 : vector<32x512xf32>
    %c0_149 = arith.constant 0 : index
    %c0_150 = arith.constant 0 : index
    %c0_151 = arith.constant 0 : index
    %247 = vector.load %arg9[%c0_149, %c0_150, %c0_151] : memref<9x8x32xbf16, #tpu.memory_space<vmem>>, vector<1x8x32xbf16>
    %248 = vector.shape_cast %247 : vector<1x8x32xbf16> to vector<8x32xbf16>
    %249 = arith.truncf %246 : vector<32x512xf32> to vector<32x512xbf16>
    %cst_152 = arith.constant dense<0.000000e+00> : vector<8x512xf32>
    %250 = tpu.matmul %248, %249, %cst_152 {dimension_numbers = #tpu.dot_dimension_numbers<[1], [0], [0], [1], [0, 0, 1, 1], [], []>} : vector<8x32xbf16>, vector<32x512xbf16>, vector<8x512xf32> -> vector<8x512xf32>
    %251 = arith.addf %243, %250 : vector<8x512xf32>
    %c16_i32_153 = arith.constant 16 : i32
    %252 = tpu.dynamic_rotate %242 by %c16_i32_153 dim 1 : vector<32x512xf32>, i32 -> vector<32x512xf32>
    %253 = vector.broadcast %1 : vector<1x512xf32> to vector<32x512xf32>
    %254 = arith.mulf %252, %253 : vector<32x512xf32>
    %c1_154 = arith.constant 1 : index
    %c0_155 = arith.constant 0 : index
    %c0_156 = arith.constant 0 : index
    %255 = vector.load %arg9[%c1_154, %c0_155, %c0_156] : memref<9x8x32xbf16, #tpu.memory_space<vmem>>, vector<1x8x32xbf16>
    %256 = vector.shape_cast %255 : vector<1x8x32xbf16> to vector<8x32xbf16>
    %257 = arith.truncf %254 : vector<32x512xf32> to vector<32x512xbf16>
    %cst_157 = arith.constant dense<0.000000e+00> : vector<8x512xf32>
    %258 = tpu.matmul %256, %257, %cst_157 {dimension_numbers = #tpu.dot_dimension_numbers<[1], [0], [0], [1], [0, 0, 1, 1], [], []>} : vector<8x32xbf16>, vector<32x512xbf16>, vector<8x512xf32> -> vector<8x512xf32>
    %259 = arith.addf %251, %258 : vector<8x512xf32>
    %c15_i32_158 = arith.constant 15 : i32
    %260 = tpu.dynamic_rotate %242 by %c15_i32_158 dim 1 : vector<32x512xf32>, i32 -> vector<32x512xf32>
    %261 = vector.broadcast %2 : vector<1x512xf32> to vector<32x512xf32>
    %262 = arith.mulf %260, %261 : vector<32x512xf32>
    %c2_159 = arith.constant 2 : index
    %c0_160 = arith.constant 0 : index
    %c0_161 = arith.constant 0 : index
    %263 = vector.load %arg9[%c2_159, %c0_160, %c0_161] : memref<9x8x32xbf16, #tpu.memory_space<vmem>>, vector<1x8x32xbf16>
    %264 = vector.shape_cast %263 : vector<1x8x32xbf16> to vector<8x32xbf16>
    %265 = arith.truncf %262 : vector<32x512xf32> to vector<32x512xbf16>
    %cst_162 = arith.constant dense<0.000000e+00> : vector<8x512xf32>
    %266 = tpu.matmul %264, %265, %cst_162 {dimension_numbers = #tpu.dot_dimension_numbers<[1], [0], [0], [1], [0, 0, 1, 1], [], []>} : vector<8x32xbf16>, vector<32x512xbf16>, vector<8x512xf32> -> vector<8x512xf32>
    %267 = arith.addf %259, %266 : vector<8x512xf32>
    %c1_i32_163 = arith.constant 1 : i32
    %268 = tpu.dynamic_rotate %242 by %c1_i32_163 dim 1 : vector<32x512xf32>, i32 -> vector<32x512xf32>
    %269 = vector.broadcast %3 : vector<1x512xf32> to vector<32x512xf32>
    %270 = arith.mulf %268, %269 : vector<32x512xf32>
    %c3_164 = arith.constant 3 : index
    %c0_165 = arith.constant 0 : index
    %c0_166 = arith.constant 0 : index
    %271 = vector.load %arg9[%c3_164, %c0_165, %c0_166] : memref<9x8x32xbf16, #tpu.memory_space<vmem>>, vector<1x8x32xbf16>
    %272 = vector.shape_cast %271 : vector<1x8x32xbf16> to vector<8x32xbf16>
    %273 = arith.truncf %270 : vector<32x512xf32> to vector<32x512xbf16>
    %cst_167 = arith.constant dense<0.000000e+00> : vector<8x512xf32>
    %274 = tpu.matmul %272, %273, %cst_167 {dimension_numbers = #tpu.dot_dimension_numbers<[1], [0], [0], [1], [0, 0, 1, 1], [], []>} : vector<8x32xbf16>, vector<32x512xbf16>, vector<8x512xf32> -> vector<8x512xf32>
    %275 = arith.addf %267, %274 : vector<8x512xf32>
    %c4_168 = arith.constant 4 : index
    %c0_169 = arith.constant 0 : index
    %c0_170 = arith.constant 0 : index
    %276 = vector.load %arg9[%c4_168, %c0_169, %c0_170] : memref<9x8x32xbf16, #tpu.memory_space<vmem>>, vector<1x8x32xbf16>
    %277 = vector.shape_cast %276 : vector<1x8x32xbf16> to vector<8x32xbf16>
    %278 = arith.truncf %242 : vector<32x512xf32> to vector<32x512xbf16>
    %cst_171 = arith.constant dense<0.000000e+00> : vector<8x512xf32>
    %279 = tpu.matmul %277, %278, %cst_171 {dimension_numbers = #tpu.dot_dimension_numbers<[1], [0], [0], [1], [0, 0, 1, 1], [], []>} : vector<8x32xbf16>, vector<32x512xbf16>, vector<8x512xf32> -> vector<8x512xf32>
    %280 = arith.addf %275, %279 : vector<8x512xf32>
    %c511_i32_172 = arith.constant 511 : i32
    %281 = tpu.dynamic_rotate %242 by %c511_i32_172 dim 1 : vector<32x512xf32>, i32 -> vector<32x512xf32>
    %282 = vector.broadcast %4 : vector<1x512xf32> to vector<32x512xf32>
    %283 = arith.mulf %281, %282 : vector<32x512xf32>
    %c5_173 = arith.constant 5 : index
    %c0_174 = arith.constant 0 : index
    %c0_175 = arith.constant 0 : index
    %284 = vector.load %arg9[%c5_173, %c0_174, %c0_175] : memref<9x8x32xbf16, #tpu.memory_space<vmem>>, vector<1x8x32xbf16>
    %285 = vector.shape_cast %284 : vector<1x8x32xbf16> to vector<8x32xbf16>
    %286 = arith.truncf %283 : vector<32x512xf32> to vector<32x512xbf16>
    %cst_176 = arith.constant dense<0.000000e+00> : vector<8x512xf32>
    %287 = tpu.matmul %285, %286, %cst_176 {dimension_numbers = #tpu.dot_dimension_numbers<[1], [0], [0], [1], [0, 0, 1, 1], [], []>} : vector<8x32xbf16>, vector<32x512xbf16>, vector<8x512xf32> -> vector<8x512xf32>
    %288 = arith.addf %280, %287 : vector<8x512xf32>
    %c497_i32_177 = arith.constant 497 : i32
    %289 = tpu.dynamic_rotate %242 by %c497_i32_177 dim 1 : vector<32x512xf32>, i32 -> vector<32x512xf32>
    %290 = vector.broadcast %5 : vector<1x512xf32> to vector<32x512xf32>
    %291 = arith.mulf %289, %290 : vector<32x512xf32>
    %c6_178 = arith.constant 6 : index
    %c0_179 = arith.constant 0 : index
    %c0_180 = arith.constant 0 : index
    %292 = vector.load %arg9[%c6_178, %c0_179, %c0_180] : memref<9x8x32xbf16, #tpu.memory_space<vmem>>, vector<1x8x32xbf16>
    %293 = vector.shape_cast %292 : vector<1x8x32xbf16> to vector<8x32xbf16>
    %294 = arith.truncf %291 : vector<32x512xf32> to vector<32x512xbf16>
    %cst_181 = arith.constant dense<0.000000e+00> : vector<8x512xf32>
    %295 = tpu.matmul %293, %294, %cst_181 {dimension_numbers = #tpu.dot_dimension_numbers<[1], [0], [0], [1], [0, 0, 1, 1], [], []>} : vector<8x32xbf16>, vector<32x512xbf16>, vector<8x512xf32> -> vector<8x512xf32>
    %296 = arith.addf %288, %295 : vector<8x512xf32>
    %c496_i32_182 = arith.constant 496 : i32
    %297 = tpu.dynamic_rotate %242 by %c496_i32_182 dim 1 : vector<32x512xf32>, i32 -> vector<32x512xf32>
    %298 = vector.broadcast %6 : vector<1x512xf32> to vector<32x512xf32>
    %299 = arith.mulf %297, %298 : vector<32x512xf32>
    %c7_183 = arith.constant 7 : index
    %c0_184 = arith.constant 0 : index
    %c0_185 = arith.constant 0 : index
    %300 = vector.load %arg9[%c7_183, %c0_184, %c0_185] : memref<9x8x32xbf16, #tpu.memory_space<vmem>>, vector<1x8x32xbf16>
    %301 = vector.shape_cast %300 : vector<1x8x32xbf16> to vector<8x32xbf16>
    %302 = arith.truncf %299 : vector<32x512xf32> to vector<32x512xbf16>
    %cst_186 = arith.constant dense<0.000000e+00> : vector<8x512xf32>
    %303 = tpu.matmul %301, %302, %cst_186 {dimension_numbers = #tpu.dot_dimension_numbers<[1], [0], [0], [1], [0, 0, 1, 1], [], []>} : vector<8x32xbf16>, vector<32x512xbf16>, vector<8x512xf32> -> vector<8x512xf32>
    %304 = arith.addf %296, %303 : vector<8x512xf32>
    %c495_i32_187 = arith.constant 495 : i32
    %305 = tpu.dynamic_rotate %242 by %c495_i32_187 dim 1 : vector<32x512xf32>, i32 -> vector<32x512xf32>
    %306 = vector.broadcast %7 : vector<1x512xf32> to vector<32x512xf32>
    %307 = arith.mulf %305, %306 : vector<32x512xf32>
    %c8_188 = arith.constant 8 : index
    %c0_189 = arith.constant 0 : index
    %c0_190 = arith.constant 0 : index
    %308 = vector.load %arg9[%c8_188, %c0_189, %c0_190] : memref<9x8x32xbf16, #tpu.memory_space<vmem>>, vector<1x8x32xbf16>
    %309 = vector.shape_cast %308 : vector<1x8x32xbf16> to vector<8x32xbf16>
    %310 = arith.truncf %307 : vector<32x512xf32> to vector<32x512xbf16>
    %cst_191 = arith.constant dense<0.000000e+00> : vector<8x512xf32>
    %311 = tpu.matmul %309, %310, %cst_191 {dimension_numbers = #tpu.dot_dimension_numbers<[1], [0], [0], [1], [0, 0, 1, 1], [], []>} : vector<8x32xbf16>, vector<32x512xbf16>, vector<8x512xf32> -> vector<8x512xf32>
    %312 = arith.addf %304, %311 : vector<8x512xf32>
    %c0_192 = arith.constant 0 : index
    %c0_193 = arith.constant 0 : index
    %313 = vector.load %arg10[%c0_192, %c0_193] : memref<8x1xf32, #tpu.memory_space<vmem>>, vector<8x1xf32>
    %314 = vector.broadcast %313 : vector<8x1xf32> to vector<8x512xf32>
    %315 = arith.addf %312, %314 : vector<8x512xf32>
    %cst_194 = arith.constant 0.000000e+00 : f32
    %316 = vector.broadcast %cst_194 : f32 to vector<8x512xf32>
    %317 = arith.maximumf %315, %316 : vector<8x512xf32>
    %c0_195 = arith.constant 0 : index
    %c0_196 = arith.constant 0 : index
    %318 = vector.load %arg11[%c0_195, %c0_196] : memref<8x512xf32, #tpu.memory_space<vmem>>, vector<8x512xf32>
    tpu.vector_store %arg11[%c0_195, %c0_196], %317 {strides = array<i32>} : memref<8x512xf32, #tpu.memory_space<vmem>>, vector<8x512xf32>,
    return
  }
  func.func @transform_0(%arg0: i32) -> (i32, i32) {
    %c0_i32 = arith.constant 0 : i32
    %c0_i32_0 = arith.constant 0 : i32
    return %c0_i32, %arg0 : i32, i32
  }
  func.func @transform_1(%arg0: i32) -> (i32, i32) {
    %c0_i32 = arith.constant 0 : i32
    %c0_i32_0 = arith.constant 0 : i32
    %c0_i32_1 = arith.constant 0 : i32
    return %c0_i32, %c0_i32_0 : i32, i32
  }
  func.func @transform_2(%arg0: i32) -> (i32, i32, i32) {
    %c0_i32 = arith.constant 0 : i32
    %c0_i32_0 = arith.constant 0 : i32
    %c0_i32_1 = arith.constant 0 : i32
    %c0_i32_2 = arith.constant 0 : i32
    return %c0_i32, %c0_i32_0, %c0_i32_1 : i32, i32, i32
  }
  func.func @transform_3(%arg0: i32) -> (i32, i32) {
    %c0_i32 = arith.constant 0 : i32
    %c0_i32_0 = arith.constant 0 : i32
    %c0_i32_1 = arith.constant 0 : i32
    return %c0_i32, %c0_i32_0 : i32, i32
  }
  func.func @transform_4(%arg0: i32) -> (i32, i32, i32) {
    %c0_i32 = arith.constant 0 : i32
    %c0_i32_0 = arith.constant 0 : i32
    %c0_i32_1 = arith.constant 0 : i32
    %c0_i32_2 = arith.constant 0 : i32
    return %c0_i32, %c0_i32_0, %c0_i32_1 : i32, i32, i32
  }
  func.func @transform_5(%arg0: i32) -> (i32, i32) {
    %c0_i32 = arith.constant 0 : i32
    %c0_i32_0 = arith.constant 0 : i32
    %c0_i32_1 = arith.constant 0 : i32
    return %c0_i32, %c0_i32_0 : i32, i32
  }
  func.func @transform_6(%arg0: i32) -> (i32, i32, i32) {
    %c0_i32 = arith.constant 0 : i32
    %c0_i32_0 = arith.constant 0 : i32
    %c0_i32_1 = arith.constant 0 : i32
    %c0_i32_2 = arith.constant 0 : i32
    return %c0_i32, %c0_i32_0, %c0_i32_1 : i32, i32, i32
  }
  func.func @transform_7(%arg0: i32) -> (i32, i32) {
    %c0_i32 = arith.constant 0 : i32
    %c0_i32_0 = arith.constant 0 : i32
    %c0_i32_1 = arith.constant 0 : i32
    return %c0_i32, %c0_i32_0 : i32, i32
  }
  func.func @transform_8(%arg0: i32) -> (i32, i32, i32) {
    %c0_i32 = arith.constant 0 : i32
    %c0_i32_0 = arith.constant 0 : i32
    %c0_i32_1 = arith.constant 0 : i32
    %c0_i32_2 = arith.constant 0 : i32
    return %c0_i32, %c0_i32_0, %c0_i32_1 : i32, i32, i32
  }
  func.func @transform_9(%arg0: i32) -> (i32, i32) {
    %c0_i32 = arith.constant 0 : i32
    %c0_i32_0 = arith.constant 0 : i32
    %c0_i32_1 = arith.constant 0 : i32
    return %c0_i32, %c0_i32_0 : i32, i32
  }
  func.func @transform_10(%arg0: i32) -> (i32, i32) {
    %c0_i32 = arith.constant 0 : i32
    %c0_i32_0 = arith.constant 0 : i32
    return %c0_i32, %arg0 : i32, i32
  }
}

</mosaic_0001>

<bundles_post_ra>
// kernel: decom_forward.1
= control target key start
LH: loop header
LB: loop body
LE: loop exit
PB: predicated region body
PF: predicated region fallthrough
CT: control target
= control target key end

     0   :  { %s6587_s17 = smov 16   ;;  %s6588_s18 = smov 17   ;;  %v63_v5 = vlaneseq  ;;  %vm143_vm2 = vcmask 1043456   ;;  %vm136_vm3 = vcmask 64512   ;;  %s11682_s0 = inlined_call_operand.vmem [shape: f32[8,512], index: 0, kind: input, shape index: {}]   ;;  %s11683_s1 = inlined_call_operand.vmem [shape: f32[8,512], index: 1, kind: input, shape index: {}]   ;;  %s11684_s2 = inlined_call_operand.vmem [shape: bf16[9,32,8], index: 2, kind: input, shape index: {}]   ;;  %s11685_s3 = inlined_call_operand.vmem [shape: f32[32,1], index: 3, kind: input, shape index: {}]   ;;  %s11686_s4 = inlined_call_operand.vmem [shape: bf16[9,32,32], index: 4, kind: input, shape index: {}]   ;;  %s11687_s5 = inlined_call_operand.vmem [shape: f32[32,1], index: 5, kind: input, shape index: {}]   ;;  %s11688_s6 = inlined_call_operand.vmem [shape: bf16[9,32,32], index: 6, kind: input, shape index: {}]   ;;  %s11689_s7 = inlined_call_operand.vmem [shape: f32[32,1], index: 7, kind: input, shape index: {}]   ;;  %s11690_s8 = inlined_call_operand.vmem [shape: bf16[9,8,32], index: 8, kind: input, shape index: {}]   ;;  %s11691_s9 = inlined_call_operand.vmem [shape: f32[8,1], index: 9, kind: input, shape index: {}]   ;;  %s11692_s10 = inlined_call_operand.vmem [shape: f32[8,512], index: 10, kind: output, shape index: {}]  }
   0x1   :  { %v6654_v0 = vld [vmem:[%s11682_s0 + $0x18] sm:$0xff]  ;;  %v6659_v1 = vld [vmem:[%s11682_s0 + $0x8] sm:$0xff]  ;;  %v6670_v2 = vld [vmem:[%s11682_s0 + $0x10] sm:$0xff]  ;;  %s6589_s23 = smov 15   ;;  %s6591_s24 = smov 127  }
   0x2   :  { %97 = vrot.lane.b32.xlu1 %v6654_v0, %s6587_s17  ;;  %93 = vrot.lane.b32.xlu0 %v6659_v1, %s6587_s17  ;;  %v6675_v3 = vld [vmem:[%s11682_s0] sm:$0xff]  ;;  %s6590_s0 = smov 1   ;;  %s6592_s25 = smov 113   ;;  %v6735_v6 = vand.u32 127, %v63_v5  ;;  %v6523_v42 = vld [vmem:[%s11684_s2 + $0x10] sm:$0xff] }
   0x3   :  { %57 = vrot.lane.b32.xlu2 %v6659_v1, %s6588_s18  ;;  %s6593_s26 = smov 112   ;;  %s6594_s27 = smov 111   ;;  %v36_v11 = vld [vmem:[%s11683_s1] ss:$8 sm:$0xf] }
   0x4   :  { %11872 = vst [vmem:[#allocation2_spill] sm:$0xff] %v6735_v6  ;;  %vm65_vm0 = vcmp.lt.s32.totalorder %v6735_v6, 17  ;;  %v5942_v12 = vld [vmem:[%s11683_s1 + $0x1] ss:$8 sm:$0xf]  ;;  %v6746_v13 = vperm.slane %v36_v11, 2 }
   0x5   :  { %vm99_vm1 = vcmp.lt.s32.totalorder %v6735_v6, 16  ;;  %v6750_v15 = vperm.slane %v5942_v12, 0  ;;  %v6752_v16 = vperm.slane %v5942_v12, 1  ;;  %v6754_v17 = vperm.slane %v5942_v12, 2 }
   0x6   :  { %11873 = vst [vmem:[#allocation3_spill] sm:$0xff] %v6746_v13  ;;  %v6756_v18 = vperm.slane %v5942_v12, 3  ;;  %v6770_v34 = vperm.slane %v36_v11, 1  ;;  %v6773_v36 = vperm.slane %v36_v11, 0  ;;  %v6775_v37 = vperm.slane %v36_v11, 3 }
   0x7   :  { %11874 = vst [vmem:[#allocation4_spill] sm:$0xff] %v6750_v15  ;;  %v5943_v55 = vld [vmem:[%s11683_s1 + $0x2] ss:$8 sm:$0xf]  ;;  %vm344_vm4 = vcmp.lt.s32.totalorder %v6735_v6, 15  ;;  %vm499_vm5 = vcmp.lt.s32.totalorder %v6735_v6, 1 }
   0x8   :  { %11875 = vst [vmem:[#allocation5_spill] sm:$0xff] %v6752_v16  ;;  %v6804_v59 = vperm.slane %v5943_v55, 2  ;;  %v6808_v62 = vperm.slane %v5943_v55, 1  ;;  %vm783_vm6 = vcmp.lt.s32.totalorder %v6735_v6, 127  ;;  %vm938_vm7 = vcmp.lt.s32.totalorder %v6735_v6, 113 }
   0x9   :  { %11876 = vst [vmem:[#allocation6_spill] sm:$0xff] %v6754_v17  ;;  %vm1093_vm8 = vcmp.lt.s32.totalorder %v6735_v6, 112  ;;  %vm1248_vm9 = vcmp.lt.s32.totalorder %v6735_v6, 111 }
   0xa   :  { %95 = vrot.lane.b32.xlu0 %v6670_v2, %s6587_s17  ;;  %91 = vrot.lane.b32.xlu1 %v6675_v3, %s6587_s17  ;;  %11877 = vst [vmem:[#allocation7_spill] sm:$0xff] %v6756_v18 }
   0xb   :  { %59 = vrot.lane.b32.xlu2 %v6670_v2, %s6588_s18  ;;  %11878 = vst [vmem:[#allocation8_spill] sm:$0xff] %v6770_v34 }
   0xc   :  { %11879 = vst [vmem:[#allocation9_spill] sm:$0xff] %v6773_v36 }
   0xd   :  { %11880 = vst [vmem:[#allocation10_spill] sm:$0xff] %v6775_v37 }
   0xe   :  { %11881 = vst [vmem:[#allocation11_spill] sm:$0xff] %v6804_v59 }
   0xf   :  { %11882 = vst [vmem:[#allocation12_spill] sm:$0xff] %v6808_v62 }
  0x12   :  { %55 = vrot.lane.b32.xlu1 %v6675_v3, %s6588_s18  ;;  %61 = vrot.lane.b32.xlu0 %v6654_v0, %s6588_s18 }
  0x13   :  { %338 = vrot.lane.b32.xlu2 %v6659_v1, %s6589_s23 }
  0x1a   :  { %340 = vrot.lane.b32.xlu0 %v6670_v2, %s6589_s23  ;;  %342 = vrot.lane.b32.xlu1 %v6654_v0, %s6589_s23 }
  0x1b   :  { %336 = vrot.lane.b32.xlu2 %v6675_v3, %s6589_s23 }
  0x22   :  { %493 = vrot.lane.b32.xlu0 %v6659_v1, %s6590_s0  ;;  %495 = vrot.lane.b32.xlu1 %v6670_v2, %s6590_s0 }
  0x23   :  { %497 = vrot.lane.b32.xlu2 %v6654_v0, %s6590_s0 }
  0x2a   :  { %491 = vrot.lane.b32.xlu0 %v6675_v3, %s6590_s0  ;;  %775 = vrot.lane.b32.xlu1 %v6675_v3, %s6591_s24 }
  0x2b   :  { %779 = vrot.lane.b32.xlu2 %v6670_v2, %s6591_s24 }
  0x32   :  { %781 = vrot.lane.b32.xlu0 %v6654_v0, %s6591_s24  ;;  %777 = vrot.lane.b32.xlu1 %v6659_v1, %s6591_s24 }
  0x33   :  { %930 = vrot.lane.b32.xlu2 %v6675_v3, %s6592_s25 }
  0x3a   :  { %936 = vrot.lane.b32.xlu1 %v6654_v0, %s6592_s25  ;;  %934 = vrot.lane.b32.xlu0 %v6670_v2, %s6592_s25 }
  0x3b   :  { %932 = vrot.lane.b32.xlu2 %v6659_v1, %s6592_s25 }
  0x42   :  { %1085 = vrot.lane.b32.xlu0 %v6675_v3, %s6593_s26  ;;  %1089 = vrot.lane.b32.xlu1 %v6670_v2, %s6593_s26 }
  0x43   :  { %1091 = vrot.lane.b32.xlu2 %v6654_v0, %s6593_s26 }
  0x4a   :  { %1087 = vrot.lane.b32.xlu0 %v6659_v1, %s6593_s26  ;;  %1240 = vrot.lane.b32.xlu1 %v6675_v3, %s6594_s27 }
  0x4b   :  { %1244 = vrot.lane.b32.xlu2 %v6670_v2, %s6594_s27 }
  0x52   :  { %1246 = vrot.lane.b32.xlu0 %v6654_v0, %s6594_s27  ;;  %1242 = vrot.lane.b32.xlu1 %v6659_v1, %s6594_s27 }
  0x5d   :  { %v58_v4 = vpop.permute.xlu2 %57 }
  0x65   :  { %v60_v7 = vpop.permute.xlu2 %59 }
  0x66   :  { %v67_v10 = vsel %vm65_vm0, %v58_v4, %v60_v7 }
  0x67   :  { %v81_v14 = vmul.f32 %v6746_v13, %v67_v10 }
  0x69   :  { %v89_v21 = vpack.c.bf16 %v81_v14, %v81_v14  ;;  %v6823_v14 = vperm.slane %v5943_v55, 0 }
  0x6b   :  { %v255_v35 = vsel %vm143_vm2, %v89_v21, 0  ;;  %11883 = vst [vmem:[#allocation13_spill] sm:$0xff] %v6823_v14 }
  0x6d   :  { %v339_v51 = vpop.permute.xlu2 %338 }
  0x74   :  { %v98_v8 = vpop.permute.xlu1 %97  ;;  %v94_v9 = vpop.permute.xlu0 %93 }
  0x7c   :  { %v96_v19 = vpop.permute.xlu0 %95  ;;  %v92_v20 = vpop.permute.xlu1 %91 }
  0x7d   :  { %v103_v22 = vsel %vm99_vm1, %v98_v8, %v92_v20  ;;  %v102_v23 = vsel %vm99_vm1, %v92_v20, %v94_v9  ;;  %v101_v24 = vsel %vm99_vm1, %v94_v9, %v96_v19  ;;  %v100_v25 = vsel %vm99_vm1, %v96_v19, %v98_v8  ;;  %v6524_v8 = vld [vmem:[%s11684_s2 + $0x18] sm:$0xff] }
  0x7e   :  { %v113_v26 = vmul.f32 %v6750_v15, %v103_v22  ;;  %v114_v27 = vmul.f32 %v6752_v16, %v102_v23  ;;  %v115_v28 = vmul.f32 %v6754_v17, %v101_v24  ;;  %v116_v29 = vmul.f32 %v6756_v18, %v100_v25 }
  0x7f   :  { %v6825_v19 = vperm.slane %v5943_v55, 3 }
  0x80   :  { %v122_v30 = vpack.c.bf16 %v113_v26, %v113_v26  ;;  %v123_v31 = vpack.c.bf16 %v114_v27, %v114_v27  ;;  %v124_v32 = vpack.c.bf16 %v115_v28, %v115_v28  ;;  %v125_v33 = vpack.c.bf16 %v116_v29, %v116_v29  ;;  %v6521_v29 = vld [vmem:[%s11684_s2] sm:$0xff] }
  0x81   :  { %11884 = vst [vmem:[#allocation14_spill] sm:$0xff] %v6825_v19 }
  0x82   :  { %v145_v38 = vsel %vm143_vm2, %v122_v30, 0  ;;  %v148_v39 = vsel %vm143_vm2, %v123_v31, 0  ;;  %v151_v40 = vsel %vm143_vm2, %v124_v32, 0  ;;  %v154_v41 = vsel %vm143_vm2, %v125_v33, 0 }
  0x83   :  { %163 = vmatpush.bf16.msra.mxu0 %v145_v38  ;;  %182 = vmatpush.bf16.msra.mxu1 %v148_v39  ;;  %v5944_v31 = vld [vmem:[%s11683_s1 + $0x3] ss:$8 sm:$0xf] }
  0x84   :  { %201 = vmatpush.bf16.msra.mxu2 %v151_v40  ;;  %220 = vmatpush.bf16.msra.mxu3 %v154_v41  ;;  %v56_v43 = vpop.permute.xlu1 %55  ;;  %v62_v44 = vpop.permute.xlu0 %61  ;;  %v6846_v33 = vperm.slane %v5944_v31, 2  ;;  %v6850_v38 = vperm.slane %v5944_v31, 1 }
  0x85   :  { %v68_v45 = vsel %vm65_vm0, %v56_v43, %v58_v4  ;;  %v66_v46 = vsel %vm65_vm0, %v60_v7, %v62_v44  ;;  %v69_v47 = vsel %vm65_vm0, %v62_v44, %v56_v43  ;;  %v337_v4 = vpop.permute.xlu2 %336  ;;  %v6522_v43 = vld [vmem:[%s11684_s2 + $0x8] sm:$0xff] }
  0x86   :  { %5961 = vmatmul.msk.bf16.vlgmr.msra.gmra.mxu0 %vm136_vm3, %v6523_v42  ;;  %5963 = vmatmul.msk.bf16.vlgmr.msra.gmra.mxu1 %vm136_vm3, %v6523_v42  ;;  %v80_v48 = vmul.f32 %v6770_v34, %v68_v45  ;;  %v79_v49 = vmul.f32 %v6773_v36, %v69_v47  ;;  %v82_v50 = vmul.f32 %v6775_v37, %v66_v46 }
  0x87   :  { %5965 = vmatmul.msk.bf16.vlgmr.msra.gmra.mxu2 %vm136_vm3, %v6523_v42  ;;  %5967 = vmatmul.msk.bf16.vlgmr.msra.gmra.mxu3 %vm136_vm3, %v6523_v42  ;;  %v347_v5 = vsel %vm344_vm4, %v337_v4, %v339_v51  ;;  %11885 = vst [vmem:[#allocation15_spill] sm:$0xff] %v6846_v33 }
  0x88   :  { %305 = vmatpush.bf16.msrb.mxu2 %v255_v35  ;;  %v88_v52 = vpack.c.bf16 %v80_v48, %v80_v48  ;;  %v87_v53 = vpack.c.bf16 %v79_v49, %v79_v49  ;;  %v90_v54 = vpack.c.bf16 %v82_v50, %v82_v50  ;;  %v359_v7 = vmul.f32 %v6808_v62, %v347_v5 }
  0x89   :  { %11886 = vst [vmem:[#allocation16_spill] sm:$0xff] %v6850_v38  ;;  %v6865_v48 = vperm.slane %v5944_v31, 0  ;;  %v6867_v49 = vperm.slane %v5944_v31, 3 }
  0x8a   :  { %v252_v56 = vsel %vm143_vm2, %v88_v52, 0  ;;  %v249_v57 = vsel %vm143_vm2, %v87_v53, 0  ;;  %v258_v58 = vsel %vm143_vm2, %v90_v54, 0  ;;  %v368_v10 = vpack.c.bf16 %v359_v7, %v359_v7 }
  0x8b   :  { %286 = vmatpush.bf16.msrb.mxu1 %v252_v56  ;;  %267 = vmatpush.bf16.msrb.mxu0 %v249_v57  ;;  %11887 = vst [vmem:[#allocation17_spill] sm:$0xff] %v6865_v48 }
  0x8c   :  { %324 = vmatpush.bf16.msrb.mxu3 %v258_v58  ;;  %v341_v60 = vpop.permute.xlu0 %340  ;;  %v391_v11 = vsel %vm143_vm2, %v368_v10, 0  ;;  %v343_v20 = vpop.permute.xlu1 %342  ;;  %11888 = vst [vmem:[#allocation18_spill] sm:$0xff] %v6867_v49  ;;  %v6527_v10 = vld [vmem:[%s11684_s2 + $0x30] sm:$0xff] }
  0x8d   :  { %v346_v61 = vsel %vm344_vm4, %v339_v51, %v341_v60  ;;  %v345_v21 = vsel %vm344_vm4, %v341_v60, %v343_v20  ;;  %v348_v22 = vsel %vm344_vm4, %v343_v20, %v337_v4  ;;  %v498_v50 = vpop.permute.xlu2 %497  ;;  %v6525_v60 = vld [vmem:[%s11684_s2 + $0x20] sm:$0xff]  ;;  %v653_v4 = vpack.c.bf16 %v6670_v2, %v6670_v2 }
  0x8e   :  { %v360_v63 = vmul.f32 %v6804_v59, %v346_v61  ;;  %v358_v23 = vmul.f32 %v6823_v14, %v348_v22  ;;  %v361_v24 = vmul.f32 %v6825_v19, %v345_v21  ;;  %v6526_v61 = vld [vmem:[%s11684_s2 + $0x28] sm:$0xff] }
  0x8f   :  { %425 = vmatpush.bf16.msra.mxu1 %v391_v11  ;;  %v678_v7 = vsel %vm143_vm2, %v653_v4, 0 }
  0x90   :  { %v369_v9 = vpack.c.bf16 %v360_v63, %v360_v63  ;;  %v367_v25 = vpack.c.bf16 %v358_v23, %v358_v23  ;;  %v370_v26 = vpack.c.bf16 %v361_v24, %v361_v24  ;;  %v652_v63 = vpack.c.bf16 %v6659_v1, %v6659_v1 }
  0x92   :  { %v394_v12 = vsel %vm143_vm2, %v369_v9, 0  ;;  %v388_v27 = vsel %vm143_vm2, %v367_v25, 0  ;;  %v397_v28 = vsel %vm143_vm2, %v370_v26, 0  ;;  %v675_v5 = vsel %vm143_vm2, %v652_v63, 0  ;;  %v6528_v26 = vld [vmem:[%s11684_s2 + $0x38] sm:$0xff] }
  0x93   :  { %444 = vmatpush.bf16.msra.mxu2 %v394_v12  ;;  %406 = vmatpush.bf16.msra.mxu0 %v388_v27  ;;  %v654_v9 = vpack.c.bf16 %v6654_v0, %v6654_v0  ;;  %v5945_v0 = vld [vmem:[%s11683_s1 + $0x4] ss:$8 sm:$0xf] }
  0x94   :  { %463 = vmatpush.bf16.msra.mxu3 %v397_v28  ;;  %v494_v30 = vpop.permute.xlu0 %493  ;;  %v496_v32 = vpop.permute.xlu1 %495  ;;  %v6914_v12 = vperm.slane %v5945_v0, 3  ;;  %v6918_v21 = vperm.slane %v5945_v0, 0  ;;  %v6933_v31 = vperm.slane %v5945_v0, 1 }
  0x95   :  { %v501_v35 = vsel %vm499_vm5, %v494_v30, %v496_v32  ;;  %v500_v51 = vsel %vm499_vm5, %v496_v32, %v498_v50  ;;  %v681_v2 = vsel %vm143_vm2, %v654_v9, 0  ;;  %v6935_v32 = vperm.slane %v5945_v0, 2 }
  0x96   :  { %5962 = vmatmul.msk.bf16.gmra.mxu0 %vm136_vm3, %v6524_v8  ;;  %5964 = vmatmul.msk.bf16.gmra.mxu1 %vm136_vm3, %v6524_v8  ;;  %v515_v40 = vmul.f32 %v6846_v33, %v501_v35  ;;  %v516_v54 = vmul.f32 %v6867_v49, %v500_v51  ;;  %11889 = vst [vmem:[#allocation19_spill] sm:$0xff] %v6914_v12  ;;  %v780_v35 = vpop.permute.xlu2 %779 }
  0x97   :  { %5966 = vmatmul.msk.bf16.gmra.mxu2 %vm136_vm3, %v6524_v8  ;;  %5968 = vmatmul.msk.bf16.gmra.mxu3 %vm136_vm3, %v6524_v8  ;;  %v651_v8 = vpack.c.bf16 %v6675_v3, %v6675_v3  ;;  %11890 = vst [vmem:[#allocation20_spill] sm:$0xff] %v6918_v21 }
  0x98   :  { %v524_v45 = vpack.c.bf16 %v515_v40, %v515_v40  ;;  %v525_v56 = vpack.c.bf16 %v516_v54, %v516_v54  ;;  %11891 = vst [vmem:[#allocation21_spill] sm:$0xff] %v6933_v31 }
  0x99   :  { %v672_v1 = vsel %vm143_vm2, %v651_v8, 0  ;;  %11892 = vst [vmem:[#allocation22_spill] sm:$0xff] %v6935_v32 }
  0x9a   :  { %v549_v47 = vsel %vm143_vm2, %v524_v45, 0  ;;  %v552_v58 = vsel %vm143_vm2, %v525_v56, 0 }
  0x9c   :  { %v492_v39 = vpop.permute.xlu0 %491  ;;  %v776_v3 = vpop.permute.xlu1 %775 }
  0x9d   :  { %v502_v41 = vsel %vm499_vm5, %v492_v39, %v494_v30  ;;  %v503_v52 = vsel %vm499_vm5, %v498_v50, %v492_v39 }
  0x9e   :  { %v514_v42 = vmul.f32 %v6850_v38, %v502_v41  ;;  %v513_v53 = vmul.f32 %v6865_v48, %v503_v52  ;;  %v931_v52 = vpop.permute.xlu2 %930 }
  0xa0   :  { %v523_v44 = vpack.c.bf16 %v514_v42, %v514_v42  ;;  %v522_v55 = vpack.c.bf16 %v513_v53, %v513_v53 }
  0xa2   :  { %v546_v46 = vsel %vm143_vm2, %v523_v44, 0  ;;  %v543_v57 = vsel %vm143_vm2, %v522_v55, 0 }
  0xa4   :  { %v782_v11 = vpop.permute.xlu0 %781  ;;  %v778_v23 = vpop.permute.xlu1 %777 }
  0xa5   :  { %v787_v20 = vsel %vm783_vm6, %v782_v11, %v776_v3  ;;  %v786_v24 = vsel %vm783_vm6, %v776_v3, %v778_v23  ;;  %v784_v39 = vsel %vm783_vm6, %v780_v35, %v782_v11  ;;  %v785_v40 = vsel %vm783_vm6, %v778_v23, %v780_v35 }
  0xa6   :  { %5977 = vmatmul.msk.bf16.vlgmr.msrb.gmra.mxu0 %vm136_vm3, %v6521_v29  ;;  %5979 = vmatmul.msk.bf16.vlgmr.msrb.gmra.mxu1 %vm136_vm3, %v6521_v29  ;;  %v800_v22 = vmul.f32 %v6914_v12, %v787_v20  ;;  %v797_v25 = vmul.f32 %v6918_v21, %v786_v24  ;;  %v798_v41 = vmul.f32 %v6933_v31, %v785_v40  ;;  %v933_v4 = vpop.permute.xlu2 %932 }
  0xa7   :  { %5981 = vmatmul.msk.bf16.vlgmr.msrb.gmra.mxu2 %vm136_vm3, %v6521_v29  ;;  %5983 = vmatmul.msk.bf16.vlgmr.msrb.gmra.mxu3 %vm136_vm3, %v6521_v29  ;;  %v799_v42 = vmul.f32 %v6935_v32, %v784_v39 }
  0xa8   :  { %580 = vmatpush.bf16.msrb.mxu1 %v546_v46  ;;  %599 = vmatpush.bf16.msrb.mxu2 %v549_v47  ;;  %v809_v27 = vpack.c.bf16 %v800_v22, %v800_v22  ;;  %v806_v28 = vpack.c.bf16 %v797_v25, %v797_v25  ;;  %v6529_v47 = vld [vmem:[%s11684_s2 + $0x40] sm:$0xff] }
  0xa9   :  { %561 = vmatpush.bf16.msrb.mxu0 %v543_v57  ;;  %618 = vmatpush.bf16.msrb.mxu3 %v552_v58  ;;  %v808_v44 = vpack.c.bf16 %v799_v42, %v799_v42  ;;  %v5946_v57 = vld [vmem:[%s11683_s1 + $0x5] ss:$8 sm:$0xf] }
  0xaa   :  { %v827_v29 = vsel %vm143_vm2, %v806_v28, 0  ;;  %v836_v30 = vsel %vm143_vm2, %v809_v27, 0  ;;  %v6983_v23 = vperm.slane %v5946_v57, 1  ;;  %v6985_v24 = vperm.slane %v5946_v57, 2 }
  0xab   :  { %v833_v46 = vsel %vm143_vm2, %v808_v44, 0 }
  0xac   :  { %v937_v58 = vpop.permute.xlu1 %936  ;;  %11895 = vst [vmem:[#allocation25_spill] sm:$0xff] %v6983_v23  ;;  %v935_v25 = vpop.permute.xlu0 %934 }
  0xad   :  { %v942_v63 = vsel %vm938_vm7, %v937_v58, %v931_v52  ;;  %11896 = vst [vmem:[#allocation26_spill] sm:$0xff] %v6985_v24  ;;  %v940_v27 = vsel %vm938_vm7, %v933_v4, %v935_v25 }
  0xae   :  { %v953_v28 = vmul.f32 %v6983_v23, %v940_v27 }
  0xb6   :  { %5978 = vmatmul.msk.bf16.gmra.mxu0 %vm136_vm3, %v6522_v43  ;;  %5980 = vmatmul.msk.bf16.gmra.mxu1 %vm136_vm3, %v6522_v43 }
  0xb7   :  { %5982 = vmatmul.msk.bf16.gmra.mxu2 %vm136_vm3, %v6522_v43  ;;  %5984 = vmatmul.msk.bf16.gmra.mxu3 %vm136_vm3, %v6522_v43  ;;  %v807_v43 = vpack.c.bf16 %v798_v41, %v798_v41  ;;  %v962_v41 = vpack.c.bf16 %v953_v28, %v953_v28 }
  0xb9   :  { %v830_v45 = vsel %vm143_vm2, %v807_v43, 0  ;;  %v985_v43 = vsel %vm143_vm2, %v962_v41, 0  ;;  %v6532_v41 = vld [vmem:[%s11684_s2 + $0x58] sm:$0xff] }
  0xc6   :  { %5997 = vmatmul.msk.bf16.vlgmr.msra.gmra.mxu0 %vm136_vm3, %v6525_v60  ;;  %5999 = vmatmul.msk.bf16.vlgmr.msra.gmra.mxu1 %vm136_vm3, %v6525_v60 }
  0xc7   :  { %6001 = vmatmul.msk.bf16.vlgmr.msra.gmra.mxu2 %vm136_vm3, %v6525_v60  ;;  %6003 = vmatmul.msk.bf16.vlgmr.msra.gmra.mxu3 %vm136_vm3, %v6525_v60  ;;  %v6956_v60 = vperm.slane %v5946_v57, 0 }
  0xc8   :  { %709 = vmatpush.bf16.msra.mxu1 %v675_v5  ;;  %728 = vmatpush.bf16.msra.mxu2 %v678_v7  ;;  %v941_v7 = vsel %vm938_vm7, %v931_v52, %v933_v4  ;;  %v1086_v4 = vpop.permute.xlu0 %1085 }
  0xc9   :  { %690 = vmatpush.bf16.msra.mxu0 %v672_v1  ;;  %747 = vmatpush.bf16.msra.mxu3 %v681_v2  ;;  %11893 = vst [vmem:[#allocation23_spill] sm:$0xff] %v6956_v60  ;;  %v952_v8 = vmul.f32 %v6956_v60, %v941_v7  ;;  %v6530_v1 = vld [vmem:[%s11684_s2 + $0x48] sm:$0xff] }
  0xcb   :  { %v961_v0 = vpack.c.bf16 %v952_v8, %v952_v8 }
  0xcd   :  { %v982_v20 = vsel %vm143_vm2, %v961_v0, 0 }
  0xd6   :  { %5998 = vmatmul.msk.bf16.gmra.mxu0 %vm136_vm3, %v6526_v61  ;;  %6000 = vmatmul.msk.bf16.gmra.mxu1 %vm136_vm3, %v6526_v61 }
  0xd7   :  { %6002 = vmatmul.msk.bf16.gmra.mxu2 %vm136_vm3, %v6526_v61  ;;  %6004 = vmatmul.msk.bf16.gmra.mxu3 %vm136_vm3, %v6526_v61  ;;  %v6958_v61 = vperm.slane %v5946_v57, 3 }
  0xd9   :  { %11894 = vst [vmem:[#allocation24_spill] sm:$0xff] %v6958_v61  ;;  %v955_v5 = vmul.f32 %v6958_v61, %v942_v63 }
  0xdb   :  { %v964_v11 = vpack.c.bf16 %v955_v5, %v955_v5 }
  0xdd   :  { %v991_v22 = vsel %vm143_vm2, %v964_v11, 0 }
  0xe6   :  { %6017 = vmatmul.msk.bf16.vlgmr.msrb.gmra.mxu0 %vm136_vm3, %v6527_v10  ;;  %6019 = vmatmul.msk.bf16.vlgmr.msrb.gmra.mxu1 %vm136_vm3, %v6527_v10 }
  0xe7   :  { %6021 = vmatmul.msk.bf16.vlgmr.msrb.gmra.mxu2 %vm136_vm3, %v6527_v10  ;;  %6023 = vmatmul.msk.bf16.vlgmr.msrb.gmra.mxu3 %vm136_vm3, %v6527_v10 }
  0xe8   :  { %845 = vmatpush.bf16.msrb.mxu0 %v827_v29  ;;  %902 = vmatpush.bf16.msrb.mxu3 %v836_v30 }
  0xe9   :  { %864 = vmatpush.bf16.msrb.mxu1 %v830_v45  ;;  %883 = vmatpush.bf16.msrb.mxu2 %v833_v46 }
  0xf6   :  { %6018 = vmatmul.msk.bf16.gmra.mxu0 %vm136_vm3, %v6528_v26  ;;  %6020 = vmatmul.msk.bf16.gmra.mxu1 %vm136_vm3, %v6528_v26 }
  0xf7   :  { %6022 = vmatmul.msk.bf16.gmra.mxu2 %vm136_vm3, %v6528_v26  ;;  %6024 = vmatmul.msk.bf16.gmra.mxu3 %vm136_vm3, %v6528_v26  ;;  %v939_v26 = vsel %vm938_vm7, %v935_v25, %v937_v58 }
  0xf8   :  { %v954_v29 = vmul.f32 %v6985_v24, %v939_v26 }
  0xfa   :  { %v963_v42 = vpack.c.bf16 %v954_v29, %v954_v29 }
  0xfc   :  { %v988_v44 = vsel %vm143_vm2, %v963_v42, 0 }
 0x103   :  { %v165_v50 = vpop.f32.mrf.mxu0  ;;  %v184_v51 = vpop.f32.mrf.mxu1 }
 0x106   :  { %6037 = vmatmul.msk.bf16.vlgmr.msra.gmra.mxu0 %vm136_vm3, %v6529_v47  ;;  %6039 = vmatmul.msk.bf16.vlgmr.msra.gmra.mxu1 %vm136_vm3, %v6529_v47 }
 0x107   :  { %6041 = vmatmul.msk.bf16.vlgmr.msra.gmra.mxu2 %vm136_vm3, %v6529_v47  ;;  %6043 = vmatmul.msk.bf16.vlgmr.msra.gmra.mxu3 %vm136_vm3, %v6529_v47  ;;  %v6531_v47 = vld [vmem:[%s11684_s2 + $0x50] sm:$0xff] }
 0x108   :  { %1000 = vmatpush.bf16.msra.mxu0 %v982_v20  ;;  %1057 = vmatpush.bf16.msra.mxu3 %v991_v22  ;;  %v5947_v20 = vld [vmem:[%s11683_s1 + $0x6] ss:$8 sm:$0xf]  ;;  %v1092_v22 = vpop.permute.xlu2 %1091 }
 0x109   :  { %1019 = vmatpush.bf16.msra.mxu1 %v985_v43  ;;  %1038 = vmatpush.bf16.msra.mxu2 %v988_v44  ;;  %v7030_v25 = vperm.slane %v5947_v20, 0  ;;  %v7032_v26 = vperm.slane %v5947_v20, 3 }
 0x10a   :  { %v203_v53 = vpop.f32.mrf.mxu2  ;;  %v222_v54 = vpop.f32.mrf.mxu3 }
 0x10b   :  { %v167_v55 = vpop.f32.mrf.mxu0  ;;  %v186_v56 = vpop.f32.mrf.mxu1  ;;  %11897 = vst [vmem:[#allocation27_spill] sm:$0xff] %v7030_v25 }
 0x10c   :  { %11898 = vst [vmem:[#allocation28_spill] sm:$0xff] %v7032_v26 }
 0x112   :  { %v6966_v9 = vpop.f32.mrf.mxu2  ;;  %v6968_v10 = vpop.f32.mrf.mxu3 }
 0x113   :  { %v6973_v2 = vpop.f32.mrf.mxu0  ;;  %v6975_v3 = vpop.f32.mrf.mxu1 }
 0x116   :  { %6038 = vmatmul.msk.bf16.gmra.mxu0 %vm136_vm3, %v6530_v1  ;;  %6040 = vmatmul.msk.bf16.gmra.mxu1 %vm136_vm3, %v6530_v1 }
 0x117   :  { %6042 = vmatmul.msk.bf16.gmra.mxu2 %vm136_vm3, %v6530_v1  ;;  %6044 = vmatmul.msk.bf16.gmra.mxu3 %vm136_vm3, %v6530_v1 }
 0x11a   :  { %v6993_v30 = vpop.f32.mrf.mxu2  ;;  %v6995_v35 = vpop.f32.mrf.mxu3 }
 0x11b   :  { %v6997_v39 = vpop.f32.mrf.mxu0  ;;  %v6999_v40 = vpop.f32.mrf.mxu1 }
 0x122   :  { %v7003_v45 = vpop.f32.mrf.mxu2  ;;  %v7005_v46 = vpop.f32.mrf.mxu3 }
 0x123   :  { %v269_v52 = vpop.f32.mrf.mxu0  ;;  %v288_v57 = vpop.f32.mrf.mxu1 }
 0x124   :  { %v7010_v58 = vadd.f32 %v269_v52, %v165_v50  ;;  %v7012_v63 = vadd.f32 %v288_v57, %v184_v51 }
 0x126   :  { %6057 = vmatmul.msk.bf16.vlgmr.msrb.gmra.mxu0 %vm136_vm3, %v6531_v47  ;;  %6059 = vmatmul.msk.bf16.vlgmr.msrb.gmra.mxu1 %vm136_vm3, %v6531_v47 }
 0x127   :  { %6061 = vmatmul.msk.bf16.vlgmr.msrb.gmra.mxu2 %vm136_vm3, %v6531_v47  ;;  %6063 = vmatmul.msk.bf16.vlgmr.msrb.gmra.mxu3 %vm136_vm3, %v6531_v47 }
 0x12a   :  { %v307_v5 = vpop.f32.mrf.mxu2  ;;  %v326_v7 = vpop.f32.mrf.mxu3 }
 0x12b   :  { %v7018_v8 = vadd.f32 %v307_v5, %v203_v53  ;;  %v7020_v1 = vadd.f32 %v326_v7, %v222_v54  ;;  %v271_v0 = vpop.f32.mrf.mxu0  ;;  %v290_v50 = vpop.f32.mrf.mxu1  ;;  %v1097_v53 = vsel %vm1093_vm8, %v1092_v22, %v1086_v4  ;;  %v7061_v7 = vperm.slane %v5947_v20, 1 }
 0x12c   :  { %v7022_v11 = vadd.f32 %v271_v0, %v167_v55  ;;  %v7024_v51 = vadd.f32 %v290_v50, %v186_v56  ;;  %v1088_v54 = vpop.permute.xlu0 %1087  ;;  %v1110_v55 = vmul.f32 %v7032_v26, %v1097_v53  ;;  %v7063_v0 = vperm.slane %v5947_v20, 2 }
 0x12d   :  { %v1096_v56 = vsel %vm1093_vm8, %v1086_v4, %v1088_v54  ;;  %11899 = vst [vmem:[#allocation29_spill] sm:$0xff] %v7061_v7 }
 0x12e   :  { %v1107_v27 = vmul.f32 %v7030_v25, %v1096_v56  ;;  %v1119_v57 = vpack.c.bf16 %v1110_v55, %v1110_v55  ;;  %11900 = vst [vmem:[#allocation30_spill] sm:$0xff] %v7063_v0 }
 0x130   :  { %v1116_v52 = vpack.c.bf16 %v1107_v27, %v1107_v27 }
 0x132   :  { %v309_v28 = vpop.f32.mrf.mxu2  ;;  %v328_v29 = vpop.f32.mrf.mxu3 }
 0x133   :  { %v7044_v42 = vadd.f32 %v309_v28, %v6966_v9  ;;  %v7047_v43 = vadd.f32 %v328_v29, %v6968_v10  ;;  %v274_v44 = vpop.f32.mrf.mxu0  ;;  %v293_v47 = vpop.f32.mrf.mxu1  ;;  %v1137_v9 = vsel %vm143_vm2, %v1116_v52, 0  ;;  %v1146_v10 = vsel %vm143_vm2, %v1119_v57, 0 }
 0x134   :  { %v7050_v4 = vadd.f32 %v274_v44, %v6973_v2  ;;  %v7053_v5 = vadd.f32 %v293_v47, %v6975_v3  ;;  %v1090_v2 = vpop.permute.xlu1 %1089  ;;  %1155 = vmatpush.bf16.msrb.mxu0 %v1137_v9  ;;  %1212 = vmatpush.bf16.msrb.mxu3 %v1146_v10 }
 0x135   :  { %v1094_v3 = vsel %vm1093_vm8, %v1090_v2, %v1092_v22  ;;  %v1095_v50 = vsel %vm1093_vm8, %v1088_v54, %v1090_v2 }
 0x136   :  { %6058 = vmatmul.msk.bf16.gmra.mxu0 %vm136_vm3, %v6532_v41  ;;  %6060 = vmatmul.msk.bf16.gmra.mxu1 %vm136_vm3, %v6532_v41  ;;  %v1108_v53 = vmul.f32 %v7061_v7, %v1095_v50  ;;  %v1109_v55 = vmul.f32 %v7063_v0, %v1094_v3 }
 0x137   :  { %6062 = vmatmul.msk.bf16.gmra.mxu2 %vm136_vm3, %v6532_v41  ;;  %6064 = vmatmul.msk.bf16.gmra.mxu3 %vm136_vm3, %v6532_v41 }
 0x138   :  { %v1117_v44 = vpack.c.bf16 %v1108_v53, %v1108_v53  ;;  %v1118_v47 = vpack.c.bf16 %v1109_v55, %v1109_v55 }
 0x13a   :  { %v312_v56 = vpop.f32.mrf.mxu2  ;;  %v331_v27 = vpop.f32.mrf.mxu3  ;;  %v1140_v52 = vsel %vm143_vm2, %v1117_v44, 0  ;;  %v1143_v57 = vsel %vm143_vm2, %v1118_v47, 0 }
 0x13b   :  { %v7072_v28 = vadd.f32 %v312_v56, %v6993_v30  ;;  %v7075_v20 = vadd.f32 %v331_v27, %v6995_v35  ;;  %v276_v29 = vpop.f32.mrf.mxu0  ;;  %v295_v41 = vpop.f32.mrf.mxu1  ;;  %1174 = vmatpush.bf16.msrb.mxu1 %v1140_v52  ;;  %1193 = vmatpush.bf16.msrb.mxu2 %v1143_v57  ;;  %v6533_v35 = vld [vmem:[%s11684_s2 + $0x60] sm:$0xff] }
 0x13c   :  { %v7078_v22 = vadd.f32 %v276_v29, %v6997_v39  ;;  %v7081_v54 = vadd.f32 %v295_v41, %v6999_v40  ;;  %v5948_v41 = vld [vmem:[%s11683_s1 + $0x7] ss:$8 sm:$0xf]  ;;  %v1247_v44 = vpop.permute.xlu0 %1246 }
 0x13d   :  { %v7124_v47 = vperm.slane %v5948_v41, 0 }
 0x13f   :  { %11902 = vst [vmem:[#allocation32_spill] sm:$0xff] %v7124_v47 }
 0x142   :  { %v314_v30 = vpop.f32.mrf.mxu2  ;;  %v333_v9 = vpop.f32.mrf.mxu3 }
 0x143   :  { %v7089_v10 = vadd.f32 %v314_v30, %v7003_v45  ;;  %v7092_v39 = vadd.f32 %v333_v9, %v7005_v46  ;;  %v408_v40 = vpop.f32.mrf.mxu0  ;;  %v427_v2 = vpop.f32.mrf.mxu1 }
 0x144   :  { %v7095_v3 = vadd.f32 %v408_v40, %v7010_v58  ;;  %v7098_v50 = vadd.f32 %v427_v2, %v7012_v63  ;;  %v1241_v45 = vpop.permute.xlu1 %1240 }
 0x146   :  { %6077 = vmatmul.msk.bf16.vlgmr.msra.gmra.mxu0 %vm136_vm3, %v6533_v35  ;;  %6079 = vmatmul.msk.bf16.vlgmr.msra.gmra.mxu1 %vm136_vm3, %v6533_v35 }
 0x147   :  { %6081 = vmatmul.msk.bf16.vlgmr.msra.gmra.mxu2 %vm136_vm3, %v6533_v35  ;;  %6083 = vmatmul.msk.bf16.vlgmr.msra.gmra.mxu3 %vm136_vm3, %v6533_v35  ;;  %v6534_v35 = vld [vmem:[%s11684_s2 + $0x68] sm:$0xff] }
 0x14a   :  { %v446_v53 = vpop.f32.mrf.mxu2  ;;  %v465_v46 = vpop.f32.mrf.mxu3 }
 0x14b   :  { %v7105_v55 = vadd.f32 %v446_v53, %v7018_v8  ;;  %v7108_v58 = vadd.f32 %v465_v46, %v7020_v1  ;;  %v410_v56 = vpop.f32.mrf.mxu0  ;;  %v429_v63 = vpop.f32.mrf.mxu1  ;;  %v7120_v8 = vperm.slane %v5948_v41, 3  ;;  %v1252_v1 = vsel %vm1248_vm9, %v1247_v44, %v1241_v45 }
 0x14c   :  { %v7111_v27 = vadd.f32 %v410_v56, %v7022_v11  ;;  %v7114_v29 = vadd.f32 %v429_v63, %v7024_v51  ;;  %v1243_v52 = vpop.permute.xlu1 %1242 }
 0x14d   :  { %11901 = vst [vmem:[#allocation31_spill] sm:$0xff] %v7120_v8  ;;  %v1265_v11 = vmul.f32 %v7120_v8, %v1252_v1  ;;  %v1251_v51 = vsel %vm1248_vm9, %v1241_v45, %v1243_v52 }
 0x14e   :  { %v1262_v57 = vmul.f32 %v7124_v47, %v1251_v51  ;;  %v7147_v51 = vperm.slane %v5948_v41, 1 }
 0x14f   :  { %v1274_v56 = vpack.c.bf16 %v1265_v11, %v1265_v11  ;;  %v7149_v11 = vperm.slane %v5948_v41, 2 }
 0x150   :  { %v1271_v63 = vpack.c.bf16 %v1262_v57, %v1262_v57  ;;  %11903 = vst [vmem:[#allocation33_spill] sm:$0xff] %v7147_v51  ;;  %v1245_v57 = vpop.permute.xlu2 %1244 }
 0x151   :  { %11904 = vst [vmem:[#allocation34_spill] sm:$0xff] %v7149_v11 }
 0x152   :  { %v448_v30 = vpop.f32.mrf.mxu2  ;;  %v467_v9 = vpop.f32.mrf.mxu3 }
 0x153   :  { %v7134_v40 = vadd.f32 %v448_v30, %v7044_v42  ;;  %v7137_v2 = vadd.f32 %v467_v9, %v7047_v43  ;;  %v413_v53 = vpop.f32.mrf.mxu0  ;;  %v432_v46 = vpop.f32.mrf.mxu1  ;;  %v1292_v42 = vsel %vm143_vm2, %v1271_v63, 0  ;;  %v1301_v43 = vsel %vm143_vm2, %v1274_v56, 0 }
 0x154   :  { %v483_v45 = vadd.f32 %v413_v53, %v7050_v4  ;;  %v484_v1 = vadd.f32 %v432_v46, %v7053_v5  ;;  %1310 = vmatpush.bf16.msra.mxu0 %v1292_v42  ;;  %1367 = vmatpush.bf16.msra.mxu3 %v1301_v43  ;;  %v1249_v4 = vsel %vm1248_vm9, %v1245_v57, %v1247_v44 }
 0x155   :  { %v1250_v5 = vsel %vm1248_vm9, %v1243_v52, %v1245_v57  ;;  %v1264_v9 = vmul.f32 %v7149_v11, %v1249_v4 }
 0x156   :  { %6078 = vmatmul.msk.bf16.gmra.mxu0 %vm136_vm3, %v6534_v35  ;;  %6080 = vmatmul.msk.bf16.gmra.mxu1 %vm136_vm3, %v6534_v35  ;;  %v1263_v30 = vmul.f32 %v7147_v51, %v1250_v5 }
 0x157   :  { %6082 = vmatmul.msk.bf16.gmra.mxu2 %vm136_vm3, %v6534_v35  ;;  %6084 = vmatmul.msk.bf16.gmra.mxu3 %vm136_vm3, %v6534_v35  ;;  %v1273_v43 = vpack.c.bf16 %v1264_v9, %v1264_v9 }
 0x158   :  { %v1272_v42 = vpack.c.bf16 %v1263_v30, %v1263_v30 }
 0x159   :  { %v1298_v57 = vsel %vm143_vm2, %v1273_v43, 0  ;;  %v6536_v43 = vld [vmem:[%s11684_s2 + $0x78] sm:$0xff] }
 0x15a   :  { %v451_v35 = vpop.f32.mrf.mxu2  ;;  %v470_v53 = vpop.f32.mrf.mxu3  ;;  %v1295_v52 = vsel %vm143_vm2, %v1272_v42, 0  ;;  %1348 = vmatpush.bf16.msra.mxu2 %v1298_v57 }
 0x15b   :  { %v485_v46 = vadd.f32 %v451_v35, %v7072_v28  ;;  %v486_v41 = vadd.f32 %v470_v53, %v7075_v20  ;;  %v415_v56 = vpop.f32.mrf.mxu0  ;;  %v434_v63 = vpop.f32.mrf.mxu1  ;;  %1329 = vmatpush.bf16.msra.mxu1 %v1295_v52  ;;  %v6535_v20 = vld [vmem:[%s11684_s2 + $0x70] sm:$0xff] }
 0x15c   :  { %v7160_v47 = vadd.f32 %v415_v56, %v7078_v22  ;;  %v7163_v44 = vadd.f32 %v434_v63, %v7081_v54 }
 0x162   :  { %v453_v4 = vpop.f32.mrf.mxu2  ;;  %v472_v28 = vpop.f32.mrf.mxu3 }
 0x163   :  { %v7171_v5 = vadd.f32 %v453_v4, %v7089_v10  ;;  %v7174_v22 = vadd.f32 %v472_v28, %v7092_v39  ;;  %v563_v54 = vpop.f32.mrf.mxu0  ;;  %v582_v30 = vpop.f32.mrf.mxu1  ;;  %v6595_v4 = vmov 0  }
 0x164   :  { %v630_v9 = vadd.f32 %v563_v54, %v7095_v3  ;;  %v631_v35 = vadd.f32 %v582_v30, %v7098_v50  ;;  %6586 = vset.pattern.permute.xlu1 %v6595_v4  ;;  %6585 = vset.pattern.permute.xlu0 %v6595_v4 }
 0x165   :  { %11905 = vst [vmem:[#allocation35_spill] sm:$0xff] %v7171_v5  ;;  %6584 = vset.pattern.permute.xlu2 %v6595_v4 }
 0x166   :  { %11906 = vst [vmem:[#allocation36_spill] sm:$0xff] %v7174_v22  ;;  %6097 = vmatmul.msk.bf16.vlgmr.msrb.gmra.mxu0 %vm136_vm3, %v6535_v20  ;;  %6099 = vmatmul.msk.bf16.vlgmr.msrb.gmra.mxu1 %vm136_vm3, %v6535_v20 }
 0x167   :  { %6101 = vmatmul.msk.bf16.vlgmr.msrb.gmra.mxu2 %vm136_vm3, %v6535_v20  ;;  %6103 = vmatmul.msk.bf16.vlgmr.msrb.gmra.mxu3 %vm136_vm3, %v6535_v20 }
 0x16a   :  { %v601_v53 = vpop.f32.mrf.mxu2  ;;  %v620_v10 = vpop.f32.mrf.mxu3 }
 0x16b   :  { %v632_v56 = vadd.f32 %v601_v53, %v7105_v55  ;;  %v633_v39 = vadd.f32 %v620_v10, %v7108_v58  ;;  %v7184_v63 = vpop.f32.mrf.mxu0  ;;  %v7186_v42 = vpop.f32.mrf.mxu1  ;;  %v1395_v55 = vld [vmem:[%s11685_s3] sm:$0xff] }
 0x16c   :  { %1401 = vperm.xlu1 %6586, %v1395_v55   ;;  %v635_v22 = vadd.f32 %v7186_v42, %v7114_v29 }
 0x172   :  { %v7188_v3 = vpop.f32.mrf.mxu2  ;;  %v7190_v50 = vpop.f32.mrf.mxu3 }
 0x173   :  { %v568_v52 = vpop.f32.mrf.mxu0  ;;  %v587_v57 = vpop.f32.mrf.mxu1 }
 0x174   :  { %v638_v58 = vadd.f32 %v568_v52, %v483_v45  ;;  %v639_v28 = vadd.f32 %v587_v57, %v484_v1  ;;  %v6537_v52 = vld [vmem:[%s11684_s2 + $0x80] sm:$0xff] }
 0x176   :  { %6098 = vmatmul.msk.bf16.gmra.mxu0 %vm136_vm3, %v6536_v43  ;;  %6100 = vmatmul.msk.bf16.gmra.mxu1 %vm136_vm3, %v6536_v43 }
 0x177   :  { %6102 = vmatmul.msk.bf16.gmra.mxu2 %vm136_vm3, %v6536_v43  ;;  %6104 = vmatmul.msk.bf16.gmra.mxu3 %vm136_vm3, %v6536_v43 }
 0x17a   :  { %v606_v20 = vpop.f32.mrf.mxu2  ;;  %v625_v54 = vpop.f32.mrf.mxu3 }
 0x17b   :  { %v640_v30 = vadd.f32 %v606_v20, %v485_v46  ;;  %v641_v53 = vadd.f32 %v625_v54, %v486_v41  ;;  %v7202_v10 = vpop.f32.mrf.mxu0  ;;  %v7204_v51 = vpop.f32.mrf.mxu1 }
 0x17c   :  { %11907 = vst [vmem:[#allocation37_spill] sm:$0xff] %v7202_v10 }
 0x182   :  { %v7206_v45 = vpop.f32.mrf.mxu2  ;;  %v7208_v1 = vpop.f32.mrf.mxu3 }
 0x183   :  { %11908 = vst [vmem:[#allocation38_spill] sm:$0xff] %v7206_v45  ;;  %v692_v57 = vpop.f32.mrf.mxu0  ;;  %v711_v4 = vpop.f32.mrf.mxu1 }
 0x184   :  { %11909 = vst [vmem:[#allocation39_spill] sm:$0xff] %v7208_v1  ;;  %v759_v55 = vadd.f32 %v692_v57, %v630_v9  ;;  %v760_v43 = vadd.f32 %v711_v4, %v631_v35  ;;  %v1398_v9 = vld [vmem:[%s11685_s3 + $0x18] sm:$0xff]  ;;  %v1397_v35 = vld [vmem:[%s11685_s3 + $0x10] sm:$0xff]  ;;  %v634_v1 = vadd.f32 %v7184_v63, %v7111_v27 }
 0x185   :  { %1416 = vperm.xlu0 %6585, %v1398_v9   ;;  %1411 = vperm.xlu2 %6584, %v1397_v35  }
 0x186   :  { %6117 = vmatmul.msk.bf16.vlgmr.msra.gmra.mxu0 %vm136_vm3, %v6537_v52  ;;  %6119 = vmatmul.msk.bf16.vlgmr.msra.gmra.mxu1 %vm136_vm3, %v6537_v52 }
 0x187   :  { %6121 = vmatmul.msk.bf16.vlgmr.msra.gmra.mxu2 %vm136_vm3, %v6537_v52  ;;  %6123 = vmatmul.msk.bf16.vlgmr.msra.gmra.mxu3 %vm136_vm3, %v6537_v52 }
 0x18a   :  { %v730_v46 = vpop.f32.mrf.mxu2  ;;  %v749_v41 = vpop.f32.mrf.mxu3 }
 0x18b   :  { %v761_v20 = vadd.f32 %v730_v46, %v632_v56  ;;  %v762_v54 = vadd.f32 %v749_v41, %v633_v39  ;;  %v7217_v8 = vpop.f32.mrf.mxu0  ;;  %v7219_v11 = vpop.f32.mrf.mxu1  ;;  %v6538_v56 = vld [vmem:[%s11684_s2 + $0x88] sm:$0xff] }
 0x18c   :  { %v1396_v46 = vld [vmem:[%s11685_s3 + $0x8] sm:$0xff] }
 0x18d   :  { %1406 = vperm.xlu2 %6584, %v1396_v46  }
 0x192   :  { %v7227_v57 = vpop.f32.mrf.mxu2  ;;  %v7229_v52 = vpop.f32.mrf.mxu3 }
 0x193   :  { %v697_v39 = vpop.f32.mrf.mxu0  ;;  %v716_v4 = vpop.f32.mrf.mxu1 }
 0x194   :  { %v767_v41 = vadd.f32 %v697_v39, %v638_v58  ;;  %v768_v7 = vadd.f32 %v716_v4, %v639_v28 }
 0x196   :  { %6118 = vmatmul.msk.bf16.gmra.mxu0 %vm136_vm3, %v6538_v56  ;;  %6120 = vmatmul.msk.bf16.gmra.mxu1 %vm136_vm3, %v6538_v56 }
 0x197   :  { %6122 = vmatmul.msk.bf16.gmra.mxu2 %vm136_vm3, %v6538_v56  ;;  %6124 = vmatmul.msk.bf16.gmra.mxu3 %vm136_vm3, %v6538_v56 }
 0x19a   :  { %v735_v9 = vpop.f32.mrf.mxu2  ;;  %v754_v35 = vpop.f32.mrf.mxu3 }
 0x19b   :  { %v769_v26 = vadd.f32 %v735_v9, %v640_v30  ;;  %v770_v0 = vadd.f32 %v754_v35, %v641_v53  ;;  %v7241_v25 = vpop.f32.mrf.mxu0  ;;  %v7243_v23 = vpop.f32.mrf.mxu1 }
 0x19c   :  { %11910 = vst [vmem:[#allocation40_spill] sm:$0xff] %v7241_v25 }
 0x1a2   :  { %v7245_v24 = vpop.f32.mrf.mxu2  ;;  %v7247_v58 = vpop.f32.mrf.mxu3 }
 0x1a3   :  { %11911 = vst [vmem:[#allocation41_spill] sm:$0xff] %v7245_v24  ;;  %v847_v28 = vpop.f32.mrf.mxu0  ;;  %v866_v39 = vpop.f32.mrf.mxu1 }
 0x1a4   :  { %11912 = vst [vmem:[#allocation42_spill] sm:$0xff] %v7247_v58  ;;  %v914_v4 = vadd.f32 %v847_v28, %v759_v55  ;;  %v915_v46 = vadd.f32 %v866_v39, %v760_v43 }
 0x1aa   :  { %v885_v60 = vpop.f32.mrf.mxu2  ;;  %v904_v61 = vpop.f32.mrf.mxu3 }
 0x1ab   :  { %v7249_v12 = vadd.f32 %v885_v60, %v761_v20  ;;  %v7251_v56 = vadd.f32 %v904_v61, %v762_v54  ;;  %v7253_v30 = vpop.f32.mrf.mxu0  ;;  %v7255_v53 = vpop.f32.mrf.mxu1 }
 0x1b2   :  { %v7257_v9 = vpop.f32.mrf.mxu2  ;;  %v7259_v35 = vpop.f32.mrf.mxu3 }
 0x1b3   :  { %v852_v32 = vpop.f32.mrf.mxu0  ;;  %v871_v31 = vpop.f32.mrf.mxu1 }
 0x1b4   :  { %v922_v21 = vadd.f32 %v852_v32, %v767_v41  ;;  %v923_v48 = vadd.f32 %v871_v31, %v768_v7 }
 0x1ba   :  { %v890_v55 = vpop.f32.mrf.mxu2  ;;  %v909_v43 = vpop.f32.mrf.mxu3 }
 0x1bb   :  { %v924_v28 = vadd.f32 %v890_v55, %v769_v26  ;;  %v925_v39 = vadd.f32 %v909_v43, %v770_v0  ;;  %v7261_v60 = vpop.f32.mrf.mxu0  ;;  %v7263_v61 = vpop.f32.mrf.mxu1 }
 0x1bc   :  { %11913 = vst [vmem:[#allocation43_spill] sm:$0xff] %v7261_v60 }
 0x1c2   :  { %v7265_v20 = vpop.f32.mrf.mxu2  ;;  %v7267_v54 = vpop.f32.mrf.mxu3 }
 0x1c3   :  { %11914 = vst [vmem:[#allocation44_spill] sm:$0xff] %v7265_v20  ;;  %v1002_v33 = vpop.f32.mrf.mxu0  ;;  %v1021_v49 = vpop.f32.mrf.mxu1 }
 0x1c4   :  { %11915 = vst [vmem:[#allocation45_spill] sm:$0xff] %v7267_v54  ;;  %v1070_v54 = vadd.f32 %v1021_v49, %v915_v46  ;;  %v764_v49 = vadd.f32 %v7219_v11, %v635_v22 }
 0x1c6   :  { %v919_v46 = vadd.f32 %v7255_v53, %v764_v49 }
 0x1ca   :  { %v1040_v38 = vpop.f32.mrf.mxu2  ;;  %v1059_v19 = vpop.f32.mrf.mxu3 }
 0x1cb   :  { %v1004_v59 = vpop.f32.mrf.mxu0  ;;  %v1023_v62 = vpop.f32.mrf.mxu1  ;;  %v1071_v27 = vadd.f32 %v1040_v38, %v7249_v12  ;;  %v1072_v29 = vadd.f32 %v1059_v19, %v7251_v56 }
 0x1d2   :  { %v7269_v32 = vpop.f32.mrf.mxu2  ;;  %v7271_v31 = vpop.f32.mrf.mxu3 }
 0x1d3   :  { %v1007_v26 = vpop.f32.mrf.mxu0  ;;  %v1026_v7 = vpop.f32.mrf.mxu1 }
 0x1d4   :  { %v7273_v0 = vadd.f32 %v1007_v26, %v922_v21  ;;  %v7275_v41 = vadd.f32 %v1026_v7, %v923_v48 }
 0x1da   :  { %v1045_v55 = vpop.f32.mrf.mxu2  ;;  %v1064_v43 = vpop.f32.mrf.mxu3 }
 0x1db   :  { %v7277_v14 = vadd.f32 %v1045_v55, %v924_v28  ;;  %v7279_v37 = vadd.f32 %v1064_v43, %v925_v39  ;;  %v7281_v36 = vpop.f32.mrf.mxu0  ;;  %v7283_v34 = vpop.f32.mrf.mxu1 }
 0x1dc   :  { %11916 = vst [vmem:[#allocation46_spill] sm:$0xff] %v7281_v36  ;;  %v1069_v36 = vadd.f32 %v1002_v33, %v914_v4  ;;  %v763_v33 = vadd.f32 %v7217_v8, %v634_v1  ;;  %v636_v8 = vadd.f32 %v7188_v3, %v7134_v40 }
 0x1de   :  { %v1402_v20 = vpop.permute.xlu1 %1401  ;;  %v918_v4 = vadd.f32 %v7253_v30, %v763_v33  ;;  %v765_v3 = vadd.f32 %v7227_v57, %v636_v8 }
 0x1e0   :  { %v1073_v42 = vadd.f32 %v1004_v59, %v918_v4  ;;  %v920_v53 = vadd.f32 %v7257_v9, %v765_v3  ;;  %v637_v9 = vadd.f32 %v7190_v50, %v7137_v2 }
 0x1e2   :  { %v7285_v13 = vpop.f32.mrf.mxu2  ;;  %v7287_v15 = vpop.f32.mrf.mxu3  ;;  %v1075_v49 = vadd.f32 %v7269_v32, %v920_v53  ;;  %v766_v32 = vadd.f32 %v7229_v52, %v637_v9 }
 0x1e3   :  { %11917 = vst [vmem:[#allocation47_spill] sm:$0xff] %v7285_v13  ;;  %v1157_v18 = vpop.f32.mrf.mxu0  ;;  %v1176_v17 = vpop.f32.mrf.mxu1 }
 0x1e4   :  { %11918 = vst [vmem:[#allocation48_spill] sm:$0xff] %v7287_v15  ;;  %v1224_v60 = vadd.f32 %v1157_v18, %v1069_v36  ;;  %v1225_v58 = vadd.f32 %v1176_v17, %v1070_v54  ;;  %v7315_v18 = vpop.permute.xlu2 %1411 }
 0x1ea   :  { %v1195_v21 = vpop.f32.mrf.mxu2  ;;  %v1214_v26 = vpop.f32.mrf.mxu3 }
 0x1eb   :  { %v1159_v48 = vpop.f32.mrf.mxu0  ;;  %v1178_v7 = vpop.f32.mrf.mxu1  ;;  %v1226_v11 = vadd.f32 %v1195_v21, %v1071_v27  ;;  %v1227_v22 = vadd.f32 %v1214_v26, %v1072_v29  ;;  %v921_v29 = vadd.f32 %v7259_v35, %v766_v32 }
 0x1ec   :  { %v1228_v59 = vadd.f32 %v1159_v48, %v1073_v42  ;;  %v1407_v33 = vpop.permute.xlu2 %1406 }
 0x1f2   :  { %v7289_v16 = vpop.f32.mrf.mxu2  ;;  %v7291_v28 = vpop.f32.mrf.mxu3 }
 0x1f3   :  { %v7293_v39 = vpop.f32.mrf.mxu0  ;;  %v7295_v55 = vpop.f32.mrf.mxu1 }
 0x1f4   :  { %v1233_v35 = vadd.f32 %v7295_v55, %v7275_v41  ;;  %v1232_v41 = vadd.f32 %v7293_v39, %v7273_v0 }
 0x1fa   :  { %v7297_v43 = vpop.f32.mrf.mxu2  ;;  %v7299_v6 = vpop.f32.mrf.mxu3 }
 0x1fb   :  { %v7301_v13 = vpop.f32.mrf.mxu0  ;;  %v7303_v15 = vpop.f32.mrf.mxu1  ;;  %v1234_v55 = vadd.f32 %v7297_v43, %v7277_v14  ;;  %v643_v14 = vadd.f32 %v7204_v51, %v7163_v44  ;;  %v1235_v43 = vadd.f32 %v7299_v6, %v7279_v37  ;;  %v11920_v37 = vld [vmem:[#allocation37_spill] sm:$0xff] }
 0x1fc   :  { %11919 = vst [vmem:[#allocation49_spill] sm:$0xff] %v7301_v13 }
 0x202   :  { %v7305_v24 = vpop.f32.mrf.mxu2  ;;  %v7307_v25 = vpop.f32.mrf.mxu3 }
 0x203   :  { %v1312_v45 = vpop.f32.mrf.mxu0  ;;  %v1331_v5 = vpop.f32.mrf.mxu1 }
 0x204   :  { %v1379_v13 = vadd.f32 %v1312_v45, %v1224_v60  ;;  %v1380_v10 = vadd.f32 %v1331_v5, %v1225_v58 }
 0x206   :  { %v1419_v17 = vadd.f32 %v1402_v20, %v1379_v13  ;;  %v1420_v36 = vadd.f32 %v1402_v20, %v1380_v10  ;;  %v1074_v13 = vadd.f32 %v1023_v62, %v919_v46 }
 0x208   :  { %vm1435_vm10 = vcmp.ge.f32.partialorder %v1419_v17, 0.0  ;;  %vm1436_vm11 = vcmp.ge.f32.partialorder %v1420_v36, 0.0  ;;  %v1451_v63 = vmul.f32 0.2, %v1419_v17  ;;  %v1452_v5 = vmul.f32 0.2, %v1420_v36 }
 0x209   :  { %v1229_v62 = vadd.f32 %v1178_v7, %v1074_v13 }
 0x20a   :  { %v7323_v10 = vsel %vm1435_vm10, %v1419_v17, %v1451_v63  ;;  %v7325_v45 = vsel %vm1436_vm11, %v1420_v36, %v1452_v5  ;;  %v1350_v1 = vpop.f32.mrf.mxu2  ;;  %v1369_v58 = vpop.f32.mrf.mxu3  ;;  %v1076_v63 = vadd.f32 %v7271_v31, %v921_v29 }
 0x20b   :  { %v1381_v38 = vadd.f32 %v1350_v1, %v1226_v11  ;;  %v1382_v12 = vadd.f32 %v1369_v58, %v1227_v22  ;;  %v1333_v19 = vpop.f32.mrf.mxu1  ;;  %1491 = vrot.lane.b32.xlu2 %v7325_v45, %s6588_s18  ;;  %1567 = vrot.lane.b32.xlu1 %v7325_v45, %s6587_s17  ;;  %v1314_v40 = vpop.f32.mrf.mxu0 }
 0x20c   :  { %1559 = vrot.lane.b32.xlu0 %v7323_v10, %s6587_s17  ;;  %v1384_v60 = vadd.f32 %v1333_v19, %v1229_v62  ;;  %v1383_v54 = vadd.f32 %v1314_v40, %v1228_v59  ;;  %v1231_v52 = vadd.f32 %v7291_v28, %v1076_v63  ;;  %v11928_v63 = vld [vmem:[#allocation43_spill] sm:$0xff] }
 0x20d   :  { %v1421_v56 = vadd.f32 %v1402_v20, %v1381_v38  ;;  %v1422_v30 = vadd.f32 %v1402_v20, %v1382_v12  ;;  %v1230_v20 = vadd.f32 %v7289_v16, %v1075_v49 }
 0x20e   :  { %v1423_v48 = vadd.f32 %v1407_v33, %v1383_v54  ;;  %v1424_v7 = vadd.f32 %v1407_v33, %v1384_v60 }
 0x20f   :  { %vm1437_vm12 = vcmp.ge.f32.partialorder %v1421_v56, 0.0  ;;  %v1453_v21 = vmul.f32 0.2, %v1421_v56  ;;  %vm1438_vm13 = vcmp.ge.f32.partialorder %v1422_v30, 0.0  ;;  %v1454_v26 = vmul.f32 0.2, %v1422_v30 }
 0x210   :  { %v1455_v4 = vmul.f32 0.2, %v1423_v48  ;;  %v1456_v46 = vmul.f32 0.2, %v1424_v7  ;;  %vm1439_vm14 = vcmp.ge.f32.partialorder %v1423_v48, 0.0  ;;  %vm1440_vm15 = vcmp.ge.f32.partialorder %v1424_v7, 0.0 }
 0x211   :  { %v7336_v17 = vsel %vm1437_vm12, %v1421_v56, %v1453_v21  ;;  %v7338_v57 = vsel %vm1438_vm13, %v1422_v30, %v1454_v26  ;;  %v772_v56 = vadd.f32 %v7243_v23, %v643_v14  ;;  %v642_v23 = vadd.f32 %v11920_v37, %v7160_v47  ;;  %v1417_v47 = vpop.permute.xlu0 %1416 }
 0x212   :  { %v1352_v36 = vpop.f32.mrf.mxu2  ;;  %v7352_v5 = vsel %vm1439_vm14, %v1423_v48, %v1455_v4  ;;  %v7354_v8 = vsel %vm1440_vm15, %v1424_v7, %v1456_v46  ;;  %v1371_v16 = vpop.f32.mrf.mxu3  ;;  %v11924_v48 = vld [vmem:[#allocation39_spill] sm:$0xff] }
 0x213   :  { %1583 = vrot.lane.b32.xlu2 %v7338_v57, %s6587_s17  ;;  %1499 = vrot.lane.b32.xlu1 %v7336_v17, %s6588_s18  ;;  %v1385_v27 = vadd.f32 %v1352_v36, %v1230_v20  ;;  %v1336_v50 = vpop.f32.mrf.mxu1  ;;  %v1386_v11 = vadd.f32 %v1371_v16, %v1231_v52  ;;  %v1317_v58 = vpop.f32.mrf.mxu0  ;;  %v927_v54 = vadd.f32 %v7263_v61, %v772_v56  ;;  %v11921_v61 = vld [vmem:[#allocation35_spill] sm:$0xff]  ;;  %v11925_v36 = vld [vmem:[#allocation40_spill] sm:$0xff]  ;;  %v11926_v20 = vld [vmem:[#allocation41_spill] sm:$0xff] }
 0x214   :  { %1575 = vrot.lane.b32.xlu0 %v7336_v17, %s6587_s17  ;;  %v1388_v22 = vadd.f32 %v1336_v50, %v1233_v35  ;;  %v1387_v19 = vadd.f32 %v1317_v58, %v1232_v41  ;;  %v771_v9 = vadd.f32 %v11925_v36, %v642_v23  ;;  %v11929_v16 = vld [vmem:[#allocation44_spill] sm:$0xff]  ;;  %v11930_v50 = vld [vmem:[#allocation45_spill] sm:$0xff]  ;;  %v11931_v35 = vld [vmem:[#allocation46_spill] sm:$0xff] }
 0x215   :  { %v1425_v2 = vadd.f32 %v1407_v33, %v1385_v27  ;;  %v1426_v13 = vadd.f32 %v1407_v33, %v1386_v11  ;;  %v1082_v21 = vadd.f32 %v7283_v34, %v927_v54  ;;  %v11922_v33 = vld [vmem:[#allocation38_spill] sm:$0xff]  ;;  %v11932_v11 = vld [vmem:[#allocation47_spill] sm:$0xff]  ;;  %v11933_v58 = vld [vmem:[#allocation48_spill] sm:$0xff] }
 0x216   :  { %v1428_v1 = vadd.f32 %v7315_v18, %v1388_v22  ;;  %v1427_v62 = vadd.f32 %v7315_v18, %v1387_v19  ;;  %v644_v49 = vadd.f32 %v11922_v33, %v11921_v61  ;;  %v11927_v27 = vld [vmem:[#allocation42_spill] sm:$0xff] }
 0x217   :  { %v1457_v31 = vmul.f32 0.2, %v1425_v2  ;;  %vm1441_vm2 = vcmp.ge.f32.partialorder %v1425_v2, 0.0  ;;  %v1458_v38 = vmul.f32 0.2, %v1426_v13  ;;  %vm1442_vm3 = vcmp.ge.f32.partialorder %v1426_v13, 0.0 }
 0x218   :  { %v1460_v12 = vmul.f32 0.2, %v1428_v1  ;;  %vm1444_vm10 = vcmp.ge.f32.partialorder %v1428_v1, 0.0  ;;  %v1459_v30 = vmul.f32 0.2, %v1427_v62  ;;  %vm1443_vm11 = vcmp.ge.f32.partialorder %v1427_v62, 0.0 }
 0x219   :  { %v7365_v42 = vsel %vm1441_vm2, %v1425_v2, %v1457_v31  ;;  %v7378_v3 = vsel %vm1442_vm3, %v1426_v13, %v1458_v38  ;;  %v1237_v34 = vadd.f32 %v7303_v15, %v1082_v21  ;;  %v773_v32 = vadd.f32 %v11926_v20, %v644_v49  ;;  %v11934_v38 = vld [vmem:[#allocation49_spill] sm:$0xff] }
 0x21a   :  { %v1355_v28 = vpop.f32.mrf.mxu2  ;;  %v7380_v59 = vsel %vm1444_vm10, %v1428_v1, %v1460_v12  ;;  %v1374_v39 = vpop.f32.mrf.mxu3  ;;  %v7397_v26 = vsel %vm1443_vm11, %v1427_v62, %v1459_v30  ;;  %v926_v2 = vadd.f32 %v11928_v63, %v771_v9  ;;  %vm1646_vm10 = vcmask 261120  }
 0x21b   :  { %1569 = vrot.lane.b32.xlu2 %v7354_v8, %s6587_s17  ;;  %1561 = vrot.lane.b32.xlu1 %v7352_v5, %s6587_s17  ;;  %v1389_v40 = vadd.f32 %v1355_v28, %v1234_v55  ;;  %v1390_v53 = vadd.f32 %v1374_v39, %v1235_v43  ;;  %v1338_v6 = vpop.f32.mrf.mxu1  ;;  %v928_v15 = vadd.f32 %v11929_v16, %v773_v32  ;;  %v1319_v28 = vpop.f32.mrf.mxu0 }
 0x21c   :  { %1507 = vrot.lane.b32.xlu0 %v7338_v57, %s6588_s18  ;;  %v1392_v46 = vadd.f32 %v1338_v6, %v1237_v34  ;;  %v1081_v31 = vadd.f32 %v11931_v35, %v926_v2 }
 0x21d   :  { %v1429_v0 = vadd.f32 %v7315_v18, %v1389_v40  ;;  %v1430_v51 = vadd.f32 %v7315_v18, %v1390_v53  ;;  %v11923_v18 = vld [vmem:[#allocation36_spill] sm:$0xff]  ;;  %v1083_v22 = vadd.f32 %v11932_v11, %v928_v15 }
 0x21e   :  { %v645_v7 = vadd.f32 %v11924_v48, %v11923_v18  ;;  %v1432_v1 = vadd.f32 %v1417_v47, %v1392_v46  ;;  %v1236_v12 = vadd.f32 %v11934_v38, %v1081_v31 }
 0x21f   :  { %v1461_v60 = vmul.f32 0.2, %v1429_v0  ;;  %vm1445_vm12 = vcmp.ge.f32.partialorder %v1429_v0, 0.0  ;;  %v1462_v4 = vmul.f32 0.2, %v1430_v51  ;;  %vm1446_vm13 = vcmp.ge.f32.partialorder %v1430_v51, 0.0 }
 0x220   :  { %v774_v29 = vadd.f32 %v11927_v27, %v645_v7  ;;  %v1238_v19 = vadd.f32 %v7305_v24, %v1083_v22  ;;  %v1464_v39 = vmul.f32 0.2, %v1432_v1  ;;  %vm1448_vm14 = vcmp.ge.f32.partialorder %v1432_v1, 0.0 }
 0x221   :  { %v7400_v44 = vsel %vm1445_vm12, %v1429_v0, %v1461_v60  ;;  %v7423_v13 = vsel %vm1446_vm13, %v1430_v51, %v1462_v4  ;;  %v1391_v0 = vadd.f32 %v1319_v28, %v1236_v12 }
 0x222   :  { %v929_v52 = vadd.f32 %v11930_v50, %v774_v29  ;;  %v1357_v55 = vpop.f32.mrf.mxu2  ;;  %v1376_v40 = vpop.f32.mrf.mxu3  ;;  %v7435_v30 = vsel %vm1448_vm14, %v1432_v1, %v1464_v39  ;;  %v11936_v1 = vld [vmem:[#allocation5_spill] sm:$0xff]  ;;  %v7582_v39 = vld [vmem:[%s11686_s4 + $0x10] sm:$0xff] }
 0x223   :  { %1501 = vrot.lane.b32.xlu2 %v7365_v42, %s6588_s18  ;;  %1577 = vrot.lane.b32.xlu1 %v7365_v42, %s6587_s17  ;;  %v1393_v14 = vadd.f32 %v1357_v55, %v1238_v19  ;;  %v1431_v56 = vadd.f32 %v1417_v47, %v1391_v0 }
 0x224   :  { %1493 = vrot.lane.b32.xlu0 %v7354_v8, %s6588_s18  ;;  %v1084_v41 = vadd.f32 %v11933_v58, %v929_v52 }
 0x225   :  { %v1433_v53 = vadd.f32 %v1417_v47, %v1393_v14  ;;  %v1463_v24 = vmul.f32 0.2, %v1431_v56  ;;  %vm1447_vm15 = vcmp.ge.f32.partialorder %v1431_v56, 0.0 }
 0x226   :  { %v1239_v62 = vadd.f32 %v7307_v25, %v1084_v41 }
 0x227   :  { %v1465_v25 = vmul.f32 0.2, %v1433_v53  ;;  %vm1449_vm2 = vcmp.ge.f32.partialorder %v1433_v53, 0.0  ;;  %v7443_v21 = vsel %vm1447_vm15, %v1431_v56, %v1463_v24 }
 0x228   :  { %v1394_v43 = vadd.f32 %v1376_v40, %v1239_v62 }
 0x229   :  { %v7445_v51 = vsel %vm1449_vm2, %v1433_v53, %v1465_v25 }
 0x22a   :  { %v1434_v60 = vadd.f32 %v1417_v47, %v1394_v43 }
 0x22b   :  { %1495 = vrot.lane.b32.xlu2 %v7380_v59, %s6588_s18  ;;  %1509 = vrot.lane.b32.xlu1 %v7378_v3, %s6588_s18 }
 0x22c   :  { %1585 = vrot.lane.b32.xlu0 %v7378_v3, %s6587_s17  ;;  %v1466_v54 = vmul.f32 0.2, %v1434_v60  ;;  %vm1450_vm3 = vcmp.ge.f32.partialorder %v1434_v60, 0.0 }
 0x22e   :  { %v7447_v6 = vsel %vm1450_vm3, %v1434_v60, %v1466_v54 }
 0x233   :  { %1571 = vrot.lane.b32.xlu1 %v7380_v59, %s6587_s17  ;;  %1487 = vrot.lane.b32.xlu2 %v7397_v26, %s6588_s18 }
 0x234   :  { %1579 = vrot.lane.b32.xlu0 %v7400_v44, %s6587_s17 }
 0x23b   :  { %1587 = vrot.lane.b32.xlu2 %v7423_v13, %s6587_s17  ;;  %1563 = vrot.lane.b32.xlu1 %v7397_v26, %s6587_s17 }
 0x23c   :  { %1511 = vrot.lane.b32.xlu0 %v7423_v13, %s6588_s18 }
 0x243   :  { %1573 = vrot.lane.b32.xlu2 %v7435_v30, %s6587_s17  ;;  %1503 = vrot.lane.b32.xlu1 %v7400_v44, %s6588_s18 }
 0x244   :  { %1497 = vrot.lane.b32.xlu0 %v7435_v30, %s6588_s18 }
 0x24b   :  { %1581 = vrot.lane.b32.xlu1 %v7445_v51, %s6587_s17  ;;  %1565 = vrot.lane.b32.xlu2 %v7443_v21, %s6587_s17 }
 0x24c   :  { %1589 = vrot.lane.b32.xlu0 %v7447_v6, %s6587_s17 }
 0x253   :  { %1483 = vrot.lane.b32.xlu1 %v7323_v10, %s6588_s18  ;;  %1485 = vrot.lane.b32.xlu2 %v7352_v5, %s6588_s18 }
 0x254   :  { %1489 = vrot.lane.b32.xlu0 %v7443_v21, %s6588_s18 }
 0x25b   :  { %1835 = vrot.lane.b32.xlu1 %v7435_v30, %s6589_s23  ;;  %1841 = vrot.lane.b32.xlu2 %v7400_v44, %s6589_s23 }
 0x25c   :  { %1833 = vrot.lane.b32.xlu0 %v7380_v59, %s6589_s23 }
 0x263   :  { %1849 = vrot.lane.b32.xlu1 %v7423_v13, %s6589_s23  ;;  %1505 = vrot.lane.b32.xlu2 %v7445_v51, %s6588_s18 }
 0x264   :  { %1829 = vrot.lane.b32.xlu0 %v7325_v45, %s6589_s23 }
 0x265   :  { %v7473_v37 = vpop.permute.xlu2 %1491 }
 0x26b   :  { %1513 = vrot.lane.b32.xlu1 %v7447_v6, %s6588_s18  ;;  %1837 = vrot.lane.b32.xlu2 %v7336_v17, %s6589_s23 }
 0x26c   :  { %1839 = vrot.lane.b32.xlu0 %v7365_v42, %s6589_s23 }
 0x26d   :  { %v7481_v23 = vpop.permute.xlu2 %1583 }
 0x273   :  { %1831 = vrot.lane.b32.xlu1 %v7354_v8, %s6589_s23  ;;  %1847 = vrot.lane.b32.xlu2 %v7378_v3, %s6589_s23 }
 0x274   :  { %1825 = vrot.lane.b32.xlu0 %v7397_v26, %s6589_s23 }
 0x275   :  { %v7489_v61 = vpop.permute.xlu2 %1569 }
 0x27b   :  { %1845 = vrot.lane.b32.xlu1 %v7338_v57, %s6589_s23  ;;  %1821 = vrot.lane.b32.xlu2 %v7323_v10, %s6589_s23 }
 0x27c   :  { %1823 = vrot.lane.b32.xlu0 %v7352_v5, %s6589_s23 }
 0x27d   :  { %v7497_v33 = vpop.permute.xlu2 %1501  ;;  %v7499_v49 = vpop.permute.xlu1 %1567 }
 0x27e   :  { %v1560_v34 = vpop.permute.xlu0 %1559 }
 0x27f   :  { %v1599_v28 = vsel %vm99_vm1, %v1560_v34, %v7499_v49  ;;  %v1603_v43 = vsel %vm99_vm1, %v7481_v23, %v1560_v34 }
 0x280   :  { %v1608_v12 = vmul.f32 %v1599_v28, %v11936_v1 }
 0x283   :  { %1827 = vrot.lane.b32.xlu1 %v7443_v21, %s6589_s23  ;;  %2020 = vrot.lane.b32.xlu2 %v7435_v30, %s6590_s0 }
 0x284   :  { %2026 = vrot.lane.b32.xlu0 %v7400_v44, %s6590_s0 }
 0x285   :  { %v7507_v18 = vpop.permute.xlu2 %1495  ;;  %v7509_v48 = vpop.permute.xlu1 %1499 }
 0x286   :  { %v7511_v7 = vpop.permute.xlu0 %1575 }
 0x287   :  { %v1595_v56 = vsel %vm99_vm1, %v7499_v49, %v7511_v7  ;;  %v11937_v49 = vld [vmem:[#allocation6_spill] sm:$0xff] }
 0x28b   :  { %2018 = vrot.lane.b32.xlu1 %v7380_v59, %s6590_s0  ;;  %1851 = vrot.lane.b32.xlu2 %v7447_v6, %s6589_s23 }
 0x28c   :  { %1843 = vrot.lane.b32.xlu0 %v7445_v51, %s6589_s23 }
 0x28d   :  { %v1562_v36 = vpop.permute.xlu1 %1561  ;;  %v7519_v9 = vpop.permute.xlu2 %1487 }
 0x28e   :  { %v7521_v20 = vpop.permute.xlu0 %1507  ;;  %v1600_v22 = vsel %vm99_vm1, %v1562_v36, %v7489_v61 }
 0x28f   :  { %v1612_v38 = vmul.f32 %v1600_v22, %v11936_v1  ;;  %v11938_v22 = vld [vmem:[#allocation7_spill] sm:$0xff] }
 0x291   :  { %v1629_v0 = vpack.c.bf16 %v1612_v38, %v1608_v12 }
 0x293   :  { %2014 = vrot.lane.b32.xlu1 %v7325_v45, %s6590_s0  ;;  %2034 = vrot.lane.b32.xlu2 %v7423_v13, %s6590_s0 }
 0x294   :  { %2022 = vrot.lane.b32.xlu0 %v7336_v17, %s6590_s0 }
 0x295   :  { %v1578_v32 = vpop.permute.xlu1 %1577  ;;  %v1588_v4 = vpop.permute.xlu2 %1587 }
 0x296   :  { %v7529_v46 = vpop.permute.xlu0 %1493  ;;  %v1596_v53 = vsel %vm99_vm1, %v7489_v61, %v1578_v32 }
 0x297   :  { %v1613_v28 = vmul.f32 %v1596_v53, %v11937_v49 }
 0x29b   :  { %2024 = vrot.lane.b32.xlu1 %v7365_v42, %s6590_s0  ;;  %2016 = vrot.lane.b32.xlu2 %v7354_v8, %s6590_s0 }
 0x29c   :  { %2032 = vrot.lane.b32.xlu0 %v7378_v3, %s6590_s0 }
 0x29d   :  { %v7537_v27 = vpop.permute.xlu1 %1509  ;;  %v1574_v29 = vpop.permute.xlu2 %1573 }
 0x29e   :  { %v1586_v47 = vpop.permute.xlu0 %1585 }
 0x29f   :  { %v1592_v34 = vsel %vm99_vm1, %v1578_v32, %v1586_v47 }
 0x2a0   :  { %v1614_v12 = vmul.f32 %v1592_v34, %v11938_v22  ;;  %v1520_v34 = vsel %vm65_vm0, %v7529_v46, %v7497_v33 }
 0x2a3   :  { %2010 = vrot.lane.b32.xlu1 %v7397_v26, %s6590_s0  ;;  %2030 = vrot.lane.b32.xlu2 %v7338_v57, %s6590_s0 }
 0x2a4   :  { %2006 = vrot.lane.b32.xlu0 %v7323_v10, %s6590_s0 }
 0x2a5   :  { %v1572_v63 = vpop.permute.xlu1 %1571  ;;  %v1566_v2 = vpop.permute.xlu2 %1565 }
 0x2a6   :  { %v1580_v16 = vpop.permute.xlu0 %1579  ;;  %v1602_v50 = vsel %vm99_vm1, %v1566_v2, %v1574_v29 }
 0x2a7   :  { %v1620_v58 = vmul.f32 %v1602_v50, %v11936_v1  ;;  %v1597_v14 = vsel %vm99_vm1, %v1572_v63, %v1580_v16  ;;  %v1593_v60 = vsel %vm99_vm1, %v1580_v16, %v1588_v4 }
 0x2a8   :  { %v1617_v50 = vmul.f32 %v1597_v14, %v11937_v49 }
 0x2ab   :  { %2028 = vrot.lane.b32.xlu1 %v7445_v51, %s6590_s0  ;;  %2012 = vrot.lane.b32.xlu2 %v7443_v21, %s6590_s0 }
 0x2ac   :  { %2036 = vrot.lane.b32.xlu0 %v7447_v6, %s6590_s0 }
 0x2ad   :  { %v1564_v52 = vpop.permute.xlu1 %1563  ;;  %v7553_v35 = vpop.permute.xlu2 %1485 }
 0x2ae   :  { %v7555_v31 = vpop.permute.xlu0 %1511  ;;  %v1601_v11 = vsel %vm99_vm1, %v1564_v52, %v1572_v63  ;;  %v1605_v24 = vsel %vm99_vm1, %v1588_v4, %v1564_v52  ;;  %v1604_v63 = vsel %vm99_vm1, %v1586_v47, %v1562_v36  ;;  %v1618_v36 = vmul.f32 %v1593_v60, %v11938_v22  ;;  %v11939_v47 = vld [vmem:[#allocation4_spill] sm:$0xff]  ;;  %v11940_v60 = vld [vmem:[#allocation3_spill] sm:$0xff] }
 0x2af   :  { %v1616_v41 = vmul.f32 %v1601_v11, %v11936_v1 }
 0x2b1   :  { %v1633_v55 = vpack.c.bf16 %v1620_v58, %v1616_v41  ;;  %v1615_v58 = vmul.f32 %v1605_v24, %v11939_v47 }
 0x2b3   :  { %2008 = vrot.lane.b32.xlu1 %v7352_v5, %s6590_s0  ;;  %2316 = vrot.lane.b32.xlu2 %v7397_v26, %s6591_s24 }
 0x2b4   :  { %2318 = vrot.lane.b32.xlu0 %v7443_v21, %s6591_s24  ;;  %1678 = vmatpush.bf16.msrb.mxu1 %v1633_v55 }
 0x2b5   :  { %v7575_v19 = vpop.permute.xlu1 %1503  ;;  %v7577_v40 = vpop.permute.xlu2 %1841 }
 0x2b6   :  { %v1498_v62 = vpop.permute.xlu0 %1497  ;;  %v1521_v55 = vsel %vm65_vm0, %v7507_v18, %v7575_v19 }
 0x2b7   :  { %v1541_v53 = vmul.f32 %v1521_v55, %v11940_v60 }
 0x2b8   :  { %1679 = vmatpush.bf16.msrb.mxu1 %v1629_v0 }
 0x2bb   :  { %6139 = vmatmul.msk.bf16.vlgmr.msrb.gmra.mxu1 %vm1646_vm10, %v7582_v39  ;;  %2332 = vrot.lane.b32.xlu1 %v7400_v44, %s6591_s24 }
 0x2bc   :  { %2340 = vrot.lane.b32.xlu0 %v7423_v13, %s6591_s24  ;;  %2312 = vrot.lane.b32.xlu2 %v7323_v10, %s6591_s24 }
 0x2bd   :  { %v1582_v25 = vpop.permute.xlu1 %1581  ;;  %v7608_v54 = vpop.permute.xlu2 %1505 }
 0x2be   :  { %v1590_v11 = vpop.permute.xlu0 %1589  ;;  %v1598_v61 = vsel %vm99_vm1, %v1574_v29, %v1582_v25  ;;  %v1522_v32 = vsel %vm65_vm0, %v1498_v62, %v7608_v54 }
 0x2bf   :  { %v1606_v16 = vsel %vm99_vm1, %v1590_v11, %v1566_v2  ;;  %v1594_v4 = vsel %vm99_vm1, %v1582_v25, %v1590_v11  ;;  %v1621_v52 = vmul.f32 %v1598_v61, %v11937_v49  ;;  %v1591_v2 = vsel %vm99_vm1, %v7511_v7, %v7481_v23 }
 0x2c0   :  { %v1619_v41 = vmul.f32 %v1606_v16, %v11939_v47  ;;  %v1622_v29 = vmul.f32 %v1594_v4, %v11938_v22  ;;  %v1545_v24 = vmul.f32 %v1522_v32, %v11940_v60  ;;  %v1609_v25 = vmul.f32 %v1595_v56, %v11937_v49 }
 0x2c1   :  { %v1634_v38 = vpack.c.bf16 %v1621_v52, %v1617_v50  ;;  %v1611_v11 = vmul.f32 %v1604_v63, %v11939_v47  ;;  %v1607_v23 = vmul.f32 %v1603_v43, %v11939_v47  ;;  %v1610_v7 = vmul.f32 %v1591_v2, %v11938_v22 }
 0x2c2   :  { %v1632_v0 = vpack.c.bf16 %v1619_v41, %v1615_v58  ;;  %v1635_v14 = vpack.c.bf16 %v1622_v29, %v1618_v36  ;;  %v1525_v56 = vsel %vm65_vm0, %v7519_v9, %v7507_v18  ;;  %v1630_v50 = vpack.c.bf16 %v1613_v28, %v1609_v25  ;;  %v6542_v36 = vld [vmem:[%s11686_s4 + $0x18] sm:$0xff]  ;;  %v11941_v58 = vld [vmem:[#allocation8_spill] sm:$0xff] }
 0x2c3   :  { %1697 = vmatpush.bf16.msrb.mxu2 %v1634_v38  ;;  %2328 = vrot.lane.b32.xlu1 %v7336_v17, %s6591_s24  ;;  %v1557_v61 = vpack.c.bf16 %v1545_v24, %v1541_v53  ;;  %v1631_v4 = vpack.c.bf16 %v1614_v12, %v1610_v7  ;;  %v1519_v18 = vsel %vm65_vm0, %v7473_v37, %v7509_v48  ;;  %v6539_v7 = vld [vmem:[%s11686_s4] sm:$0xff] }
 0x2c4   :  { %1716 = vmatpush.bf16.msrb.mxu3 %v1635_v14  ;;  %2314 = vrot.lane.b32.xlu0 %v7352_v5, %s6591_s24  ;;  %v1628_v32 = vpack.c.bf16 %v1611_v11, %v1607_v23  ;;  %v1540_v41 = vmul.f32 %v1525_v56, %v11941_v58  ;;  %v1537_v29 = vmul.f32 %v1520_v34, %v11940_v60 }
 0x2c5   :  { %2330 = vrot.lane.b32.xlu2 %v7365_v42, %s6591_s24  ;;  %1659 = vmatpush.bf16.msrb.mxu0 %v1632_v0  ;;  %v1484_v43 = vpop.permute.xlu1 %1483  ;;  %v7659_v63 = vpop.permute.xlu2 %1837  ;;  %v1524_v38 = vsel %vm65_vm0, %v7553_v35, %v7529_v46  ;;  %v1529_v53 = vsel %vm65_vm0, %v7555_v31, %v7519_v9  ;;  %v1517_v56 = vsel %vm65_vm0, %v7575_v19, %v7555_v31 }
 0x2c6   :  { %v1490_v16 = vpop.permute.xlu0 %1489  ;;  %v1523_v28 = vsel %vm65_vm0, %v1484_v43, %v7473_v37  ;;  %v1536_v14 = vmul.f32 %v1524_v38, %v11941_v58  ;;  %v1516_v9 = vsel %vm65_vm0, %v7497_v33, %v7537_v27  ;;  %v1527_v31 = vsel %vm65_vm0, %v7521_v20, %v1484_v43 }
 0x2c7   :  { %v1526_v52 = vsel %vm65_vm0, %v1490_v16, %v1498_v62  ;;  %1698 = vmatpush.bf16.msrb.mxu2 %v1630_v50  ;;  %v1533_v62 = vmul.f32 %v1519_v18, %v11940_v60  ;;  %v1532_v12 = vmul.f32 %v1523_v28, %v11941_v58  ;;  %v11942_v18 = vld [vmem:[#allocation9_spill] sm:$0xff]  ;;  %v1515_v43 = vsel %vm65_vm0, %v7509_v48, %v7521_v20 }
 0x2c8   :  { %v1544_v2 = vmul.f32 %v1526_v52, %v11941_v58  ;;  %1717 = vmatpush.bf16.msrb.mxu3 %v1631_v4  ;;  %v1539_v52 = vmul.f32 %v1529_v53, %v11942_v18 }
 0x2c9   :  { %1660 = vmatpush.bf16.msrb.mxu0 %v1628_v32  ;;  %v1553_v37 = vpack.c.bf16 %v1537_v29, %v1533_v62  ;;  %v11943_v32 = vld [vmem:[#allocation10_spill] sm:$0xff]  ;;  %v1531_v29 = vmul.f32 %v1527_v31, %v11942_v18 }
 0x2ca   :  { %v1556_v55 = vpack.c.bf16 %v1544_v2, %v1540_v41  ;;  %6141 = vmatmul.msk.bf16.vlgmr.msrb.gmra.mxu2 %vm1646_vm10, %v7582_v39  ;;  %v1534_v62 = vmul.f32 %v1515_v43, %v11943_v32  ;;  %v11945_v43 = vld [vmem:[#allocation12_spill] sm:$0xff] }
 0x2cb   :  { %1789 = vmatpush.bf16.msra.mxu2 %v1557_v61  ;;  %6140 = vmatmul.msk.bf16.gmra.mxu1 %vm1646_vm10, %v6542_v36 }
 0x2cc   :  { %6143 = vmatmul.msk.bf16.vlgmr.msrb.gmra.mxu3 %vm1646_vm10, %v7582_v39  ;;  %6137 = vmatmul.msk.bf16.vlgmr.msrb.gmra.mxu0 %vm1646_vm10, %v7582_v39  ;;  %v1552_v39 = vpack.c.bf16 %v1536_v14, %v1532_v12  ;;  %v6540_v12 = vld [vmem:[%s11686_s4 + $0x8] sm:$0xff] }
 0x2cd   :  { %2338 = vrot.lane.b32.xlu1 %v7378_v3, %s6591_s24  ;;  %2336 = vrot.lane.b32.xlu0 %v7338_v57, %s6591_s24  ;;  %v7695_v46 = vpop.permute.xlu1 %1835  ;;  %v7697_v0 = vpop.permute.xlu2 %1847 }
 0x2ce   :  { %2324 = vrot.lane.b32.xlu2 %v7380_v59, %s6591_s24  ;;  %1770 = vmatpush.bf16.msra.mxu1 %v1556_v55  ;;  %v7700_v24 = vpop.permute.xlu0 %1833 }
 0x2cf   :  { %1790 = vmatpush.bf16.msra.mxu2 %v1553_v37 }
 0x2d2   :  { %1771 = vmatpush.bf16.msra.mxu1 %v1552_v39 }
 0x2d5   :  { %2320 = vrot.lane.b32.xlu1 %v7325_v45, %s6591_s24  ;;  %2326 = vrot.lane.b32.xlu0 %v7435_v30, %s6591_s24  ;;  %v7708_v25 = vpop.permute.xlu1 %1849  ;;  %v7710_v11 = vpop.permute.xlu2 %1821 }
 0x2d6   :  { %2322 = vrot.lane.b32.xlu2 %v7354_v8, %s6591_s24  ;;  %v7712_v23 = vpop.permute.xlu0 %1829 }
 0x2da   :  { %6142 = vmatmul.msk.bf16.gmra.mxu2 %vm1646_vm10, %v6542_v36 }
 0x2db   :  { %6155 = vmatmul.msk.bf16.vlgmr.msra.gmra.mxu1 %vm1646_vm10, %v6539_v7 }
 0x2dc   :  { %6144 = vmatmul.msk.bf16.gmra.mxu3 %vm1646_vm10, %v6542_v36  ;;  %6138 = vmatmul.msk.bf16.gmra.mxu0 %vm1646_vm10, %v6542_v36  ;;  %v1542_v36 = vmul.f32 %v1517_v56, %v11943_v32 }
 0x2dd   :  { %2503 = vrot.lane.b32.xlu1 %v7443_v21, %s6592_s25  ;;  %2501 = vrot.lane.b32.xlu0 %v7397_v26, %s6592_s25  ;;  %v1514_v34 = vpop.permute.xlu1 %1513  ;;  %v7735_v50 = vpop.permute.xlu2 %2020 }
 0x2de   :  { %2517 = vrot.lane.b32.xlu2 %v7400_v44, %s6592_s25  ;;  %v1518_v19 = vsel %vm65_vm0, %v7608_v54, %v1514_v34  ;;  %v1530_v61 = vsel %vm65_vm0, %v1514_v34, %v1490_v16  ;;  %v7749_v4 = vpop.permute.xlu0 %1839  ;;  %v1528_v54 = vsel %vm65_vm0, %v7537_v27, %v7553_v35  ;;  %v1538_v16 = vmul.f32 %v1516_v9, %v11943_v32 }
 0x2df   :  { %v1543_v41 = vmul.f32 %v1530_v61, %v11942_v18  ;;  %v1546_v33 = vmul.f32 %v1518_v19, %v11943_v32  ;;  %v1535_v55 = vmul.f32 %v1528_v54, %v11942_v18 }
 0x2e0   :  { %v1554_v35 = vpack.c.bf16 %v1538_v16, %v1534_v62 }
 0x2e1   :  { %v1555_v2 = vpack.c.bf16 %v1543_v41, %v1539_v52  ;;  %v1558_v28 = vpack.c.bf16 %v1546_v33, %v1542_v36  ;;  %v1551_v27 = vpack.c.bf16 %v1535_v55, %v1531_v29  ;;  %v11944_v36 = vld [vmem:[#allocation13_spill] sm:$0xff] }
 0x2e3   :  { %1751 = vmatpush.bf16.msra.mxu0 %v1555_v2  ;;  %1808 = vmatpush.bf16.msra.mxu3 %v1558_v28 }
 0x2e5   :  { %2525 = vrot.lane.b32.xlu1 %v7423_v13, %s6592_s25  ;;  %2497 = vrot.lane.b32.xlu0 %v7323_v10, %s6592_s25  ;;  %v1832_v48 = vpop.permute.xlu1 %1831  ;;  %v1852_v20 = vpop.permute.xlu2 %1851 }
 0x2e6   :  { %2334 = vrot.lane.b32.xlu2 %v7445_v51, %s6591_s24  ;;  %v1826_v38 = vpop.permute.xlu0 %1825 }
 0x2e7   :  { %1752 = vmatpush.bf16.msra.mxu0 %v1551_v27  ;;  %1809 = vmatpush.bf16.msra.mxu3 %v1554_v35  ;;  %v1867_v53 = vsel %vm344_vm4, %v7708_v25, %v1826_v38  ;;  %v1861_v27 = vsel %vm344_vm4, %v7710_v11, %v7712_v23  ;;  %v1859_v35 = vsel %vm344_vm4, %v7700_v24, %v7577_v40 }
 0x2e8   :  { %v1877_v41 = vmul.f32 %v1867_v53, %v11944_v36 }
 0x2ea   :  { %6157 = vmatmul.msk.bf16.vlgmr.msra.gmra.mxu2 %vm1646_vm10, %v6539_v7 }
 0x2eb   :  { %6156 = vmatmul.msk.bf16.gmra.mxu1 %vm1646_vm10, %v6540_v12 }
 0x2ec   :  { %6159 = vmatmul.msk.bf16.vlgmr.msra.gmra.mxu3 %vm1646_vm10, %v6539_v7  ;;  %6153 = vmatmul.msk.bf16.vlgmr.msra.gmra.mxu0 %vm1646_vm10, %v6539_v7  ;;  %v1863_v7 = vsel %vm344_vm4, %v1826_v38, %v7700_v24 }
 0x2ed   :  { %2342 = vrot.lane.b32.xlu1 %v7447_v6, %s6591_s24  ;;  %2515 = vrot.lane.b32.xlu0 %v7365_v42, %s6592_s25  ;;  %v1846_v37 = vpop.permute.xlu1 %1845  ;;  %v7786_v14 = vpop.permute.xlu2 %2034  ;;  %v1878_v16 = vmul.f32 %v1863_v7, %v11945_v43 }
 0x2ee   :  { %2513 = vrot.lane.b32.xlu2 %v7336_v17, %s6592_s25  ;;  %v1824_v39 = vpop.permute.xlu0 %1823  ;;  %v1865_v9 = vsel %vm344_vm4, %v1846_v37, %v7710_v11  ;;  %v1855_v11 = vsel %vm344_vm4, %v7577_v40, %v7708_v25  ;;  %v1858_v40 = vsel %vm344_vm4, %v1832_v48, %v7749_v4 }
 0x2ef   :  { %v1866_v31 = vsel %vm344_vm4, %v7697_v0, %v1824_v39  ;;  %v1869_v29 = vmul.f32 %v1865_v9, %v11944_v36  ;;  %v1862_v2 = vsel %vm344_vm4, %v1824_v39, %v1832_v48  ;;  %v1857_v48 = vsel %vm344_vm4, %v7712_v23, %v7659_v63 }
 0x2f0   :  { %v1873_v28 = vmul.f32 %v1866_v31, %v11944_v36  ;;  %v1874_v38 = vmul.f32 %v1862_v2, %v11945_v43 }
 0x2f2   :  { %v1890_v53 = vpack.c.bf16 %v1873_v28, %v1869_v29  ;;  %v1854_v28 = vsel %vm344_vm4, %v7749_v4, %v7697_v0 }
 0x2f5   :  { %2499 = vrot.lane.b32.xlu1 %v7352_v5, %s6592_s25  ;;  %2509 = vrot.lane.b32.xlu0 %v7380_v59, %s6592_s25  ;;  %v1828_v56 = vpop.permute.xlu1 %1827  ;;  %v7800_v34 = vpop.permute.xlu2 %2016 }
 0x2f6   :  { %2523 = vrot.lane.b32.xlu2 %v7378_v3, %s6592_s25  ;;  %v1864_v19 = vsel %vm344_vm4, %v1828_v56, %v7695_v46  ;;  %v1868_v61 = vsel %vm344_vm4, %v1852_v20, %v1828_v56  ;;  %v7813_v52 = vpop.permute.xlu0 %2026  ;;  %v11946_v56 = vld [vmem:[#allocation11_spill] sm:$0xff] }
 0x2f7   :  { %v1881_v33 = vmul.f32 %v1868_v61, %v11944_v36  ;;  %v1882_v54 = vmul.f32 %v1864_v19, %v11945_v43  ;;  %v1879_v9 = vmul.f32 %v1859_v35, %v11946_v56  ;;  %v11947_v19 = vld [vmem:[#allocation14_spill] sm:$0xff]  ;;  %v1871_v23 = vmul.f32 %v1857_v48, %v11946_v56 }
 0x2f8   :  { %v1880_v61 = vmul.f32 %v1855_v11, %v11947_v19 }
 0x2f9   :  { %v1894_v62 = vpack.c.bf16 %v1881_v33, %v1877_v41  ;;  %v1895_v55 = vpack.c.bf16 %v1882_v54, %v1878_v16  ;;  %v1875_v16 = vmul.f32 %v1858_v40, %v11946_v56 }
 0x2fa   :  { %6158 = vmatmul.msk.bf16.gmra.mxu2 %vm1646_vm10, %v6540_v12 }
 0x2fb   :  { %1920 = vmatpush.bf16.msrb.mxu0 %v1894_v62  ;;  %1939 = vmatpush.bf16.msrb.mxu1 %v1895_v55  ;;  %v1876_v55 = vmul.f32 %v1854_v28, %v11947_v19  ;;  %v1892_v4 = vpack.c.bf16 %v1875_v16, %v1871_v23  ;;  %v11949_v16 = vld [vmem:[#allocation18_spill] sm:$0xff] }
 0x2fc   :  { %6160 = vmatmul.msk.bf16.gmra.mxu3 %vm1646_vm10, %v6540_v12  ;;  %6154 = vmatmul.msk.bf16.gmra.mxu0 %vm1646_vm10, %v6540_v12  ;;  %v1870_v12 = vmul.f32 %v1861_v27, %v11945_v43 }
 0x2fd   :  { %2521 = vrot.lane.b32.xlu1 %v7338_v57, %s6592_s25  ;;  %2507 = vrot.lane.b32.xlu0 %v7354_v8, %s6592_s25  ;;  %v7845_v39 = vpop.permute.xlu1 %2018  ;;  %v7847_v24 = vpop.permute.xlu2 %2030 }
 0x2fe   :  { %2505 = vrot.lane.b32.xlu2 %v7325_v45, %s6592_s25  ;;  %v1844_v7 = vpop.permute.xlu0 %1843  ;;  %v1891_v54 = vpack.c.bf16 %v1874_v38, %v1870_v12  ;;  %v2044_v48 = vsel %vm499_vm5, %v7845_v39, %v7813_v52 }
 0x2ff   :  { %v1856_v25 = vsel %vm344_vm4, %v1844_v7, %v1852_v20  ;;  %v1860_v31 = vsel %vm344_vm4, %v7695_v46, %v1844_v7  ;;  %1921 = vmatpush.bf16.msrb.mxu0 %v1890_v53  ;;  %v1853_v20 = vsel %vm344_vm4, %v7659_v63, %v1846_v37  ;;  %v6543_v46 = vld [vmem:[%s11686_s4 + $0x20] sm:$0xff]  ;;  %v6544_v53 = vld [vmem:[%s11686_s4 + $0x28] sm:$0xff] }
 0x300   :  { %v1883_v41 = vmul.f32 %v1860_v31, %v11946_v56  ;;  %v1884_v33 = vmul.f32 %v1856_v25, %v11947_v19  ;;  %1940 = vmatpush.bf16.msrb.mxu1 %v1891_v54  ;;  %v1872_v62 = vmul.f32 %v1853_v20, %v11947_v19  ;;  %v11948_v31 = vld [vmem:[#allocation16_spill] sm:$0xff]  ;;  %v2040_v54 = vsel %vm499_vm5, %v7813_v52, %v7786_v14 }
 0x301   :  { %v2065_v52 = vmul.f32 %v2040_v54, %v11949_v16 }
 0x302   :  { %v1896_v29 = vpack.c.bf16 %v1883_v41, %v1879_v9  ;;  %v1897_v2 = vpack.c.bf16 %v1884_v33, %v1880_v61  ;;  %v1893_v27 = vpack.c.bf16 %v1876_v55, %v1872_v62 }
 0x303   :  { %6175 = vmatmul.msk.bf16.vlgmr.msrb.gmra.mxu1 %vm1646_vm10, %v6543_v46 }
 0x304   :  { %1958 = vmatpush.bf16.msrb.mxu2 %v1896_v29  ;;  %1977 = vmatpush.bf16.msrb.mxu3 %v1897_v2 }
 0x305   :  { %2511 = vrot.lane.b32.xlu1 %v7435_v30, %s6592_s25  ;;  %2702 = vrot.lane.b32.xlu0 %v7400_v44, %s6593_s26  ;;  %v7884_v63 = vpop.permute.xlu1 %2014  ;;  %v2013_v37 = vpop.permute.xlu2 %2012 }
 0x306   :  { %2688 = vrot.lane.b32.xlu2 %v7443_v21, %s6593_s26  ;;  %v2023_v0 = vpop.permute.xlu0 %2022  ;;  %v2049_v12 = vsel %vm499_vm5, %v2013_v37, %v7735_v50 }
 0x307   :  { %v2067_v61 = vmul.f32 %v2049_v12, %v11948_v31  ;;  %v11951_v12 = vld [vmem:[#allocation17_spill] sm:$0xff] }
 0x308   :  { %1959 = vmatpush.bf16.msrb.mxu2 %v1892_v4  ;;  %1978 = vmatpush.bf16.msrb.mxu3 %v1893_v27 }
 0x30b   :  { %6177 = vmatmul.msk.bf16.vlgmr.msrb.gmra.mxu2 %vm1646_vm10, %v6543_v46 }
 0x30c   :  { %6173 = vmatmul.msk.bf16.vlgmr.msrb.gmra.mxu0 %vm1646_vm10, %v6543_v46  ;;  %6179 = vmatmul.msk.bf16.vlgmr.msrb.gmra.mxu3 %vm1646_vm10, %v6543_v46 }
 0x30d   :  { %2686 = vrot.lane.b32.xlu1 %v7397_v26, %s6593_s26  ;;  %2519 = vrot.lane.b32.xlu0 %v7445_v51, %s6592_s25  ;;  %v2025_v35 = vpop.permute.xlu1 %2024  ;;  %v7896_v38 = vpop.permute.xlu2 %2316 }
 0x30e   :  { %2527 = vrot.lane.b32.xlu2 %v7447_v6, %s6592_s25  ;;  %v2033_v11 = vpop.permute.xlu0 %2032  ;;  %v2043_v2 = vsel %vm499_vm5, %v7800_v34, %v2025_v35 }
 0x30f   :  { %v2039_v23 = vsel %vm499_vm5, %v2025_v35, %v2033_v11 }
 0x313   :  { %6176 = vmatmul.msk.bf16.gmra.mxu1 %vm1646_vm10, %v6544_v53 }
 0x315   :  { %2682 = vrot.lane.b32.xlu1 %v7323_v10, %s6593_s26  ;;  %2698 = vrot.lane.b32.xlu0 %v7336_v17, %s6593_s26  ;;  %v2011_v7 = vpop.permute.xlu1 %2010 }
 0x316   :  { %2710 = vrot.lane.b32.xlu2 %v7423_v13, %s6593_s26  ;;  %v2048_v9 = vsel %vm499_vm5, %v2011_v7, %v7845_v39  ;;  %v2007_v40 = vpop.permute.xlu0 %2006  ;;  %v7916_v25 = vpop.permute.xlu2 %2312  ;;  %v2052_v20 = vsel %vm499_vm5, %v7786_v14, %v2011_v7  ;;  %v11950_v39 = vld [vmem:[#allocation15_spill] sm:$0xff] }
 0x317   :  { %v2063_v41 = vmul.f32 %v2048_v9, %v11948_v31  ;;  %v2064_v29 = vmul.f32 %v2044_v48, %v11950_v39  ;;  %v2038_v9 = vsel %vm499_vm5, %v2023_v0, %v7847_v24 }
 0x319   :  { %v2080_v33 = vpack.c.bf16 %v2067_v61, %v2063_v41  ;;  %v2060_v61 = vmul.f32 %v2043_v2, %v11950_v39 }
 0x31b   :  { %6178 = vmatmul.msk.bf16.gmra.mxu2 %vm1646_vm10, %v6544_v53  ;;  %2124 = vmatpush.bf16.msra.mxu1 %v2080_v33 }
 0x31c   :  { %6174 = vmatmul.msk.bf16.gmra.mxu0 %vm1646_vm10, %v6544_v53  ;;  %6180 = vmatmul.msk.bf16.gmra.mxu3 %vm1646_vm10, %v6544_v53  ;;  %v2042_v53 = vsel %vm499_vm5, %v7884_v63, %v2023_v0  ;;  %v2050_v0 = vsel %vm499_vm5, %v7847_v24, %v2007_v40 }
 0x31d   :  { %2700 = vrot.lane.b32.xlu1 %v7365_v42, %s6593_s26  ;;  %2708 = vrot.lane.b32.xlu0 %v7378_v3, %s6593_s26  ;;  %v2029_v46 = vpop.permute.xlu1 %2028  ;;  %v2056_v48 = vmul.f32 %v2042_v53, %v11950_v39 }
 0x31e   :  { %2684 = vrot.lane.b32.xlu2 %v7352_v5, %s6593_s26  ;;  %v2045_v14 = vsel %vm499_vm5, %v7735_v50, %v2029_v46  ;;  %v2037_v28 = vpop.permute.xlu0 %2036  ;;  %v2062_v50 = vmul.f32 %v2052_v20, %v11951_v12  ;;  %v2057_v20 = vmul.f32 %v2038_v9, %v11949_v16  ;;  %v2198_v9 = vpack.c.bf16 %v7365_v42, %v7336_v17 }
 0x31f   :  { %v2068_v62 = vmul.f32 %v2045_v14, %v11950_v39  ;;  %v2041_v55 = vsel %vm499_vm5, %v2029_v46, %v2037_v28  ;;  %v2053_v4 = vsel %vm499_vm5, %v2037_v28, %v2013_v37  ;;  %v7955_v27 = vpop.permute.xlu2 %2330  ;;  %v2061_v37 = vmul.f32 %v2039_v23, %v11949_v16 }
 0x320   :  { %v2066_v7 = vmul.f32 %v2053_v4, %v11951_v12  ;;  %v2069_v35 = vmul.f32 %v2041_v55, %v11949_v16  ;;  %v2046_v46 = vsel %vm499_vm5, %v2007_v40, %v7884_v63  ;;  %v2202_v14 = vpack.c.bf16 %v7445_v51, %v7400_v44 }
 0x321   :  { %v2081_v41 = vpack.c.bf16 %v2068_v62, %v2064_v29  ;;  %v2077_v29 = vpack.c.bf16 %v2060_v61, %v2056_v48  ;;  %v2078_v2 = vpack.c.bf16 %v2061_v37, %v2057_v20  ;;  %v2054_v28 = vmul.f32 %v2050_v0, %v11951_v12 }
 0x322   :  { %v2079_v33 = vpack.c.bf16 %v2066_v7, %v2062_v50  ;;  %v2082_v54 = vpack.c.bf16 %v2069_v35, %v2065_v52  ;;  %v2055_v23 = vmul.f32 %v2046_v46, %v11948_v31  ;;  %v2200_v7 = vpack.c.bf16 %v7443_v21, %v7397_v26 }
 0x323   :  { %2143 = vmatpush.bf16.msra.mxu2 %v2081_v41  ;;  %v2201_v35 = vpack.c.bf16 %v7435_v30, %v7380_v59  ;;  %v2199_v41 = vpack.c.bf16 %v7378_v3, %v7338_v57  ;;  %v2197_v48 = vpack.c.bf16 %v7354_v8, %v7325_v45 }
 0x324   :  { %2105 = vmatpush.bf16.msra.mxu0 %v2079_v33  ;;  %2162 = vmatpush.bf16.msra.mxu3 %v2082_v54  ;;  %v2196_v54 = vpack.c.bf16 %v7352_v5, %v7323_v10 }
 0x325   :  { %2694 = vrot.lane.b32.xlu1 %v7380_v59, %s6593_s26  ;;  %2690 = vrot.lane.b32.xlu0 %v7325_v45, %s6593_s26  ;;  %v2009_v52 = vpop.permute.xlu1 %2008 }
 0x326   :  { %2706 = vrot.lane.b32.xlu2 %v7338_v57, %s6593_s26  ;;  %v2047_v63 = vsel %vm499_vm5, %v2009_v52, %v7800_v34  ;;  %v2051_v24 = vsel %vm499_vm5, %v2033_v11, %v2009_v52  ;;  %v7987_v40 = vpop.permute.xlu0 %2318  ;;  %v6545_v34 = vld [vmem:[%s11686_s4 + $0x30] sm:$0xff]  ;;  %v2203_v11 = vpack.c.bf16 %v7447_v6, %v7423_v13  ;;  %v6546_v52 = vld [vmem:[%s11686_s4 + $0x38] sm:$0xff] }
 0x327   :  { %v2058_v62 = vmul.f32 %v2051_v24, %v11951_v12  ;;  %v2059_v55 = vmul.f32 %v2047_v63, %v11948_v31  ;;  %2144 = vmatpush.bf16.msra.mxu2 %v2077_v29 }
 0x328   :  { %v2325_v4 = vpop.permute.xlu2 %2324  ;;  %2163 = vmatpush.bf16.msra.mxu3 %v2078_v2 }
 0x329   :  { %v2075_v53 = vpack.c.bf16 %v2058_v62, %v2054_v28  ;;  %v2076_v50 = vpack.c.bf16 %v2059_v55, %v2055_v23  ;;  %v11952_v28 = vld [vmem:[#allocation20_spill] sm:$0xff] }
 0x32b   :  { %2264 = vmatpush.bf16.msrb.mxu2 %v2202_v14  ;;  %2106 = vmatpush.bf16.msra.mxu0 %v2075_v53 }
 0x32c   :  { %2283 = vmatpush.bf16.msrb.mxu3 %v2203_v11  ;;  %6197 = vmatmul.msk.bf16.vlgmr.msra.gmra.mxu2 %vm1646_vm10, %v6545_v34 }
 0x32d   :  { %2704 = vrot.lane.b32.xlu1 %v7445_v51, %s6593_s26  ;;  %2125 = vmatpush.bf16.msra.mxu1 %v2076_v50  ;;  %v8012_v61 = vpop.permute.xlu1 %2332 }
 0x32e   :  { %6199 = vmatmul.msk.bf16.vlgmr.msra.gmra.mxu3 %vm1646_vm10, %v6545_v34  ;;  %2712 = vrot.lane.b32.xlu0 %v7447_v6, %s6593_s26  ;;  %v8018_v37 = vpop.permute.xlu0 %2340 }
 0x32f   :  { %2696 = vrot.lane.b32.xlu2 %v7435_v30, %s6593_s26  ;;  %2226 = vmatpush.bf16.msrb.mxu0 %v2200_v7 }
 0x330   :  { %2265 = vmatpush.bf16.msrb.mxu2 %v2198_v9  ;;  %v2323_v33 = vpop.permute.xlu2 %2322  ;;  %2284 = vmatpush.bf16.msrb.mxu3 %v2199_v41 }
 0x331   :  { %2245 = vmatpush.bf16.msrb.mxu1 %v2201_v35  ;;  %6193 = vmatmul.msk.bf16.vlgmr.msra.gmra.mxu0 %vm1646_vm10, %v6545_v34 }
 0x332   :  { %6195 = vmatmul.msk.bf16.vlgmr.msra.gmra.mxu1 %vm1646_vm10, %v6545_v34 }
 0x333   :  { %2227 = vmatpush.bf16.msrb.mxu0 %v2196_v54  ;;  %v2349_v54 = vsel %vm783_vm6, %v2323_v33, %v7955_v27 }
 0x335   :  { %2246 = vmatpush.bf16.msrb.mxu1 %v2197_v48  ;;  %2692 = vrot.lane.b32.xlu1 %v7354_v8, %s6593_s26  ;;  %v8030_v20 = vpop.permute.xlu1 %2328 }
 0x336   :  { %2873 = vrot.lane.b32.xlu0 %v7443_v21, %s6594_s27  ;;  %v8034_v46 = vpop.permute.xlu0 %2314 }
 0x337   :  { %2871 = vrot.lane.b32.xlu2 %v7397_v26, %s6594_s27  ;;  %v2353_v35 = vsel %vm783_vm6, %v8034_v46, %v2323_v33 }
 0x338   :  { %v8036_v0 = vpop.permute.xlu2 %2517  ;;  %v8041_v29 = vpop.f32.mrf.mxu1 }
 0x33c   :  { %6198 = vmatmul.msk.bf16.gmra.mxu2 %vm1646_vm10, %v6546_v52 }
 0x33d   :  { %2887 = vrot.lane.b32.xlu1 %v7400_v44, %s6594_s27  ;;  %v2354_v44 = vsel %vm783_vm6, %v7896_v38, %v2325_v4 }
 0x33e   :  { %6200 = vmatmul.msk.bf16.gmra.mxu3 %vm1646_vm10, %v6546_v52  ;;  %2895 = vrot.lane.b32.xlu0 %v7423_v13, %s6594_s27  ;;  %v2368_v23 = vmul.f32 %v2354_v44, %v11952_v28 }
 0x33f   :  { %2867 = vrot.lane.b32.xlu2 %v7323_v10, %s6594_s27  ;;  %v8051_v26 = vpop.permute.xlu1 %2338  ;;  %v8053_v21 = vpop.permute.xlu0 %2336  ;;  %v2350_v10 = vsel %vm783_vm6, %v2325_v4, %v8012_v61 }
 0x340   :  { %v8055_v63 = vpop.permute.xlu2 %2334  ;;  %v8058_v24 = vpop.f32.mrf.mxu1 }
 0x341   :  { %6194 = vmatmul.msk.bf16.gmra.mxu0 %vm1646_vm10, %v6546_v52 }
 0x342   :  { %6196 = vmatmul.msk.bf16.gmra.mxu1 %vm1646_vm10, %v6546_v52 }
 0x345   :  { %2883 = vrot.lane.b32.xlu1 %v7336_v17, %s6594_s27  ;;  %v6547_v17 = vld [vmem:[%s11686_s4 + $0x40] sm:$0xff] }
 0x346   :  { %2869 = vrot.lane.b32.xlu0 %v7352_v5, %s6594_s27 }
 0x347   :  { %2885 = vrot.lane.b32.xlu2 %v7365_v42, %s6594_s27  ;;  %v2321_v13 = vpop.permute.xlu1 %2320  ;;  %v2327_v2 = vpop.permute.xlu0 %2326  ;;  %v11953_v42 = vld [vmem:[#allocation21_spill] sm:$0xff] }
 0x348   :  { %v8073_v14 = vpop.permute.xlu2 %2513  ;;  %v2351_v5 = vsel %vm783_vm6, %v2327_v2, %v8055_v63  ;;  %v2355_v62 = vsel %vm783_vm6, %v7987_v40, %v2327_v2  ;;  %v8085_v55 = vpop.f32.mrf.mxu1  ;;  %v2369_v4 = vmul.f32 %v2350_v10, %v11953_v42  ;;  %v2352_v34 = vsel %vm783_vm6, %v7916_v25, %v2321_v13 }
 0x349   :  { %v2372_v11 = vmul.f32 %v2355_v62, %v11952_v28  ;;  %v2373_v53 = vmul.f32 %v2351_v5, %v11953_v42  ;;  %v8093_v50 = vpop.f32.mrf.mxu0  ;;  %v2348_v7 = vsel %vm783_vm6, %v2321_v13, %v8030_v20  ;;  %v2360_v48 = vmul.f32 %v2352_v34, %v11952_v28 }
 0x34a   :  { %v2361_v52 = vmul.f32 %v2348_v7, %v11953_v42  ;;  %v2364_v10 = vmul.f32 %v2353_v35, %v11952_v28 }
 0x34b   :  { %v2385_v9 = vpack.c.bf16 %v2372_v11, %v2368_v23  ;;  %v2386_v41 = vpack.c.bf16 %v2373_v53, %v2369_v4 }
 0x34c   :  { %6217 = vmatmul.msk.bf16.vlgmr.msrb.gmra.mxu2 %vm1646_vm10, %v6547_v17  ;;  %v2381_v5 = vpack.c.bf16 %v2364_v10, %v2360_v48 }
 0x34d   :  { %2897 = vrot.lane.b32.xlu1 %v7447_v6, %s6594_s27  ;;  %v8112_v44 = vpop.f32.mrf.mxu2  ;;  %2411 = vmatpush.bf16.msra.mxu0 %v2385_v9  ;;  %v2365_v6 = vmul.f32 %v2349_v54, %v11953_v42  ;;  %v2346_v9 = vsel %vm783_vm6, %v8012_v61, %v8018_v37  ;;  %v11954_v54 = vld [vmem:[#allocation22_spill] sm:$0xff] }
 0x34e   :  { %6219 = vmatmul.msk.bf16.vlgmr.msrb.gmra.mxu3 %vm1646_vm10, %v6547_v17  ;;  %2891 = vrot.lane.b32.xlu0 %v7338_v57, %s6594_s27  ;;  %v2370_v48 = vmul.f32 %v2346_v9, %v11954_v54 }
 0x34f   :  { %2889 = vrot.lane.b32.xlu2 %v7445_v51, %s6594_s27  ;;  %v8117_v33 = vpop.f32.mrf.mxu3  ;;  %v8119_v13 = vpop.permute.xlu1 %2503  ;;  %2430 = vmatpush.bf16.msra.mxu1 %v2386_v41  ;;  %v2382_v62 = vpack.c.bf16 %v2365_v6, %v2361_v52  ;;  %v2358_v41 = vsel %vm783_vm6, %v8018_v37, %v7896_v38  ;;  %v11955_v52 = vld [vmem:[#allocation19_spill] sm:$0xff]  ;;  %v2344_v37 = vsel %vm783_vm6, %v8030_v20, %v8053_v21 }
 0x350   :  { %v8122_v2 = vpop.permute.xlu0 %2501  ;;  %v8124_v23 = vpop.permute.xlu2 %2523  ;;  %v2371_v10 = vmul.f32 %v2358_v41, %v11955_v52  ;;  %v2356_v20 = vsel %vm783_vm6, %v8053_v21, %v7916_v25  ;;  %v3053_v41 = vld [vmem:[%s11687_s5 + $0x8] sm:$0xff] }
 0x351   :  { %6213 = vmatmul.msk.bf16.vlgmr.msrb.gmra.mxu0 %vm1646_vm10, %v6547_v17  ;;  %v8127_v57 = vpop.f32.mrf.mxu1  ;;  %v8130_v51 = vpop.f32.mrf.mxu0 }
 0x352   :  { %6215 = vmatmul.msk.bf16.vlgmr.msrb.gmra.mxu1 %vm1646_vm10, %v6547_v17  ;;  %2412 = vmatpush.bf16.msra.mxu0 %v2381_v5 }
 0x353   :  { %2431 = vmatpush.bf16.msra.mxu1 %v2382_v62 }
 0x355   :  { %2893 = vrot.lane.b32.xlu1 %v7378_v3, %s6594_s27  ;;  %v8136_v4 = vpop.f32.mrf.mxu2  ;;  %v6548_v3 = vld [vmem:[%s11686_s4 + $0x48] sm:$0xff] }
 0x356   :  { %2881 = vrot.lane.b32.xlu0 %v7435_v30, %s6594_s27 }
 0x357   :  { %2879 = vrot.lane.b32.xlu2 %v7380_v59, %s6594_s27  ;;  %v8140_v34 = vpop.f32.mrf.mxu3  ;;  %v8142_v11 = vpop.permute.xlu1 %2525  ;;  %v3054_v59 = vld [vmem:[%s11687_s5 + $0x10] sm:$0xff] }
 0x358   :  { %v8144_v17 = vpop.permute.xlu0 %2497  ;;  %v8146_v53 = vpop.permute.xlu2 %2505 }
 0x359   :  { %v1773_v7 = vpop.f32.mrf.mxu1  ;;  %v8151_v35 = vpop.f32.mrf.mxu0 }
 0x35a   :  { %v8154_v30 = vadd.f32 %v1773_v7, %v8041_v29 }
 0x35c   :  { %6218 = vmatmul.msk.bf16.gmra.mxu2 %vm1646_vm10, %v6548_v3 }
 0x35d   :  { %2875 = vrot.lane.b32.xlu1 %v7325_v45, %s6594_s27  ;;  %v8171_v29 = vpop.f32.mrf.mxu2  ;;  %v2345_v45 = vsel %vm783_vm6, %v7955_v27, %v8051_v26  ;;  %v2357_v27 = vsel %vm783_vm6, %v8051_v26, %v8034_v46  ;;  %v3055_v46 = vld [vmem:[%s11687_s5 + $0x18] sm:$0xff]  ;;  %v2362_v26 = vmul.f32 %v2344_v37, %v11954_v54 }
 0x35e   :  { %6220 = vmatmul.msk.bf16.gmra.mxu3 %vm1646_vm10, %v6548_v3  ;;  %3068 = vperm.xlu0 %6585, %v3054_v59   ;;  %v2366_v25 = vmul.f32 %v2345_v45, %v11954_v54 }
 0x35f   :  { %2877 = vrot.lane.b32.xlu2 %v7354_v8, %s6594_s27  ;;  %v8177_v61 = vpop.f32.mrf.mxu3  ;;  %v2343_v38 = vpop.permute.xlu1 %2342 }
 0x360   :  { %v2347_v6 = vsel %vm783_vm6, %v8055_v63, %v2343_v38  ;;  %v2359_v8 = vsel %vm783_vm6, %v2343_v38, %v7987_v40  ;;  %v8193_v5 = vpop.permute.xlu0 %2515  ;;  %v8205_v7 = vpop.permute.xlu2 %2688  ;;  %v2367_v38 = vmul.f32 %v2357_v27, %v11955_v52  ;;  %v2383_v37 = vpack.c.bf16 %v2366_v25, %v2362_v26 }
 0x361   :  { %v2374_v62 = vmul.f32 %v2347_v6, %v11954_v54  ;;  %v2375_v63 = vmul.f32 %v2359_v8, %v11955_v52  ;;  %6214 = vmatmul.msk.bf16.gmra.mxu0 %vm1646_vm10, %v6548_v3  ;;  %v8208_v40 = vpop.f32.mrf.mxu1  ;;  %v8211_v59 = vpop.f32.mrf.mxu0  ;;  %v3052_v6 = vld [vmem:[%s11687_s5] sm:$0xff]  ;;  %v2543_v8 = vsel %vm938_vm7, %v8142_v11, %v8122_v2 }
 0x362   :  { %6216 = vmatmul.msk.bf16.gmra.mxu1 %vm1646_vm10, %v6548_v3  ;;  %v2363_v3 = vmul.f32 %v2356_v20, %v11955_v52 }
 0x363   :  { %v2387_v21 = vpack.c.bf16 %v2374_v62, %v2370_v48  ;;  %v2388_v9 = vpack.c.bf16 %v2375_v63, %v2371_v10  ;;  %v6549_v62 = vld [vmem:[%s11686_s4 + $0x50] sm:$0xff] }
 0x364   :  { %v2384_v20 = vpack.c.bf16 %v2367_v38, %v2363_v3 }
 0x365   :  { %3073 = vperm.xlu1 %6586, %v3055_v46   ;;  %2449 = vmatpush.bf16.msra.mxu2 %v2387_v21  ;;  %v8226_v45 = vpop.f32.mrf.mxu2 }
 0x366   :  { %3063 = vperm.xlu0 %6585, %v3053_v41   ;;  %2468 = vmatpush.bf16.msra.mxu3 %v2388_v9  ;;  %v11956_v9 = vld [vmem:[#allocation24_spill] sm:$0xff] }
 0x367   :  { %3058 = vperm.xlu2 %6584, %v3052_v6   ;;  %v8228_v48 = vpop.f32.mrf.mxu3  ;;  %v2500_v10 = vpop.permute.xlu1 %2499  ;;  %v2556_v41 = vmul.f32 %v2543_v8, %v11956_v9 }
 0x368   :  { %v2510_v27 = vpop.permute.xlu0 %2509  ;;  %v8237_v63 = vpop.permute.xlu2 %2527 }
 0x369   :  { %v1778_v46 = vpop.f32.mrf.mxu1  ;;  %2450 = vmatpush.bf16.msra.mxu2 %v2383_v37  ;;  %v2544_v25 = vsel %vm938_vm7, %v8237_v63, %v8119_v13  ;;  %v1754_v26 = vpop.f32.mrf.mxu0  ;;  %v2542_v37 = vsel %vm938_vm7, %v8124_v23, %v2500_v10 }
 0x36a   :  { %v8244_v21 = vadd.f32 %v1778_v46, %v8085_v55  ;;  %2469 = vmatpush.bf16.msra.mxu3 %v2384_v20  ;;  %v2560_v38 = vmul.f32 %v2544_v25, %v11956_v9  ;;  %v8249_v3 = vadd.f32 %v1754_v26, %v8093_v50  ;;  %v2552_v26 = vmul.f32 %v2542_v37, %v11956_v9 }
 0x36c   :  { %6237 = vmatmul.msk.bf16.vlgmr.msra.gmra.mxu2 %vm1646_vm10, %v6549_v62  ;;  %v2573_v6 = vpack.c.bf16 %v2560_v38, %v2556_v41 }
 0x36d   :  { %v1792_v52 = vpop.f32.mrf.mxu2 }
 0x36e   :  { %6239 = vmatmul.msk.bf16.vlgmr.msra.gmra.mxu3 %vm1646_vm10, %v6549_v62  ;;  %v8257_v20 = vadd.f32 %v1792_v52, %v8112_v44 }
 0x36f   :  { %2653 = vmatpush.bf16.msrb.mxu3 %v2573_v6  ;;  %v2522_v55 = vpop.permute.xlu1 %2521  ;;  %v1811_v8 = vpop.f32.mrf.mxu3 }
 0x370   :  { %v2541_v50 = vsel %vm938_vm7, %v2522_v55, %v8144_v17  ;;  %v2508_v46 = vpop.permute.xlu0 %2507  ;;  %v8263_v25 = vadd.f32 %v1811_v8, %v8117_v33  ;;  %v8267_v38 = vpop.permute.xlu2 %2710  ;;  %v2539_v33 = vsel %vm938_vm7, %v8122_v2, %v2510_v27  ;;  %v11957_v2 = vld [vmem:[#allocation23_spill] sm:$0xff] }
 0x371   :  { %v2548_v41 = vmul.f32 %v2541_v50, %v11956_v9  ;;  %6233 = vmatmul.msk.bf16.vlgmr.msra.gmra.mxu0 %vm1646_vm10, %v6549_v62  ;;  %v1756_v44 = vpop.f32.mrf.mxu0 }
 0x372   :  { %6235 = vmatmul.msk.bf16.vlgmr.msra.gmra.mxu1 %vm1646_vm10, %v6549_v62  ;;  %v8272_v52 = vadd.f32 %v1756_v44, %v8130_v51 }
 0x373   :  { %v2569_v6 = vpack.c.bf16 %v2552_v26, %v2548_v41  ;;  %v6550_v26 = vld [vmem:[%s11686_s4 + $0x58] sm:$0xff]  ;;  %v2553_v41 = vmul.f32 %v2539_v33, %v11957_v2 }
 0x375   :  { %2654 = vmatpush.bf16.msrb.mxu3 %v2569_v6  ;;  %v1794_v8 = vpop.f32.mrf.mxu2 }
 0x376   :  { %v8278_v50 = vadd.f32 %v1794_v8, %v8136_v4  ;;  %v2538_v4 = vsel %vm938_vm7, %v2500_v10, %v2508_v46  ;;  %v2531_v10 = vsel %vm938_vm7, %v8036_v0, %v8142_v11 }
 0x377   :  { %v2512_v37 = vpop.permute.xlu1 %2511  ;;  %v1813_v9 = vpop.f32.mrf.mxu3  ;;  %v2549_v33 = vmul.f32 %v2538_v4, %v11957_v2 }
 0x378   :  { %v2540_v62 = vsel %vm938_vm7, %v8119_v13, %v2512_v37  ;;  %v8283_v54 = vpop.permute.xlu0 %2702  ;;  %v8286_v51 = vadd.f32 %v1813_v9, %v8140_v34  ;;  %v8295_v6 = vpop.permute.xlu2 %2684  ;;  %v2537_v13 = vsel %vm938_vm7, %v8144_v17, %v8146_v53 }
 0x379   :  { %v2557_v44 = vmul.f32 %v2540_v62, %v11957_v2  ;;  %v1759_v8 = vpop.f32.mrf.mxu0  ;;  %v8301_v34 = vpop.f32.mrf.mxu1  ;;  %v2545_v62 = vmul.f32 %v2537_v13, %v11957_v2  ;;  %v11958_v2 = vld [vmem:[#allocation26_spill] sm:$0xff] }
 0x37a   :  { %v8304_v42 = vadd.f32 %v1759_v8, %v8151_v35  ;;  %v2535_v35 = vsel %vm938_vm7, %v2510_v27, %v8036_v0  ;;  %v2529_v8 = vsel %vm938_vm7, %v8073_v14, %v2522_v55  ;;  %v2555_v28 = vmul.f32 %v2531_v10, %v11958_v2  ;;  %v11959_v55 = vld [vmem:[#allocation25_spill] sm:$0xff] }
 0x37b   :  { %v2570_v9 = vpack.c.bf16 %v2557_v44, %v2553_v41  ;;  %v2534_v0 = vsel %vm938_vm7, %v2508_v46, %v8193_v5 }
 0x37c   :  { %6238 = vmatmul.msk.bf16.gmra.mxu2 %vm1646_vm10, %v6550_v26 }
 0x37d   :  { %2596 = vmatpush.bf16.msrb.mxu0 %v2570_v9  ;;  %v1797_v17 = vpop.f32.mrf.mxu2  ;;  %v2566_v9 = vpack.c.bf16 %v2549_v33, %v2545_v62  ;;  %v2547_v62 = vmul.f32 %v2529_v8, %v11958_v2 }
 0x37e   :  { %6240 = vmatmul.msk.bf16.gmra.mxu3 %vm1646_vm10, %v6550_v26  ;;  %v8320_v4 = vadd.f32 %v1797_v17, %v8171_v29  ;;  %v2554_v17 = vmul.f32 %v2535_v35, %v11959_v55 }
 0x37f   :  { %v8317_v41 = vpop.permute.xlu1 %2686  ;;  %v1816_v44 = vpop.f32.mrf.mxu3 }
 0x380   :  { %v2520_v11 = vpop.permute.xlu0 %2519  ;;  %v8326_v13 = vadd.f32 %v1816_v44, %v8177_v61  ;;  %v8341_v10 = vpop.permute.xlu2 %2706 }
 0x381   :  { %v2532_v29 = vsel %vm938_vm7, %v2520_v11, %v8237_v63  ;;  %v2536_v27 = vsel %vm938_vm7, %v2512_v37, %v2520_v11  ;;  %6234 = vmatmul.msk.bf16.gmra.mxu0 %vm1646_vm10, %v6550_v26  ;;  %v1761_v46 = vpop.f32.mrf.mxu0  ;;  %v2533_v63 = vsel %vm938_vm7, %v8146_v53, %v8073_v14  ;;  %v2530_v37 = vsel %vm938_vm7, %v8193_v5, %v8124_v23  ;;  %v1942_v44 = vpop.f32.mrf.mxu1 }
 0x382   :  { %v2558_v61 = vmul.f32 %v2536_v27, %v11959_v55  ;;  %v2559_v33 = vmul.f32 %v2532_v29, %v11958_v2  ;;  %6236 = vmatmul.msk.bf16.gmra.mxu1 %vm1646_vm10, %v6550_v26  ;;  %2597 = vmatpush.bf16.msrb.mxu0 %v2566_v9  ;;  %v8354_v35 = vadd.f32 %v1761_v46, %v8211_v59 }
 0x383   :  { %v2550_v26 = vmul.f32 %v2534_v0, %v11959_v55  ;;  %v8358_v29 = vadd.f32 %v1942_v44, %v8154_v30  ;;  %v2546_v14 = vmul.f32 %v2533_v63, %v11959_v55  ;;  %v2551_v53 = vmul.f32 %v2530_v37, %v11958_v2 }
 0x384   :  { %11960 = vst [vmem:[#allocation37_spill] sm:$0xff] %v8354_v35  ;;  %v2571_v11 = vpack.c.bf16 %v2558_v61, %v2554_v17  ;;  %v2572_v9 = vpack.c.bf16 %v2559_v33, %v2555_v28  ;;  %v6551_v17 = vld [vmem:[%s11686_s4 + $0x60] sm:$0xff] }
 0x385   :  { %v1799_v23 = vpop.f32.mrf.mxu2  ;;  %v2567_v30 = vpack.c.bf16 %v2550_v26, %v2546_v14  ;;  %v2568_v0 = vpack.c.bf16 %v2551_v53, %v2547_v62 }
 0x386   :  { %2615 = vmatpush.bf16.msrb.mxu1 %v2571_v11  ;;  %2634 = vmatpush.bf16.msrb.mxu2 %v2572_v9  ;;  %v8365_v59 = vadd.f32 %v1799_v23, %v8226_v45 }
 0x387   :  { %v8362_v5 = vpop.permute.xlu1 %2682  ;;  %v1818_v8 = vpop.f32.mrf.mxu3 }
 0x388   :  { %v8367_v27 = vpop.permute.xlu0 %2698  ;;  %v8370_v28 = vadd.f32 %v1818_v8, %v8228_v48 }
 0x389   :  { %v1923_v61 = vpop.f32.mrf.mxu0  ;;  %v8378_v45 = vpop.f32.mrf.mxu1 }
 0x38a   :  { %2616 = vmatpush.bf16.msrb.mxu1 %v2567_v30  ;;  %2635 = vmatpush.bf16.msrb.mxu2 %v2568_v0  ;;  %v8376_v33 = vadd.f32 %v1923_v61, %v8249_v3  ;;  %v2697_v46 = vpop.permute.xlu2 %2696  ;;  %v11961_v0 = vld [vmem:[#allocation27_spill] sm:$0xff] }
 0x38b   :  { %v2725_v14 = vsel %vm1093_vm8, %v8205_v7, %v2697_v46 }
 0x38d   :  { %6257 = vmatmul.msk.bf16.vlgmr.msrb.gmra.mxu2 %vm1646_vm10, %v6551_v17 }
 0x38e   :  { %6259 = vmatmul.msk.bf16.vlgmr.msrb.gmra.mxu3 %vm1646_vm10, %v6551_v17  ;;  %v1961_v63 = vpop.f32.mrf.mxu2 }
 0x38f   :  { %v8382_v48 = vpop.permute.xlu1 %2700  ;;  %v8385_v62 = vadd.f32 %v1961_v63, %v8257_v20  ;;  %v1980_v44 = vpop.f32.mrf.mxu3  ;;  %v6552_v63 = vld [vmem:[%s11686_s4 + $0x68] sm:$0xff] }
 0x390   :  { %v2709_v37 = vpop.permute.xlu0 %2708  ;;  %v8389_v3 = vadd.f32 %v1980_v44, %v8263_v25 }
 0x391   :  { %6253 = vmatmul.msk.bf16.vlgmr.msrb.gmra.mxu0 %vm1646_vm10, %v6551_v17  ;;  %v8392_v26 = vpop.f32.mrf.mxu0  ;;  %v1947_v11 = vpop.f32.mrf.mxu1 }
 0x392   :  { %6255 = vmatmul.msk.bf16.vlgmr.msrb.gmra.mxu1 %vm1646_vm10, %v6551_v17  ;;  %v8395_v9 = vadd.f32 %v1947_v11, %v8244_v21  ;;  %v8400_v20 = vpop.permute.xlu2 %2871  ;;  %v2742_v17 = vmul.f32 %v2725_v14, %v11961_v0  ;;  %v2728_v14 = vsel %vm1093_vm8, %v8267_v38, %v8317_v41 }
 0x396   :  { %v1963_v23 = vpop.f32.mrf.mxu2 }
 0x397   :  { %v2695_v53 = vpop.permute.xlu1 %2694  ;;  %v8406_v30 = vadd.f32 %v1963_v23, %v8278_v50  ;;  %v1982_v61 = vpop.f32.mrf.mxu3  ;;  %v2716_v50 = vsel %vm1093_vm8, %v8283_v54, %v8267_v38  ;;  %v2727_v38 = vsel %vm1093_vm8, %v2709_v37, %v8295_v6 }
 0x398   :  { %v2724_v25 = vsel %vm1093_vm8, %v8317_v41, %v2695_v53  ;;  %v2691_v8 = vpop.permute.xlu0 %2690  ;;  %v8414_v44 = vadd.f32 %v1982_v61, %v8286_v51  ;;  %v2720_v51 = vsel %vm1093_vm8, %v2695_v53, %v8283_v54 }
 0x399   :  { %v2738_v21 = vmul.f32 %v2724_v25, %v11961_v0  ;;  %v1928_v11 = vpop.f32.mrf.mxu0  ;;  %v11963_v25 = vld [vmem:[#allocation28_spill] sm:$0xff] }
 0x39a   :  { %v8417_v2 = vadd.f32 %v1928_v11, %v8304_v42  ;;  %v11962_v42 = vld [vmem:[#allocation30_spill] sm:$0xff]  ;;  %v2715_v11 = vsel %vm1093_vm8, %v8382_v48, %v2709_v37  ;;  %v8440_v41 = vpop.permute.xlu2 %2867 }
 0x39b   :  { %v2755_v55 = vpack.c.bf16 %v2742_v17, %v2738_v21  ;;  %v2740_v23 = vmul.f32 %v2716_v50, %v11962_v42  ;;  %v2741_v17 = vmul.f32 %v2728_v14, %v11963_v25  ;;  %v11964_v50 = vld [vmem:[#allocation29_spill] sm:$0xff] }
 0x39c   :  { %v2739_v14 = vmul.f32 %v2720_v51, %v11964_v50 }
 0x39d   :  { %6258 = vmatmul.msk.bf16.gmra.mxu2 %vm1646_vm10, %v6552_v63  ;;  %2781 = vmatpush.bf16.msra.mxu0 %v2755_v55 }
 0x39e   :  { %6260 = vmatmul.msk.bf16.gmra.mxu3 %vm1646_vm10, %v6552_v63  ;;  %v1966_v61 = vpop.f32.mrf.mxu2 }
 0x39f   :  { %v2705_v21 = vpop.permute.xlu1 %2704  ;;  %v8445_v53 = vadd.f32 %v1966_v61, %v8320_v4  ;;  %v1985_v12 = vpop.f32.mrf.mxu3  ;;  %v2714_v4 = vsel %vm1093_vm8, %v8367_v27, %v8341_v10 }
 0x3a0   :  { %v2721_v54 = vsel %vm1093_vm8, %v2697_v46, %v2705_v21  ;;  %v2713_v55 = vpop.permute.xlu0 %2712  ;;  %v8462_v61 = vadd.f32 %v1985_v12, %v8326_v13  ;;  %v2718_v13 = vsel %vm1093_vm8, %v2691_v8, %v8367_v27 }
 0x3a1   :  { %v2743_v39 = vmul.f32 %v2721_v54, %v11964_v50  ;;  %v2717_v16 = vsel %vm1093_vm8, %v2705_v21, %v2713_v55  ;;  %v2729_v37 = vsel %vm1093_vm8, %v2713_v55, %v8205_v7  ;;  %6254 = vmatmul.msk.bf16.gmra.mxu0 %vm1646_vm10, %v6552_v63  ;;  %v2726_v7 = vsel %vm1093_vm8, %v8341_v10, %v8362_v5 }
 0x3a2   :  { %v2744_v46 = vmul.f32 %v2717_v16, %v11962_v42  ;;  %v2745_v51 = vmul.f32 %v2729_v37, %v11963_v25  ;;  %6256 = vmatmul.msk.bf16.gmra.mxu1 %vm1646_vm10, %v6552_v63  ;;  %v2736_v21 = vmul.f32 %v2715_v11, %v11962_v42  ;;  %v2737_v55 = vmul.f32 %v2727_v38, %v11963_v25  ;;  %v8479_v63 = vpop.f32.mrf.mxu1 }
 0x3a3   :  { %v2756_v54 = vpack.c.bf16 %v2743_v39, %v2739_v14  ;;  %v2732_v16 = vmul.f32 %v2714_v4, %v11962_v42  ;;  %v2733_v12 = vmul.f32 %v2726_v7, %v11963_v25  ;;  %v2722_v10 = vsel %vm1093_vm8, %v8362_v5, %v2691_v8  ;;  %v8481_v39 = vpop.f32.mrf.mxu0  ;;  %v11969_v42 = vld [vmem:[#allocation31_spill] sm:$0xff] }
 0x3a4   :  { %v2757_v31 = vpack.c.bf16 %v2744_v46, %v2740_v23  ;;  %v2758_v19 = vpack.c.bf16 %v2745_v51, %v2741_v17  ;;  %11965 = vst [vmem:[#allocation35_spill] sm:$0xff] %v8481_v39 }
 0x3a5   :  { %2800 = vmatpush.bf16.msra.mxu1 %v2756_v54  ;;  %v2753_v11 = vpack.c.bf16 %v2736_v21, %v2732_v16  ;;  %v2754_v8 = vpack.c.bf16 %v2737_v55, %v2733_v12 }
 0x3a6   :  { %2819 = vmatpush.bf16.msra.mxu2 %v2757_v31  ;;  %2838 = vmatpush.bf16.msra.mxu3 %v2758_v19  ;;  %v1968_v17 = vpop.f32.mrf.mxu2  ;;  %v2730_v31 = vmul.f32 %v2722_v10, %v11961_v0  ;;  %v2731_v19 = vmul.f32 %v2718_v13, %v11964_v50 }
 0x3a7   :  { %v2693_v23 = vpop.permute.xlu1 %2692  ;;  %v8492_v5 = vadd.f32 %v1968_v17, %v8365_v59  ;;  %v1987_v46 = vpop.f32.mrf.mxu3 }
 0x3a8   :  { %v2719_v38 = vsel %vm1093_vm8, %v2693_v23, %v8382_v48  ;;  %v2723_v27 = vsel %vm1093_vm8, %v8295_v6, %v2693_v23  ;;  %v8489_v14 = vpop.permute.xlu0 %2873  ;;  %v6553_v48 = vld [vmem:[%s11686_s4 + $0x70] sm:$0xff]  ;;  %v8501_v6 = vpop.permute.xlu2 %2885  ;;  %v8504_v51 = vadd.f32 %v1987_v46, %v8370_v28 }
 0x3a9   :  { %11966 = vst [vmem:[#allocation38_spill] sm:$0xff] %v8492_v5  ;;  %v2734_v37 = vmul.f32 %v2723_v27, %v11961_v0  ;;  %v2735_v4 = vmul.f32 %v2719_v38, %v11964_v50  ;;  %v1994_v5 = vadd.f32 %v8392_v26, %v8272_v52 }
 0x3aa   :  { %11967 = vst [vmem:[#allocation36_spill] sm:$0xff] %v8504_v51  ;;  %2820 = vmatpush.bf16.msra.mxu2 %v2753_v11  ;;  %2839 = vmatpush.bf16.msra.mxu3 %v2754_v8 }
 0x3ab   :  { %v2751_v59 = vpack.c.bf16 %v2734_v37, %v2730_v31  ;;  %v2752_v7 = vpack.c.bf16 %v2735_v4, %v2731_v19  ;;  %v6554_v31 = vld [vmem:[%s11686_s4 + $0x78] sm:$0xff] }
 0x3ad   :  { %6277 = vmatmul.msk.bf16.vlgmr.msra.gmra.mxu2 %vm1646_vm10, %v6553_v48  ;;  %2782 = vmatpush.bf16.msra.mxu0 %v2751_v59 }
 0x3ae   :  { %6279 = vmatmul.msk.bf16.vlgmr.msra.gmra.mxu3 %vm1646_vm10, %v6553_v48  ;;  %v2108_v21 = vpop.f32.mrf.mxu0  ;;  %2801 = vmatpush.bf16.msra.mxu1 %v2752_v7 }
 0x3af   :  { %v8509_v54 = vadd.f32 %v2108_v21, %v8376_v33  ;;  %v2127_v55 = vpop.f32.mrf.mxu1  ;;  %v2888_v16 = vpop.permute.xlu1 %2887 }
 0x3b0   :  { %v8512_v12 = vadd.f32 %v2127_v55, %v8358_v29  ;;  %v2896_v28 = vpop.permute.xlu0 %2895  ;;  %v2146_v13 = vpop.f32.mrf.mxu2 }
 0x3b1   :  { %v8515_v10 = vadd.f32 %v2146_v13, %v8385_v62  ;;  %v2165_v23 = vpop.f32.mrf.mxu3  ;;  %6273 = vmatmul.msk.bf16.vlgmr.msra.gmra.mxu0 %vm1646_vm10, %v6553_v48  ;;  %v2890_v33 = vpop.permute.xlu2 %2889  ;;  %v2913_v19 = vsel %vm1248_vm9, %v2896_v28, %v8400_v20 }
 0x3b2   :  { %v8519_v17 = vadd.f32 %v2165_v23, %v8389_v3  ;;  %6275 = vmatmul.msk.bf16.vlgmr.msra.gmra.mxu1 %vm1646_vm10, %v6553_v48  ;;  %v2901_v3 = vsel %vm1248_vm9, %v2888_v16, %v2896_v28  ;;  %v11968_v23 = vld [vmem:[#allocation34_spill] sm:$0xff]  ;;  %v2926_v25 = vmul.f32 %v2913_v19, %v11969_v42 }
 0x3b3   :  { %v2925_v50 = vmul.f32 %v2901_v3, %v11968_v23 }
 0x3b6   :  { %v8522_v11 = vpop.f32.mrf.mxu0 }
 0x3b7   :  { %v8524_v38 = vpop.f32.mrf.mxu1  ;;  %v8526_v29 = vpop.permute.xlu1 %2883 }
 0x3b8   :  { %v2870_v27 = vpop.permute.xlu0 %2869  ;;  %v8528_v8 = vpop.f32.mrf.mxu2 }
 0x3b9   :  { %v8530_v62 = vpop.f32.mrf.mxu3  ;;  %v2880_v37 = vpop.permute.xlu2 %2879 }
 0x3bd   :  { %6278 = vmatmul.msk.bf16.gmra.mxu2 %vm1646_vm10, %v6554_v31 }
 0x3be   :  { %6280 = vmatmul.msk.bf16.gmra.mxu3 %vm1646_vm10, %v6554_v31  ;;  %v2113_v4 = vpop.f32.mrf.mxu0 }
 0x3bf   :  { %v8543_v46 = vadd.f32 %v2113_v4, %v8417_v2  ;;  %v2132_v48 = vpop.f32.mrf.mxu1  ;;  %v2898_v59 = vpop.permute.xlu1 %2897 }
 0x3c0   :  { %v8546_v7 = vadd.f32 %v2132_v48, %v8395_v9  ;;  %v2902_v21 = vsel %vm1248_vm9, %v2890_v33, %v2898_v59  ;;  %v2914_v55 = vsel %vm1248_vm9, %v2898_v59, %v8489_v14  ;;  %v2892_v28 = vpop.permute.xlu0 %2891  ;;  %v2151_v13 = vpop.f32.mrf.mxu2 }
 0x3c1   :  { %v2929_v2 = vmul.f32 %v2902_v21, %v11968_v23  ;;  %v2930_v4 = vmul.f32 %v2914_v55, %v11969_v42  ;;  %v2170_v0 = vpop.f32.mrf.mxu3  ;;  %6274 = vmatmul.msk.bf16.gmra.mxu0 %vm1646_vm10, %v6554_v31  ;;  %v8559_v9 = vadd.f32 %v2151_v13, %v8445_v53  ;;  %v2899_v3 = vsel %vm1248_vm9, %v8526_v29, %v2892_v28  ;;  %v2878_v13 = vpop.permute.xlu2 %2877 }
 0x3c2   :  { %v8562_v48 = vadd.f32 %v2170_v0, %v8462_v61  ;;  %6276 = vmatmul.msk.bf16.gmra.mxu1 %vm1646_vm10, %v6554_v31  ;;  %v2911_v19 = vsel %vm1248_vm9, %v2892_v28, %v8440_v41  ;;  %v2905_v0 = vsel %vm1248_vm9, %v2880_v37, %v2888_v16  ;;  %v2909_v53 = vsel %vm1248_vm9, %v8400_v20, %v2880_v37 }
 0x3c3   :  { %v2942_v59 = vpack.c.bf16 %v2929_v2, %v2925_v50  ;;  %v2943_v56 = vpack.c.bf16 %v2930_v4, %v2926_v25  ;;  %v2917_v61 = vmul.f32 %v2899_v3, %v11968_v23  ;;  %v2918_v31 = vmul.f32 %v2911_v19, %v11969_v42  ;;  %v11973_v3 = vld [vmem:[#allocation32_spill] sm:$0xff] }
 0x3c4   :  { %v2923_v19 = vmul.f32 %v2909_v53, %v11973_v3 }
 0x3c5   :  { %3004 = vmatpush.bf16.msrb.mxu2 %v2942_v59  ;;  %3023 = vmatpush.bf16.msrb.mxu3 %v2943_v56 }
 0x3c6   :  { %v8571_v21 = vpop.f32.mrf.mxu0 }
 0x3c7   :  { %11970 = vst [vmem:[#allocation39_spill] sm:$0xff] %v8571_v21  ;;  %v8578_v25 = vpop.f32.mrf.mxu1  ;;  %v2894_v50 = vpop.permute.xlu1 %2893 }
 0x3c8   :  { %v2900_v56 = vsel %vm1248_vm9, %v8501_v6, %v2894_v50  ;;  %v2912_v55 = vsel %vm1248_vm9, %v2894_v50, %v2870_v27  ;;  %v2882_v28 = vpop.permute.xlu0 %2881  ;;  %v8587_v16 = vpop.f32.mrf.mxu2  ;;  %v11974_v50 = vld [vmem:[#allocation33_spill] sm:$0xff] }
 0x3c9   :  { %11971 = vst [vmem:[#allocation40_spill] sm:$0xff] %v8587_v16  ;;  %v2921_v20 = vmul.f32 %v2900_v56, %v11968_v23  ;;  %v2922_v37 = vmul.f32 %v2912_v55, %v11969_v42  ;;  %v2906_v2 = vsel %vm1248_vm9, %v2882_v28, %v2890_v33  ;;  %v2910_v4 = vsel %vm1248_vm9, %v8489_v14, %v2882_v28  ;;  %v8596_v59 = vpop.f32.mrf.mxu3  ;;  %v6555_v14 = vld [vmem:[%s11686_s4 + $0x80] sm:$0xff]  ;;  %v3059_v26 = vpop.permute.xlu2 %3058 }
 0x3ca   :  { %11972 = vst [vmem:[#allocation41_spill] sm:$0xff] %v8596_v59  ;;  %v2924_v36 = vmul.f32 %v2905_v0, %v11974_v50  ;;  %v2927_v43 = vmul.f32 %v2910_v4, %v11973_v3  ;;  %v2928_v32 = vmul.f32 %v2906_v2, %v11974_v50  ;;  %v2908_v55 = vsel %vm1248_vm9, %v2870_v27, %v2878_v13 }
 0x3cb   :  { %v2938_v56 = vpack.c.bf16 %v2921_v20, %v2917_v61  ;;  %v2939_v23 = vpack.c.bf16 %v2922_v37, %v2918_v31  ;;  %v2904_v0 = vsel %vm1248_vm9, %v2878_v13, %v8501_v6  ;;  %v2919_v61 = vmul.f32 %v2908_v55, %v11973_v3 }
 0x3cc   :  { %v2940_v33 = vpack.c.bf16 %v2927_v43, %v2923_v19  ;;  %v2941_v42 = vpack.c.bf16 %v2928_v32, %v2924_v36 }
 0x3cd   :  { %3005 = vmatpush.bf16.msrb.mxu2 %v2938_v56  ;;  %3024 = vmatpush.bf16.msrb.mxu3 %v2939_v23 }
 0x3ce   :  { %v2229_v53 = vpop.f32.mrf.mxu0  ;;  %2966 = vmatpush.bf16.msrb.mxu0 %v2940_v33  ;;  %2985 = vmatpush.bf16.msrb.mxu1 %v2941_v42  ;;  %v2920_v42 = vmul.f32 %v2904_v0, %v11974_v50 }
 0x3cf   :  { %v2296_v31 = vadd.f32 %v2229_v53, %v8509_v54  ;;  %v2248_v27 = vpop.f32.mrf.mxu1  ;;  %v2876_v43 = vpop.permute.xlu1 %2875 }
 0x3d0   :  { %v2297_v32 = vadd.f32 %v2248_v27, %v8512_v12  ;;  %v2903_v36 = vsel %vm1248_vm9, %v2876_v43, %v8526_v29  ;;  %v2907_v23 = vsel %vm1248_vm9, %v8440_v41, %v2876_v43  ;;  %v2267_v6 = vpop.f32.mrf.mxu2  ;;  %6297 = vmatmul.msk.bf16.vlgmr.msrb.gmra.mxu2 %vm1646_vm10, %v6555_v14  ;;  %6299 = vmatmul.msk.bf16.vlgmr.msrb.gmra.mxu3 %vm1646_vm10, %v6555_v14  ;;  %v8723_v39 = vpop.permute.xlu0 %3068 }
 0x3d1   :  { %v2915_v54 = vmul.f32 %v2907_v23, %v11973_v3  ;;  %v2916_v28 = vmul.f32 %v2903_v36, %v11974_v50  ;;  %v2298_v12 = vadd.f32 %v2267_v6, %v8515_v10  ;;  %v2286_v13 = vpop.f32.mrf.mxu3  ;;  %v6556_v10 = vld [vmem:[%s11686_s4 + $0x88] sm:$0xff] }
 0x3d2   :  { %v2299_v29 = vadd.f32 %v2286_v13, %v8519_v17 }
 0x3d3   :  { %v2936_v20 = vpack.c.bf16 %v2919_v61, %v2915_v54  ;;  %v2937_v37 = vpack.c.bf16 %v2920_v42, %v2916_v28 }
 0x3d5   :  { %2967 = vmatpush.bf16.msrb.mxu0 %v2936_v20  ;;  %2986 = vmatpush.bf16.msrb.mxu1 %v2937_v37 }
 0x3d6   :  { %v8626_v41 = vpop.f32.mrf.mxu0 }
 0x3d7   :  { %v8628_v2 = vpop.f32.mrf.mxu1 }
 0x3d8   :  { %v8630_v4 = vpop.f32.mrf.mxu2  ;;  %6293 = vmatmul.msk.bf16.vlgmr.msrb.gmra.mxu0 %vm1646_vm10, %v6555_v14  ;;  %6295 = vmatmul.msk.bf16.vlgmr.msrb.gmra.mxu1 %vm1646_vm10, %v6555_v14 }
 0x3d9   :  { %v8634_v19 = vpop.f32.mrf.mxu3 }
 0x3de   :  { %v2234_v17 = vpop.f32.mrf.mxu0 }
 0x3df   :  { %v2304_v56 = vadd.f32 %v2234_v17, %v8543_v46  ;;  %v2253_v55 = vpop.f32.mrf.mxu1 }
 0x3e0   :  { %v2305_v33 = vadd.f32 %v2253_v55, %v8546_v7  ;;  %v2272_v0 = vpop.f32.mrf.mxu2  ;;  %6298 = vmatmul.msk.bf16.gmra.mxu2 %vm1646_vm10, %v6556_v10  ;;  %6300 = vmatmul.msk.bf16.gmra.mxu3 %vm1646_vm10, %v6556_v10 }
 0x3e1   :  { %v2306_v53 = vadd.f32 %v2272_v0, %v8559_v9  ;;  %v2291_v14 = vpop.f32.mrf.mxu3 }
 0x3e2   :  { %v2307_v61 = vadd.f32 %v2291_v14, %v8562_v48 }
 0x3e6   :  { %v8645_v27 = vpop.f32.mrf.mxu0 }
 0x3e7   :  { %11975 = vst [vmem:[#allocation42_spill] sm:$0xff] %v8645_v27  ;;  %v8647_v43 = vpop.f32.mrf.mxu1 }
 0x3e8   :  { %v8649_v36 = vpop.f32.mrf.mxu2  ;;  %6294 = vmatmul.msk.bf16.gmra.mxu0 %vm1646_vm10, %v6556_v10  ;;  %6296 = vmatmul.msk.bf16.gmra.mxu1 %vm1646_vm10, %v6556_v10 }
 0x3e9   :  { %11976 = vst [vmem:[#allocation43_spill] sm:$0xff] %v8649_v36  ;;  %v8653_v46 = vpop.f32.mrf.mxu3  ;;  %v1776_v36 = vadd.f32 %v8208_v40, %v8058_v24 }
 0x3ea   :  { %11977 = vst [vmem:[#allocation44_spill] sm:$0xff] %v8653_v46 }
 0x3eb   :  { %v1995_v27 = vadd.f32 %v8378_v45, %v1776_v36 }
 0x3ed   :  { %v2180_v21 = vadd.f32 %v8524_v38, %v1995_v27 }
 0x3ee   :  { %v2414_v7 = vpop.f32.mrf.mxu0 }
 0x3ef   :  { %v2481_v23 = vadd.f32 %v2414_v7, %v2296_v31  ;;  %v2433_v6 = vpop.f32.mrf.mxu1  ;;  %v2301_v24 = vadd.f32 %v8628_v2, %v2180_v21 }
 0x3f0   :  { %v2482_v42 = vadd.f32 %v2433_v6, %v2297_v32  ;;  %v2452_v9 = vpop.f32.mrf.mxu2 }
 0x3f1   :  { %v8655_v54 = vadd.f32 %v2452_v9, %v2298_v12  ;;  %v2471_v48 = vpop.f32.mrf.mxu3 }
 0x3f2   :  { %v8657_v28 = vadd.f32 %v2471_v48, %v2299_v29 }
 0x3f6   :  { %v8659_v13 = vpop.f32.mrf.mxu0 }
 0x3f7   :  { %v8661_v20 = vpop.f32.mrf.mxu1 }
 0x3f8   :  { %v8663_v37 = vpop.f32.mrf.mxu2 }
 0x3f9   :  { %v8665_v17 = vpop.f32.mrf.mxu3 }
 0x3fe   :  { %v2419_v10 = vpop.f32.mrf.mxu0 }
 0x3ff   :  { %v2489_v55 = vadd.f32 %v2419_v10, %v2304_v56  ;;  %v2438_v0 = vpop.f32.mrf.mxu1 }
 0x400   :  { %v2490_v31 = vadd.f32 %v2438_v0, %v2305_v33  ;;  %v2457_v14 = vpop.f32.mrf.mxu2 }
 0x401   :  { %v2491_v32 = vadd.f32 %v2457_v14, %v2306_v53  ;;  %v2476_v7 = vpop.f32.mrf.mxu3 }
 0x402   :  { %v2492_v12 = vadd.f32 %v2476_v7, %v2307_v61 }
 0x406   :  { %v8667_v6 = vpop.f32.mrf.mxu0 }
 0x407   :  { %11978 = vst [vmem:[#allocation45_spill] sm:$0xff] %v8667_v6  ;;  %v8669_v29 = vpop.f32.mrf.mxu1 }
 0x408   :  { %v8671_v9 = vpop.f32.mrf.mxu2 }
 0x409   :  { %11979 = vst [vmem:[#allocation46_spill] sm:$0xff] %v8671_v9  ;;  %v8673_v48 = vpop.f32.mrf.mxu3 }
 0x40a   :  { %11980 = vst [vmem:[#allocation47_spill] sm:$0xff] %v8673_v48 }
 0x40e   :  { %v2599_v50 = vpop.f32.mrf.mxu0 }
 0x40f   :  { %v2618_v3 = vpop.f32.mrf.mxu1 }
 0x410   :  { %v2637_v60 = vpop.f32.mrf.mxu2  ;;  %v2667_v16 = vadd.f32 %v2618_v3, %v2482_v42 }
 0x411   :  { %v8675_v18 = vpop.f32.mrf.mxu3  ;;  %v2668_v35 = vadd.f32 %v2637_v60, %v8655_v54 }
 0x416   :  { %v8677_v56 = vpop.f32.mrf.mxu0 }
 0x417   :  { %v2620_v33 = vpop.f32.mrf.mxu1 }
 0x418   :  { %v8679_v10 = vpop.f32.mrf.mxu2 }
 0x419   :  { %v8681_v53 = vpop.f32.mrf.mxu3 }
 0x41e   :  { %v2604_v61 = vpop.f32.mrf.mxu0 }
 0x41f   :  { %v8683_v0 = vadd.f32 %v2604_v61, %v2489_v55  ;;  %v2623_v14 = vpop.f32.mrf.mxu1 }
 0x420   :  { %v8685_v7 = vadd.f32 %v2623_v14, %v2490_v31  ;;  %v2642_v22 = vpop.f32.mrf.mxu2 }
 0x421   :  { %v8687_v47 = vadd.f32 %v2642_v22, %v2491_v32  ;;  %v2661_v58 = vpop.f32.mrf.mxu3 }
 0x422   :  { %v8689_v1 = vadd.f32 %v2661_v58, %v2492_v12 }
 0x423   :  { %11981 = vst [vmem:[#allocation48_spill] sm:$0xff] %v8687_v47  ;;  %v2179_v47 = vadd.f32 %v8522_v11, %v1994_v5 }
 0x424   :  { %11982 = vst [vmem:[#allocation49_spill] sm:$0xff] %v8689_v1  ;;  %v2666_v1 = vadd.f32 %v2599_v50, %v2481_v23 }
 0x425   :  { %v2300_v38 = vadd.f32 %v8626_v41, %v2179_v47 }
 0x426   :  { %v8691_v49 = vpop.f32.mrf.mxu0 }
 0x427   :  { %11983 = vst [vmem:[#allocation50_spill] sm:$0xff] %v8691_v49  ;;  %v8693_v15 = vpop.f32.mrf.mxu1  ;;  %v2485_v27 = vadd.f32 %v8659_v13, %v2300_v38 }
 0x428   :  { %v8695_v48 = vpop.f32.mrf.mxu2 }
 0x429   :  { %11984 = vst [vmem:[#allocation51_spill] sm:$0xff] %v8695_v48  ;;  %v8697_v46 = vpop.f32.mrf.mxu3 }
 0x42a   :  { %11985 = vst [vmem:[#allocation52_spill] sm:$0xff] %v8697_v46 }
 0x42e   :  { %v2784_v59 = vpop.f32.mrf.mxu0 }
 0x42f   :  { %v2803_v55 = vpop.f32.mrf.mxu1 }
 0x430   :  { %v2822_v61 = vpop.f32.mrf.mxu2 }
 0x431   :  { %v2841_v51 = vpop.f32.mrf.mxu3  ;;  %v2853_v52 = vadd.f32 %v2822_v61, %v2668_v35  ;;  %v2670_v35 = vadd.f32 %v8677_v56, %v2485_v27  ;;  %v1781_v27 = vadd.f32 %v8301_v34, %v8127_v57 }
 0x436   :  { %v2786_v31 = vpop.f32.mrf.mxu0 }
 0x437   :  { %v2805_v14 = vpop.f32.mrf.mxu1 }
 0x438   :  { %v8699_v9 = vpop.f32.mrf.mxu2 }
 0x439   :  { %v8701_v22 = vpop.f32.mrf.mxu3 }
 0x43e   :  { %v8703_v58 = vpop.f32.mrf.mxu0 }
 0x43f   :  { %v8705_v32 = vpop.f32.mrf.mxu1 }
 0x440   :  { %v8707_v12 = vpop.f32.mrf.mxu2 }
 0x441   :  { %11986 = vst [vmem:[#allocation53_spill] sm:$0xff] %v8707_v12  ;;  %v8709_v49 = vpop.f32.mrf.mxu3 }
 0x442   :  { %11987 = vst [vmem:[#allocation54_spill] sm:$0xff] %v8709_v49  ;;  %v2851_v49 = vadd.f32 %v2784_v59, %v2666_v1  ;;  %v2486_v1 = vadd.f32 %v8661_v20, %v2301_v24 }
 0x444   :  { %v2671_v36 = vadd.f32 %v2620_v33, %v2486_v1 }
 0x446   :  { %v8711_v48 = vpop.f32.mrf.mxu0  ;;  %v2856_v21 = vadd.f32 %v2805_v14, %v2671_v36 }
 0x447   :  { %11988 = vst [vmem:[#allocation55_spill] sm:$0xff] %v8711_v48  ;;  %v8713_v46 = vpop.f32.mrf.mxu1  ;;  %v2852_v48 = vadd.f32 %v2803_v55, %v2667_v16 }
 0x448   :  { %v8715_v6 = vpop.f32.mrf.mxu2 }
 0x449   :  { %11989 = vst [vmem:[#allocation56_spill] sm:$0xff] %v8715_v6  ;;  %v8728_v40 = vpop.f32.mrf.mxu3 }
 0x453   :  { %v3007_v45 = vpop.f32.mrf.mxu2  ;;  %v3026_v42 = vpop.f32.mrf.mxu3 }
 0x454   :  { %v3038_v16 = vadd.f32 %v3007_v45, %v2853_v52 }
 0x455   :  { %v2969_v12 = vpop.f32.mrf.mxu0  ;;  %v2988_v6 = vpop.f32.mrf.mxu1 }
 0x456   :  { %v3036_v3 = vadd.f32 %v2969_v12, %v2851_v49  ;;  %v3037_v50 = vadd.f32 %v2988_v6, %v2852_v48  ;;  %v2669_v49 = vadd.f32 %v8675_v18, %v8657_v28  ;;  %v3078_v2 = vadd.f32 %v3059_v26, %v3038_v16  ;;  %v3064_v28 = vpop.permute.xlu0 %3063 }
 0x457   :  { %v2855_v18 = vadd.f32 %v2786_v31, %v2670_v35 }
 0x458   :  { %v3076_v59 = vadd.f32 %v3059_v26, %v3036_v3  ;;  %v3077_v60 = vadd.f32 %v3059_v26, %v3037_v50  ;;  %v2854_v20 = vadd.f32 %v2841_v51, %v2669_v49  ;;  %v3110_v6 = vmul.f32 0.2, %v3078_v2 }
 0x459   :  { %vm3094_vm13 = vcmp.ge.f32.partialorder %v3078_v2, 0.0  ;;  %v2860_v51 = vadd.f32 %v8705_v32, %v8685_v7  ;;  %v2181_v7 = vadd.f32 %v8528_v8, %v8406_v30  ;;  %v2182_v32 = vadd.f32 %v8530_v62, %v8414_v44 }
 0x45a   :  { %vm3092_vm11 = vcmp.ge.f32.partialorder %v3076_v59, 0.0  ;;  %v3108_v5 = vmul.f32 0.2, %v3076_v59  ;;  %vm3093_vm12 = vcmp.ge.f32.partialorder %v3077_v60, 0.0  ;;  %v3109_v11 = vmul.f32 0.2, %v3077_v60 }
 0x45b   :  { %v3039_v48 = vadd.f32 %v3026_v42, %v2854_v20  ;;  %v8746_v61 = vsel %vm3094_vm13, %v3078_v2, %v3110_v6  ;;  %v2302_v1 = vadd.f32 %v8630_v4, %v2181_v7  ;;  %v3009_v62 = vpop.f32.mrf.mxu2  ;;  %v3028_v57 = vpop.f32.mrf.mxu3  ;;  %v11997_v7 = vld [vmem:[#allocation49_spill] sm:$0xff] }
 0x45c   :  { %v8736_v47 = vsel %vm3092_vm11, %v3076_v59, %v3108_v5  ;;  %v8738_v41 = vsel %vm3093_vm12, %v3077_v60, %v3109_v11  ;;  %v2303_v59 = vadd.f32 %v8634_v19, %v2182_v32  ;;  %v2003_v5 = vadd.f32 %v8479_v63, %v1781_v27  ;;  %v8805_v2 = vpop.permute.xlu1 %3073  ;;  %v11998_v32 = vld [vmem:[#allocation54_spill] sm:$0xff] }
 0x45d   :  { %v2990_v23 = vpop.f32.mrf.mxu1  ;;  %3148 = vrot.lane.b32.xlu0 %v8738_v41, %s6588_s18  ;;  %3224 = vrot.lane.b32.xlu2 %v8738_v41, %s6587_s17  ;;  %v2971_v13 = vpop.f32.mrf.mxu0  ;;  %v3079_v14 = vadd.f32 %v3059_v26, %v3039_v48  ;;  %v2487_v60 = vadd.f32 %v8663_v37, %v2302_v1  ;;  %v11992_v48 = vld [vmem:[#allocation37_spill] sm:$0xff]  ;;  %v2862_v1 = vadd.f32 %v11998_v32, %v11997_v7 }
 0x45e   :  { %v3041_v54 = vadd.f32 %v2990_v23, %v2856_v21  ;;  %3140 = vrot.lane.b32.xlu1 %v8736_v47, %s6588_s18  ;;  %v3040_v33 = vadd.f32 %v2971_v13, %v2855_v18  ;;  %v2488_v36 = vadd.f32 %v8665_v17, %v2303_v59  ;;  %v2188_v34 = vadd.f32 %v8578_v25, %v2003_v5  ;;  %v11991_v13 = vld [vmem:[#allocation53_spill] sm:$0xff] }
 0x45f   :  { %v3111_v31 = vmul.f32 0.2, %v3079_v14  ;;  %vm3095_vm15 = vcmp.ge.f32.partialorder %v3079_v14, 0.0  ;;  %v2672_v30 = vadd.f32 %v8679_v10, %v2487_v60  ;;  %v2859_v25 = vadd.f32 %v8703_v58, %v8683_v0  ;;  %v11990_v58 = vld [vmem:[#allocation48_spill] sm:$0xff]  ;;  %v12000_v60 = vld [vmem:[#allocation43_spill] sm:$0xff]  ;;  %v12001_v5 = vld [vmem:[#allocation45_spill] sm:$0xff] }
 0x460   :  { %v3081_v56 = vadd.f32 %v3064_v28, %v3041_v54  ;;  %v3080_v24 = vadd.f32 %v3064_v28, %v3040_v33  ;;  %v2673_v44 = vadd.f32 %v8681_v53, %v2488_v36  ;;  %v2309_v37 = vadd.f32 %v8647_v43, %v2188_v34 }
 0x461   :  { %v8758_v52 = vsel %vm3095_vm15, %v3079_v14, %v3111_v31  ;;  %v2857_v4 = vadd.f32 %v8699_v9, %v2672_v30  ;;  %v2861_v20 = vadd.f32 %v11991_v13, %v11990_v58 }
 0x462   :  { %vm3097_vm14 = vcmp.ge.f32.partialorder %v3081_v56, 0.0  ;;  %v3113_v55 = vmul.f32 0.2, %v3081_v56  ;;  %v3112_v3 = vmul.f32 0.2, %v3080_v24  ;;  %vm3096_vm2 = vcmp.ge.f32.partialorder %v3080_v24, 0.0 }
 0x463   :  { %v2858_v19 = vadd.f32 %v8701_v22, %v2673_v44  ;;  %v3042_v63 = vadd.f32 %v3009_v62, %v2857_v4  ;;  %v2494_v10 = vadd.f32 %v8669_v29, %v2309_v37  ;;  %v12002_v62 = vld [vmem:[#allocation46_spill] sm:$0xff] }
 0x464   :  { %v8748_v12 = vsel %vm3097_vm14, %v3081_v56, %v3113_v55  ;;  %v8760_v26 = vsel %vm3096_vm2, %v3080_v24, %v3112_v3  ;;  %v11993_v56 = vld [vmem:[#allocation35_spill] sm:$0xff]  ;;  %v3031_v24 = vpop.f32.mrf.mxu3  ;;  %v11995_v3 = vld [vmem:[#allocation38_spill] sm:$0xff] }
 0x465   :  { %v2993_v45 = vpop.f32.mrf.mxu1  ;;  %3226 = vrot.lane.b32.xlu0 %v8748_v12, %s6587_s17  ;;  %3156 = vrot.lane.b32.xlu2 %v8746_v61, %s6588_s18  ;;  %v3043_v17 = vadd.f32 %v3028_v57, %v2858_v19  ;;  %v3082_v53 = vadd.f32 %v3064_v28, %v3042_v63  ;;  %v2679_v11 = vadd.f32 %v8693_v15, %v2494_v10  ;;  %v2974_v21 = vpop.f32.mrf.mxu0  ;;  %v12003_v57 = vld [vmem:[#allocation50_spill] sm:$0xff]  ;;  %v12004_v19 = vld [vmem:[#allocation51_spill] sm:$0xff] }
 0x466   :  { %3216 = vrot.lane.b32.xlu1 %v8736_v47, %s6587_s17  ;;  %v3045_v50 = vadd.f32 %v2993_v45, %v2860_v51  ;;  %v3044_v22 = vadd.f32 %v2974_v21, %v2859_v25  ;;  %v2002_v33 = vadd.f32 %v11993_v56, %v11992_v48  ;;  %v11994_v51 = vld [vmem:[#allocation39_spill] sm:$0xff]  ;;  %v3047_v36 = vadd.f32 %v3031_v24, %v2862_v1  ;;  %v12006_v21 = vld [vmem:[#allocation56_spill] sm:$0xff] }
 0x467   :  { %v3083_v49 = vadd.f32 %v3064_v28, %v3043_v17  ;;  %v2864_v43 = vadd.f32 %v8713_v46, %v2679_v11  ;;  %v3114_v29 = vmul.f32 0.2, %v3082_v53  ;;  %vm3098_vm11 = vcmp.ge.f32.partialorder %v3082_v53, 0.0  ;;  %v3012_v46 = vpop.f32.mrf.mxu2  ;;  %v12005_v11 = vld [vmem:[#allocation55_spill] sm:$0xff] }
 0x468   :  { %v3085_v38 = vadd.f32 %v8723_v39, %v3045_v50  ;;  %v3084_v42 = vadd.f32 %v8723_v39, %v3044_v22  ;;  %v3046_v28 = vadd.f32 %v3012_v46, %v2861_v20  ;;  %v2187_v31 = vadd.f32 %v11994_v51, %v2002_v33  ;;  %v11996_v50 = vld [vmem:[#allocation40_spill] sm:$0xff] }
 0x469   :  { %v3115_v15 = vmul.f32 0.2, %v3083_v49  ;;  %vm3099_vm12 = vcmp.ge.f32.partialorder %v3083_v49, 0.0  ;;  %v8807_v23 = vsel %vm3098_vm11, %v3082_v53, %v3114_v29  ;;  %v3087_v37 = vadd.f32 %v8723_v39, %v3047_v36 }
 0x46a   :  { %v3117_v16 = vmul.f32 0.2, %v3085_v38  ;;  %vm3101_vm3 = vcmp.ge.f32.partialorder %v3085_v38, 0.0  ;;  %v3116_v18 = vmul.f32 0.2, %v3084_v42  ;;  %vm3100_vm13 = vcmp.ge.f32.partialorder %v3084_v42, 0.0 }
 0x46b   :  { %v8810_v54 = vsel %vm3099_vm12, %v3083_v49, %v3115_v15  ;;  %v3086_v14 = vadd.f32 %v8723_v39, %v3046_v28  ;;  %v3119_v29 = vmul.f32 0.2, %v3087_v37  ;;  %vm3103_vm2 = vcmp.ge.f32.partialorder %v3087_v37, 0.0 }
 0x46c   :  { %v8780_v8 = vsel %vm3101_vm3, %v3085_v38, %v3117_v16  ;;  %v8823_v55 = vsel %vm3100_vm13, %v3084_v42, %v3116_v18  ;;  %v2189_v38 = vadd.f32 %v11996_v50, %v11995_v3  ;;  %v11999_v16 = vld [vmem:[#allocation42_spill] sm:$0xff]  ;;  %v12011_v18 = vld [vmem:[#allocation52_spill] sm:$0xff] }
 0x46d   :  { %3240 = vrot.lane.b32.xlu0 %v8758_v52, %s6587_s17  ;;  %3142 = vrot.lane.b32.xlu2 %v8760_v26, %s6588_s18  ;;  %v2995_v9 = vpop.f32.mrf.mxu1  ;;  %v2308_v59 = vadd.f32 %v11999_v16, %v2187_v31  ;;  %v3118_v30 = vmul.f32 0.2, %v3086_v14  ;;  %vm3102_vm15 = vcmp.ge.f32.partialorder %v3086_v14, 0.0  ;;  %v2976_v53 = vpop.f32.mrf.mxu0  ;;  %v8860_v58 = vsel %vm3103_vm2, %v3087_v37, %v3119_v29 }
 0x46e   :  { %3150 = vrot.lane.b32.xlu1 %v8748_v12, %s6588_s18  ;;  %v3049_v35 = vadd.f32 %v2995_v9, %v2864_v43  ;;  %v2310_v27 = vadd.f32 %v12000_v60, %v2189_v38  ;;  %v12007_v9 = vld [vmem:[#allocation36_spill] sm:$0xff]  ;;  %v12008_v43 = vld [vmem:[#allocation41_spill] sm:$0xff] }
 0x46f   :  { %v2493_v44 = vadd.f32 %v12001_v5, %v2308_v59  ;;  %v8846_v17 = vsel %vm3102_vm15, %v3086_v14, %v3118_v30  ;;  %v3014_v10 = vpop.f32.mrf.mxu2  ;;  %v2190_v39 = vadd.f32 %v12008_v43, %v12007_v9 }
 0x470   :  { %v3089_v0 = vadd.f32 %v8805_v2, %v3049_v35  ;;  %v2495_v4 = vadd.f32 %v12002_v62, %v2310_v27  ;;  %v12009_v35 = vld [vmem:[#allocation44_spill] sm:$0xff] }
 0x471   :  { %v2678_v34 = vadd.f32 %v12003_v57, %v2493_v44  ;;  %v2311_v42 = vadd.f32 %v12009_v35, %v2190_v39 }
 0x472   :  { %v3121_v6 = vmul.f32 0.2, %v3089_v0  ;;  %vm3105_vm14 = vcmp.ge.f32.partialorder %v3089_v0, 0.0  ;;  %v2680_v63 = vadd.f32 %v12004_v19, %v2495_v4 }
 0x473   :  { %v2863_v49 = vadd.f32 %v12005_v11, %v2678_v34 }
 0x474   :  { %v8826_v45 = vsel %vm3105_vm14, %v3089_v0, %v3121_v6  ;;  %v2865_v25 = vadd.f32 %v12006_v21, %v2680_v63  ;;  %v12010_v0 = vld [vmem:[#allocation47_spill] sm:$0xff]  ;;  %v3033_v6 = vpop.f32.mrf.mxu3 }
 0x475   :  { %3152 = vrot.lane.b32.xlu0 %v8780_v8, %s6588_s18  ;;  %3218 = vrot.lane.b32.xlu2 %v8760_v26, %s6587_s17  ;;  %v3048_v15 = vadd.f32 %v2976_v53, %v2863_v49  ;;  %v2496_v46 = vadd.f32 %v12010_v0, %v2311_v42 }
 0x476   :  { %3232 = vrot.lane.b32.xlu1 %v8746_v61, %s6587_s17  ;;  %v3050_v22 = vadd.f32 %v3014_v10, %v2865_v25 }
 0x477   :  { %v3088_v20 = vadd.f32 %v8805_v2, %v3048_v15  ;;  %v2681_v28 = vadd.f32 %v12011_v18, %v2496_v46 }
 0x478   :  { %v3090_v13 = vadd.f32 %v8805_v2, %v3050_v22  ;;  %v12014_v22 = vld [vmem:[#allocation6_spill] sm:$0xff] }
 0x479   :  { %v2866_v48 = vadd.f32 %v8728_v40, %v2681_v28  ;;  %v3120_v33 = vmul.f32 0.2, %v3088_v20  ;;  %vm3104_vm11 = vcmp.ge.f32.partialorder %v3088_v20, 0.0 }
 0x47a   :  { %v3122_v56 = vmul.f32 0.2, %v3090_v13  ;;  %vm3106_vm3 = vcmp.ge.f32.partialorder %v3090_v13, 0.0 }
 0x47b   :  { %v3051_v14 = vadd.f32 %v3033_v6, %v2866_v48  ;;  %v8874_v51 = vsel %vm3104_vm11, %v3088_v20, %v3120_v33  ;;  %v9035_v48 = vld [vmem:[%s11688_s6 + $0x10] sm:$0xff] }
 0x47c   :  { %v8872_v24 = vsel %vm3106_vm3, %v3090_v13, %v3122_v56 }
 0x47d   :  { %3489 = vrot.lane.b32.xlu0 %v8780_v8, %s6589_s23  ;;  %3228 = vrot.lane.b32.xlu2 %v8780_v8, %s6587_s17  ;;  %v3091_v31 = vadd.f32 %v8805_v2, %v3051_v14 }
 0x47e   :  { %3164 = vrot.lane.b32.xlu1 %v8758_v52, %s6588_s18 }
 0x47f   :  { %v3123_v40 = vmul.f32 0.2, %v3091_v31  ;;  %vm3107_vm12 = vcmp.ge.f32.partialorder %v3091_v31, 0.0 }
 0x481   :  { %v8883_v3 = vsel %vm3107_vm12, %v3091_v31, %v3123_v40 }
 0x485   :  { %3158 = vrot.lane.b32.xlu0 %v8807_v23, %s6588_s18  ;;  %3234 = vrot.lane.b32.xlu2 %v8807_v23, %s6587_s17 }
 0x486   :  { %3242 = vrot.lane.b32.xlu1 %v8810_v54, %s6587_s17 }
 0x48d   :  { %3166 = vrot.lane.b32.xlu2 %v8810_v54, %s6588_s18  ;;  %3144 = vrot.lane.b32.xlu0 %v8823_v55, %s6588_s18 }
 0x48e   :  { %3154 = vrot.lane.b32.xlu1 %v8826_v45, %s6588_s18 }
 0x495   :  { %3220 = vrot.lane.b32.xlu2 %v8823_v55, %s6587_s17  ;;  %3230 = vrot.lane.b32.xlu0 %v8826_v45, %s6587_s17 }
 0x496   :  { %3236 = vrot.lane.b32.xlu1 %v8846_v17, %s6587_s17 }
 0x49d   :  { %3160 = vrot.lane.b32.xlu2 %v8846_v17, %s6588_s18  ;;  %3244 = vrot.lane.b32.xlu0 %v8860_v58, %s6587_s17 }
 0x49e   :  { %3168 = vrot.lane.b32.xlu1 %v8860_v58, %s6588_s18 }
 0x4a5   :  { %3238 = vrot.lane.b32.xlu2 %v8872_v24, %s6587_s17  ;;  %3222 = vrot.lane.b32.xlu0 %v8874_v51, %s6587_s17 }
 0x4a6   :  { %3146 = vrot.lane.b32.xlu1 %v8874_v51, %s6588_s18 }
 0x4ad   :  { %3497 = vrot.lane.b32.xlu2 %v8846_v17, %s6589_s23  ;;  %3485 = vrot.lane.b32.xlu0 %v8738_v41, %s6589_s23 }
 0x4ae   :  { %3246 = vrot.lane.b32.xlu1 %v8883_v3, %s6587_s17 }
 0x4b5   :  { %3493 = vrot.lane.b32.xlu2 %v8746_v61, %s6589_s23  ;;  %3495 = vrot.lane.b32.xlu0 %v8807_v23, %s6589_s23 }
 0x4b6   :  { %3491 = vrot.lane.b32.xlu1 %v8826_v45, %s6589_s23 }
 0x4b7   :  { %v8897_v2 = vpop.permute.xlu2 %3224 }
 0x4bd   :  { %3503 = vrot.lane.b32.xlu2 %v8810_v54, %s6589_s23  ;;  %3481 = vrot.lane.b32.xlu0 %v8823_v55, %s6589_s23 }
 0x4be   :  { %3505 = vrot.lane.b32.xlu1 %v8860_v58, %s6589_s23 }
 0x4bf   :  { %v8905_v50 = vpop.permute.xlu2 %3156 }
 0x4c5   :  { %3477 = vrot.lane.b32.xlu2 %v8736_v47, %s6589_s23  ;;  %3162 = vrot.lane.b32.xlu0 %v8872_v24, %s6588_s18 }
 0x4c6   :  { %3487 = vrot.lane.b32.xlu1 %v8748_v12, %s6589_s23 }
 0x4c7   :  { %v8913_v38 = vpop.permute.xlu2 %3142 }
 0x4cd   :  { %3170 = vrot.lane.b32.xlu2 %v8883_v3, %s6588_s18  ;;  %3479 = vrot.lane.b32.xlu0 %v8760_v26, %s6589_s23 }
 0x4ce   :  { %3501 = vrot.lane.b32.xlu1 %v8758_v52, %s6589_s23 }
 0x4cf   :  { %v8921_v7 = vpop.permute.xlu0 %3148  ;;  %v8923_v32 = vpop.permute.xlu2 %3218 }
 0x4d0   :  { %v8925_v1 = vpop.permute.xlu1 %3140 }
 0x4d5   :  { %3676 = vrot.lane.b32.xlu2 %v8826_v45, %s6590_s0  ;;  %3682 = vrot.lane.b32.xlu0 %v8846_v17, %s6590_s0 }
 0x4d6   :  { %3483 = vrot.lane.b32.xlu1 %v8874_v51, %s6589_s23 }
 0x4d7   :  { %v8933_v16 = vpop.permute.xlu0 %3226  ;;  %v3229_v59 = vpop.permute.xlu2 %3228 }
 0x4d8   :  { %v8935_v60 = vpop.permute.xlu1 %3216 }
 0x4dd   :  { %3690 = vrot.lane.b32.xlu2 %v8860_v58, %s6590_s0  ;;  %3678 = vrot.lane.b32.xlu0 %v8746_v61, %s6590_s0 }
 0x4de   :  { %3674 = vrot.lane.b32.xlu1 %v8780_v8, %s6590_s0 }
 0x4df   :  { %v8943_v27 = vpop.permute.xlu0 %3240  ;;  %v8945_v36 = vpop.permute.xlu2 %3234 }
 0x4e0   :  { %v8947_v30 = vpop.permute.xlu1 %3150  ;;  %v3253_v42 = vsel %vm99_vm1, %v8933_v16, %v8945_v36 }
 0x4e1   :  { %v3270_v13 = vmul.f32 %v3253_v42, %v12014_v22 }
 0x4e5   :  { %3672 = vrot.lane.b32.xlu2 %v8748_v12, %s6590_s0  ;;  %3499 = vrot.lane.b32.xlu0 %v8872_v24, %s6589_s23 }
 0x4e6   :  { %3670 = vrot.lane.b32.xlu1 %v8738_v41, %s6590_s0 }
 0x4e7   :  { %v8955_v5 = vpop.permute.xlu0 %3152  ;;  %v8957_v44 = vpop.permute.xlu2 %3166 }
 0x4e8   :  { %v8959_v62 = vpop.permute.xlu1 %3232 }
 0x4e9   :  { %v3252_v39 = vsel %vm99_vm1, %v8897_v2, %v8959_v62 }
 0x4ea   :  { %v3266_v0 = vmul.f32 %v3252_v39, %v12014_v22  ;;  %v12016_v39 = vld [vmem:[#allocation5_spill] sm:$0xff] }
 0x4ec   :  { %v3287_v6 = vpack.c.bf16 %v3270_v13, %v3266_v0 }
 0x4ed   :  { %3507 = vrot.lane.b32.xlu2 %v8883_v3, %s6589_s23  ;;  %3688 = vrot.lane.b32.xlu0 %v8810_v54, %s6590_s0 }
 0x4ee   :  { %3680 = vrot.lane.b32.xlu1 %v8807_v23, %s6590_s0 }
 0x4ef   :  { %v8967_v4 = vpop.permute.xlu0 %3489  ;;  %v8969_v57 = vpop.permute.xlu2 %3220 }
 0x4f0   :  { %v8971_v34 = vpop.permute.xlu1 %3164  ;;  %v3258_v56 = vsel %vm99_vm1, %v8969_v57, %v3229_v59 }
 0x4f5   :  { %3686 = vrot.lane.b32.xlu2 %v8758_v52, %s6590_s0  ;;  %3662 = vrot.lane.b32.xlu0 %v8736_v47, %s6590_s0 }
 0x4f6   :  { %3666 = vrot.lane.b32.xlu1 %v8823_v55, %s6590_s0 }
 0x4f7   :  { %v8979_v19 = vpop.permute.xlu0 %3158  ;;  %v8981_v63 = vpop.permute.xlu2 %3160 }
 0x4f8   :  { %v8983_v37 = vpop.permute.xlu1 %3242 }
 0x4fd   :  { %3668 = vrot.lane.b32.xlu2 %v8874_v51, %s6590_s0  ;;  %3974 = vrot.lane.b32.xlu0 %v8874_v51, %s6591_s24 }
 0x4fe   :  { %3664 = vrot.lane.b32.xlu1 %v8760_v26, %s6590_s0 }
 0x4ff   :  { %v8991_v10 = vpop.permute.xlu2 %3238  ;;  %v8993_v53 = vpop.permute.xlu0 %3144 }
 0x500   :  { %v8995_v11 = vpop.permute.xlu1 %3154 }
 0x505   :  { %3972 = vrot.lane.b32.xlu2 %v8823_v55, %s6591_s24  ;;  %3692 = vrot.lane.b32.xlu0 %v8883_v3, %s6590_s0 }
 0x506   :  { %3988 = vrot.lane.b32.xlu1 %v8846_v17, %s6591_s24 }
 0x507   :  { %v9003_v49 = vpop.permute.xlu2 %3497  ;;  %v3231_v21 = vpop.permute.xlu0 %3230 }
 0x508   :  { %12012 = vst [vmem:[#allocation48_spill] sm:$0xff] %v9003_v49  ;;  %v3237_v25 = vpop.permute.xlu1 %3236  ;;  %v3255_v43 = vsel %vm99_vm1, %v3231_v21, %v8991_v10 }
 0x509   :  { %v3254_v29 = vsel %vm99_vm1, %v3229_v59, %v3237_v25  ;;  %v3278_v15 = vmul.f32 %v3255_v43, %v12014_v22  ;;  %v3257_v43 = vsel %vm99_vm1, %v8923_v32, %v8933_v16  ;;  %v3256_v59 = vsel %vm99_vm1, %v8935_v60, %v8897_v2 }
 0x50a   :  { %v3274_v35 = vmul.f32 %v3254_v29, %v12014_v22  ;;  %v3273_v29 = vmul.f32 %v3258_v56, %v12016_v39  ;;  %v3269_v42 = vmul.f32 %v3257_v43, %v12016_v39  ;;  %v3265_v0 = vmul.f32 %v3256_v59, %v12016_v39  ;;  %v12018_v22 = vld [vmem:[#allocation4_spill] sm:$0xff] }
 0x50b   :  { %v3182_v16 = vsel %vm65_vm0, %v8993_v53, %v8955_v5  ;;  %v3181_v2 = vsel %vm65_vm0, %v8913_v38, %v8947_v30 }
 0x50c   :  { %v3291_v46 = vpack.c.bf16 %v3278_v15, %v3274_v35 }
 0x50d   :  { %3968 = vrot.lane.b32.xlu2 %v8736_v47, %s6591_s24  ;;  %3996 = vrot.lane.b32.xlu0 %v8860_v58, %s6591_s24 }
 0x50e   :  { %3353 = vmatpush.bf16.msra.mxu2 %v3291_v46  ;;  %3684 = vrot.lane.b32.xlu1 %v8872_v24, %s6590_s0  ;;  %v12017_v46 = vld [vmem:[#allocation8_spill] sm:$0xff] }
 0x50f   :  { %v9028_v20 = vpop.permute.xlu2 %3493  ;;  %v3245_v18 = vpop.permute.xlu0 %3244 }
 0x510   :  { %12015 = vst [vmem:[#allocation53_spill] sm:$0xff] %v9028_v20  ;;  %v9030_v28 = vpop.permute.xlu1 %3168  ;;  %v3250_v56 = vsel %vm99_vm1, %v3237_v25, %v3245_v18  ;;  %v3249_v25 = vsel %vm99_vm1, %v8945_v36, %v8983_v37  ;;  %v12019_v20 = vld [vmem:[#allocation7_spill] sm:$0xff] }
 0x511   :  { %v3275_v49 = vmul.f32 %v3250_v56, %v12019_v20  ;;  %v3271_v56 = vmul.f32 %v3249_v25, %v12019_v20 }
 0x512   :  { %3354 = vmatpush.bf16.msra.mxu2 %v3287_v6  ;;  %v3197_v6 = vmul.f32 %v3182_v16, %v12017_v46 }
 0x515   :  { %3986 = vrot.lane.b32.xlu2 %v8807_v23, %s6591_s24  ;;  %3970 = vrot.lane.b32.xlu0 %v8760_v26, %s6591_s24 }
 0x516   :  { %3984 = vrot.lane.b32.xlu1 %v8746_v61, %s6591_s24  ;;  %6317 = vmatmul.msk.bf16.vlgmr.msra.gmra.mxu2 %vm1646_vm10, %v9035_v48 }
 0x517   :  { %v9048_v33 = vpop.permute.xlu2 %3503  ;;  %v3223_v14 = vpop.permute.xlu0 %3222 }
 0x518   :  { %v3259_v31 = vsel %vm99_vm1, %v3223_v14, %v3231_v21  ;;  %v3147_v40 = vpop.permute.xlu1 %3146 }
 0x519   :  { %v3277_v15 = vmul.f32 %v3259_v31, %v12016_v39  ;;  %v3183_v35 = vsel %vm65_vm0, %v3147_v40, %v8995_v11  ;;  %v3262_v31 = vsel %vm99_vm1, %v3245_v18, %v8969_v57  ;;  %v3261_v57 = vsel %vm99_vm1, %v8983_v37, %v8923_v32 }
 0x51a   :  { %v3201_v13 = vmul.f32 %v3183_v35, %v12017_v46  ;;  %v3272_v39 = vmul.f32 %v3262_v31, %v12018_v22  ;;  %v3260_v32 = vsel %vm99_vm1, %v8943_v27, %v8935_v60  ;;  %v3248_v37 = vsel %vm99_vm1, %v8959_v62, %v8943_v27 }
 0x51b   :  { %v3290_v21 = vpack.c.bf16 %v3277_v15, %v3273_v29  ;;  %v3180_v29 = vsel %vm65_vm0, %v8925_v1, %v8921_v7  ;;  %v3193_v15 = vmul.f32 %v3181_v2, %v12017_v46  ;;  %v3186_v60 = vsel %vm65_vm0, %v9030_v28, %v8993_v53 }
 0x51c   :  { %v3213_v18 = vpack.c.bf16 %v3201_v13, %v3197_v6  ;;  %v9126_v13 = vld [vmem:[%s11688_s6 + $0x18] sm:$0xff]  ;;  %v3268_v6 = vmul.f32 %v3261_v57, %v12018_v22  ;;  %v3264_v62 = vmul.f32 %v3260_v32, %v12018_v22  ;;  %v3184_v53 = vsel %vm65_vm0, %v8971_v34, %v8925_v1 }
 0x51d   :  { %3980 = vrot.lane.b32.xlu2 %v8780_v8, %s6591_s24  ;;  %3992 = vrot.lane.b32.xlu0 %v8758_v52, %s6591_s24  ;;  %v3185_v1 = vsel %vm65_vm0, %v8957_v44, %v8913_v38  ;;  %v3174_v32 = vsel %vm65_vm0, %v8981_v63, %v9030_v28 }
 0x51e   :  { %3334 = vmatpush.bf16.msra.mxu1 %v3290_v21  ;;  %3994 = vrot.lane.b32.xlu1 %v8810_v54, %s6591_s24  ;;  %v3286_v21 = vpack.c.bf16 %v3269_v42, %v3265_v0  ;;  %v3189_v0 = vmul.f32 %v3180_v29, %v12017_v46  ;;  %v3285_v57 = vpack.c.bf16 %v3268_v6, %v3264_v62  ;;  %v12021_v6 = vld [vmem:[#allocation3_spill] sm:$0xff] }
 0x51f   :  { %v9088_v43 = vpop.permute.xlu2 %3477  ;;  %v9090_v59 = vpop.permute.xlu0 %3485 }
 0x520   :  { %v3247_v35 = vpop.permute.xlu1 %3246  ;;  %v3209_v27 = vpack.c.bf16 %v3193_v15, %v3189_v0  ;;  %v12020_v15 = vld [vmem:[#allocation9_spill] sm:$0xff] }
 0x521   :  { %v3251_v16 = vsel %vm99_vm1, %v8991_v10, %v3247_v35  ;;  %v3263_v2 = vsel %vm99_vm1, %v3247_v35, %v3223_v14  ;;  %v3196_v35 = vmul.f32 %v3186_v60, %v12020_v15 }
 0x522   :  { %v3276_v36 = vmul.f32 %v3263_v2, %v12018_v22  ;;  %v3279_v42 = vmul.f32 %v3251_v16, %v12019_v20  ;;  %3335 = vmatpush.bf16.msra.mxu1 %v3286_v21  ;;  %v3188_v16 = vmul.f32 %v3184_v53, %v12020_v15 }
 0x524   :  { %v3289_v10 = vpack.c.bf16 %v3276_v36, %v3272_v39  ;;  %v3292_v14 = vpack.c.bf16 %v3279_v42, %v3275_v49  ;;  %v3267_v49 = vmul.f32 %v3248_v37, %v12019_v20 }
 0x525   :  { %6315 = vmatmul.msk.bf16.vlgmr.msra.gmra.mxu1 %vm1646_vm10, %v9035_v48  ;;  %3978 = vrot.lane.b32.xlu2 %v8748_v12, %s6591_s24 }
 0x526   :  { %3426 = vmatpush.bf16.msrb.mxu1 %v3213_v18  ;;  %3982 = vrot.lane.b32.xlu0 %v8826_v45, %s6591_s24  ;;  %v3288_v18 = vpack.c.bf16 %v3271_v56, %v3267_v49 }
 0x527   :  { %3976 = vrot.lane.b32.xlu1 %v8738_v41, %s6591_s24  ;;  %3315 = vmatpush.bf16.msra.mxu0 %v3289_v10  ;;  %v3171_v39 = vpop.permute.xlu2 %3170  ;;  %v9144_v31 = vpop.permute.xlu0 %3495 }
 0x528   :  { %3372 = vmatpush.bf16.msra.mxu3 %v3292_v14  ;;  %v3187_v29 = vsel %vm65_vm0, %v3171_v39, %v3147_v40  ;;  %v9152_v25 = vpop.permute.xlu1 %3491  ;;  %6318 = vmatmul.msk.bf16.gmra.mxu2 %vm1646_vm10, %v9126_v13  ;;  %v3192_v40 = vmul.f32 %v3185_v1, %v12020_v15  ;;  %v3177_v14 = vsel %vm65_vm0, %v8947_v30, %v8979_v19 }
 0x529   :  { %v3200_v21 = vmul.f32 %v3187_v29, %v12020_v15  ;;  %v3176_v30 = vsel %vm65_vm0, %v8921_v7, %v8905_v50 }
 0x52a   :  { %3427 = vmatpush.bf16.msrb.mxu1 %v3209_v27  ;;  %v3208_v42 = vpack.c.bf16 %v3192_v40, %v3188_v16  ;;  %v12022_v27 = vld [vmem:[#allocation10_spill] sm:$0xff] }
 0x52b   :  { %v3212_v2 = vpack.c.bf16 %v3200_v21, %v3196_v35  ;;  %3316 = vmatpush.bf16.msra.mxu0 %v3285_v57  ;;  %v3199_v49 = vmul.f32 %v3174_v32, %v12022_v27  ;;  %v3190_v35 = vmul.f32 %v3176_v30, %v12021_v6  ;;  %v3172_v21 = vsel %vm65_vm0, %v8905_v50, %v8971_v34 }
 0x52c   :  { %3373 = vmatpush.bf16.msra.mxu3 %v3288_v18  ;;  %v6557_v18 = vld [vmem:[%s11688_s6] sm:$0xff] }
 0x52d   :  { %4173 = vrot.lane.b32.xlu2 %v8846_v17, %s6592_s25 }
 0x52e   :  { %6313 = vmatmul.msk.bf16.vlgmr.msra.gmra.mxu0 %vm1646_vm10, %v9035_v48  ;;  %4157 = vrot.lane.b32.xlu0 %v8823_v55, %s6592_s25 }
 0x52f   :  { %3407 = vmatpush.bf16.msrb.mxu0 %v3212_v2  ;;  %6319 = vmatmul.msk.bf16.vlgmr.msra.gmra.mxu3 %vm1646_vm10, %v9035_v48  ;;  %v9174_v38 = vpop.permute.xlu2 %3676  ;;  %v3482_v36 = vpop.permute.xlu0 %3481  ;;  %v3178_v48 = vsel %vm65_vm0, %v8955_v5, %v8981_v63 }
 0x530   :  { %4159 = vrot.lane.b32.xlu1 %v8874_v51, %s6592_s25  ;;  %v9176_v0 = vpop.permute.xlu1 %3505  ;;  %v3198_v56 = vmul.f32 %v3178_v48, %v12021_v6  ;;  %v3519_v1 = vsel %vm344_vm4, %v3482_v36, %v8967_v4 }
 0x531   :  { %v3523_v16 = vsel %vm344_vm4, %v9176_v0, %v3482_v36  ;;  %v12024_v36 = vld [vmem:[#allocation13_spill] sm:$0xff] }
 0x533   :  { %3408 = vmatpush.bf16.msrb.mxu0 %v3208_v42 }
 0x535   :  { %6316 = vmatmul.msk.bf16.gmra.mxu1 %vm1646_vm10, %v9126_v13  ;;  %4169 = vrot.lane.b32.xlu2 %v8746_v61, %s6592_s25 }
 0x536   :  { %4153 = vrot.lane.b32.xlu0 %v8736_v47, %s6592_s25 }
 0x537   :  { %v9194_v37 = vpop.permute.xlu2 %3690  ;;  %v3163_v10 = vpop.permute.xlu0 %3162 }
 0x538   :  { %4181 = vrot.lane.b32.xlu1 %v8860_v58, %s6592_s25  ;;  %v3175_v5 = vsel %vm65_vm0, %v3163_v10, %v3171_v39  ;;  %v3179_v63 = vsel %vm65_vm0, %v8995_v11, %v3163_v10  ;;  %v9205_v28 = vpop.permute.xlu1 %3487  ;;  %v3173_v11 = vsel %vm65_vm0, %v8979_v19, %v8957_v44  ;;  %v3194_v39 = vmul.f32 %v3177_v14, %v12021_v6  ;;  %v12023_v10 = vld [vmem:[#allocation12_spill] sm:$0xff] }
 0x539   :  { %v3202_v60 = vmul.f32 %v3179_v63, %v12021_v6  ;;  %v3203_v62 = vmul.f32 %v3175_v5, %v12022_v27  ;;  %v3195_v7 = vmul.f32 %v3173_v11, %v12022_v27  ;;  %v3191_v19 = vmul.f32 %v3172_v21, %v12022_v27 }
 0x53a   :  { %v3210_v34 = vpack.c.bf16 %v3194_v39, %v3190_v35  ;;  %v3534_v14 = vmul.f32 %v3519_v1, %v12023_v10  ;;  %v3533_v5 = vmul.f32 %v3523_v16, %v12024_v36  ;;  %v3517_v39 = vsel %vm344_vm4, %v9088_v43, %v9090_v59 }
 0x53b   :  { %v3214_v53 = vpack.c.bf16 %v3202_v60, %v3198_v56  ;;  %v3215_v29 = vpack.c.bf16 %v3203_v62, %v3199_v49 }
 0x53d   :  { %4179 = vrot.lane.b32.xlu2 %v8810_v54, %s6592_s25  ;;  %3445 = vmatpush.bf16.msrb.mxu2 %v3214_v53 }
 0x53e   :  { %6314 = vmatmul.msk.bf16.gmra.mxu0 %vm1646_vm10, %v9126_v13  ;;  %4171 = vrot.lane.b32.xlu0 %v8807_v23, %s6592_s25 }
 0x53f   :  { %6320 = vmatmul.msk.bf16.gmra.mxu3 %vm1646_vm10, %v9126_v13  ;;  %v9236_v44 = vpop.permute.xlu2 %3672  ;;  %v3480_v50 = vpop.permute.xlu0 %3479  ;;  %v3211_v13 = vpack.c.bf16 %v3195_v7, %v3191_v19  ;;  %v3526_v7 = vmul.f32 %v3517_v39, %v12023_v10 }
 0x540   :  { %4155 = vrot.lane.b32.xlu1 %v8760_v26, %s6592_s25  ;;  %3464 = vmatpush.bf16.msrb.mxu3 %v3215_v29  ;;  %v3502_v57 = vpop.permute.xlu1 %3501  ;;  %v3518_v60 = vsel %vm344_vm4, %v3480_v50, %v9205_v28  ;;  %v3522_v62 = vsel %vm344_vm4, %v9048_v33, %v3480_v50 }
 0x541   :  { %3446 = vmatpush.bf16.msrb.mxu2 %v3210_v34  ;;  %v3521_v30 = vsel %vm344_vm4, %v3502_v57, %v9088_v43  ;;  %v3529_v53 = vmul.f32 %v3522_v62, %v12024_v36  ;;  %v3530_v29 = vmul.f32 %v3518_v60, %v12023_v10  ;;  %v6558_v34 = vld [vmem:[%s11688_s6 + $0x8] sm:$0xff]  ;;  %v12028_v62 = vld [vmem:[#allocation14_spill] sm:$0xff] }
 0x542   :  { %v3525_v35 = vmul.f32 %v3521_v30, %v12024_v36 }
 0x544   :  { %3465 = vmatpush.bf16.msrb.mxu3 %v3211_v13  ;;  %6333 = vmatmul.msk.bf16.vlgmr.msrb.gmra.mxu2 %vm1646_vm10, %v6557_v18  ;;  %v3546_v19 = vpack.c.bf16 %v3529_v53, %v3525_v35  ;;  %v12025_v13 = vld [vmem:[#allocation48_spill] sm:$0xff] }
 0x545   :  { %6331 = vmatmul.msk.bf16.vlgmr.msrb.gmra.mxu1 %vm1646_vm10, %v6557_v18  ;;  %3990 = vrot.lane.b32.xlu2 %v8872_v24, %s6591_s24  ;;  %v3515_v1 = vsel %vm344_vm4, %v8967_v4, %v12025_v13  ;;  %v3511_v16 = vsel %vm344_vm4, %v12025_v13, %v9176_v0  ;;  %v3514_v4 = vsel %vm344_vm4, %v9205_v28, %v9144_v31 }
 0x546   :  { %4165 = vrot.lane.b32.xlu0 %v8780_v8, %s6592_s25  ;;  %v3536_v30 = vmul.f32 %v3511_v16, %v12028_v62 }
 0x547   :  { %v3508_v2 = vpop.permute.xlu2 %3507  ;;  %v9256_v40 = vpop.permute.xlu0 %3682 }
 0x548   :  { %4177 = vrot.lane.b32.xlu1 %v8758_v52, %s6592_s25  ;;  %v3484_v42 = vpop.permute.xlu1 %3483 }
 0x549   :  { %v3520_v48 = vsel %vm344_vm4, %v3484_v42, %v9152_v25  ;;  %v3524_v32 = vsel %vm344_vm4, %v3508_v2, %v3484_v42 }
 0x54a   :  { %v3537_v63 = vmul.f32 %v3524_v32, %v12024_v36  ;;  %v3538_v56 = vmul.f32 %v3520_v48, %v12023_v10  ;;  %v12026_v32 = vld [vmem:[#allocation53_spill] sm:$0xff] }
 0x54b   :  { %v3509_v0 = vsel %vm344_vm4, %v12026_v32, %v3502_v57  ;;  %v3513_v57 = vsel %vm344_vm4, %v9090_v59, %v12026_v32 }
 0x54c   :  { %v3550_v49 = vpack.c.bf16 %v3537_v63, %v3533_v5  ;;  %v3551_v11 = vpack.c.bf16 %v3538_v56, %v3534_v14  ;;  %v12027_v56 = vld [vmem:[#allocation11_spill] sm:$0xff] }
 0x54d   :  { %4161 = vrot.lane.b32.xlu2 %v8738_v41, %s6592_s25  ;;  %v3535_v60 = vmul.f32 %v3515_v1, %v12027_v56 }
 0x54e   :  { %6329 = vmatmul.msk.bf16.vlgmr.msrb.gmra.mxu0 %vm1646_vm10, %v6557_v18  ;;  %4163 = vrot.lane.b32.xlu0 %v8748_v12, %s6592_s25 }
 0x54f   :  { %6335 = vmatmul.msk.bf16.vlgmr.msrb.gmra.mxu3 %vm1646_vm10, %v6557_v18  ;;  %v9291_v43 = vpop.permute.xlu2 %3686  ;;  %v9293_v21 = vpop.permute.xlu0 %3678  ;;  %3576 = vmatpush.bf16.msra.mxu0 %v3550_v49  ;;  %v3547_v18 = vpack.c.bf16 %v3530_v29, %v3526_v7  ;;  %v3527_v29 = vmul.f32 %v3513_v57, %v12027_v56  ;;  %v6562_v57 = vld [vmem:[%s11688_s6 + $0x28] sm:$0xff] }
 0x550   :  { %3998 = vrot.lane.b32.xlu1 %v8883_v3, %s6591_s24  ;;  %3595 = vmatpush.bf16.msra.mxu1 %v3551_v11  ;;  %v9296_v50 = vpop.permute.xlu1 %3674  ;;  %v3528_v11 = vmul.f32 %v3509_v0, %v12028_v62 }
 0x553   :  { %3577 = vmatpush.bf16.msra.mxu0 %v3546_v19 }
 0x554   :  { %3596 = vmatpush.bf16.msra.mxu1 %v3547_v18  ;;  %6334 = vmatmul.msk.bf16.gmra.mxu2 %vm1646_vm10, %v6558_v34 }
 0x555   :  { %6332 = vmatmul.msk.bf16.gmra.mxu1 %vm1646_vm10, %v6558_v34  ;;  %4344 = vrot.lane.b32.xlu2 %v8874_v51, %s6593_s26 }
 0x556   :  { %4358 = vrot.lane.b32.xlu0 %v8846_v17, %s6593_s26 }
 0x557   :  { %v9317_v42 = vpop.permute.xlu2 %3668  ;;  %v3500_v48 = vpop.permute.xlu0 %3499 }
 0x558   :  { %4167 = vrot.lane.b32.xlu1 %v8826_v45, %s6592_s25  ;;  %v3512_v14 = vsel %vm344_vm4, %v3500_v48, %v3508_v2  ;;  %v3516_v5 = vsel %vm344_vm4, %v9152_v25, %v3500_v48  ;;  %v9331_v63 = vpop.permute.xlu1 %3670  ;;  %v3510_v25 = vsel %vm344_vm4, %v9144_v31, %v9048_v33  ;;  %v3531_v2 = vmul.f32 %v3514_v4, %v12027_v56  ;;  %v12029_v4 = vld [vmem:[#allocation16_spill] sm:$0xff] }
 0x559   :  { %v3539_v49 = vmul.f32 %v3516_v5, %v12027_v56  ;;  %v3540_v28 = vmul.f32 %v3512_v14, %v12028_v62  ;;  %v3532_v35 = vmul.f32 %v3510_v25, %v12028_v62  ;;  %v3705_v18 = vsel %vm499_vm5, %v9317_v42, %v9174_v38 }
 0x55a   :  { %v3548_v31 = vpack.c.bf16 %v3531_v2, %v3527_v29  ;;  %v3723_v32 = vmul.f32 %v3705_v18, %v12029_v4  ;;  %v12030_v18 = vld [vmem:[#allocation17_spill] sm:$0xff] }
 0x55b   :  { %v3552_v39 = vpack.c.bf16 %v3539_v49, %v3535_v60  ;;  %v3553_v53 = vpack.c.bf16 %v3540_v28, %v3536_v30  ;;  %v3549_v7 = vpack.c.bf16 %v3532_v35, %v3528_v11 }
 0x55d   :  { %3614 = vmatpush.bf16.msra.mxu2 %v3552_v39  ;;  %3633 = vmatpush.bf16.msra.mxu3 %v3553_v53  ;;  %v3857_v53 = vpack.c.bf16 %v8826_v45, %v8780_v8 }
 0x55e   :  { %6330 = vmatmul.msk.bf16.gmra.mxu0 %vm1646_vm10, %v6558_v34  ;;  %4366 = vrot.lane.b32.xlu2 %v8860_v58, %s6593_s26 }
 0x55f   :  { %6336 = vmatmul.msk.bf16.gmra.mxu3 %vm1646_vm10, %v6558_v34  ;;  %4354 = vrot.lane.b32.xlu0 %v8746_v61, %s6593_s26  ;;  %v9355_v33 = vpop.permute.xlu2 %3972  ;;  %v9357_v59 = vpop.permute.xlu0 %3688  ;;  %v6561_v34 = vld [vmem:[%s11688_s6 + $0x20] sm:$0xff] }
 0x560   :  { %4342 = vrot.lane.b32.xlu1 %v8823_v55, %s6593_s26  ;;  %v9361_v19 = vpop.permute.xlu1 %3680 }
 0x561   :  { %3615 = vmatpush.bf16.msra.mxu2 %v3548_v31  ;;  %3634 = vmatpush.bf16.msra.mxu3 %v3549_v7 }
 0x564   :  { %6353 = vmatmul.msk.bf16.vlgmr.msra.gmra.mxu2 %vm1646_vm10, %v6561_v34 }
 0x565   :  { %6351 = vmatmul.msk.bf16.vlgmr.msra.gmra.mxu1 %vm1646_vm10, %v6561_v34 }
 0x566   :  { %4340 = vrot.lane.b32.xlu2 %v8760_v26, %s6593_s26 }
 0x567   :  { %4175 = vrot.lane.b32.xlu0 %v8872_v24, %s6592_s25  ;;  %v9376_v13 = vpop.permute.xlu2 %3968  ;;  %v3663_v1 = vpop.permute.xlu0 %3662 }
 0x568   :  { %4338 = vrot.lane.b32.xlu1 %v8736_v47, %s6593_s26  ;;  %v3667_v16 = vpop.permute.xlu1 %3666  ;;  %v3702_v5 = vsel %vm499_vm5, %v3663_v1, %v9331_v63 }
 0x569   :  { %v3704_v48 = vsel %vm499_vm5, %v3667_v16, %v9296_v50  ;;  %v3711_v25 = vmul.f32 %v3702_v5, %v12029_v4  ;;  %v3708_v39 = vsel %vm499_vm5, %v9194_v37, %v3667_v16 }
 0x56a   :  { %v3719_v0 = vmul.f32 %v3704_v48, %v12029_v4  ;;  %v3718_v16 = vmul.f32 %v3708_v39, %v12030_v18 }
 0x56c   :  { %v3736_v14 = vpack.c.bf16 %v3723_v32, %v3719_v0  ;;  %v3706_v32 = vsel %vm499_vm5, %v9291_v43, %v3663_v1  ;;  %v3853_v0 = vpack.c.bf16 %v8748_v12, %v8738_v41 }
 0x56e   :  { %6349 = vmatmul.msk.bf16.vlgmr.msra.gmra.mxu0 %vm1646_vm10, %v6561_v34  ;;  %4183 = vrot.lane.b32.xlu2 %v8883_v3, %s6592_s25 }
 0x56f   :  { %6355 = vmatmul.msk.bf16.vlgmr.msra.gmra.mxu3 %vm1646_vm10, %v6561_v34  ;;  %4364 = vrot.lane.b32.xlu0 %v8810_v54, %s6593_s26  ;;  %v9394_v60 = vpop.permute.xlu2 %3986  ;;  %v9396_v30 = vpop.permute.xlu0 %3974 }
 0x570   :  { %4356 = vrot.lane.b32.xlu1 %v8807_v23, %s6593_s26  ;;  %3780 = vmatpush.bf16.msrb.mxu1 %v3736_v14  ;;  %v3665_v49 = vpop.permute.xlu1 %3664 }
 0x571   :  { %v3703_v28 = vsel %vm499_vm5, %v3665_v49, %v9236_v44  ;;  %v3707_v31 = vsel %vm499_vm5, %v9357_v59, %v3665_v49  ;;  %v3710_v49 = vmul.f32 %v3706_v32, %v12030_v18 }
 0x572   :  { %v3715_v2 = vmul.f32 %v3703_v28, %v12029_v4  ;;  %v3714_v14 = vmul.f32 %v3707_v31, %v12030_v18 }
 0x574   :  { %v3732_v11 = vpack.c.bf16 %v3715_v2, %v3711_v25  ;;  %6354 = vmatmul.msk.bf16.gmra.mxu2 %vm1646_vm10, %v6562_v57  ;;  %v3731_v25 = vpack.c.bf16 %v3714_v14, %v3710_v49  ;;  %v3856_v2 = vpack.c.bf16 %v8874_v51, %v8823_v55 }
 0x575   :  { %6352 = vmatmul.msk.bf16.gmra.mxu1 %vm1646_vm10, %v6562_v57 }
 0x576   :  { %3781 = vmatpush.bf16.msrb.mxu1 %v3732_v11  ;;  %4362 = vrot.lane.b32.xlu2 %v8758_v52, %s6593_s26  ;;  %v3695_v11 = vsel %vm499_vm5, %v9361_v19, %v9357_v59  ;;  %v3694_v59 = vsel %vm499_vm5, %v9293_v21, %v9291_v43  ;;  %v3698_v43 = vsel %vm499_vm5, %v9331_v63, %v9293_v21 }
 0x577   :  { %4346 = vrot.lane.b32.xlu0 %v8738_v41, %s6593_s26  ;;  %v9419_v29 = vpop.permute.xlu2 %3980  ;;  %v3693_v35 = vpop.permute.xlu0 %3692 }
 0x578   :  { %4350 = vrot.lane.b32.xlu1 %v8780_v8, %s6593_s26  ;;  %v3709_v7 = vsel %vm499_vm5, %v3693_v35, %v9317_v42  ;;  %v9429_v34 = vpop.permute.xlu1 %3988  ;;  %v3696_v42 = vsel %vm499_vm5, %v9256_v40, %v9194_v37 }
 0x579   :  { %v3722_v48 = vmul.f32 %v3709_v7, %v12030_v18 }
 0x57a   :  { %3901 = vmatpush.bf16.msra.mxu1 %v3857_v53 }
 0x57b   :  { %v3735_v5 = vpack.c.bf16 %v3722_v48, %v3718_v16  ;;  %v3699_v16 = vsel %vm499_vm5, %v9236_v44, %v9361_v19 }
 0x57d   :  { %3761 = vmatpush.bf16.msrb.mxu0 %v3735_v5 }
 0x57e   :  { %3902 = vmatpush.bf16.msra.mxu1 %v3853_v0  ;;  %6350 = vmatmul.msk.bf16.gmra.mxu0 %vm1646_vm10, %v6562_v57  ;;  %v3852_v0 = vpack.c.bf16 %v8760_v26, %v8736_v47 }
 0x57f   :  { %6356 = vmatmul.msk.bf16.gmra.mxu3 %vm1646_vm10, %v6562_v57  ;;  %4352 = vrot.lane.b32.xlu2 %v8826_v45, %s6593_s26  ;;  %v9450_v1 = vpop.permute.xlu2 %3978  ;;  %v9452_v28 = vpop.permute.xlu0 %3996  ;;  %v3700_v57 = vsel %vm499_vm5, %v9296_v50, %v9256_v40  ;;  %v6563_v40 = vld [vmem:[%s11688_s6 + $0x30] sm:$0xff]  ;;  %v12031_v50 = vld [vmem:[#allocation18_spill] sm:$0xff] }
 0x580   :  { %4529 = vrot.lane.b32.xlu0 %v8874_v51, %s6594_s27  ;;  %4348 = vrot.lane.b32.xlu1 %v8748_v12, %s6593_s26  ;;  %v3685_v37 = vpop.permute.xlu1 %3684  ;;  %v3721_v53 = vmul.f32 %v3696_v42, %v12031_v50  ;;  %v3717_v32 = vmul.f32 %v3695_v11, %v12031_v50  ;;  %v3713_v5 = vmul.f32 %v3694_v59, %v12031_v50 }
 0x581   :  { %v3697_v39 = vsel %vm499_vm5, %v3685_v37, %v3693_v35  ;;  %3762 = vmatpush.bf16.msrb.mxu0 %v3731_v25  ;;  %v3701_v31 = vsel %vm499_vm5, %v9174_v38, %v3685_v37  ;;  %v12032_v35 = vld [vmem:[#allocation15_spill] sm:$0xff]  ;;  %v3859_v25 = vpack.c.bf16 %v8883_v3, %v8860_v58  ;;  %v3854_v37 = vpack.c.bf16 %v8807_v23, %v8746_v61 }
 0x582   :  { %v3725_v51 = vmul.f32 %v3697_v39, %v12031_v50  ;;  %v3720_v7 = vmul.f32 %v3700_v57, %v12032_v35  ;;  %v3724_v48 = vmul.f32 %v3701_v31, %v12032_v35  ;;  %v3716_v44 = vmul.f32 %v3699_v16, %v12032_v35 }
 0x583   :  { %v3712_v21 = vmul.f32 %v3698_v43, %v12032_v35  ;;  %v3734_v42 = vpack.c.bf16 %v3717_v32, %v3713_v5  ;;  %v3858_v57 = vpack.c.bf16 %v8872_v24, %v8846_v17  ;;  %v12034_v43 = vld [vmem:[#allocation21_spill] sm:$0xff]  ;;  %v12036_v35 = vld [vmem:[#allocation19_spill] sm:$0xff] }
 0x584   :  { %v3738_v38 = vpack.c.bf16 %v3725_v51, %v3721_v53  ;;  %v3737_v14 = vpack.c.bf16 %v3724_v48, %v3720_v7 }
 0x585   :  { %3882 = vmatpush.bf16.msra.mxu0 %v3856_v2  ;;  %6371 = vmatmul.msk.bf16.vlgmr.msrb.gmra.mxu1 %vm1646_vm10, %v6563_v40  ;;  %v3855_v2 = vpack.c.bf16 %v8810_v54, %v8758_v52 }
 0x586   :  { %3818 = vmatpush.bf16.msrb.mxu3 %v3738_v38  ;;  %3799 = vmatpush.bf16.msrb.mxu2 %v3737_v14 }
 0x587   :  { %4527 = vrot.lane.b32.xlu2 %v8823_v55, %s6594_s27  ;;  %v9500_v19 = vpop.permute.xlu2 %4173  ;;  %v9502_v49 = vpop.permute.xlu0 %3970  ;;  %v3733_v55 = vpack.c.bf16 %v3716_v44, %v3712_v21 }
 0x588   :  { %4368 = vrot.lane.b32.xlu0 %v8883_v3, %s6593_s26  ;;  %4543 = vrot.lane.b32.xlu1 %v8846_v17, %s6594_s27  ;;  %v9507_v63 = vpop.permute.xlu1 %3984 }
 0x589   :  { %3883 = vmatpush.bf16.msra.mxu0 %v3852_v0 }
 0x58a   :  { %3819 = vmatpush.bf16.msrb.mxu3 %v3734_v42  ;;  %3800 = vmatpush.bf16.msrb.mxu2 %v3733_v55 }
 0x58d   :  { %6373 = vmatmul.msk.bf16.vlgmr.msrb.gmra.mxu2 %vm1646_vm10, %v6563_v40 }
 0x58e   :  { %3939 = vmatpush.bf16.msra.mxu3 %v3859_v25  ;;  %3920 = vmatpush.bf16.msra.mxu2 %v3858_v57  ;;  %v4005_v25 = vsel %vm783_vm6, %v9450_v1, %v9394_v60 }
 0x58f   :  { %6369 = vmatmul.msk.bf16.vlgmr.msrb.gmra.mxu0 %vm1646_vm10, %v6563_v40  ;;  %6375 = vmatmul.msk.bf16.vlgmr.msrb.gmra.mxu3 %vm1646_vm10, %v6563_v40  ;;  %v9522_v11 = vpop.permute.xlu2 %4169  ;;  %v9524_v17 = vpop.permute.xlu0 %3992 }
 0x590   :  { %4523 = vrot.lane.b32.xlu2 %v8736_v47, %s6594_s27  ;;  %4551 = vrot.lane.b32.xlu0 %v8860_v58, %s6594_s27  ;;  %v9530_v39 = vpop.permute.xlu1 %3994  ;;  %v6564_v47 = vld [vmem:[%s11688_s6 + $0x38] sm:$0xff]  ;;  %v4010_v58 = vsel %vm783_vm6, %v9355_v33, %v9419_v29 }
 0x591   :  { %4360 = vrot.lane.b32.xlu1 %v8872_v24, %s6593_s26 }
 0x592   :  { %3921 = vmatpush.bf16.msra.mxu2 %v3854_v37  ;;  %3940 = vmatpush.bf16.msra.mxu3 %v3855_v2  ;;  %v4021_v2 = vmul.f32 %v4005_v25, %v12034_v43 }
 0x595   :  { %6372 = vmatmul.msk.bf16.gmra.mxu1 %vm1646_vm10, %v6564_v47 }
 0x597   :  { %v9538_v40 = vpop.permute.xlu2 %4179 }
 0x598   :  { %4541 = vrot.lane.b32.xlu2 %v8807_v23, %s6594_s27  ;;  %4525 = vrot.lane.b32.xlu0 %v8760_v26, %s6594_s27  ;;  %v3983_v53 = vpop.permute.xlu0 %3982  ;;  %v12033_v23 = vld [vmem:[#allocation20_spill] sm:$0xff]  ;;  %v4009_v26 = vsel %vm783_vm6, %v9502_v49, %v9450_v1 }
 0x599   :  { %4539 = vrot.lane.b32.xlu1 %v8746_v61, %s6594_s27  ;;  %v3977_v31 = vpop.permute.xlu1 %3976  ;;  %v4011_v51 = vsel %vm783_vm6, %v9396_v30, %v3983_v53  ;;  %v4024_v7 = vmul.f32 %v4010_v58, %v12033_v23  ;;  %v4006_v61 = vsel %vm783_vm6, %v9419_v29, %v9429_v34  ;;  %v9566_v32 = vpop.f32.mrf.mxu2  ;;  %v4020_v5 = vmul.f32 %v4009_v26, %v12033_v23 }
 0x59a   :  { %v4028_v59 = vmul.f32 %v4011_v51, %v12033_v23  ;;  %v4008_v16 = vsel %vm783_vm6, %v9376_v13, %v3977_v31  ;;  %v4025_v14 = vmul.f32 %v4006_v61, %v12034_v43 }
 0x59b   :  { %v4016_v38 = vmul.f32 %v4008_v16, %v12033_v23  ;;  %v6566_v16 = vld [vmem:[%s11688_s6 + $0x48] sm:$0xff] }
 0x59c   :  { %v4041_v48 = vpack.c.bf16 %v4028_v59, %v4024_v7 }
 0x59d   :  { %6374 = vmatmul.msk.bf16.gmra.mxu2 %vm1646_vm10, %v6564_v47  ;;  %v4037_v57 = vpack.c.bf16 %v4020_v5, %v4016_v38  ;;  %v4711_v38 = vld [vmem:[%s11689_s7 + $0x18] sm:$0xff] }
 0x59e   :  { %4067 = vmatpush.bf16.msrb.mxu0 %v4041_v48 }
 0x59f   :  { %6370 = vmatmul.msk.bf16.gmra.mxu0 %vm1646_vm10, %v6564_v47  ;;  %6376 = vmatmul.msk.bf16.gmra.mxu3 %vm1646_vm10, %v6564_v47  ;;  %v9572_v0 = vpop.permute.xlu2 %3990 }
 0x5a0   :  { %4535 = vrot.lane.b32.xlu2 %v8780_v8, %s6594_s27  ;;  %4547 = vrot.lane.b32.xlu0 %v8758_v52, %s6594_s27  ;;  %v4007_v29 = vsel %vm783_vm6, %v3983_v53, %v9572_v0  ;;  %v4004_v8 = vsel %vm783_vm6, %v3977_v31, %v9507_v63  ;;  %v9587_v21 = vpop.permute.xlu0 %4157 }
 0x5a1   :  { %4549 = vrot.lane.b32.xlu1 %v8810_v54, %s6594_s27  ;;  %v4029_v44 = vmul.f32 %v4007_v29, %v12034_v43  ;;  %v6565_v54 = vld [vmem:[%s11688_s6 + $0x40] sm:$0xff]  ;;  %v4017_v37 = vmul.f32 %v4004_v8, %v12034_v43  ;;  %v9611_v58 = vpop.f32.mrf.mxu2  ;;  %v4709_v29 = vld [vmem:[%s11689_s7 + $0x8] sm:$0xff] }
 0x5a2   :  { %v9589_v52 = vpop.permute.xlu1 %4159  ;;  %v9594_v42 = vpop.f32.mrf.mxu1  ;;  %4068 = vmatpush.bf16.msrb.mxu0 %v4037_v57  ;;  %v4002_v57 = vsel %vm783_vm6, %v9429_v34, %v9452_v28  ;;  %v4000_v34 = vsel %vm783_vm6, %v9507_v63, %v9524_v17 }
 0x5a3   :  { %v4042_v55 = vpack.c.bf16 %v4029_v44, %v4025_v14  ;;  %v4038_v1 = vpack.c.bf16 %v4021_v2, %v4017_v37  ;;  %v4014_v37 = vsel %vm783_vm6, %v9452_v28, %v9355_v33  ;;  %v4012_v33 = vsel %vm783_vm6, %v9524_v17, %v9376_v13 }
 0x5a4   :  { %v4027_v27 = vmul.f32 %v4014_v37, %v12036_v35 }
 0x5a5   :  { %6391 = vmatmul.msk.bf16.vlgmr.msra.gmra.mxu1 %vm1646_vm10, %v6565_v54 }
 0x5a6   :  { %4086 = vmatpush.bf16.msrb.mxu1 %v4042_v55 }
 0x5a7   :  { %v9605_v47 = vpop.permute.xlu2 %4161 }
 0x5a8   :  { %4533 = vrot.lane.b32.xlu2 %v8748_v12, %s6594_s27  ;;  %4537 = vrot.lane.b32.xlu0 %v8826_v45, %s6594_s27  ;;  %v9613_v53 = vpop.permute.xlu0 %4153  ;;  %v4708_v12 = vld [vmem:[%s11689_s7] sm:$0xff] }
 0x5a9   :  { %4531 = vrot.lane.b32.xlu1 %v8738_v41, %s6594_s27 }
 0x5aa   :  { %v9615_v31 = vpop.permute.xlu1 %4181  ;;  %v9617_v51 = vpop.f32.mrf.mxu1  ;;  %4087 = vmatpush.bf16.msrb.mxu1 %v4038_v1 }
 0x5ab   :  { %v9619_v59 = vpop.f32.mrf.mxu0  ;;  %v4199_v37 = vsel %vm938_vm7, %v9615_v31, %v9587_v21 }
 0x5ad   :  { %6393 = vmatmul.msk.bf16.vlgmr.msra.gmra.mxu2 %vm1646_vm10, %v6565_v54 }
 0x5af   :  { %6389 = vmatmul.msk.bf16.vlgmr.msra.gmra.mxu0 %vm1646_vm10, %v6565_v54  ;;  %6395 = vmatmul.msk.bf16.vlgmr.msra.gmra.mxu3 %vm1646_vm10, %v6565_v54  ;;  %v9631_v41 = vpop.permute.xlu2 %4344 }
 0x5b0   :  { %4545 = vrot.lane.b32.xlu2 %v8872_v24, %s6594_s27  ;;  %4714 = vperm.xlu0 %6585, %v4708_v12   ;;  %v9633_v45 = vpop.permute.xlu0 %4171  ;;  %v9646_v24 = vpop.f32.mrf.mxu2  ;;  %v6567_v12 = vld [vmem:[%s11688_s6 + $0x50] sm:$0xff] }
 0x5b1   :  { %4553 = vrot.lane.b32.xlu1 %v8883_v3, %s6594_s27  ;;  %v4710_v3 = vld [vmem:[%s11689_s7 + $0x10] sm:$0xff] }
 0x5b2   :  { %v9635_v7 = vpop.f32.mrf.mxu3  ;;  %v9640_v48 = vpop.permute.xlu1 %4155 }
 0x5b3   :  { %v9642_v61 = vpop.f32.mrf.mxu1  ;;  %v9644_v26 = vpop.f32.mrf.mxu0 }
 0x5b5   :  { %6392 = vmatmul.msk.bf16.gmra.mxu1 %vm1646_vm10, %v6566_v16 }
 0x5b8   :  { %4724 = vperm.xlu2 %6584, %v4710_v3   ;;  %4729 = vperm.xlu0 %6585, %v4711_v38   ;;  %v9658_v14 = vpop.permute.xlu2 %4366  ;;  %v9660_v5 = vpop.permute.xlu0 %4165  ;;  %v12035_v3 = vld [vmem:[#allocation22_spill] sm:$0xff] }
 0x5b9   :  { %4719 = vperm.xlu1 %6586, %v4709_v29   ;;  %v9670_v55 = vpop.f32.mrf.mxu2  ;;  %v4026_v38 = vmul.f32 %v4002_v57, %v12035_v3  ;;  %v4001_v29 = vsel %vm783_vm6, %v9394_v60, %v9530_v39  ;;  %v4013_v57 = vsel %vm783_vm6, %v9530_v39, %v9502_v49  ;;  %v4018_v49 = vmul.f32 %v4000_v34, %v12035_v3 }
 0x5ba   :  { %v9662_v8 = vpop.f32.mrf.mxu3  ;;  %v9664_v44 = vpop.permute.xlu1 %4177  ;;  %v4019_v39 = vmul.f32 %v4012_v33, %v12036_v35 }
 0x5bb   :  { %v9666_v54 = vpop.f32.mrf.mxu0  ;;  %v9668_v25 = vpop.f32.mrf.mxu1 }
 0x5bd   :  { %6394 = vmatmul.msk.bf16.gmra.mxu2 %vm1646_vm10, %v6566_v16 }
 0x5bf   :  { %6390 = vmatmul.msk.bf16.gmra.mxu0 %vm1646_vm10, %v6566_v16  ;;  %6396 = vmatmul.msk.bf16.gmra.mxu3 %vm1646_vm10, %v6566_v16 }
 0x5c0   :  { %v9683_v2 = vpop.permute.xlu2 %4340  ;;  %v9685_v1 = vpop.permute.xlu0 %4163 }
 0x5c2   :  { %v9699_v28 = vpop.f32.mrf.mxu3  ;;  %v3999_v16 = vpop.permute.xlu1 %3998 }
 0x5c3   :  { %v4003_v63 = vsel %vm783_vm6, %v9572_v0, %v3999_v16  ;;  %v4015_v13 = vsel %vm783_vm6, %v3999_v16, %v9396_v30  ;;  %v9715_v17 = vpop.f32.mrf.mxu0  ;;  %v3429_v50 = vpop.f32.mrf.mxu1  ;;  %v4022_v30 = vmul.f32 %v4001_v29, %v12035_v3  ;;  %v4023_v0 = vmul.f32 %v4013_v57, %v12036_v35 }
 0x5c4   :  { %v4030_v60 = vmul.f32 %v4003_v63, %v12035_v3  ;;  %v4031_v6 = vmul.f32 %v4015_v13, %v12036_v35  ;;  %v9721_v18 = vadd.f32 %v3429_v50, %v9594_v42  ;;  %v4195_v42 = vsel %vm938_vm7, %v9587_v21, %v9660_v5 }
 0x5c5   :  { %6411 = vmatmul.msk.bf16.vlgmr.msrb.gmra.mxu1 %vm1646_vm10, %v6567_v12  ;;  %v4039_v57 = vpack.c.bf16 %v4022_v30, %v4018_v49  ;;  %v4197_v13 = vsel %vm938_vm7, %v9664_v44, %v9613_v53  ;;  %v4194_v21 = vsel %vm938_vm7, %v9640_v48, %v9685_v1  ;;  %v12038_v49 = vld [vmem:[#allocation23_spill] sm:$0xff] }
 0x5c6   :  { %v4043_v16 = vpack.c.bf16 %v4030_v60, %v4026_v38  ;;  %v4044_v62 = vpack.c.bf16 %v4031_v6, %v4027_v27  ;;  %v12037_v6 = vld [vmem:[#allocation24_spill] sm:$0xff] }
 0x5c7   :  { %v3448_v63 = vpop.f32.mrf.mxu2  ;;  %v4212_v27 = vmul.f32 %v4199_v37, %v12037_v6 }
 0x5c8   :  { %4105 = vmatpush.bf16.msrb.mxu2 %v4043_v16  ;;  %4124 = vmatpush.bf16.msrb.mxu3 %v4044_v62  ;;  %v9733_v50 = vadd.f32 %v3448_v63, %v9566_v32  ;;  %v4184_v34 = vpop.permute.xlu2 %4183  ;;  %v9739_v33 = vpop.permute.xlu0 %4358  ;;  %v4040_v32 = vpack.c.bf16 %v4023_v0, %v4019_v39  ;;  %v4209_v39 = vmul.f32 %v4195_v42, %v12038_v49 }
 0x5c9   :  { %v4200_v38 = vsel %vm938_vm7, %v4184_v34, %v9589_v52  ;;  %v4204_v42 = vmul.f32 %v4197_v13, %v12037_v6 }
 0x5ca   :  { %v9745_v29 = vpop.f32.mrf.mxu3  ;;  %v4168_v62 = vpop.permute.xlu1 %4167  ;;  %v4216_v60 = vmul.f32 %v4200_v38, %v12037_v6  ;;  %v4193_v38 = vsel %vm938_vm7, %v9613_v53, %v9605_v47 }
 0x5cb   :  { %v4196_v16 = vsel %vm938_vm7, %v9589_v52, %v4168_v62  ;;  %v3410_v37 = vpop.f32.mrf.mxu0  ;;  %v9759_v63 = vpop.f32.mrf.mxu1  ;;  %v4198_v52 = vsel %vm938_vm7, %v9538_v40, %v9640_v48  ;;  %v4201_v53 = vmul.f32 %v4193_v38, %v12038_v49  ;;  %v4187_v38 = vsel %vm938_vm7, %v9500_v19, %v9615_v31 }
 0x5cc   :  { %v4213_v30 = vmul.f32 %v4196_v16, %v12038_v49  ;;  %v9764_v0 = vadd.f32 %v3410_v37, %v9619_v59  ;;  %4106 = vmatpush.bf16.msrb.mxu2 %v4039_v57  ;;  %4125 = vmatpush.bf16.msrb.mxu3 %v4040_v32  ;;  %v4229_v3 = vpack.c.bf16 %v4216_v60, %v4212_v27  ;;  %v6568_v32 = vld [vmem:[%s11688_s6 + $0x58] sm:$0xff] }
 0x5cd   :  { %v4205_v16 = vmul.f32 %v4194_v21, %v12038_v49  ;;  %v4208_v57 = vmul.f32 %v4198_v52, %v12037_v6  ;;  %v4185_v31 = vsel %vm938_vm7, %v9522_v11, %v9664_v44 }
 0x5ce   :  { %v4226_v35 = vpack.c.bf16 %v4213_v30, %v4209_v39 }
 0x5cf   :  { %6409 = vmatmul.msk.bf16.vlgmr.msrb.gmra.mxu0 %vm1646_vm10, %v6567_v12  ;;  %6413 = vmatmul.msk.bf16.vlgmr.msrb.gmra.mxu2 %vm1646_vm10, %v6567_v12  ;;  %v9779_v59 = vpop.f32.mrf.mxu2  ;;  %v4225_v60 = vpack.c.bf16 %v4208_v57, %v4204_v42  ;;  %v12040_v57 = vld [vmem:[#allocation25_spill] sm:$0xff] }
 0x5d0   :  { %6415 = vmatmul.msk.bf16.vlgmr.msrb.gmra.mxu3 %vm1646_vm10, %v6567_v12  ;;  %4252 = vmatpush.bf16.msra.mxu0 %v4226_v35  ;;  %v9783_v48 = vpop.permute.xlu2 %4362  ;;  %v4222_v12 = vpack.c.bf16 %v4205_v16, %v4201_v53 }
 0x5d1   :  { %4309 = vmatpush.bf16.msra.mxu3 %v4229_v3  ;;  %v9785_v27 = vpop.permute.xlu0 %4354 }
 0x5d2   :  { %v3467_v13 = vpop.f32.mrf.mxu3  ;;  %v9790_v21 = vpop.permute.xlu1 %4342 }
 0x5d3   :  { %v9793_v37 = vadd.f32 %v3467_v13, %v9635_v7  ;;  %v3412_v39 = vpop.f32.mrf.mxu0  ;;  %v3434_v30 = vpop.f32.mrf.mxu1  ;;  %v4191_v7 = vsel %vm938_vm7, %v9660_v5, %v9500_v19 }
 0x5d4   :  { %v9796_v35 = vadd.f32 %v3412_v39, %v9644_v26  ;;  %v9799_v3 = vadd.f32 %v3434_v30, %v9642_v61  ;;  %4253 = vmatpush.bf16.msra.mxu0 %v4222_v12  ;;  %v12039_v26 = vld [vmem:[#allocation26_spill] sm:$0xff]  ;;  %v4210_v13 = vmul.f32 %v4191_v7, %v12040_v57  ;;  %v4189_v7 = vsel %vm938_vm7, %v9605_v47, %v9522_v11 }
 0x5d5   :  { %4310 = vmatpush.bf16.msra.mxu3 %v4225_v60  ;;  %6412 = vmatmul.msk.bf16.gmra.mxu1 %vm1646_vm10, %v6568_v32  ;;  %v4211_v42 = vmul.f32 %v4187_v38, %v12039_v26 }
 0x5d7   :  { %v3453_v52 = vpop.f32.mrf.mxu2 }
 0x5d8   :  { %v9814_v61 = vadd.f32 %v3453_v52, %v9646_v24  ;;  %v4190_v24 = vsel %vm938_vm7, %v9685_v1, %v9633_v45  ;;  %v4186_v1 = vsel %vm938_vm7, %v9633_v45, %v9538_v40 }
 0x5d9   :  { %v9811_v16 = vpop.permute.xlu2 %4352  ;;  %v4176_v53 = vpop.permute.xlu0 %4175  ;;  %v4207_v11 = vmul.f32 %v4186_v1, %v12039_v26 }
 0x5da   :  { %v4188_v12 = vsel %vm938_vm7, %v4176_v53, %v4184_v34  ;;  %v4192_v19 = vsel %vm938_vm7, %v4168_v62, %v4176_v53  ;;  %v3469_v5 = vpop.f32.mrf.mxu3  ;;  %v9825_v60 = vpop.permute.xlu1 %4338 }
 0x5db   :  { %v4214_v39 = vmul.f32 %v4192_v19, %v12040_v57  ;;  %v4215_v30 = vmul.f32 %v4188_v12, %v12039_v26  ;;  %v9834_v44 = vadd.f32 %v3469_v5, %v9662_v8  ;;  %v3415_v38 = vpop.f32.mrf.mxu0  ;;  %v9836_v34 = vpop.f32.mrf.mxu1  ;;  %v4203_v8 = vmul.f32 %v4185_v31, %v12039_v26 }
 0x5dc   :  { %v9839_v62 = vadd.f32 %v3415_v38, %v9666_v54  ;;  %v4206_v12 = vmul.f32 %v4190_v24, %v12040_v57  ;;  %v4202_v54 = vmul.f32 %v4189_v7, %v12040_v57 }
 0x5dd   :  { %v4227_v52 = vpack.c.bf16 %v4214_v39, %v4210_v13  ;;  %v4228_v53 = vpack.c.bf16 %v4215_v30, %v4211_v42  ;;  %v4224_v19 = vpack.c.bf16 %v4207_v11, %v4203_v8  ;;  %v6569_v39 = vld [vmem:[%s11688_s6 + $0x60] sm:$0xff]  ;;  %v12041_v11 = vld [vmem:[#allocation27_spill] sm:$0xff] }
 0x5de   :  { %v4223_v31 = vpack.c.bf16 %v4206_v12, %v4202_v54 }
 0x5df   :  { %6410 = vmatmul.msk.bf16.gmra.mxu0 %vm1646_vm10, %v6568_v32  ;;  %6414 = vmatmul.msk.bf16.gmra.mxu2 %vm1646_vm10, %v6568_v32  ;;  %v3455_v47 = vpop.f32.mrf.mxu2 }
 0x5e0   :  { %6416 = vmatmul.msk.bf16.gmra.mxu3 %vm1646_vm10, %v6568_v32  ;;  %4271 = vmatpush.bf16.msra.mxu1 %v4227_v52  ;;  %v9857_v40 = vadd.f32 %v3455_v47, %v9670_v55 }
 0x5e1   :  { %4290 = vmatpush.bf16.msra.mxu2 %v4228_v53  ;;  %v9859_v45 = vpop.permute.xlu0 %4364  ;;  %v9875_v38 = vpop.permute.xlu2 %4527 }
 0x5e2   :  { %v3472_v42 = vpop.f32.mrf.mxu3  ;;  %v9861_v13 = vpop.permute.xlu1 %4356 }
 0x5e3   :  { %v9864_v5 = vadd.f32 %v3472_v42, %v9699_v28  ;;  %v3417_v32 = vpop.f32.mrf.mxu0  ;;  %v3598_v24 = vpop.f32.mrf.mxu1 }
 0x5e4   :  { %v9870_v30 = vadd.f32 %v3417_v32, %v9715_v17  ;;  %v9873_v55 = vadd.f32 %v3598_v24, %v9721_v18  ;;  %4272 = vmatpush.bf16.msra.mxu1 %v4223_v31  ;;  %v4381_v17 = vsel %vm1093_vm8, %v9631_v41, %v9811_v16 }
 0x5e5   :  { %4291 = vmatpush.bf16.msra.mxu2 %v4224_v19  ;;  %v4398_v47 = vmul.f32 %v4381_v17, %v12041_v11 }
 0x5e7   :  { %6431 = vmatmul.msk.bf16.vlgmr.msra.gmra.mxu1 %vm1646_vm10, %v6569_v39  ;;  %v3617_v28 = vpop.f32.mrf.mxu2 }
 0x5e8   :  { %v9881_v1 = vadd.f32 %v3617_v28, %v9733_v50 }
 0x5e9   :  { %v9878_v7 = vpop.permute.xlu0 %4346 }
 0x5ea   :  { %v3474_v52 = vpop.f32.mrf.mxu3  ;;  %v4351_v18 = vpop.permute.xlu1 %4350 }
 0x5eb   :  { %v9888_v53 = vadd.f32 %v3474_v52, %v9745_v29  ;;  %v3579_v8 = vpop.f32.mrf.mxu0  ;;  %v9890_v12 = vpop.f32.mrf.mxu1  ;;  %v4380_v54 = vsel %vm1093_vm8, %v9790_v21, %v4351_v18  ;;  %v3451_v29 = vadd.f32 %v9779_v59, %v9611_v58 }
 0x5ec   :  { %v9896_v50 = vadd.f32 %v3579_v8, %v9764_v0  ;;  %v4394_v42 = vmul.f32 %v4380_v54, %v12041_v11  ;;  %v9903_v31 = vpop.permute.xlu2 %4523  ;;  %v4378_v0 = vsel %vm1093_vm8, %v9825_v60, %v9878_v7  ;;  %v6570_v54 = vld [vmem:[%s11688_s6 + $0x68] sm:$0xff] }
 0x5ee   :  { %v4411_v19 = vpack.c.bf16 %v4398_v47, %v4394_v42  ;;  %v4386_v47 = vmul.f32 %v4378_v0, %v12041_v11 }
 0x5ef   :  { %6429 = vmatmul.msk.bf16.vlgmr.msra.gmra.mxu0 %vm1646_vm10, %v6569_v39  ;;  %6433 = vmatmul.msk.bf16.vlgmr.msra.gmra.mxu2 %vm1646_vm10, %v6569_v39  ;;  %v3619_v32 = vpop.f32.mrf.mxu2 }
 0x5f0   :  { %6435 = vmatmul.msk.bf16.vlgmr.msra.gmra.mxu3 %vm1646_vm10, %v6569_v39  ;;  %4437 = vmatpush.bf16.msrb.mxu0 %v4411_v19  ;;  %v9913_v28 = vadd.f32 %v3619_v32, %v3451_v29  ;;  %v4384_v32 = vsel %vm1093_vm8, %v9658_v14, %v9790_v21  ;;  %v4383_v21 = vsel %vm1093_vm8, %v9859_v45, %v9683_v2 }
 0x5f2   :  { %v9911_v24 = vpop.permute.xlu0 %4529  ;;  %12042 = vst [vmem:[#allocation37_spill] sm:$0xff] %v9913_v28  ;;  %v3636_v17 = vpop.f32.mrf.mxu3 }
 0x5f3   :  { %v4349_v58 = vpop.permute.xlu1 %4348  ;;  %v9916_v59 = vadd.f32 %v3636_v17, %v9793_v37  ;;  %v3581_v52 = vpop.f32.mrf.mxu0 }
 0x5f4   :  { %v4379_v39 = vsel %vm1093_vm8, %v9683_v2, %v4349_v58  ;;  %v3603_v8 = vpop.f32.mrf.mxu1  ;;  %v9927_v29 = vadd.f32 %v3581_v52, %v9796_v35  ;;  %v9937_v49 = vpop.permute.xlu2 %4541  ;;  %v4372_v2 = vsel %vm1093_vm8, %v9739_v33, %v9658_v14  ;;  %v4371_v14 = vsel %vm1093_vm8, %v9861_v13, %v9859_v45 }
 0x5f5   :  { %v4390_v42 = vmul.f32 %v4379_v39, %v12041_v11  ;;  %v9930_v37 = vadd.f32 %v3603_v8, %v9799_v3  ;;  %v12043_v8 = vld [vmem:[#allocation28_spill] sm:$0xff] }
 0x5f6   :  { %v4393_v57 = vmul.f32 %v4383_v21, %v12043_v8  ;;  %v12045_v21 = vld [vmem:[#allocation30_spill] sm:$0xff] }
 0x5f7   :  { %v4407_v19 = vpack.c.bf16 %v4390_v42, %v4386_v47  ;;  %6432 = vmatmul.msk.bf16.gmra.mxu1 %vm1646_vm10, %v6570_v54  ;;  %v3622_v17 = vpop.f32.mrf.mxu2  ;;  %v4397_v47 = vmul.f32 %v4384_v32, %v12043_v8  ;;  %v4382_v32 = vsel %vm1093_vm8, %v9783_v48, %v9825_v60  ;;  %v4376_v60 = vsel %vm1093_vm8, %v4351_v18, %v9739_v33  ;;  %v12046_v33 = vld [vmem:[#allocation29_spill] sm:$0xff] }
 0x5f8   :  { %v9940_v39 = vadd.f32 %v3622_v17, %v9814_v61  ;;  %v4395_v18 = vmul.f32 %v4376_v60, %v12046_v33 }
 0x5f9   :  { %4438 = vmatpush.bf16.msrb.mxu0 %v4407_v19 }
 0x5fa   :  { %v4369_v0 = vpop.permute.xlu0 %4368  ;;  %v3638_v3 = vpop.f32.mrf.mxu3 }
 0x5fb   :  { %v4385_v35 = vsel %vm1093_vm8, %v4369_v0, %v9631_v41  ;;  %v9945_v52 = vpop.permute.xlu1 %4543  ;;  %v9954_v19 = vadd.f32 %v3638_v3, %v9834_v44  ;;  %v3584_v61 = vpop.f32.mrf.mxu0  ;;  %v4389_v44 = vmul.f32 %v4382_v32, %v12043_v8 }
 0x5fc   :  { %v4401_v42 = vmul.f32 %v4385_v35, %v12043_v8  ;;  %v9956_v17 = vpop.f32.mrf.mxu1  ;;  %v9959_v41 = vadd.f32 %v3584_v61, %v9839_v62  ;;  %v4536_v45 = vpop.permute.xlu2 %4535 }
 0x5fd   :  { %12044 = vst [vmem:[#allocation35_spill] sm:$0xff] %v9954_v19 }
 0x5fe   :  { %v4414_v11 = vpack.c.bf16 %v4401_v42, %v4397_v47  ;;  %v4396_v42 = vmul.f32 %v4372_v2, %v12045_v21 }
 0x5ff   :  { %6430 = vmatmul.msk.bf16.gmra.mxu0 %vm1646_vm10, %v6570_v54  ;;  %6434 = vmatmul.msk.bf16.gmra.mxu2 %vm1646_vm10, %v6570_v54  ;;  %v3624_v62 = vpop.f32.mrf.mxu2 }
 0x600   :  { %6436 = vmatmul.msk.bf16.gmra.mxu3 %vm1646_vm10, %v6570_v54  ;;  %v9978_v35 = vadd.f32 %v3624_v62, %v9857_v40  ;;  %v4410_v54 = vpack.c.bf16 %v4393_v57, %v4389_v44  ;;  %v4375_v40 = vsel %vm1093_vm8, %v4349_v58, %v9861_v13  ;;  %v4370_v13 = vsel %vm1093_vm8, %v9785_v27, %v9783_v48 }
 0x601   :  { %4494 = vmatpush.bf16.msrb.mxu3 %v4414_v11  ;;  %v4392_v58 = vmul.f32 %v4371_v14, %v12045_v21 }
 0x602   :  { %v9980_v3 = vpop.permute.xlu0 %4551  ;;  %v3641_v47 = vpop.f32.mrf.mxu3 }
 0x603   :  { %v9988_v11 = vadd.f32 %v3641_v47, %v9864_v5  ;;  %v4361_v61 = vpop.permute.xlu1 %4360  ;;  %v3586_v32 = vpop.f32.mrf.mxu0 }
 0x604   :  { %v4373_v57 = vsel %vm1093_vm8, %v4361_v61, %v4369_v0  ;;  %v4377_v2 = vsel %vm1093_vm8, %v9811_v16, %v4361_v61  ;;  %v3783_v44 = vpop.f32.mrf.mxu1  ;;  %v10002_v60 = vadd.f32 %v3586_v32, %v9870_v30  ;;  %v4374_v16 = vsel %vm1093_vm8, %v9878_v7, %v9785_v27 }
 0x605   :  { %4495 = vmatpush.bf16.msrb.mxu3 %v4410_v54  ;;  %v4399_v5 = vmul.f32 %v4377_v2, %v12046_v33  ;;  %v4400_v62 = vmul.f32 %v4373_v57, %v12045_v21  ;;  %v10005_v47 = vadd.f32 %v3783_v44, %v9873_v55  ;;  %v4391_v0 = vmul.f32 %v4375_v40, %v12046_v33  ;;  %v6571_v57 = vld [vmem:[%s11688_s6 + $0x70] sm:$0xff]  ;;  %v4534_v44 = vpop.permute.xlu2 %4533 }
 0x606   :  { %v4388_v61 = vmul.f32 %v4370_v13, %v12045_v21  ;;  %v4387_v55 = vmul.f32 %v4374_v16, %v12046_v33 }
 0x607   :  { %v4412_v54 = vpack.c.bf16 %v4399_v5, %v4395_v18  ;;  %v4413_v30 = vpack.c.bf16 %v4400_v62, %v4396_v42 }
 0x608   :  { %v4408_v18 = vpack.c.bf16 %v4391_v0, %v4387_v55  ;;  %v4409_v42 = vpack.c.bf16 %v4392_v58, %v4388_v61 }
 0x609   :  { %4456 = vmatpush.bf16.msrb.mxu1 %v4412_v54  ;;  %4475 = vmatpush.bf16.msrb.mxu2 %v4413_v30  ;;  %v4565_v30 = vsel %vm1248_vm9, %v9875_v38, %v4536_v45 }
 0x60a   :  { %v10019_v32 = vpop.permute.xlu0 %4525  ;;  %v3643_v48 = vpop.f32.mrf.mxu3 }
 0x60b   :  { %v10025_v27 = vadd.f32 %v3643_v48, %v9888_v53  ;;  %v4540_v7 = vpop.permute.xlu1 %4539 }
 0x60c   :  { %v3764_v14 = vpop.f32.mrf.mxu0  ;;  %v10030_v2 = vpop.f32.mrf.mxu1 }
 0x60d   :  { %v10028_v40 = vadd.f32 %v3764_v14, %v9896_v50  ;;  %4457 = vmatpush.bf16.msrb.mxu1 %v4408_v18  ;;  %4476 = vmatpush.bf16.msrb.mxu2 %v4409_v42  ;;  %v4546_v61 = vpop.permute.xlu2 %4545  ;;  %v12049_v42 = vld [vmem:[#allocation32_spill] sm:$0xff] }
 0x60f   :  { %6449 = vmatmul.msk.bf16.vlgmr.msrb.gmra.mxu0 %vm1646_vm10, %v6571_v57 }
 0x610   :  { %6455 = vmatmul.msk.bf16.vlgmr.msrb.gmra.mxu3 %vm1646_vm10, %v6571_v57  ;;  %6451 = vmatmul.msk.bf16.vlgmr.msrb.gmra.mxu1 %vm1646_vm10, %v6571_v57  ;;  %v3802_v5 = vpop.f32.mrf.mxu2 }
 0x611   :  { %6453 = vmatmul.msk.bf16.vlgmr.msrb.gmra.mxu2 %vm1646_vm10, %v6571_v57  ;;  %v10037_v62 = vadd.f32 %v3802_v5, %v9881_v1  ;;  %v4561_v1 = vsel %vm1248_vm9, %v4536_v45, %v9945_v52  ;;  %v4579_v45 = vmul.f32 %v4565_v30, %v12049_v42  ;;  %v12050_v5 = vld [vmem:[#allocation33_spill] sm:$0xff]  ;;  %v4560_v30 = vsel %vm1248_vm9, %v4534_v44, %v9937_v49 }
 0x612   :  { %v4548_v53 = vpop.permute.xlu0 %4547  ;;  %v3821_v50 = vpop.f32.mrf.mxu3 }
 0x613   :  { %v4550_v13 = vpop.permute.xlu1 %4549  ;;  %v10040_v16 = vadd.f32 %v3821_v50, %v9916_v59  ;;  %v6572_v59 = vld [vmem:[%s11688_s6 + $0x78] sm:$0xff]  ;;  %v4580_v50 = vmul.f32 %v4561_v1, %v12050_v5  ;;  %v4564_v1 = vsel %vm1248_vm9, %v10019_v32, %v4534_v44  ;;  %v4576_v44 = vmul.f32 %v4560_v30, %v12050_v5 }
 0x614   :  { %v10042_v58 = vpop.f32.mrf.mxu0  ;;  %v3788_v0 = vpop.f32.mrf.mxu1  ;;  %v4568_v30 = vsel %vm1248_vm9, %v4550_v13, %v10019_v32 }
 0x615   :  { %v10045_v54 = vadd.f32 %v3788_v0, %v9930_v37 }
 0x618   :  { %v10053_v48 = vpop.f32.mrf.mxu2 }
 0x619   :  { %12047 = vst [vmem:[#allocation39_spill] sm:$0xff] %v10053_v48 }
 0x61a   :  { %v4538_v55 = vpop.permute.xlu0 %4537  ;;  %v10063_v14 = vpop.f32.mrf.mxu3 }
 0x61b   :  { %v4562_v37 = vsel %vm1248_vm9, %v4538_v55, %v4546_v61  ;;  %v4566_v57 = vsel %vm1248_vm9, %v9911_v24, %v4538_v55  ;;  %12048 = vst [vmem:[#allocation38_spill] sm:$0xff] %v10063_v14  ;;  %v4532_v18 = vpop.permute.xlu1 %4531 }
 0x61c   :  { %v4583_v0 = vmul.f32 %v4566_v57, %v12049_v42  ;;  %v4584_v33 = vmul.f32 %v4562_v37, %v12050_v5  ;;  %v3769_v21 = vpop.f32.mrf.mxu0  ;;  %v10069_v8 = vpop.f32.mrf.mxu1  ;;  %v4559_v6 = vsel %vm1248_vm9, %v4532_v18, %v4540_v7  ;;  %v4563_v55 = vsel %vm1248_vm9, %v9903_v31, %v4532_v18 }
 0x61d   :  { %v10077_v26 = vadd.f32 %v3769_v21, %v9959_v41  ;;  %v4557_v18 = vsel %vm1248_vm9, %v9945_v52, %v9980_v3  ;;  %v4571_v41 = vmul.f32 %v4563_v55, %v12049_v42  ;;  %v4572_v21 = vmul.f32 %v4559_v6, %v12050_v5  ;;  %v12052_v5 = vld [vmem:[#allocation31_spill] sm:$0xff] }
 0x61e   :  { %v4596_v37 = vpack.c.bf16 %v4583_v0, %v4579_v45  ;;  %v4597_v57 = vpack.c.bf16 %v4584_v33, %v4580_v50  ;;  %v4575_v33 = vmul.f32 %v4564_v1, %v12049_v42  ;;  %v4569_v52 = vsel %vm1248_vm9, %v9980_v3, %v9875_v38  ;;  %v12051_v45 = vld [vmem:[#allocation34_spill] sm:$0xff] }
 0x61f   :  { %6450 = vmatmul.msk.bf16.gmra.mxu0 %vm1646_vm10, %v6572_v59  ;;  %v4581_v50 = vmul.f32 %v4557_v18, %v12051_v45  ;;  %v4555_v6 = vsel %vm1248_vm9, %v4540_v7, %v4548_v53  ;;  %v4556_v55 = vsel %vm1248_vm9, %v9937_v49, %v4550_v13  ;;  %v4593_v18 = vpack.c.bf16 %v4576_v44, %v4572_v21 }
 0x620   :  { %6456 = vmatmul.msk.bf16.gmra.mxu3 %vm1646_vm10, %v6572_v59  ;;  %6452 = vmatmul.msk.bf16.gmra.mxu1 %vm1646_vm10, %v6572_v59  ;;  %v3807_v0 = vpop.f32.mrf.mxu2  ;;  %v4582_v32 = vmul.f32 %v4569_v52, %v12052_v5 }
 0x621   :  { %6454 = vmatmul.msk.bf16.gmra.mxu2 %vm1646_vm10, %v6572_v59  ;;  %4622 = vmatpush.bf16.msra.mxu0 %v4596_v37  ;;  %v4567_v59 = vsel %vm1248_vm9, %v4548_v53, %v9903_v31  ;;  %v3841_v38 = vadd.f32 %v3807_v0, %v9940_v39  ;;  %v4592_v37 = vpack.c.bf16 %v4575_v33, %v4571_v41 }
 0x622   :  { %4641 = vmatpush.bf16.msra.mxu1 %v4597_v57  ;;  %v3826_v3 = vpop.f32.mrf.mxu3  ;;  %v4578_v33 = vmul.f32 %v4568_v30, %v12052_v5 }
 0x623   :  { %v4554_v1 = vpop.permute.xlu1 %4553  ;;  %v3842_v7 = vadd.f32 %v3826_v3, %v9988_v11  ;;  %v4573_v11 = vmul.f32 %v4555_v6, %v12051_v45 }
 0x624   :  { %v4558_v57 = vsel %vm1248_vm9, %v4546_v61, %v4554_v1  ;;  %v4570_v31 = vsel %vm1248_vm9, %v4554_v1, %v9911_v24  ;;  %v10120_v53 = vpop.f32.mrf.mxu0  ;;  %v3904_v49 = vpop.f32.mrf.mxu1  ;;  %v4574_v61 = vmul.f32 %v4567_v59, %v12052_v5  ;;  %v4577_v24 = vmul.f32 %v4556_v55, %v12051_v45 }
 0x625   :  { %v4585_v39 = vmul.f32 %v4558_v57, %v12051_v45  ;;  %v4586_v13 = vmul.f32 %v4570_v31, %v12052_v5  ;;  %v3953_v41 = vadd.f32 %v3904_v49, %v10005_v47  ;;  %4623 = vmatpush.bf16.msra.mxu0 %v4592_v37  ;;  %v6573_v47 = vld [vmem:[%s11688_s6 + $0x80] sm:$0xff] }
 0x626   :  { %4642 = vmatpush.bf16.msra.mxu1 %v4593_v18  ;;  %v4594_v6 = vpack.c.bf16 %v4577_v24, %v4573_v11  ;;  %v4595_v3 = vpack.c.bf16 %v4578_v33, %v4574_v61 }
 0x627   :  { %v4598_v0 = vpack.c.bf16 %v4585_v39, %v4581_v50  ;;  %v4599_v21 = vpack.c.bf16 %v4586_v13, %v4582_v32  ;;  %v6574_v32 = vld [vmem:[%s11688_s6 + $0x88] sm:$0xff] }
 0x628   :  { %v10130_v44 = vpop.f32.mrf.mxu2 }
 0x629   :  { %4660 = vmatpush.bf16.msra.mxu2 %v4598_v0  ;;  %4679 = vmatpush.bf16.msra.mxu3 %v4599_v21 }
 0x62a   :  { %v10135_v52 = vpop.f32.mrf.mxu3 }
 0x62c   :  { %v3885_v59 = vpop.f32.mrf.mxu0  ;;  %v10137_v1 = vpop.f32.mrf.mxu1 }
 0x62d   :  { %v3952_v55 = vadd.f32 %v3885_v59, %v10028_v40  ;;  %4661 = vmatpush.bf16.msra.mxu2 %v4594_v6  ;;  %4680 = vmatpush.bf16.msra.mxu3 %v4595_v3 }
 0x62f   :  { %6469 = vmatmul.msk.bf16.vlgmr.msra.gmra.mxu0 %vm1646_vm10, %v6573_v47 }
 0x630   :  { %6471 = vmatmul.msk.bf16.vlgmr.msra.gmra.mxu1 %vm1646_vm10, %v6573_v47  ;;  %6475 = vmatmul.msk.bf16.vlgmr.msra.gmra.mxu3 %vm1646_vm10, %v6573_v47  ;;  %v3923_v50 = vpop.f32.mrf.mxu2 }
 0x631   :  { %6473 = vmatmul.msk.bf16.vlgmr.msra.gmra.mxu2 %vm1646_vm10, %v6573_v47  ;;  %v3954_v30 = vadd.f32 %v3923_v50, %v10037_v62 }
 0x632   :  { %v3942_v37 = vpop.f32.mrf.mxu3 }
 0x633   :  { %v3955_v57 = vadd.f32 %v3942_v37, %v10040_v16 }
 0x634   :  { %v10146_v31 = vpop.f32.mrf.mxu0  ;;  %v3909_v49 = vpop.f32.mrf.mxu1 }
 0x635   :  { %v3961_v40 = vadd.f32 %v3909_v49, %v10045_v54 }
 0x638   :  { %v10149_v18 = vpop.f32.mrf.mxu2 }
 0x639   :  { %12053 = vst [vmem:[#allocation40_spill] sm:$0xff] %v10149_v18 }
 0x63a   :  { %v10154_v39 = vpop.f32.mrf.mxu3 }
 0x63b   :  { %12054 = vst [vmem:[#allocation49_spill] sm:$0xff] %v10154_v39 }
 0x63c   :  { %v3890_v13 = vpop.f32.mrf.mxu0  ;;  %v10156_v11 = vpop.f32.mrf.mxu1 }
 0x63d   :  { %v3960_v62 = vadd.f32 %v3890_v13, %v10077_v26 }
 0x63f   :  { %6470 = vmatmul.msk.bf16.gmra.mxu0 %vm1646_vm10, %v6574_v32 }
 0x640   :  { %6472 = vmatmul.msk.bf16.gmra.mxu1 %vm1646_vm10, %v6574_v32  ;;  %6476 = vmatmul.msk.bf16.gmra.mxu3 %vm1646_vm10, %v6574_v32  ;;  %v3928_v16 = vpop.f32.mrf.mxu2 }
 0x641   :  { %6474 = vmatmul.msk.bf16.gmra.mxu2 %vm1646_vm10, %v6574_v32  ;;  %v3962_v54 = vadd.f32 %v3928_v16, %v3841_v38 }
 0x642   :  { %v3947_v61 = vpop.f32.mrf.mxu3 }
 0x643   :  { %v3963_v24 = vadd.f32 %v3947_v61, %v3842_v7 }
 0x644   :  { %v10163_v33 = vpop.f32.mrf.mxu0  ;;  %v4089_v0 = vpop.f32.mrf.mxu1 }
 0x645   :  { %v10165_v21 = vadd.f32 %v4089_v0, %v3953_v41 }
 0x648   :  { %v10167_v47 = vpop.f32.mrf.mxu2 }
 0x64a   :  { %v10169_v26 = vpop.f32.mrf.mxu3 }
 0x64c   :  { %v4070_v6 = vpop.f32.mrf.mxu0  ;;  %v10171_v3 = vpop.f32.mrf.mxu1 }
 0x64d   :  { %v10173_v59 = vadd.f32 %v4070_v6, %v3952_v55 }
 0x652   :  { %v4108_v50 = vpop.f32.mrf.mxu2 }
 0x653   :  { %v10175_v37 = vadd.f32 %v4108_v50, %v3954_v30  ;;  %v4127_v38 = vpop.f32.mrf.mxu3 }
 0x654   :  { %v10177_v49 = vadd.f32 %v4127_v38, %v3955_v57  ;;  %v10179_v7 = vpop.f32.mrf.mxu0  ;;  %v4094_v32 = vpop.f32.mrf.mxu1 }
 0x655   :  { %v4146_v41 = vadd.f32 %v4094_v32, %v3961_v40 }
 0x65a   :  { %v10181_v13 = vpop.f32.mrf.mxu2 }
 0x65b   :  { %12055 = vst [vmem:[#allocation54_spill] sm:$0xff] %v10181_v13  ;;  %v10183_v16 = vpop.f32.mrf.mxu3 }
 0x65c   :  { %12056 = vst [vmem:[#allocation42_spill] sm:$0xff] %v10183_v16  ;;  %v4075_v61 = vpop.f32.mrf.mxu0  ;;  %v4096_v0 = vpop.f32.mrf.mxu1 }
 0x65d   :  { %v4145_v42 = vadd.f32 %v4075_v61, %v3960_v62 }
 0x662   :  { %v4113_v45 = vpop.f32.mrf.mxu2 }
 0x663   :  { %v4147_v55 = vadd.f32 %v4113_v45, %v3962_v54  ;;  %v4132_v6 = vpop.f32.mrf.mxu3 }
 0x664   :  { %v4148_v5 = vadd.f32 %v4132_v6, %v3963_v24  ;;  %v4077_v30 = vpop.f32.mrf.mxu0  ;;  %v4274_v50 = vpop.f32.mrf.mxu1 }
 0x66a   :  { %v4115_v56 = vpop.f32.mrf.mxu2 }
 0x66b   :  { %v4134_v57 = vpop.f32.mrf.mxu3 }
 0x66c   :  { %v10185_v38 = vpop.f32.mrf.mxu0  ;;  %v10187_v43 = vpop.f32.mrf.mxu1 }
 0x672   :  { %v10189_v40 = vpop.f32.mrf.mxu2 }
 0x673   :  { %v10191_v32 = vpop.f32.mrf.mxu3 }
 0x674   :  { %v10193_v20 = vpop.f32.mrf.mxu0  ;;  %v4279_v36 = vpop.f32.mrf.mxu1 }
 0x675   :  { %v4331_v62 = vadd.f32 %v4279_v36, %v4146_v41 }
 0x67a   :  { %v10195_v61 = vpop.f32.mrf.mxu2 }
 0x67b   :  { %12057 = vst [vmem:[#allocation43_spill] sm:$0xff] %v10195_v61  ;;  %v10197_v45 = vpop.f32.mrf.mxu3 }
 0x67c   :  { %12058 = vst [vmem:[#allocation45_spill] sm:$0xff] %v10197_v45  ;;  %v4260_v54 = vpop.f32.mrf.mxu0  ;;  %v4281_v15 = vpop.f32.mrf.mxu1 }
 0x67d   :  { %v4330_v24 = vadd.f32 %v4260_v54, %v4145_v42  ;;  %v3437_v42 = vadd.f32 %v9836_v34, %v9668_v25 }
 0x682   :  { %v4298_v6 = vpop.f32.mrf.mxu2 }
 0x683   :  { %v4332_v4 = vadd.f32 %v4298_v6, %v4147_v55  ;;  %v4317_v22 = vpop.f32.mrf.mxu3  ;;  %v3843_v6 = vadd.f32 %v10120_v53, %v10002_v60  ;;  %v3846_v60 = vadd.f32 %v10135_v52, %v10025_v27 }
 0x684   :  { %v4333_v10 = vadd.f32 %v4317_v22, %v4148_v5  ;;  %v4262_v23 = vpop.f32.mrf.mxu0  ;;  %v3659_v5 = vadd.f32 %v9956_v17, %v3437_v42  ;;  %v3845_v17 = vadd.f32 %v10130_v44, %v9978_v35 }
 0x685   :  { %v3964_v48 = vadd.f32 %v10163_v33, %v3843_v6  ;;  %v10268_v6 = vpop.permute.xlu1 %4719 }
 0x686   :  { %v3844_v14 = vadd.f32 %v10069_v8, %v3659_v5 }
 0x687   :  { %v4149_v34 = vadd.f32 %v4077_v30, %v3964_v48  ;;  %v3966_v48 = vadd.f32 %v10167_v47, %v3845_v17  ;;  %v4322_v47 = vadd.f32 %v10185_v38, %v10173_v59 }
 0x688   :  { %v3965_v25 = vadd.f32 %v10156_v11, %v3844_v14  ;;  %v3967_v11 = vadd.f32 %v10169_v26, %v3846_v60 }
 0x689   :  { %v4334_v42 = vadd.f32 %v4262_v23, %v4149_v34  ;;  %v4151_v23 = vadd.f32 %v4115_v56, %v3966_v48  ;;  %v3835_v48 = vadd.f32 %v10042_v58, %v9927_v29 }
 0x68a   :  { %v4300_v46 = vpop.f32.mrf.mxu2  ;;  %v4152_v44 = vadd.f32 %v4134_v57, %v3967_v11 }
 0x68b   :  { %v4319_v9 = vpop.f32.mrf.mxu3  ;;  %v4336_v27 = vadd.f32 %v4300_v46, %v4151_v23  ;;  %v3956_v11 = vadd.f32 %v10146_v31, %v3835_v48 }
 0x68c   :  { %v4440_v16 = vpop.f32.mrf.mxu0 }
 0x68d   :  { %v4459_v13 = vpop.f32.mrf.mxu1  ;;  %v4507_v56 = vadd.f32 %v4440_v16, %v4322_v47  ;;  %v4141_v23 = vadd.f32 %v10179_v7, %v3956_v11 }
 0x693   :  { %v10201_v18 = vpop.f32.mrf.mxu3 }
 0x694   :  { %v10199_v39 = vpop.f32.mrf.mxu2  ;;  %v10203_v36 = vpop.f32.mrf.mxu0 }
 0x695   :  { %v10205_v41 = vpop.f32.mrf.mxu1 }
 0x69b   :  { %v10211_v22 = vpop.f32.mrf.mxu3 }
 0x69c   :  { %v10209_v55 = vpop.f32.mrf.mxu2  ;;  %12060 = vst [vmem:[#allocation50_spill] sm:$0xff] %v10211_v22  ;;  %v4445_v54 = vpop.f32.mrf.mxu0 }
 0x69d   :  { %12059 = vst [vmem:[#allocation46_spill] sm:$0xff] %v10209_v55  ;;  %v10216_v45 = vadd.f32 %v4445_v54, %v4330_v24  ;;  %v4464_v61 = vpop.f32.mrf.mxu1  ;;  %v4150_v55 = vadd.f32 %v4096_v0, %v3965_v25  ;;  %v4323_v0 = vadd.f32 %v4274_v50, %v10165_v21  ;;  %v4325_v25 = vadd.f32 %v10191_v32, %v10177_v49 }
 0x69e   :  { %v10219_v19 = vadd.f32 %v4464_v61, %v4331_v62 }
 0x69f   :  { %v4335_v53 = vadd.f32 %v4281_v15, %v4150_v55  ;;  %v4337_v15 = vadd.f32 %v4319_v9, %v4152_v44  ;;  %v3432_v9 = vadd.f32 %v9759_v63, %v9617_v51  ;;  %v4326_v44 = vadd.f32 %v10193_v20, %v4141_v23 }
 0x6a1   :  { %v3651_v21 = vadd.f32 %v9890_v12, %v3432_v9  ;;  %v12067_v9 = vld [vmem:[#allocation54_spill] sm:$0xff] }
 0x6a3   :  { %v4502_v28 = vpop.f32.mrf.mxu3  ;;  %v3836_v59 = vadd.f32 %v10030_v2, %v3651_v21  ;;  %v12068_v21 = vld [vmem:[#allocation42_spill] sm:$0xff] }
 0x6a4   :  { %v4483_v22 = vpop.f32.mrf.mxu2  ;;  %v10229_v8 = vadd.f32 %v4502_v28, %v4333_v10  ;;  %v4447_v62 = vpop.f32.mrf.mxu0  ;;  %v4508_v10 = vadd.f32 %v4459_v13, %v4323_v0 }
 0x6a5   :  { %v10227_v24 = vadd.f32 %v4483_v22, %v4332_v4  ;;  %v10231_v33 = vadd.f32 %v4447_v62, %v4334_v42  ;;  %v4466_v14 = vpop.f32.mrf.mxu1  ;;  %v4715_v22 = vpop.permute.xlu0 %4714  ;;  %v3957_v51 = vadd.f32 %v10137_v1, %v3836_v59  ;;  %v12069_v59 = vld [vmem:[#allocation43_spill] sm:$0xff] }
 0x6a6   :  { %v10235_v35 = vadd.f32 %v4466_v14, %v4335_v53  ;;  %v4510_v53 = vadd.f32 %v10201_v18, %v4325_v25 }
 0x6a7   :  { %v4142_v16 = vadd.f32 %v10171_v3, %v3957_v51 }
 0x6a9   :  { %v4327_v12 = vadd.f32 %v10187_v43, %v4142_v16 }
 0x6ab   :  { %v4504_v52 = vpop.f32.mrf.mxu3  ;;  %v4512_v2 = vadd.f32 %v10205_v41, %v4327_v12  ;;  %v4324_v41 = vadd.f32 %v10189_v40, %v10175_v37 }
 0x6ac   :  { %v4485_v4 = vpop.f32.mrf.mxu2  ;;  %v10240_v30 = vadd.f32 %v4504_v52, %v4337_v15  ;;  %v4625_v26 = vpop.f32.mrf.mxu0  ;;  %v12061_v52 = vld [vmem:[#allocation37_spill] sm:$0xff] }
 0x6ad   :  { %v10238_v28 = vadd.f32 %v4485_v4, %v4336_v27  ;;  %v4644_v61 = vpop.f32.mrf.mxu1  ;;  %v4692_v5 = vadd.f32 %v4625_v26, %v4507_v56  ;;  %v4509_v60 = vadd.f32 %v10199_v39, %v4324_v41  ;;  %v4511_v27 = vadd.f32 %v10203_v36, %v4326_v44  ;;  %v10327_v36 = vpop.permute.xlu2 %4724  ;;  %v12066_v56 = vld [vmem:[#allocation49_spill] sm:$0xff] }
 0x6ae   :  { %v4693_v55 = vadd.f32 %v4644_v61, %v4508_v10  ;;  %v12062_v10 = vld [vmem:[#allocation39_spill] sm:$0xff]  ;;  %v10394_v11 = vpop.permute.xlu0 %4729 }
 0x6af   :  { %v4732_v50 = vadd.f32 %v4715_v22, %v4692_v5  ;;  %v3837_v47 = vadd.f32 %v12062_v10, %v12061_v52  ;;  %v12063_v61 = vld [vmem:[#allocation35_spill] sm:$0xff] }
 0x6b0   :  { %v4733_v57 = vadd.f32 %v4715_v22, %v4693_v55  ;;  %v12065_v55 = vld [vmem:[#allocation40_spill] sm:$0xff] }
 0x6b1   :  { %v4764_v63 = vmul.f32 0.2, %v4732_v50  ;;  %vm4748_vm14 = vcmp.ge.f32.partialorder %v4732_v50, 0.0 }
 0x6b2   :  { %vm4749_vm13 = vcmp.ge.f32.partialorder %v4733_v57, 0.0  ;;  %v4765_v46 = vmul.f32 0.2, %v4733_v57 }
 0x6b3   :  { %v10259_v38 = vsel %vm4748_vm14, %v4732_v50, %v4764_v63  ;;  %v4682_v42 = vpop.f32.mrf.mxu3  ;;  %v12070_v63 = vld [vmem:[#allocation45_spill] sm:$0xff] }
 0x6b4   :  { %v10247_v13 = vsel %vm4749_vm13, %v4733_v57, %v4765_v46  ;;  %v4663_v17 = vpop.f32.mrf.mxu2  ;;  %v4695_v40 = vadd.f32 %v4682_v42, %v4510_v53  ;;  %v4627_v0 = vpop.f32.mrf.mxu0 }
 0x6b5   :  { %5194 = vrot.lane.b32.xlu1 %v10247_v13, %s6590_s0  ;;  %4877 = vrot.lane.b32.xlu0 %v10247_v13, %s6587_s17  ;;  %v4646_v54 = vpop.f32.mrf.mxu1  ;;  %v4694_v37 = vadd.f32 %v4663_v17, %v4509_v60  ;;  %v4696_v29 = vadd.f32 %v4627_v0, %v4511_v27 }
 0x6b6   :  { %4804 = vrot.lane.b32.xlu2 %v10247_v13, %s6588_s18  ;;  %v4697_v1 = vadd.f32 %v4646_v54, %v4512_v2  ;;  %v4735_v32 = vadd.f32 %v4715_v22, %v4695_v40  ;;  %v12071_v2 = vld [vmem:[#allocation46_spill] sm:$0xff] }
 0x6b7   :  { %v4734_v49 = vadd.f32 %v4715_v22, %v4694_v37  ;;  %v4736_v58 = vadd.f32 %v10268_v6, %v4696_v29  ;;  %v3958_v22 = vadd.f32 %v12065_v55, %v3837_v47 }
 0x6b8   :  { %v4737_v3 = vadd.f32 %v10268_v6, %v4697_v1  ;;  %v4767_v39 = vmul.f32 0.2, %v4735_v32  ;;  %vm4751_vm3 = vcmp.ge.f32.partialorder %v4735_v32, 0.0 }
 0x6b9   :  { %v4766_v62 = vmul.f32 0.2, %v4734_v49  ;;  %vm4750_vm2 = vcmp.ge.f32.partialorder %v4734_v49, 0.0  ;;  %v4768_v31 = vmul.f32 0.2, %v4736_v58  ;;  %vm4752_vm11 = vcmp.ge.f32.partialorder %v4736_v58, 0.0 }
 0x6ba   :  { %v4769_v43 = vmul.f32 0.2, %v4737_v3  ;;  %vm4753_vm15 = vcmp.ge.f32.partialorder %v4737_v3, 0.0  ;;  %v10299_v14 = vsel %vm4751_vm3, %v4735_v32, %v4767_v39  ;;  %v4143_v46 = vadd.f32 %v12067_v9, %v3958_v22 }
 0x6bb   :  { %v10297_v18 = vsel %vm4750_vm2, %v4734_v49, %v4766_v62  ;;  %v10329_v15 = vsel %vm4752_vm11, %v4736_v58, %v4768_v31 }
 0x6bc   :  { %v10281_v34 = vsel %vm4753_vm15, %v4737_v3, %v4769_v43  ;;  %v4328_v51 = vadd.f32 %v12069_v59, %v4143_v46  ;;  %v4665_v12 = vpop.f32.mrf.mxu2  ;;  %v4684_v3 = vpop.f32.mrf.mxu3  ;;  %v12072_v43 = vld [vmem:[#allocation50_spill] sm:$0xff] }
 0x6bd   :  { %5396 = vrot.lane.b32.xlu1 %v10247_v13, %s6591_s24  ;;  %5061 = vrot.lane.b32.xlu0 %v10247_v13, %s6589_s23  ;;  %v4649_v20 = vpop.f32.mrf.mxu1  ;;  %v4630_v32 = vpop.f32.mrf.mxu0 }
 0x6be   :  { %4869 = vrot.lane.b32.xlu2 %v10259_v38, %s6587_s17  ;;  %v4701_v7 = vadd.f32 %v4649_v20, %v10219_v19  ;;  %v12064_v19 = vld [vmem:[#allocation38_spill] sm:$0xff]  ;;  %v4513_v1 = vadd.f32 %v12071_v2, %v4328_v51  ;;  %v4700_v62 = vadd.f32 %v4630_v32, %v10216_v45 }
 0x6bf   :  { %v3838_v26 = vadd.f32 %v12064_v19, %v12063_v61 }
 0x6c0   :  { %v4741_v4 = vadd.f32 %v10327_v36, %v4701_v7  ;;  %v4698_v25 = vadd.f32 %v4665_v12, %v4513_v1  ;;  %v4740_v48 = vadd.f32 %v10327_v36, %v4700_v62 }
 0x6c1   :  { %v3959_v57 = vadd.f32 %v12066_v56, %v3838_v26 }
 0x6c2   :  { %v4773_v5 = vmul.f32 0.2, %v4741_v4  ;;  %vm4757_vm12 = vcmp.ge.f32.partialorder %v4741_v4, 0.0  ;;  %v4738_v42 = vadd.f32 %v10268_v6, %v4698_v25  ;;  %v4772_v23 = vmul.f32 0.2, %v4740_v48 }
 0x6c3   :  { %v4144_v50 = vadd.f32 %v12068_v21, %v3959_v57  ;;  %vm4756_vm15 = vcmp.ge.f32.partialorder %v4740_v48, 0.0 }
 0x6c4   :  { %v10348_v54 = vsel %vm4757_vm12, %v4741_v4, %v4773_v5  ;;  %v4770_v53 = vmul.f32 0.2, %v4738_v42  ;;  %vm4754_vm13 = vcmp.ge.f32.partialorder %v4738_v42, 0.0  ;;  %v10398_v45 = vsel %vm4756_vm15, %v4740_v48, %v4772_v23  ;;  %v4687_v26 = vpop.f32.mrf.mxu3  ;;  %v12075_v23 = vld [vmem:[#allocation8_spill] sm:$0xff] }
 0x6c5   :  { %5053 = vrot.lane.b32.xlu0 %v10259_v38, %s6589_s23  ;;  %4796 = vrot.lane.b32.xlu1 %v10259_v38, %s6588_s18  ;;  %v4329_v16 = vadd.f32 %v12070_v63, %v4144_v50  ;;  %v4651_v0 = vpop.f32.mrf.mxu1  ;;  %v4703_v56 = vadd.f32 %v4687_v26, %v10229_v8  ;;  %v4668_v50 = vpop.f32.mrf.mxu2 }
 0x6c6   :  { %5388 = vrot.lane.b32.xlu2 %v10259_v38, %s6591_s24  ;;  %v10366_v40 = vsel %vm4754_vm13, %v4738_v42, %v4770_v53  ;;  %v4705_v58 = vadd.f32 %v4651_v0, %v10235_v35  ;;  %v4702_v51 = vadd.f32 %v4668_v50, %v10227_v24 }
 0x6c7   :  { %v4514_v41 = vadd.f32 %v12072_v43, %v4329_v16  ;;  %v4743_v21 = vadd.f32 %v10327_v36, %v4703_v56 }
 0x6c8   :  { %v4745_v4 = vadd.f32 %v10394_v11, %v4705_v58  ;;  %v4742_v1 = vadd.f32 %v10327_v36, %v4702_v51 }
 0x6c9   :  { %v4699_v17 = vadd.f32 %v4684_v3, %v4514_v41  ;;  %v4775_v63 = vmul.f32 0.2, %v4743_v21  ;;  %vm4759_vm3 = vcmp.ge.f32.partialorder %v4743_v21, 0.0 }
 0x6ca   :  { %v4777_v10 = vmul.f32 0.2, %v4745_v4  ;;  %vm4761_vm2 = vcmp.ge.f32.partialorder %v4745_v4, 0.0  ;;  %v4774_v41 = vmul.f32 0.2, %v4742_v1  ;;  %vm4758_vm11 = vcmp.ge.f32.partialorder %v4742_v1, 0.0 }
 0x6cb   :  { %v4739_v60 = vadd.f32 %v10268_v6, %v4699_v17  ;;  %v10476_v3 = vsel %vm4759_vm3, %v4743_v21, %v4775_v63 }
 0x6cc   :  { %v10433_v19 = vsel %vm4761_vm2, %v4745_v4, %v4777_v10  ;;  %v10492_v17 = vsel %vm4758_vm11, %v4742_v1, %v4774_v41  ;;  %v4689_v50 = vpop.f32.mrf.mxu3 }
 0x6cd   :  { %5186 = vrot.lane.b32.xlu0 %v10259_v38, %s6590_s0  ;;  %4879 = vrot.lane.b32.xlu1 %v10281_v34, %s6587_s17  ;;  %v4771_v37 = vmul.f32 0.2, %v4739_v60  ;;  %vm4755_vm14 = vcmp.ge.f32.partialorder %v4739_v60, 0.0  ;;  %v4707_v51 = vadd.f32 %v4689_v50, %v10240_v30 }
 0x6ce   :  { %5196 = vrot.lane.b32.xlu2 %v10281_v34, %s6590_s0 }
 0x6cf   :  { %v10368_v49 = vsel %vm4755_vm14, %v4739_v60, %v4771_v37  ;;  %v4747_v30 = vadd.f32 %v10394_v11, %v4707_v51 }
 0x6d0   :  { %12073 = vst [vmem:[#allocation51_spill] sm:$0xff] %v10368_v49 }
 0x6d1   :  { %vm4763_vm13 = vcmp.ge.f32.partialorder %v4747_v30, 0.0 }
 0x6d5   :  { %4806 = vrot.lane.b32.xlu0 %v10281_v34, %s6588_s18  ;;  %5063 = vrot.lane.b32.xlu1 %v10281_v34, %s6589_s23 }
 0x6d6   :  { %5398 = vrot.lane.b32.xlu2 %v10281_v34, %s6591_s24 }
 0x6dd   :  { %4812 = vrot.lane.b32.xlu0 %v10297_v18, %s6588_s18  ;;  %4820 = vrot.lane.b32.xlu1 %v10299_v14, %s6588_s18 }
 0x6de   :  { %4885 = vrot.lane.b32.xlu2 %v10297_v18, %s6587_s17 }
 0x6e5   :  { %5202 = vrot.lane.b32.xlu0 %v10297_v18, %s6590_s0  ;;  %4893 = vrot.lane.b32.xlu1 %v10299_v14, %s6587_s17 }
 0x6e6   :  { %5069 = vrot.lane.b32.xlu2 %v10297_v18, %s6589_s23 }
 0x6ed   :  { %5412 = vrot.lane.b32.xlu0 %v10299_v14, %s6591_s24  ;;  %5077 = vrot.lane.b32.xlu1 %v10299_v14, %s6589_s23 }
 0x6ee   :  { %5210 = vrot.lane.b32.xlu2 %v10299_v14, %s6590_s0 }
 0x6f5   :  { %5404 = vrot.lane.b32.xlu1 %v10297_v18, %s6591_s24  ;;  %4871 = vrot.lane.b32.xlu0 %v10329_v15, %s6587_s17 }
 0x6f6   :  { %4798 = vrot.lane.b32.xlu2 %v10329_v15, %s6588_s18 }
 0x6fd   :  { %5055 = vrot.lane.b32.xlu1 %v10329_v15, %s6589_s23  ;;  %5390 = vrot.lane.b32.xlu0 %v10329_v15, %s6591_s24 }
 0x6fe   :  { %4881 = vrot.lane.b32.xlu2 %v10348_v54, %s6587_s17 }
 0x705   :  { %5188 = vrot.lane.b32.xlu1 %v10329_v15, %s6590_s0  ;;  %5065 = vrot.lane.b32.xlu0 %v10348_v54, %s6589_s23 }
 0x706   :  { %5400 = vrot.lane.b32.xlu2 %v10348_v54, %s6591_s24 }
 0x70d   :  { %4808 = vrot.lane.b32.xlu1 %v10348_v54, %s6588_s18  ;;  %4887 = vrot.lane.b32.xlu0 %v10366_v40, %s6587_s17 }
 0x70e   :  { %4822 = vrot.lane.b32.xlu2 %v10368_v49, %s6588_s18 }
 0x710   :  { %v10376_v6 = vpop.permute.xlu2 %4804 }
 0x715   :  { %5198 = vrot.lane.b32.xlu1 %v10348_v54, %s6590_s0  ;;  %5071 = vrot.lane.b32.xlu0 %v10366_v40, %s6589_s23 }
 0x716   :  { %4895 = vrot.lane.b32.xlu2 %v10368_v49, %s6587_s17 }
 0x718   :  { %v10385_v39 = vpop.permute.xlu2 %4869 }
 0x71d   :  { %4814 = vrot.lane.b32.xlu1 %v10366_v40, %s6588_s18  ;;  %5212 = vrot.lane.b32.xlu0 %v10368_v49, %s6590_s0 }
 0x71e   :  { %5079 = vrot.lane.b32.xlu2 %v10368_v49, %s6589_s23 }
 0x720   :  { %v10396_v44 = vpop.permute.xlu2 %5388 }
 0x725   :  { %5204 = vrot.lane.b32.xlu1 %v10366_v40, %s6590_s0  ;;  %4800 = vrot.lane.b32.xlu0 %v10398_v45, %s6588_s18 }
 0x726   :  { %5406 = vrot.lane.b32.xlu2 %v10366_v40, %s6591_s24 }
 0x727   :  { %v4878_v27 = vpop.permute.xlu0 %4877  ;;  %v10406_v29 = vpop.permute.xlu1 %5194 }
 0x728   :  { %v10412_v31 = vsel %vm99_vm1, %v10385_v39, %v4878_v27  ;;  %v10414_v7 = vpop.permute.xlu2 %5196 }
 0x72d   :  { %5414 = vrot.lane.b32.xlu1 %v10368_v49, %s6591_s24  ;;  %5525 = vrot.lane.b32.xlu0 %v10398_v45, %s6592_s25 }
 0x72e   :  { %5057 = vrot.lane.b32.xlu2 %v10398_v45, %s6589_s23 }
 0x72f   :  { %v5062_v52 = vpop.permute.xlu0 %5061  ;;  %v10423_v35 = vpop.permute.xlu1 %5396 }
 0x730   :  { %v10429_v47 = vsel %vm783_vm6, %v10396_v44, %v10423_v35  ;;  %v10431_v61 = vpop.permute.xlu2 %5398 }
 0x735   :  { %4873 = vrot.lane.b32.xlu1 %v10398_v45, %s6587_s17  ;;  %4883 = vrot.lane.b32.xlu0 %v10433_v19, %s6587_s17 }
 0x736   :  { %5392 = vrot.lane.b32.xlu2 %v10398_v45, %s6591_s24 }
 0x737   :  { %v10441_v55 = vpop.permute.xlu0 %5053  ;;  %v4797_v22 = vpop.permute.xlu1 %4796 }
 0x738   :  { %v10447_v57 = vsel %vm344_vm4, %v10441_v55, %v5062_v52  ;;  %v4886_v5 = vpop.permute.xlu2 %4885  ;;  %v4836_v9 = vsel %vm65_vm0, %v4797_v22, %v10376_v6 }
 0x739   :  { %v10454_v46 = vsel %vm99_vm1, %v4878_v27, %v4886_v5  ;;  %v10515_v0 = vmul.f32 %v4836_v9, %v12075_v23 }
 0x73d   :  { %5190 = vrot.lane.b32.xlu1 %v10398_v45, %s6590_s0  ;;  %5402 = vrot.lane.b32.xlu0 %v10433_v19, %s6591_s24 }
 0x73e   :  { %4810 = vrot.lane.b32.xlu2 %v10433_v19, %s6588_s18 }
 0x73f   :  { %v5187_v8 = vpop.permute.xlu0 %5186  ;;  %v10463_v59 = vpop.permute.xlu1 %4879 }
 0x740   :  { %v10469_v16 = vsel %vm499_vm5, %v5187_v8, %v10406_v29  ;;  %v5070_v12 = vpop.permute.xlu2 %5069 }
 0x741   :  { %v10473_v2 = vsel %vm344_vm4, %v5062_v52, %v5070_v12 }
 0x745   :  { %5067 = vrot.lane.b32.xlu1 %v10433_v19, %s6589_s23  ;;  %4824 = vrot.lane.b32.xlu0 %v10476_v3, %s6588_s18 }
 0x746   :  { %5200 = vrot.lane.b32.xlu2 %v10433_v19, %s6590_s0 }
 0x747   :  { %v10484_v24 = vpop.permute.xlu0 %4806  ;;  %v10486_v43 = vpop.permute.xlu1 %5063 }
 0x748   :  { %v5211_v25 = vpop.permute.xlu2 %5210 }
 0x749   :  { %v10490_v36 = vsel %vm499_vm5, %v5211_v25, %v5187_v8 }
 0x74d   :  { %4889 = vrot.lane.b32.xlu1 %v10492_v17, %s6587_s17  ;;  %4897 = vrot.lane.b32.xlu0 %v10476_v3, %s6587_s17 }
 0x74e   :  { %4816 = vrot.lane.b32.xlu2 %v10492_v17, %s6588_s18 }
 0x74f   :  { %v4813_v42 = vpop.permute.xlu0 %4812  ;;  %v4821_v60 = vpop.permute.xlu1 %4820 }
 0x750   :  { %v10503_v53 = vsel %vm65_vm0, %v10376_v6, %v4813_v42  ;;  %v10507_v37 = vsel %vm65_vm0, %v4813_v42, %v4821_v60  ;;  %v4840_v32 = vsel %vm65_vm0, %v4821_v60, %v4797_v22  ;;  %v4799_v62 = vpop.permute.xlu2 %4798  ;;  %v4632_v6 = vpop.f32.mrf.mxu0  ;;  %v4779_v60 = vmul.f32 0.2, %v4747_v30 }
 0x751   :  { %v4837_v48 = vsel %vm65_vm0, %v4799_v62, %v10484_v24  ;;  %v4704_v4 = vadd.f32 %v4632_v6, %v10231_v33  ;;  %v4670_v42 = vpop.f32.mrf.mxu2 }
 0x752   :  { %v10518_v27 = vmul.f32 %v4837_v48, %v12075_v23 }
 0x753   :  { %v4744_v21 = vadd.f32 %v10394_v11, %v4704_v4 }
 0x755   :  { %5081 = vrot.lane.b32.xlu1 %v10476_v3, %s6589_s23  ;;  %5206 = vrot.lane.b32.xlu0 %v10492_v17, %s6590_s0  ;;  %vm4760_vm12 = vcmp.ge.f32.partialorder %v4744_v21, 0.0 }
 0x756   :  { %5073 = vrot.lane.b32.xlu2 %v10492_v17, %s6589_s23 }
 0x757   :  { %v5203_v52 = vpop.permute.xlu0 %5202  ;;  %v4894_v10 = vpop.permute.xlu1 %4893 }
 0x758   :  { %v10531_v26 = vsel %vm499_vm5, %v5203_v52, %v5211_v25  ;;  %v10536_v22 = vsel %vm499_vm5, %v10406_v29, %v5203_v52  ;;  %v10540_v56 = vsel %vm99_vm1, %v4886_v5, %v4894_v10  ;;  %v4913_v9 = vsel %vm99_vm1, %v4894_v10, %v10385_v39  ;;  %v10545_v33 = vpop.permute.xlu2 %4881  ;;  %v12077_v10 = vld [vmem:[#allocation5_spill] sm:$0xff] }
 0x759   :  { %v4776_v29 = vmul.f32 0.2, %v4744_v21 }
 0x75b   :  { %v10569_v25 = vsel %vm4760_vm12, %v4744_v21, %v4776_v29  ;;  %v12078_v29 = vld [vmem:[#allocation9_spill] sm:$0xff] }
 0x75d   :  { %5408 = vrot.lane.b32.xlu1 %v10492_v17, %s6591_s24  ;;  %5416 = vrot.lane.b32.xlu0 %v10476_v3, %s6591_s24 }
 0x75e   :  { %5214 = vrot.lane.b32.xlu2 %v10476_v3, %s6590_s0 }
 0x75f   :  { %v5413_v5 = vpop.permute.xlu0 %5412  ;;  %v5078_v8 = vpop.permute.xlu1 %5077 }
 0x760   :  { %v10558_v39 = vsel %vm783_vm6, %v5413_v5, %v10396_v44  ;;  %v10562_v63 = vsel %vm344_vm4, %v5070_v12, %v5078_v8  ;;  %v5097_v1 = vsel %vm344_vm4, %v5078_v8, %v10441_v55  ;;  %v10567_v41 = vpop.permute.xlu2 %5400  ;;  %v4706_v44 = vadd.f32 %v4670_v42, %v10238_v28 }
 0x761   :  { %12076 = vst [vmem:[#allocation55_spill] sm:$0xff] %v10567_v41  ;;  %v10593_v28 = vmul.f32 %v10412_v31, %v12077_v10  ;;  %v10610_v31 = vsel %vm4763_vm13, %v4747_v30, %v4779_v60  ;;  %v12085_v41 = vld [vmem:[#allocation4_spill] sm:$0xff] }
 0x762   :  { %v4746_v8 = vadd.f32 %v10394_v11, %v4706_v44  ;;  %v12081_v44 = vld [vmem:[#allocation20_spill] sm:$0xff] }
 0x763   :  { %v10624_v30 = vmul.f32 %v10429_v47, %v12081_v44 }
 0x764   :  { %vm4762_vm14 = vcmp.ge.f32.partialorder %v4746_v8, 0.0 }
 0x765   :  { %5059 = vrot.lane.b32.xlu0 %v10569_v25, %s6589_s23  ;;  %4802 = vrot.lane.b32.xlu1 %v10569_v25, %s6588_s18  ;;  %12082 = vst [vmem:[#allocation41_spill] sm:$0xff] %v10624_v30  ;;  %v12091_v30 = vld [vmem:[#allocation13_spill] sm:$0xff] }
 0x766   :  { %4875 = vrot.lane.b32.xlu2 %v10569_v25, %s6587_s17 }
 0x767   :  { %v5405_v55 = vpop.permute.xlu1 %5404  ;;  %v4872_v12 = vpop.permute.xlu0 %4871 }
 0x768   :  { %v10581_v48 = vsel %vm783_vm6, %v5405_v55, %v5413_v5  ;;  %v5424_v6 = vsel %vm783_vm6, %v10423_v35, %v5405_v55  ;;  %v4910_v4 = vsel %vm99_vm1, %v4872_v12, %v10463_v59  ;;  %v10589_v52 = vpop.permute.xlu2 %4822  ;;  %v10602_v35 = vmul.f32 %v4840_v32, %v12078_v29 }
 0x769   :  { %v10596_v21 = vmul.f32 %v4910_v4, %v12077_v10  ;;  %v4841_v50 = vsel %vm65_vm0, %v10589_v52, %v4799_v62  ;;  %v4778_v62 = vmul.f32 0.2, %v4746_v8 }
 0x76a   :  { %12079 = vst [vmem:[#allocation56_spill] sm:$0xff] %v10602_v35  ;;  %v10605_v5 = vmul.f32 %v4841_v50, %v12078_v29  ;;  %v12083_v50 = vld [vmem:[#allocation12_spill] sm:$0xff]  ;;  %v10646_v35 = vmul.f32 %v4913_v9, %v12085_v41 }
 0x76b   :  { %v10635_v42 = vmul.f32 %v10447_v57, %v12083_v50 }
 0x76c   :  { %12080 = vst [vmem:[#allocation36_spill] sm:$0xff] %v10605_v5 }
 0x76d   :  { %5394 = vrot.lane.b32.xlu0 %v10569_v25, %s6591_s24  ;;  %4826 = vrot.lane.b32.xlu1 %v10610_v31, %s6588_s18  ;;  %12086 = vst [vmem:[#allocation47_spill] sm:$0xff] %v10646_v35 }
 0x76e   :  { %5192 = vrot.lane.b32.xlu2 %v10569_v25, %s6590_s0 }
 0x76f   :  { %v5056_v32 = vpop.permute.xlu1 %5055  ;;  %v10620_v11 = vpop.permute.xlu0 %5390 }
 0x770   :  { %v5094_v55 = vsel %vm344_vm4, %v5056_v32, %v10486_v43  ;;  %v5429_v60 = vsel %vm783_vm6, %v10620_v11, %v10431_v61  ;;  %v4896_v4 = vpop.permute.xlu2 %4895 }
 0x771   :  { %v10638_v58 = vmul.f32 %v5094_v55, %v12083_v50  ;;  %v10641_v47 = vmul.f32 %v5429_v60, %v12081_v44  ;;  %v4914_v51 = vsel %vm99_vm1, %v4896_v4, %v4872_v12  ;;  %v10656_v55 = vsel %vm4762_vm14, %v4746_v8, %v4778_v62  ;;  %v12088_v62 = vld [vmem:[#allocation16_spill] sm:$0xff] }
 0x772   :  { %v10649_v5 = vmul.f32 %v4914_v51, %v12085_v41  ;;  %v10673_v57 = vmul.f32 %v10469_v16, %v12088_v62 }
 0x773   :  { %12084 = vst [vmem:[#allocation44_spill] sm:$0xff] %v10641_v47  ;;  %v10681_v47 = vmul.f32 %v5097_v1, %v12091_v30 }
 0x774   :  { %12087 = vst [vmem:[#allocation52_spill] sm:$0xff] %v10649_v5 }
 0x775   :  { %4818 = vrot.lane.b32.xlu0 %v10656_v55, %s6588_s18  ;;  %4899 = vrot.lane.b32.xlu1 %v10610_v31, %s6587_s17  ;;  %12089 = vst [vmem:[#allocation48_spill] sm:$0xff] %v10673_v57 }
 0x776   :  { %4891 = vrot.lane.b32.xlu2 %v10656_v55, %s6587_s17  ;;  %12092 = vst [vmem:[#allocation37_spill] sm:$0xff] %v10681_v47  ;;  %v12095_v47 = vld [vmem:[#allocation7_spill] sm:$0xff] }
 0x777   :  { %v5189_v9 = vpop.permute.xlu1 %5188  ;;  %v10666_v12 = vpop.permute.xlu0 %5065 }
 0x778   :  { %v5227_v8 = vsel %vm499_vm5, %v5189_v9, %v10414_v7  ;;  %v5080_v51 = vpop.permute.xlu2 %5079 }
 0x779   :  { %v10676_v60 = vmul.f32 %v5227_v8, %v12088_v62  ;;  %v5098_v29 = vsel %vm344_vm4, %v5080_v51, %v5056_v32 }
 0x77a   :  { %v10684_v44 = vmul.f32 %v5098_v29, %v12091_v30  ;;  %v12094_v29 = vld [vmem:[#allocation6_spill] sm:$0xff] }
 0x77b   :  { %12090 = vst [vmem:[#allocation53_spill] sm:$0xff] %v10676_v60  ;;  %v10700_v32 = vmul.f32 %v10454_v46, %v12094_v29 }
 0x77c   :  { %12093 = vst [vmem:[#allocation39_spill] sm:$0xff] %v10684_v44  ;;  %v10711_v44 = vmul.f32 %v10540_v56, %v12095_v47 }
 0x77d   :  { %5521 = vrot.lane.b32.xlu0 %v10259_v38, %s6592_s25  ;;  %5527 = vrot.lane.b32.xlu1 %v10569_v25, %s6592_s25 }
 0x77e   :  { %5541 = vrot.lane.b32.xlu2 %v10492_v17, %s6592_s25  ;;  %12096 = vst [vmem:[#allocation35_spill] sm:$0xff] %v10711_v44 }
 0x77f   :  { %v10696_v16 = vpop.permute.xlu1 %4808  ;;  %v4888_v1 = vpop.permute.xlu0 %4887 }
 0x780   :  { %v4902_v8 = vsel %vm99_vm1, %v4888_v1, %v4896_v4  ;;  %v4906_v5 = vsel %vm99_vm1, %v10463_v59, %v4888_v1  ;;  %v10707_v35 = vpop.permute.xlu2 %5406  ;;  %v12097_v4 = vld [vmem:[#allocation21_spill] sm:$0xff] }
 0x781   :  { %v10714_v30 = vmul.f32 %v4906_v5, %v12094_v29  ;;  %v10717_v57 = vmul.f32 %v4902_v8, %v12095_v47  ;;  %v5425_v46 = vsel %vm783_vm6, %v10431_v61, %v10707_v35  ;;  %v10724_v60 = vmul.f32 %v5424_v6, %v12097_v4  ;;  %v12100_v8 = vld [vmem:[#allocation11_spill] sm:$0xff] }
 0x782   :  { %v10727_v59 = vmul.f32 %v5425_v46, %v12097_v4  ;;  %v10745_v46 = vmul.f32 %v10473_v2, %v12100_v8 }
 0x783   :  { %12098 = vst [vmem:[#allocation38_spill] sm:$0xff] %v10724_v60  ;;  %v12102_v60 = vld [vmem:[#allocation14_spill] sm:$0xff] }
 0x784   :  { %12099 = vst [vmem:[#allocation40_spill] sm:$0xff] %v10727_v59  ;;  %v10756_v59 = vmul.f32 %v10562_v63, %v12102_v60  ;;  %v12106_v63 = vld [vmem:[#allocation17_spill] sm:$0xff] }
 0x785   :  { %5539 = vrot.lane.b32.xlu0 %v10366_v40, %s6592_s25  ;;  %5549 = vrot.lane.b32.xlu1 %v10476_v3, %s6592_s25  ;;  %12101 = vst [vmem:[#allocation49_spill] sm:$0xff] %v10745_v46 }
 0x786   :  { %5537 = vrot.lane.b32.xlu2 %v10297_v18, %s6592_s25  ;;  %12103 = vst [vmem:[#allocation54_spill] sm:$0xff] %v10756_v59 }
 0x787   :  { %v10741_v61 = vpop.permute.xlu1 %5198  ;;  %v5072_v6 = vpop.permute.xlu0 %5071 }
 0x788   :  { %v5086_v5 = vsel %vm344_vm4, %v5072_v6, %v5080_v51  ;;  %v5090_v1 = vsel %vm344_vm4, %v10486_v43, %v5072_v6  ;;  %v10752_v56 = vpop.permute.xlu2 %5057 }
 0x789   :  { %v10759_v4 = vmul.f32 %v5090_v1, %v12100_v8  ;;  %v10762_v44 = vmul.f32 %v5086_v5, %v12102_v60  ;;  %v10768_v2 = vsel %vm344_vm4, %v10752_v56, %v10666_v12  ;;  %v10782_v5 = vmul.f32 %v10490_v36, %v12106_v63  ;;  %v12108_v60 = vld [vmem:[#allocation3_spill] sm:$0xff]  ;;  %v12109_v36 = vld [vmem:[#allocation10_spill] sm:$0xff] }
 0x78a   :  { %v10786_v43 = vmul.f32 %v10503_v53, %v12108_v60 }
 0x78b   :  { %12104 = vst [vmem:[#allocation42_spill] sm:$0xff] %v10759_v4  ;;  %v10800_v4 = vmul.f32 %v10507_v37, %v12109_v36 }
 0x78c   :  { %12105 = vst [vmem:[#allocation43_spill] sm:$0xff] %v10762_v44 }
 0x78d   :  { %5533 = vrot.lane.b32.xlu0 %v10348_v54, %s6592_s25  ;;  %5523 = vrot.lane.b32.xlu1 %v10329_v15, %s6592_s25  ;;  %12107 = vst [vmem:[#allocation45_spill] sm:$0xff] %v10782_v5 }
 0x78e   :  { %5547 = vrot.lane.b32.xlu2 %v10368_v49, %s6592_s25  ;;  %12110 = vst [vmem:[#allocation46_spill] sm:$0xff] %v10800_v4 }
 0x78f   :  { %v4815_v1 = vpop.permute.xlu1 %4814  ;;  %v5213_v6 = vpop.permute.xlu0 %5212 }
 0x790   :  { %v4829_v51 = vsel %vm65_vm0, %v4815_v1, %v10589_v52  ;;  %v4833_v59 = vsel %vm65_vm0, %v10484_v24, %v4815_v1  ;;  %v5231_v44 = vsel %vm499_vm5, %v5213_v6, %v5189_v9  ;;  %v10796_v46 = vpop.permute.xlu2 %5392  ;;  %v12113_v24 = vld [vmem:[#allocation15_spill] sm:$0xff] }
 0x791   :  { %v10803_v53 = vmul.f32 %v4833_v59, %v12108_v60  ;;  %v10806_v8 = vmul.f32 %v4829_v51, %v12109_v36  ;;  %v10809_v52 = vmul.f32 %v5231_v44, %v12106_v63  ;;  %v10840_v5 = vmul.f32 %v10536_v22, %v12113_v24 }
 0x793   :  { %12111 = vst [vmem:[#allocation50_spill] sm:$0xff] %v10806_v8 }
 0x794   :  { %12112 = vst [vmem:[#allocation2_spill] sm:$0xff] %v10809_v52  ;;  %v12115_v52 = vld [vmem:[#allocation18_spill] sm:$0xff] }
 0x795   :  { %5075 = vrot.lane.b32.xlu0 %v10656_v55, %s6589_s23  ;;  %5545 = vrot.lane.b32.xlu1 %v10299_v14, %s6592_s25  ;;  %12114 = vst [vmem:[#allocation8_spill] sm:$0xff] %v10840_v5  ;;  %v10844_v63 = vmul.f32 %v10531_v26, %v12115_v52 }
 0x796   :  { %5083 = vrot.lane.b32.xlu2 %v10610_v31, %s6589_s23 }
 0x797   :  { %v5205_v37 = vpop.permute.xlu1 %5204  ;;  %v10823_v44 = vpop.permute.xlu0 %4800  ;;  %12116 = vst [vmem:[#allocation5_spill] sm:$0xff] %v10844_v63 }
 0x798   :  { %v5219_v59 = vsel %vm499_vm5, %v5205_v37, %v5213_v6  ;;  %v5223_v51 = vsel %vm499_vm5, %v10414_v7, %v5205_v37  ;;  %v10830_v1 = vpop.permute.xlu2 %4810  ;;  %v10836_v9 = vsel %vm65_vm0, %v10823_v44, %v10696_v16  ;;  %v12120_v37 = vld [vmem:[#allocation19_spill] sm:$0xff] }
 0x799   :  { %v10847_v6 = vmul.f32 %v5223_v51, %v12113_v24  ;;  %v10850_v7 = vmul.f32 %v5219_v59, %v12115_v52  ;;  %v10874_v63 = vmul.f32 %v10558_v39, %v12120_v37 }
 0x79b   :  { %12117 = vst [vmem:[#allocation12_spill] sm:$0xff] %v10847_v6 }
 0x79c   :  { %12118 = vst [vmem:[#allocation4_spill] sm:$0xff] %v10850_v7  ;;  %v12122_v7 = vld [vmem:[#allocation22_spill] sm:$0xff] }
 0x79d   :  { %5531 = vrot.lane.b32.xlu0 %v10281_v34, %s6592_s25  ;;  %5535 = vrot.lane.b32.xlu1 %v10433_v19, %s6592_s25  ;;  %12121 = vst [vmem:[#allocation6_spill] sm:$0xff] %v10874_v63  ;;  %v10878_v5 = vmul.f32 %v10581_v48, %v12122_v7 }
 0x79e   :  { %5529 = vrot.lane.b32.xlu2 %v10247_v13, %s6592_s25 }
 0x79f   :  { %v5415_v26 = vpop.permute.xlu1 %5414  ;;  %v10862_v22 = vpop.permute.xlu0 %5525  ;;  %12123 = vst [vmem:[#allocation7_spill] sm:$0xff] %v10878_v5 }
 0x7a0   :  { %12119 = vst [vmem:[#allocation16_spill] sm:$0xff] %v10862_v22  ;;  %v5421_v59 = vsel %vm783_vm6, %v10707_v35, %v5415_v26  ;;  %v5433_v51 = vsel %vm783_vm6, %v5415_v26, %v10620_v11  ;;  %v10870_v4 = vpop.permute.xlu2 %5200 }
 0x7a1   :  { %v10881_v22 = vmul.f32 %v5421_v59, %v12122_v7  ;;  %v10884_v6 = vmul.f32 %v5433_v51, %v12120_v37 }
 0x7a3   :  { %12124 = vst [vmem:[#allocation3_spill] sm:$0xff] %v10881_v22 }
 0x7a4   :  { %12125 = vst [vmem:[#allocation10_spill] sm:$0xff] %v10884_v6 }
 0x7a5   :  { %5216 = vrot.lane.b32.xlu0 %v10610_v31, %s6590_s0  ;;  %5208 = vrot.lane.b32.xlu1 %v10656_v55, %s6590_s0 }
 0x7a6   :  { %5660 = vrot.lane.b32.xlu2 %v10569_v25, %s6593_s26 }
 0x7a7   :  { %v10896_v39 = vpop.permute.xlu1 %4873  ;;  %v4884_v48 = vpop.permute.xlu0 %4883 }
 0x7a8   :  { %v10898_v26 = vpop.permute.xlu2 %4816 }
 0x7ad   :  { %5674 = vrot.lane.b32.xlu0 %v10492_v17, %s6593_s26  ;;  %5658 = vrot.lane.b32.xlu1 %v10398_v45, %s6593_s26 }
 0x7ae   :  { %5682 = vrot.lane.b32.xlu2 %v10476_v3, %s6593_s26 }
 0x7af   :  { %v10906_v59 = vpop.permute.xlu1 %5190  ;;  %v10908_v51 = vpop.permute.xlu0 %5402 }
 0x7b0   :  { %12126 = vst [vmem:[#allocation57_spill] sm:$0xff] %v10908_v51  ;;  %v5074_v11 = vpop.permute.xlu2 %5073 }
 0x7b1   :  { %v10913_v35 = vsel %vm344_vm4, %v10666_v12, %v5074_v11  ;;  %v4911_v12 = vsel %vm99_vm1, %v10896_v39, %v10545_v33 }
 0x7b2   :  { %12127 = vst [vmem:[#allocation58_spill] sm:$0xff] %v10913_v35  ;;  %v4926_v24 = vmul.f32 %v4911_v12, %v12077_v10 }
 0x7b5   :  { %5670 = vrot.lane.b32.xlu0 %v10297_v18, %s6593_s26  ;;  %5654 = vrot.lane.b32.xlu1 %v10259_v38, %s6593_s26 }
 0x7b6   :  { %5656 = vrot.lane.b32.xlu2 %v10329_v15, %s6593_s26 }
 0x7b7   :  { %v10921_v63 = vpop.permute.xlu1 %5067  ;;  %v10923_v6 = vpop.permute.xlu0 %4824 }
 0x7b8   :  { %v5215_v5 = vpop.permute.xlu2 %5214 }
 0x7b9   :  { %v10928_v22 = vsel %vm499_vm5, %v5215_v5, %v10906_v59 }
 0x7ba   :  { %12128 = vst [vmem:[#allocation59_spill] sm:$0xff] %v10928_v22 }
 0x7bd   :  { %5680 = vrot.lane.b32.xlu0 %v10368_v49, %s6593_s26  ;;  %5672 = vrot.lane.b32.xlu1 %v10366_v40, %s6593_s26 }
 0x7be   :  { %5678 = vrot.lane.b32.xlu2 %v10299_v14, %s6593_s26 }
 0x7bf   :  { %v10940_v37 = vpop.permute.xlu1 %4889  ;;  %v10942_v7 = vpop.permute.xlu0 %4897 }
 0x7c0   :  { %v10944_v51 = vpop.permute.xlu2 %4875 }
 0x7c1   :  { %v4912_v52 = vsel %vm99_vm1, %v10944_v51, %v4884_v48 }
 0x7c2   :  { %v4930_v22 = vmul.f32 %v4912_v52, %v12077_v10 }
 0x7c4   :  { %v4940_v35 = vpack.c.bf16 %v4930_v22, %v4926_v24  ;;  %v12132_v22 = vpack.c.bf16 %v10596_v21, %v10593_v28  ;;  %v4907_v28 = vsel %vm99_vm1, %v10545_v33, %v10940_v37 }
 0x7c5   :  { %5662 = vrot.lane.b32.xlu0 %v10247_v13, %s6593_s26  ;;  %5418 = vrot.lane.b32.xlu1 %v10610_v31, %s6591_s24 }
 0x7c6   :  { %5410 = vrot.lane.b32.xlu2 %v10656_v55, %s6591_s24  ;;  %4965 = vmatpush.bf16.msrb.mxu1 %v4940_v35  ;;  %v10981_v35 = vld [vmem:[%s11690_s8 + $0x4] sm:$0xf] }
 0x7c7   :  { %v10957_v49 = vpop.permute.xlu1 %5081  ;;  %v5207_v8 = vpop.permute.xlu0 %5206 }
 0x7c8   :  { %v10962_v12 = vsel %vm344_vm4, %v5074_v11, %v10957_v49  ;;  %v10966_v10 = vsel %vm499_vm5, %v5207_v8, %v5215_v5  ;;  %v10971_v52 = vsel %vm499_vm5, %v10741_v61, %v5207_v8  ;;  %v10973_v24 = vpop.permute.xlu2 %5192 }
 0x7c9   :  { %12129 = vst [vmem:[#allocation60_spill] sm:$0xff] %v10962_v12 }
 0x7ca   :  { %12130 = vst [vmem:[#allocation61_spill] sm:$0xff] %v10966_v10  ;;  %4966 = vmatpush.bf16.msrb.mxu1 %v12132_v22 }
 0x7cb   :  { %12131 = vst [vmem:[#allocation62_spill] sm:$0xff] %v10971_v52  ;;  %v4927_v52 = vmul.f32 %v4907_v28, %v12094_v29 }
 0x7cd   :  { %5543 = vrot.lane.b32.xlu0 %v10656_v55, %s6592_s25  ;;  %5666 = vrot.lane.b32.xlu1 %v10348_v54, %s6593_s26 }
 0x7ce   :  { %5668 = vrot.lane.b32.xlu2 %v10433_v19, %s6593_s26  ;;  %6479 = vmatmul.msk.bf16.vlgmr.msrb.gmra.mxu1 %vm1646_vm10, %v10981_v35 }
 0x7cf   :  { %v10995_v21 = vpop.permute.xlu1 %5408  ;;  %v5417_v8 = vpop.permute.xlu0 %5416 }
 0x7d0   :  { %v11000_v5 = vsel %vm783_vm6, %v10995_v21, %v5417_v8  ;;  %v11005_v11 = vsel %vm783_vm6, %v5417_v8, %v10796_v46  ;;  %v4892_v22 = vpop.permute.xlu2 %4891 }
 0x7d1   :  { %12133 = vst [vmem:[#allocation63_spill] sm:$0xff] %v11000_v5  ;;  %v4908_v10 = vsel %vm99_vm1, %v4884_v48, %v4892_v22  ;;  %v4853_v48 = vmul.f32 %v10836_v9, %v12075_v23 }
 0x7d2   :  { %12134 = vst [vmem:[#allocation64_spill] sm:$0xff] %v11005_v11  ;;  %v4931_v33 = vmul.f32 %v4908_v10, %v12094_v29 }
 0x7d4   :  { %v4941_v12 = vpack.c.bf16 %v4931_v33, %v4927_v52 }
 0x7d5   :  { %5793 = vrot.lane.b32.xlu0 %v10569_v25, %s6594_s27  ;;  %5664 = vrot.lane.b32.xlu1 %v10281_v34, %s6593_s26 }
 0x7d6   :  { %5551 = vrot.lane.b32.xlu2 %v10610_v31, %s6592_s25  ;;  %4978 = vmatpush.bf16.msrb.mxu2 %v4941_v12  ;;  %v12135_v12 = vpack.c.bf16 %v10714_v30, %v10700_v32  ;;  %v5229_v30 = vsel %vm499_vm5, %v10973_v24, %v10870_v4 }
 0x7d7   :  { %v11017_v8 = vpop.permute.xlu0 %5059  ;;  %v4803_v11 = vpop.permute.xlu1 %4802 }
 0x7d8   :  { %v11019_v5 = vpop.permute.xlu2 %5541  ;;  %v4839_v29 = vsel %vm65_vm0, %v4803_v11, %v10830_v1  ;;  %v5096_v52 = vsel %vm344_vm4, %v11017_v8, %v10921_v63 }
 0x7d9   :  { %v4857_v10 = vmul.f32 %v4839_v29, %v12075_v23  ;;  %v5114_v33 = vmul.f32 %v5096_v52, %v12083_v50  ;;  %v5110_v23 = vmul.f32 %v10768_v2, %v12083_v50  ;;  %v5247_v50 = vmul.f32 %v5229_v30, %v12088_v62  ;;  %v11064_v52 = vld [vmem:[%s11690_s8] sm:$0xf] }
 0x7da   :  { %4979 = vmatpush.bf16.msrb.mxu2 %v12135_v12  ;;  %v12136_v2 = vpack.c.bf16 %v10518_v27, %v10515_v0  ;;  %v4834_v12 = vsel %vm65_vm0, %v10696_v16, %v10898_v26  ;;  %v4903_v0 = vsel %vm99_vm1, %v10940_v37, %v10942_v7  ;;  %v12137_v16 = vpack.c.bf16 %v10638_v58, %v10635_v42 }
 0x7db   :  { %v4866_v28 = vpack.c.bf16 %v4857_v10, %v4853_v48  ;;  %v5228_v48 = vsel %vm499_vm5, %v10906_v59, %v10741_v61  ;;  %v5124_v10 = vpack.c.bf16 %v5114_v33, %v5110_v23  ;;  %v4915_v59 = vsel %vm99_vm1, %v10942_v7, %v10896_v39 }
 0x7dc   :  { %v5243_v61 = vmul.f32 %v5228_v48, %v12088_v62  ;;  %v4854_v62 = vmul.f32 %v4834_v12, %v12108_v60  ;;  %v4925_v33 = vmul.f32 %v4915_v59, %v12085_v41  ;;  %v4928_v58 = vmul.f32 %v4903_v0, %v12095_v47  ;;  %v12139_v59 = vld [vmem:[#allocation48_spill] sm:$0xff] }
 0x7dd   :  { %5815 = vrot.lane.b32.xlu0 %v10476_v3, %s6594_s27  ;;  %5807 = vrot.lane.b32.xlu1 %v10492_v17, %s6594_s27 }
 0x7de   :  { %5791 = vrot.lane.b32.xlu2 %v10398_v45, %s6594_s27  ;;  %5020 = vmatpush.bf16.msra.mxu1 %v4866_v28  ;;  %v5257_v27 = vpack.c.bf16 %v5247_v50, %v5243_v61  ;;  %v12138_v61 = vld [vmem:[#allocation53_spill] sm:$0xff] }
 0x7df   :  { %v11047_v32 = vpop.permute.xlu0 %5394  ;;  %v4827_v9 = vpop.permute.xlu1 %4826  ;;  %6480 = vmatmul.msk.bf16.vlgmr.msrb.gmra.mxu2 %vm1646_vm10, %v10981_v35 }
 0x7e0   :  { %v11051_v29 = vpop.permute.xlu2 %5537 }
 0x7e2   :  { %5021 = vmatpush.bf16.msra.mxu1 %v12136_v2 }
 0x7e5   :  { %6483 = vmatmul.msk.bf16.vlgmr.msra.gmra.mxu1 %vm1646_vm10, %v11064_v52  ;;  %5684 = vrot.lane.b32.xlu0 %v10610_v31, %s6593_s26 }
 0x7e6   :  { %5149 = vmatpush.bf16.msrb.mxu1 %v5124_v10  ;;  %5787 = vrot.lane.b32.xlu2 %v10259_v38, %s6594_s27 }
 0x7e7   :  { %5676 = vrot.lane.b32.xlu1 %v10656_v55, %s6593_s26  ;;  %v4819_v39 = vpop.permute.xlu0 %4818  ;;  %v4900_v28 = vpop.permute.xlu1 %4899 }
 0x7e8   :  { %v4835_v7 = vsel %vm65_vm0, %v10830_v1, %v4819_v39  ;;  %v11095_v37 = vpop.permute.xlu2 %5547  ;;  %v4904_v23 = vsel %vm99_vm1, %v4892_v22, %v4900_v28  ;;  %v4916_v30 = vsel %vm99_vm1, %v4900_v28, %v10944_v51  ;;  %v4843_v1 = vsel %vm65_vm0, %v4827_v9, %v4803_v11 }
 0x7e9   :  { %v4858_v42 = vmul.f32 %v4835_v7, %v12108_v60  ;;  %v4929_v48 = vmul.f32 %v4916_v30, %v12085_v41  ;;  %v4932_v10 = vmul.f32 %v4904_v23, %v12095_v47  ;;  %v4831_v50 = vsel %vm65_vm0, %v4819_v39, %v4827_v9  ;;  %v12141_v60 = vld [vmem:[#allocation9_spill] sm:$0xff]  ;;  %v12144_v30 = vld [vmem:[#allocation52_spill] sm:$0xff] }
 0x7ea   :  { %5150 = vmatpush.bf16.msrb.mxu1 %v12137_v16  ;;  %v12140_v51 = vpack.c.bf16 %v12138_v61, %v12139_v59  ;;  %v4830_v41 = vsel %vm65_vm0, %v10898_v26, %v10923_v6  ;;  %v4842_v47 = vsel %vm65_vm0, %v10923_v6, %v10823_v44  ;;  %v4856_v11 = vmul.f32 %v4843_v1, %v12141_v60  ;;  %v12143_v7 = vld [vmem:[#allocation13_spill] sm:$0xff]  ;;  %v12150_v1 = vld [vmem:[#allocation56_spill] sm:$0xff]  ;;  %v12153_v61 = vld [vmem:[#allocation46_spill] sm:$0xff] }
 0x7eb   :  { %v4867_v2 = vpack.c.bf16 %v4858_v42, %v4854_v62  ;;  %v4939_v22 = vpack.c.bf16 %v4929_v48, %v4925_v33  ;;  %v4942_v12 = vpack.c.bf16 %v4932_v10, %v4928_v58  ;;  %v4859_v9 = vmul.f32 %v4831_v50, %v12109_v36  ;;  %v12149_v10 = vld [vmem:[#allocation36_spill] sm:$0xff] }
 0x7ec   :  { %v4852_v44 = vmul.f32 %v4842_v47, %v12141_v60  ;;  %v4855_v6 = vmul.f32 %v4830_v41, %v12109_v36  ;;  %v12142_v16 = vpack.c.bf16 %v10803_v53, %v10786_v43  ;;  %v5099_v39 = vsel %vm344_vm4, %v10957_v49, %v10752_v56  ;;  %v11148_v36 = vld [vmem:[%s11690_s8 + $0x8] sm:$0xf]  ;;  %v12156_v60 = vld [vmem:[#allocation37_spill] sm:$0xff] }
 0x7ed   :  { %5789 = vrot.lane.b32.xlu0 %v10329_v15, %s6594_s27  ;;  %5033 = vmatpush.bf16.msra.mxu2 %v4867_v2  ;;  %v12147_v43 = vld [vmem:[#allocation35_spill] sm:$0xff]  ;;  %v5109_v49 = vmul.f32 %v5099_v39, %v12143_v7  ;;  %v5326_v56 = vpack.c.bf16 %v10433_v19, %v10348_v54  ;;  %v12151_v50 = vpack.c.bf16 %v12149_v10, %v12150_v1 }
 0x7ee   :  { %5282 = vmatpush.bf16.msra.mxu1 %v5257_v27  ;;  %5805 = vrot.lane.b32.xlu2 %v10366_v40, %s6594_s27  ;;  %v4865_v28 = vpack.c.bf16 %v4856_v11, %v4852_v44  ;;  %v4868_v33 = vpack.c.bf16 %v4859_v9, %v4855_v6  ;;  %v12148_v53 = vpack.c.bf16 %v10717_v57, %v12147_v43  ;;  %v12155_v47 = vld [vmem:[#allocation39_spill] sm:$0xff] }
 0x7ef   :  { %5803 = vrot.lane.b32.xlu1 %v10297_v18, %s6594_s27  ;;  %4952 = vmatpush.bf16.msrb.mxu0 %v4939_v22  ;;  %v11129_v26 = vpop.permute.xlu0 %5521  ;;  %v11131_v0 = vpop.permute.xlu1 %5527  ;;  %v5322_v41 = vpack.c.bf16 %v10281_v34, %v10247_v13  ;;  %v12157_v11 = vpack.c.bf16 %v12155_v47, %v12156_v60  ;;  %v12158_v6 = vld [vmem:[#allocation51_spill] sm:$0xff]  ;;  %v12165_v60 = vld [vmem:[#allocation25_spill] sm:$0xff] }
 0x7f0   :  { %4991 = vmatpush.bf16.msrb.mxu3 %v4942_v12  ;;  %v5084_v27 = vpop.permute.xlu2 %5083  ;;  %v12152_v12 = vld [vmem:[#allocation50_spill] sm:$0xff]  ;;  %v11230_v39 = vld [vmem:[%s11690_s8 + $0xc] sm:$0xf] }
 0x7f1   :  { %v5100_v62 = vsel %vm344_vm4, %v5084_v27, %v11017_v8  ;;  %5034 = vmatpush.bf16.msra.mxu2 %v12142_v16  ;;  %v12145_v8 = vld [vmem:[#allocation47_spill] sm:$0xff]  ;;  %v12154_v59 = vpack.c.bf16 %v12152_v12, %v12153_v61 }
 0x7f2   :  { %5283 = vmatpush.bf16.msra.mxu1 %v12140_v51  ;;  %v5113_v23 = vmul.f32 %v5100_v62, %v12143_v7  ;;  %v12146_v58 = vpack.c.bf16 %v12144_v30, %v12145_v8  ;;  %v12162_v7 = vld [vmem:[#allocation60_spill] sm:$0xff]  ;;  %v12163_v30 = vld [vmem:[#allocation26_spill] sm:$0xff] }
 0x7f4   :  { %4953 = vmatpush.bf16.msrb.mxu0 %v12146_v58  ;;  %4992 = vmatpush.bf16.msrb.mxu3 %v12148_v53  ;;  %v5123_v57 = vpack.c.bf16 %v5113_v23, %v5109_v49  ;;  %v12164_v58 = vld [vmem:[#allocation24_spill] sm:$0xff] }
 0x7f5   :  { %6488 = vmatmul.msk.bf16.vlgmr.msrb.gmra.mxu1 %vm1646_vm10, %v11148_v36  ;;  %5811 = vrot.lane.b32.xlu0 %v10299_v14, %s6594_s27 }
 0x7f6   :  { %5351 = vmatpush.bf16.msrb.mxu1 %v5326_v56  ;;  %5809 = vrot.lane.b32.xlu2 %v10656_v55, %s6594_s27 }
 0x7f7   :  { %6478 = vmatmul.msk.bf16.vlgmr.msrb.gmra.mxu0 %vm1646_vm10, %v10981_v35  ;;  %6481 = vmatmul.msk.bf16.vlgmr.msrb.gmra.mxu3 %vm1646_vm10, %v10981_v35  ;;  %v5540_v42 = vpop.permute.xlu0 %5539  ;;  %v11170_v48 = vpop.permute.xlu1 %5549 }
 0x7f8   :  { %5007 = vmatpush.bf16.msra.mxu0 %v4865_v28  ;;  %5046 = vmatpush.bf16.msra.mxu3 %v4868_v33  ;;  %v5554_v2 = vsel %vm938_vm7, %v5540_v42, %v11095_v37  ;;  %v11180_v35 = vpop.permute.xlu2 %5529  ;;  %v11186_v22 = vsel %vm938_vm7, %v11019_v5, %v11170_v48  ;;  %v12161_v33 = vld [vmem:[#allocation14_spill] sm:$0xff] }
 0x7f9   :  { %5817 = vrot.lane.b32.xlu1 %v10610_v31, %s6594_s27  ;;  %v5557_v51 = vsel %vm938_vm7, %v11180_v35, %v11051_v29  ;;  %6484 = vmatmul.msk.bf16.vlgmr.msra.gmra.mxu2 %vm1646_vm10, %v11064_v52  ;;  %v5112_v23 = vmul.f32 %v12162_v7, %v12161_v33  ;;  %v11243_v8 = vmul.f32 %v5554_v2, %v12163_v30 }
 0x7fa   :  { %5352 = vmatpush.bf16.msrb.mxu1 %v5322_v41 }
 0x7fc   :  { %5008 = vmatpush.bf16.msra.mxu0 %v12151_v50  ;;  %5047 = vmatpush.bf16.msra.mxu3 %v12154_v59 }
 0x7fd   :  { %5801 = vrot.lane.b32.xlu0 %v10433_v19, %s6594_s27  ;;  %v5920_v19 = vld [vmem:[%s11691_s9] sm:$0xff] }
 0x7fe   :  { %5799 = vrot.lane.b32.xlu2 %v10348_v54, %s6594_s27 }
 0x7ff   :  { %v11206_v9 = vpop.permute.xlu0 %5533  ;;  %v11208_v44 = vpop.permute.xlu1 %5523 }
 0x800   :  { %5136 = vmatpush.bf16.msrb.mxu0 %v5123_v57  ;;  %v11216_v62 = vsel %vm938_vm7, %v11206_v9, %v11019_v5  ;;  %v11218_v16 = vpop.permute.xlu2 %5660  ;;  %v5566_v54 = vsel %vm938_vm7, %v11095_v37, %v11208_v44  ;;  %v12159_v5 = vld [vmem:[#allocation11_spill] sm:$0xff]  ;;  %v12160_v37 = vld [vmem:[#allocation58_spill] sm:$0xff] }
 0x801   :  { %5813 = vrot.lane.b32.xlu1 %v12158_v6, %s6594_s27  ;;  %v5111_v28 = vmul.f32 %v12160_v37, %v12159_v5  ;;  %v11246_v43 = vmul.f32 %v5566_v54, %v12164_v58 }
 0x804   :  { %5137 = vmatpush.bf16.msrb.mxu0 %v12157_v11  ;;  %v11287_v11 = vmul.f32 %v5557_v51, %v12165_v60 }
 0x805   :  { %5923 = vperm.xlu0 %6585, %v5920_v19   ;;  %6493 = vmatmul.msk.bf16.vlgmr.msra.gmra.mxu1 %vm1646_vm10, %v11230_v39  ;;  %v12166_v19 = vld [vmem:[#allocation42_spill] sm:$0xff] }
 0x806   :  { %5797 = vrot.lane.b32.xlu2 %v10281_v34, %s6594_s27 }
 0x807   :  { %6482 = vmatmul.msk.bf16.vlgmr.msra.gmra.mxu0 %vm1646_vm10, %v11064_v52  ;;  %6485 = vmatmul.msk.bf16.vlgmr.msra.gmra.mxu3 %vm1646_vm10, %v11064_v52  ;;  %v5076_v53 = vpop.permute.xlu0 %5075  ;;  %v5546_v49 = vpop.permute.xlu1 %5545 }
 0x808   :  { %v5088_v52 = vsel %vm344_vm4, %v5076_v53, %v5084_v27  ;;  %v5092_v56 = vsel %vm344_vm4, %v10921_v63, %v5076_v53  ;;  %v11257_v57 = vpop.permute.xlu2 %5682  ;;  %v5553_v10 = vsel %vm938_vm7, %v11051_v29, %v5546_v49  ;;  %v5565_v34 = vsel %vm938_vm7, %v5546_v49, %v11129_v26  ;;  %v12173_v53 = vld [vmem:[#allocation59_spill] sm:$0xff] }
 0x809   :  { %5795 = vrot.lane.b32.xlu1 %v10247_v13, %s6594_s27  ;;  %v5115_v1 = vmul.f32 %v5092_v56, %v12159_v5  ;;  %v5116_v13 = vmul.f32 %v5088_v52, %v12161_v33  ;;  %v11268_v27 = vmul.f32 %v5553_v10, %v12163_v30  ;;  %v11271_v50 = vmul.f32 %v5565_v34, %v12164_v58  ;;  %v12167_v5 = vld [vmem:[#allocation49_spill] sm:$0xff]  ;;  %v12170_v33 = vld [vmem:[#allocation54_spill] sm:$0xff]  ;;  %v12174_v10 = vld [vmem:[#allocation15_spill] sm:$0xff] }
 0x80a   :  { %v12168_v37 = vpack.c.bf16 %v12166_v19, %v12167_v5  ;;  %v12175_v34 = vld [vmem:[#allocation62_spill] sm:$0xff]  ;;  %v12177_v19 = vld [vmem:[#allocation61_spill] sm:$0xff] }
 0x80b   :  { %v5125_v63 = vpack.c.bf16 %v5115_v1, %v5111_v28  ;;  %v5126_v2 = vpack.c.bf16 %v5116_v13, %v5112_v23  ;;  %v5590_v12 = vpack.c.bf16 %v11246_v43, %v11271_v50  ;;  %v5589_v29 = vpack.c.bf16 %v11243_v8, %v11268_v27  ;;  %v12169_v28 = vld [vmem:[#allocation43_spill] sm:$0xff]  ;;  %v12172_v23 = vld [vmem:[#allocation17_spill] sm:$0xff] }
 0x80c   :  { %v12171_v7 = vpack.c.bf16 %v12169_v28, %v12170_v33  ;;  %v5242_v49 = vmul.f32 %v12173_v53, %v12172_v23  ;;  %v5244_v1 = vmul.f32 %v12175_v34, %v12174_v10  ;;  %v6506_v43 = vld [vmem:[%s11690_s8 + $0x18] sm:$0xf] }
 0x80d   :  { %5162 = vmatpush.bf16.msrb.mxu2 %v5125_v63  ;;  %5175 = vmatpush.bf16.msrb.mxu3 %v5126_v2 }
 0x80f   :  { %v11277_v61 = vpop.permute.xlu0 %5531  ;;  %v11279_v59 = vpop.permute.xlu1 %5535 }
 0x810   :  { %v5558_v41 = vsel %vm938_vm7, %v11277_v61, %v5540_v42  ;;  %v11284_v47 = vpop.permute.xlu2 %5656  ;;  %v11301_v42 = vld [vmem:[%s11690_s8 + $0x10] sm:$0xf] }
 0x811   :  { %v11290_v54 = vmul.f32 %v5558_v41, %v12165_v60  ;;  %5163 = vmatpush.bf16.msrb.mxu2 %v12168_v37  ;;  %5176 = vmatpush.bf16.msrb.mxu3 %v12171_v7  ;;  %v12176_v41 = vld [vmem:[#allocation18_spill] sm:$0xff] }
 0x812   :  { %v5245_v5 = vmul.f32 %v12177_v19, %v12176_v41  ;;  %v12184_v19 = vld [vmem:[#allocation8_spill] sm:$0xff] }
 0x813   :  { %v5588_v51 = vpack.c.bf16 %v11290_v54, %v11287_v11 }
 0x814   :  { %6489 = vmatmul.msk.bf16.vlgmr.msrb.gmra.mxu2 %vm1646_vm10, %v11148_v36 }
 0x815   :  { %6498 = vmatmul.msk.bf16.vlgmr.msrb.gmra.mxu1 %vm1646_vm10, %v11301_v42 }
 0x817   :  { %6487 = vmatmul.msk.bf16.vlgmr.msrb.gmra.mxu0 %vm1646_vm10, %v11148_v36  ;;  %6490 = vmatmul.msk.bf16.vlgmr.msrb.gmra.mxu3 %vm1646_vm10, %v11148_v36  ;;  %v5217_v52 = vpop.permute.xlu0 %5216  ;;  %v5209_v56 = vpop.permute.xlu1 %5208 }
 0x818   :  { %v5233_v13 = vsel %vm499_vm5, %v5217_v52, %v10973_v24  ;;  %v11320_v63 = vpop.permute.xlu2 %5678  ;;  %v5221_v2 = vsel %vm499_vm5, %v5209_v56, %v5217_v52  ;;  %v5225_v36 = vsel %vm499_vm5, %v10870_v4, %v5209_v56  ;;  %v12178_v52 = vld [vmem:[#allocation55_spill] sm:$0xff] }
 0x819   :  { %v5246_v37 = vmul.f32 %v5233_v13, %v12172_v23  ;;  %v5248_v28 = vmul.f32 %v5225_v36, %v12174_v10  ;;  %v5249_v33 = vmul.f32 %v5221_v2, %v12176_v41  ;;  %v5426_v4 = vsel %vm783_vm6, %v12178_v52, %v10995_v21  ;;  %v12179_v23 = vld [vmem:[#allocation57_spill] sm:$0xff]  ;;  %v12180_v21 = vld [vmem:[#allocation2_spill] sm:$0xff]  ;;  %v12183_v41 = vld [vmem:[#allocation12_spill] sm:$0xff] }
 0x81a   :  { %v5431_v10 = vsel %vm783_vm6, %v11047_v32, %v12179_v23  ;;  %v12181_v2 = vld [vmem:[#allocation45_spill] sm:$0xff] }
 0x81b   :  { %v5256_v7 = vpack.c.bf16 %v5246_v37, %v5242_v49  ;;  %v5258_v24 = vpack.c.bf16 %v5248_v28, %v5244_v1  ;;  %v5259_v53 = vpack.c.bf16 %v5249_v33, %v5245_v5  ;;  %v5325_v1 = vpack.c.bf16 %v10569_v25, %v10398_v45  ;;  %v12186_v25 = vld [vmem:[#allocation21_spill] sm:$0xff] }
 0x81c   :  { %v12182_v36 = vpack.c.bf16 %v12180_v21, %v12181_v2  ;;  %v12185_v5 = vpack.c.bf16 %v12183_v41, %v12184_v19  ;;  %v5327_v37 = vpack.c.bf16 %v10656_v55, %v10492_v17  ;;  %v5328_v28 = vpack.c.bf16 %v10610_v31, %v10476_v3  ;;  %v12190_v21 = vld [vmem:[#allocation20_spill] sm:$0xff] }
 0x81d   :  { %5269 = vmatpush.bf16.msra.mxu0 %v5256_v7  ;;  %5295 = vmatpush.bf16.msra.mxu2 %v5258_v24  ;;  %v5430_v45 = vsel %vm783_vm6, %v10796_v46, %v12178_v52  ;;  %v5445_v33 = vmul.f32 %v5426_v4, %v12186_v25  ;;  %v12187_v24 = vld [vmem:[#allocation4_spill] sm:$0xff]  ;;  %v5448_v2 = vmul.f32 %v5431_v10, %v12190_v21 }
 0x81e   :  { %5308 = vmatpush.bf16.msra.mxu3 %v5259_v53  ;;  %v12188_v53 = vld [vmem:[#allocation5_spill] sm:$0xff]  ;;  %v5444_v3 = vmul.f32 %v5430_v45, %v12190_v21  ;;  %v5321_v31 = vpack.c.bf16 %v10329_v15, %v10259_v38  ;;  %v5323_v55 = vpack.c.bf16 %v10366_v40, %v10297_v18  ;;  %v5324_v46 = vpack.c.bf16 %v12158_v6, %v10299_v14  ;;  %v12191_v15 = vld [vmem:[#allocation40_spill] sm:$0xff] }
 0x81f   :  { %v11336_v56 = vpop.permute.xlu0 %5674  ;;  %v11338_v34 = vpop.permute.xlu1 %5658  ;;  %v11397_v18 = vld [vmem:[%s11690_s8 + $0x14] sm:$0xf]  ;;  %v12195_v40 = vld [vmem:[#allocation41_spill] sm:$0xff]  ;;  %v5562_v21 = vsel %vm938_vm7, %v11208_v44, %v11277_v61 }
 0x820   :  { %v11344_v49 = vpop.permute.xlu2 %5410  ;;  %v5458_v52 = vpack.c.bf16 %v5448_v2, %v5444_v3  ;;  %v12194_v14 = vld [vmem:[#allocation44_spill] sm:$0xff]  ;;  %v5700_v8 = vsel %vm1093_vm8, %v11257_v57, %v11338_v34 }
 0x821   :  { %v5427_v13 = vsel %vm783_vm6, %v12179_v23, %v11344_v49  ;;  %5270 = vmatpush.bf16.msra.mxu0 %v12182_v36  ;;  %5296 = vmatpush.bf16.msra.mxu2 %v12185_v5  ;;  %v12189_v23 = vpack.c.bf16 %v12187_v24, %v12188_v53  ;;  %v12196_v6 = vpack.c.bf16 %v12194_v14, %v12195_v40  ;;  %v12197_v41 = vld [vmem:[#allocation16_spill] sm:$0xff] }
 0x822   :  { %v5449_v7 = vmul.f32 %v5427_v13, %v12186_v25  ;;  %v5564_v13 = vsel %vm938_vm7, %v11131_v0, %v11279_v59  ;;  %v5567_v19 = vsel %vm938_vm7, %v11170_v48, %v12197_v41  ;;  %v12199_v24 = vld [vmem:[#allocation28_spill] sm:$0xff] }
 0x823   :  { %5309 = vmatpush.bf16.msra.mxu3 %v12189_v23  ;;  %v12203_v14 = vld [vmem:[#allocation64_spill] sm:$0xff] }
 0x824   :  { %v5459_v17 = vpack.c.bf16 %v5449_v7, %v5445_v33  ;;  %6494 = vmatmul.msk.bf16.vlgmr.msra.gmra.mxu2 %vm1646_vm10, %v11230_v39  ;;  %v12198_v33 = vld [vmem:[#allocation23_spill] sm:$0xff] }
 0x825   :  { %5338 = vmatpush.bf16.msrb.mxu0 %v5325_v1  ;;  %5364 = vmatpush.bf16.msrb.mxu2 %v5327_v37  ;;  %v5581_v7 = vmul.f32 %v5564_v13, %v12198_v33 }
 0x826   :  { %5484 = vmatpush.bf16.msra.mxu1 %v5459_v17 }
 0x827   :  { %5377 = vmatpush.bf16.msrb.mxu3 %v5328_v28  ;;  %6492 = vmatmul.msk.bf16.vlgmr.msra.gmra.mxu0 %vm1646_vm10, %v11230_v39  ;;  %v11385_v4 = vpop.permute.xlu0 %5670  ;;  %v11387_v10 = vpop.permute.xlu1 %5654  ;;  %v5563_v28 = vsel %vm938_vm7, %v12197_v41, %v11206_v9  ;;  %v5580_v9 = vmul.f32 %v5567_v19, %v12164_v58 }
 0x828   :  { %6495 = vmatmul.msk.bf16.vlgmr.msra.gmra.mxu3 %vm1646_vm10, %v11230_v39  ;;  %v11389_v38 = vpop.permute.xlu2 %5668  ;;  %v12192_v39 = vld [vmem:[#allocation38_spill] sm:$0xff]  ;;  %v5698_v36 = vsel %vm1093_vm8, %v11320_v63, %v11387_v10  ;;  %v5577_v17 = vmul.f32 %v5563_v28, %v12198_v33 }
 0x829   :  { %5339 = vmatpush.bf16.msrb.mxu0 %v5321_v31  ;;  %5365 = vmatpush.bf16.msrb.mxu2 %v5323_v55  ;;  %v12193_v1 = vpack.c.bf16 %v12191_v15, %v12192_v39  ;;  %v11430_v53 = vmul.f32 %v5698_v36, %v12199_v24  ;;  %v5561_v31 = vsel %vm938_vm7, %v11129_v26, %v11180_v35  ;;  %v12200_v26 = vld [vmem:[#allocation22_spill] sm:$0xff]  ;;  %v12201_v35 = vld [vmem:[#allocation63_spill] sm:$0xff] }
 0x82a   :  { %v5573_v55 = vmul.f32 %v5562_v21, %v12198_v33  ;;  %v5569_v44 = vmul.f32 %v5561_v31, %v12198_v33  ;;  %v12205_v31 = vld [vmem:[#allocation3_spill] sm:$0xff] }
 0x82b   :  { %5378 = vmatpush.bf16.msrb.mxu3 %v5324_v46  ;;  %5485 = vmatpush.bf16.msra.mxu1 %v12193_v1  ;;  %v5591_v46 = vpack.c.bf16 %v5581_v7, %v5577_v17  ;;  %v12202_v1 = vld [vmem:[#allocation19_spill] sm:$0xff] }
 0x82c   :  { %v5587_v13 = vpack.c.bf16 %v5573_v55, %v5569_v44 }
 0x82d   :  { %5471 = vmatpush.bf16.msra.mxu0 %v5458_v52  ;;  %v5446_v52 = vmul.f32 %v12201_v35, %v12200_v26 }
 0x82e   :  { %6503 = vmatmul.msk.bf16.vlgmr.msra.gmra.mxu1 %vm1646_vm10, %v11397_v18 }
 0x82f   :  { %v11416_v5 = vpop.permute.xlu0 %5680  ;;  %v11418_v37 = vpop.permute.xlu1 %5672 }
 0x830   :  { %v5699_v45 = vsel %vm1093_vm8, %v11416_v5, %v11284_v47  ;;  %v5552_v25 = vpop.permute.xlu2 %5551 }
 0x831   :  { %5472 = vmatpush.bf16.msra.mxu0 %v12196_v6  ;;  %v11433_v48 = vmul.f32 %v5699_v45, %v12199_v24  ;;  %v5568_v23 = vsel %vm938_vm7, %v5552_v25, %v11131_v0  ;;  %v5578_v45 = vmul.f32 %v11216_v62, %v12165_v60 }
 0x832   :  { %v5584_v2 = vmul.f32 %v5568_v23, %v12164_v58 }
 0x833   :  { %v5723_v3 = vpack.c.bf16 %v11433_v48, %v11430_v53 }
 0x834   :  { %v5594_v0 = vpack.c.bf16 %v5584_v2, %v5580_v9  ;;  %6499 = vmatmul.msk.bf16.vlgmr.msrb.gmra.mxu2 %vm1646_vm10, %v11301_v42  ;;  %v12204_v9 = vld [vmem:[#allocation27_spill] sm:$0xff] }
 0x837   :  { %6497 = vmatmul.msk.bf16.vlgmr.msrb.gmra.mxu0 %vm1646_vm10, %v11301_v42  ;;  %v11459_v58 = vpop.permute.xlu0 %5662  ;;  %v5419_v61 = vpop.permute.xlu1 %5418 }
 0x838   :  { %6500 = vmatmul.msk.bf16.vlgmr.msrb.gmra.mxu3 %vm1646_vm10, %v11301_v42  ;;  %5604 = vmatpush.bf16.msrb.mxu0 %v5591_v46  ;;  %v5423_v15 = vsel %vm783_vm6, %v11344_v49, %v5419_v61  ;;  %v5435_v39 = vsel %vm783_vm6, %v5419_v61, %v11047_v32  ;;  %v5447_v42 = vmul.f32 %v12203_v14, %v12202_v1  ;;  %v11490_v2 = vpop.permute.xlu2 %5791  ;;  %v12208_v46 = vld [vmem:[#allocation10_spill] sm:$0xff] }
 0x839   :  { %v5450_v40 = vmul.f32 %v5423_v15, %v12200_v26  ;;  %v5451_v6 = vmul.f32 %v5435_v39, %v12202_v1  ;;  %v5697_v49 = vsel %vm1093_vm8, %v11218_v16, %v11389_v38  ;;  %v5579_v32 = vmul.f32 %v11186_v22, %v12163_v30 }
 0x83a   :  { %v5714_v21 = vmul.f32 %v5697_v49, %v12204_v9  ;;  %v5713_v1 = vmul.f32 %v5700_v8, %v12199_v24 }
 0x83b   :  { %v5460_v36 = vpack.c.bf16 %v5450_v40, %v5446_v52  ;;  %v5461_v41 = vpack.c.bf16 %v5451_v6, %v5447_v42 }
 0x83c   :  { %5605 = vmatpush.bf16.msrb.mxu0 %v5587_v13  ;;  %v12211_v13 = vld [vmem:[#allocation30_spill] sm:$0xff] }
 0x83d   :  { %5497 = vmatpush.bf16.msra.mxu2 %v5460_v36  ;;  %5510 = vmatpush.bf16.msra.mxu3 %v5461_v41  ;;  %v12212_v36 = vld [vmem:[#allocation29_spill] sm:$0xff] }
 0x83f   :  { %v5544_v19 = vpop.permute.xlu0 %5543  ;;  %v5667_v28 = vpop.permute.xlu1 %5666 }
 0x840   :  { %v5556_v33 = vsel %vm938_vm7, %v5544_v19, %v5552_v25  ;;  %v5560_v7 = vsel %vm938_vm7, %v11279_v59, %v5544_v19  ;;  %v5696_v23 = vsel %vm1093_vm8, %v11338_v34, %v5667_v28  ;;  %v12206_v25 = vld [vmem:[#allocation7_spill] sm:$0xff]  ;;  %v12209_v59 = vld [vmem:[#allocation6_spill] sm:$0xff]  ;;  %v11530_v50 = vpop.permute.xlu2 %5787  ;;  %v5692_v54 = vsel %vm1093_vm8, %v5667_v28, %v11336_v56 }
 0x841   :  { %v5582_v22 = vmul.f32 %v5560_v7, %v12165_v60  ;;  %v5583_v17 = vmul.f32 %v5556_v33, %v12163_v30  ;;  %v5710_v62 = vmul.f32 %v5696_v23, %v12204_v9  ;;  %v12207_v55 = vpack.c.bf16 %v12205_v31, %v12206_v25 }
 0x842   :  { %v12210_v44 = vpack.c.bf16 %v12208_v46, %v12209_v59  ;;  %v5694_v30 = vsel %vm1093_vm8, %v11387_v10, %v11459_v58  ;;  %v5687_v34 = vsel %vm1093_vm8, %v11418_v37, %v11416_v5  ;;  %v5711_v41 = vmul.f32 %v5692_v54, %v12212_v36  ;;  %v12216_v54 = vld [vmem:[#allocation33_spill] sm:$0xff] }
 0x843   :  { %5498 = vmatpush.bf16.msra.mxu2 %v12207_v55  ;;  %v5592_v61 = vpack.c.bf16 %v5582_v22, %v5578_v45  ;;  %v5593_v26 = vpack.c.bf16 %v5583_v17, %v5579_v32  ;;  %v5724_v35 = vpack.c.bf16 %v5714_v21, %v5710_v62  ;;  %v5702_v10 = vmul.f32 %v5694_v30, %v12204_v9  ;;  %v6511_v21 = vld [vmem:[%s11690_s8 + $0x1c] sm:$0xf] }
 0x844   :  { %5511 = vmatpush.bf16.msra.mxu3 %v12210_v44 }
 0x845   :  { %5617 = vmatpush.bf16.msrb.mxu1 %v5592_v61  ;;  %v12213_v61 = vld [vmem:[#allocation31_spill] sm:$0xff] }
 0x846   :  { %6504 = vmatmul.msk.bf16.vlgmr.msra.gmra.mxu2 %vm1646_vm10, %v11397_v18 }
 0x847   :  { %5630 = vmatpush.bf16.msrb.mxu2 %v5593_v26  ;;  %6502 = vmatmul.msk.bf16.vlgmr.msra.gmra.mxu0 %vm1646_vm10, %v11397_v18  ;;  %v11514_v60 = vpop.permute.xlu0 %5793 }
 0x848   :  { %5643 = vmatpush.bf16.msrb.mxu3 %v5594_v0  ;;  %5737 = vmatpush.bf16.msra.mxu0 %v5724_v35  ;;  %v5665_v0 = vpop.permute.xlu1 %5664  ;;  %v11540_v27 = vpop.permute.xlu2 %5805  ;;  %v12214_v35 = vld [vmem:[#allocation34_spill] sm:$0xff] }
 0x849   :  { %6505 = vmatmul.msk.bf16.vlgmr.msra.gmra.mxu3 %vm1646_vm10, %v11397_v18  ;;  %v5695_v52 = vsel %vm1093_vm8, %v11284_v47, %v5665_v0  ;;  %5618 = vmatpush.bf16.msrb.mxu1 %v5588_v51 }
 0x84a   :  { %v5706_v15 = vmul.f32 %v5695_v52, %v12204_v9 }
 0x84b   :  { %5631 = vmatpush.bf16.msrb.mxu2 %v5589_v29  ;;  %v4968_v47 = vpop.f32.mrf.mxu1  ;;  %v5688_v29 = vsel %vm1093_vm8, %v11336_v56, %v11257_v57  ;;  %v5691_v57 = vsel %vm1093_vm8, %v5665_v0, %v11418_v37  ;;  %v5686_v37 = vsel %vm1093_vm8, %v11385_v4, %v11320_v63 }
 0x84c   :  { %5644 = vmatpush.bf16.msrb.mxu3 %v5590_v12  ;;  %v5720_v12 = vpack.c.bf16 %v5706_v15, %v5702_v10  ;;  %6508 = vmatmul.msk.bf16.vlgmr.msrb.gmra.mxu1 %vm1646_vm10, %v6506_v43  ;;  %v5712_v5 = vmul.f32 %v5688_v29, %v12211_v13  ;;  %v5707_v19 = vmul.f32 %v5691_v57, %v12212_v36 }
 0x84d   :  { %v5704_v33 = vmul.f32 %v5686_v37, %v12211_v13 }
 0x84e   :  { %5738 = vmatpush.bf16.msra.mxu0 %v5720_v12 }
 0x84f   :  { %v5816_v18 = vpop.permute.xlu0 %5815 }
 0x850   :  { %v11533_v39 = vpop.permute.xlu1 %5807  ;;  %v5810_v63 = vpop.permute.xlu2 %5809  ;;  %v5833_v48 = vsel %vm1248_vm9, %v5816_v18, %v11490_v2 }
 0x851   :  { %v5846_v26 = vmul.f32 %v5833_v48, %v12213_v61 }
 0x853   :  { %v4970_v11 = vpop.f32.mrf.mxu1 }
 0x854   :  { %v12215_v11 = vld [vmem:[#allocation32_spill] sm:$0xff] }
 0x856   :  { %6509 = vmatmul.msk.bf16.vlgmr.msrb.gmra.mxu2 %vm1646_vm10, %v6506_v43 }
 0x857   :  { %6507 = vmatmul.msk.bf16.vlgmr.msrb.gmra.mxu0 %vm1646_vm10, %v6506_v43  ;;  %v5685_v51 = vpop.permute.xlu0 %5684 }
 0x858   :  { %v5701_v14 = vsel %vm1093_vm8, %v5685_v51, %v11218_v16  ;;  %v5800_v31 = vpop.permute.xlu2 %5799 }
 0x859   :  { %6510 = vmatmul.msk.bf16.vlgmr.msrb.gmra.mxu3 %vm1646_vm10, %v6506_v43  ;;  %v5677_v42 = vpop.permute.xlu1 %5676  ;;  %v5717_v40 = vmul.f32 %v5701_v14, %v12199_v24  ;;  %v5690_v24 = vsel %vm1093_vm8, %v11459_v58, %v11385_v4  ;;  %v5829_v10 = vsel %vm1248_vm9, %v11490_v2, %v5800_v31  ;;  %v5825_v15 = vsel %vm1248_vm9, %v5800_v31, %v11533_v39 }
 0x85a   :  { %v5689_v56 = vsel %vm1093_vm8, %v5677_v42, %v5685_v51  ;;  %v5693_v6 = vsel %vm1093_vm8, %v11389_v38, %v5677_v42  ;;  %v5708_v38 = vmul.f32 %v5687_v34, %v12211_v13  ;;  %v5703_v7 = vmul.f32 %v5690_v24, %v12212_v36 }
 0x85b   :  { %v5715_v16 = vmul.f32 %v5693_v6, %v12212_v36  ;;  %v5716_v49 = vmul.f32 %v5689_v56, %v12211_v13  ;;  %v5727_v32 = vpack.c.bf16 %v5717_v40, %v5713_v1  ;;  %v5843_v8 = vmul.f32 %v5829_v10, %v12215_v11 }
 0x85c   :  { %v5721_v4 = vpack.c.bf16 %v5707_v19, %v5703_v7  ;;  %v5722_v58 = vpack.c.bf16 %v5708_v38, %v5704_v33 }
 0x85d   :  { %v5725_v28 = vpack.c.bf16 %v5715_v16, %v5711_v41  ;;  %v5726_v45 = vpack.c.bf16 %v5716_v49, %v5712_v5  ;;  %5776 = vmatpush.bf16.msra.mxu3 %v5727_v32  ;;  %v6516_v32 = vld [vmem:[%s11690_s8 + $0x20] sm:$0xf] }
 0x85f   :  { %5750 = vmatpush.bf16.msra.mxu1 %v5725_v28  ;;  %5763 = vmatpush.bf16.msra.mxu2 %v5726_v45  ;;  %v11584_v23 = vpop.permute.xlu0 %5789 }
 0x860   :  { %v5798_v49 = vpop.permute.xlu2 %5797 }
 0x861   :  { %v11586_v9 = vpop.permute.xlu1 %5803  ;;  %5777 = vmatpush.bf16.msra.mxu3 %v5723_v3  ;;  %v5821_v3 = vsel %vm1248_vm9, %v11533_v39, %v5816_v18  ;;  %v5844_v39 = vmul.f32 %v5825_v15, %v12216_v54  ;;  %v5824_v38 = vsel %vm1248_vm9, %v5798_v49, %v11540_v27  ;;  %v5828_v19 = vsel %vm1248_vm9, %v11584_v23, %v5798_v49 }
 0x862   :  { %v5023_v22 = vpop.f32.mrf.mxu1  ;;  %v11594_v17 = vpop.f32.mrf.mxu2  ;;  %v5845_v30 = vmul.f32 %v5821_v3, %v12214_v35 }
 0x863   :  { %5751 = vmatpush.bf16.msra.mxu1 %v5721_v4  ;;  %5764 = vmatpush.bf16.msra.mxu2 %v5722_v58  ;;  %v5024_v62 = vadd.f32 %v5023_v22, %v4968_v47  ;;  %v5839_v4 = vmul.f32 %v5828_v19, %v12215_v11 }
 0x866   :  { %6513 = vmatmul.msk.bf16.vlgmr.msra.gmra.mxu1 %vm1646_vm10, %v6511_v21  ;;  %6514 = vmatmul.msk.bf16.vlgmr.msra.gmra.mxu2 %vm1646_vm10, %v6511_v21 }
 0x867   :  { %6512 = vmatmul.msk.bf16.vlgmr.msra.gmra.mxu0 %vm1646_vm10, %v6511_v21  ;;  %v5812_v53 = vpop.permute.xlu0 %5811 }
 0x868   :  { %v5819_v47 = vsel %vm1248_vm9, %v11586_v9, %v5812_v53  ;;  %v5831_v51 = vsel %vm1248_vm9, %v5812_v53, %v11530_v50 }
 0x869   :  { %6515 = vmatmul.msk.bf16.vlgmr.msra.gmra.mxu3 %vm1646_vm10, %v6511_v21  ;;  %v5837_v14 = vmul.f32 %v5819_v47, %v12214_v35  ;;  %v5838_v5 = vmul.f32 %v5831_v51, %v12213_v61 }
 0x86a   :  { %v5025_v55 = vpop.f32.mrf.mxu1  ;;  %v4983_v44 = vpop.f32.mrf.mxu2 }
 0x86b   :  { %v5818_v25 = vpop.permute.xlu1 %5817 }
 0x86c   :  { %v5822_v46 = vsel %vm1248_vm9, %v5810_v63, %v5818_v25  ;;  %v5834_v59 = vsel %vm1248_vm9, %v5818_v25, %v11514_v60 }
 0x86d   :  { %v5849_v0 = vmul.f32 %v5822_v46, %v12214_v35  ;;  %v5850_v52 = vmul.f32 %v5834_v59, %v12213_v61 }
 0x86f   :  { %v5859_v43 = vpack.c.bf16 %v5849_v0, %v5845_v30  ;;  %v5860_v12 = vpack.c.bf16 %v5850_v52, %v5846_v26  ;;  %v5802_v18 = vpop.permute.xlu0 %5801 }
 0x870   :  { %v5826_v29 = vsel %vm1248_vm9, %v5802_v18, %v5810_v63  ;;  %v5830_v2 = vsel %vm1248_vm9, %v11514_v60, %v5802_v18 }
 0x871   :  { %5896 = vmatpush.bf16.msrb.mxu2 %v5859_v43  ;;  %5909 = vmatpush.bf16.msrb.mxu3 %v5860_v12  ;;  %v5847_v1 = vmul.f32 %v5830_v2, %v12215_v11  ;;  %v5848_v34 = vmul.f32 %v5826_v29, %v12216_v54 }
 0x872   :  { %v5152_v57 = vpop.f32.mrf.mxu1 }
 0x873   :  { %v5814_v42 = vpop.permute.xlu1 %5813  ;;  %v5857_v40 = vpack.c.bf16 %v5847_v1, %v5843_v8  ;;  %v5858_v56 = vpack.c.bf16 %v5848_v34, %v5844_v39  ;;  %v5183_v16 = vadd.f32 %v5152_v57, %v5024_v62 }
 0x874   :  { %v5820_v60 = vsel %vm1248_vm9, %v11540_v27, %v5814_v42  ;;  %v5832_v6 = vsel %vm1248_vm9, %v5814_v42, %v11584_v23  ;;  %v4955_v13 = vpop.f32.mrf.mxu0  ;;  %v5840_v23 = vmul.f32 %v5824_v38, %v12216_v54 }
 0x875   :  { %v5841_v36 = vmul.f32 %v5820_v60, %v12214_v35  ;;  %v5842_v41 = vmul.f32 %v5832_v6, %v12213_v61  ;;  %5870 = vmatpush.bf16.msrb.mxu0 %v5857_v40  ;;  %5883 = vmatpush.bf16.msrb.mxu1 %v5858_v56 }
 0x877   :  { %v5855_v37 = vpack.c.bf16 %v5841_v36, %v5837_v14  ;;  %v5856_v24 = vpack.c.bf16 %v5842_v41, %v5838_v5 }
 0x879   :  { %5897 = vmatpush.bf16.msrb.mxu2 %v5855_v37  ;;  %5910 = vmatpush.bf16.msrb.mxu3 %v5856_v24 }
 0x87a   :  { %v4994_v28 = vpop.f32.mrf.mxu3  ;;  %v5154_v33 = vpop.f32.mrf.mxu1 }
 0x87b   :  { %v5796_v45 = vpop.permute.xlu1 %5795 }
 0x87c   :  { %v5823_v7 = vsel %vm1248_vm9, %v5796_v45, %v11586_v9  ;;  %v5827_v63 = vsel %vm1248_vm9, %v11530_v50, %v5796_v45  ;;  %6519 = vmatmul.msk.bf16.vlgmr.msrb.gmra.mxu2 %vm1646_vm10, %v6516_v32  ;;  %6520 = vmatmul.msk.bf16.vlgmr.msrb.gmra.mxu3 %vm1646_vm10, %v6516_v32  ;;  %v4957_v27 = vpop.f32.mrf.mxu0  ;;  %v5036_v22 = vpop.f32.mrf.mxu2 }
 0x87d   :  { %v5835_v58 = vmul.f32 %v5827_v63, %v12215_v11  ;;  %v5836_v21 = vmul.f32 %v5823_v7, %v12216_v54  ;;  %v5037_v53 = vadd.f32 %v5036_v22, %v11594_v17 }
 0x87f   :  { %v5853_v62 = vpack.c.bf16 %v5839_v4, %v5835_v58  ;;  %v5854_v9 = vpack.c.bf16 %v5840_v23, %v5836_v21 }
 0x881   :  { %5871 = vmatpush.bf16.msrb.mxu0 %v5853_v62  ;;  %5884 = vmatpush.bf16.msrb.mxu1 %v5854_v9 }
 0x882   :  { %v4996_v20 = vpop.f32.mrf.mxu3  ;;  %v5285_v50 = vpop.f32.mrf.mxu1 }
 0x883   :  { %v5316_v3 = vadd.f32 %v5285_v50, %v5183_v16 }
 0x884   :  { %6517 = vmatmul.msk.bf16.vlgmr.msrb.gmra.mxu0 %vm1646_vm10, %v6516_v32  ;;  %6518 = vmatmul.msk.bf16.vlgmr.msrb.gmra.mxu1 %vm1646_vm10, %v6516_v32  ;;  %v5010_v48 = vpop.f32.mrf.mxu0  ;;  %v5038_v25 = vpop.f32.mrf.mxu2 }
 0x885   :  { %v5011_v31 = vadd.f32 %v5010_v48, %v4955_v13 }
 0x88a   :  { %v5049_v55 = vpop.f32.mrf.mxu3  ;;  %v5287_v59 = vpop.f32.mrf.mxu1 }
 0x88b   :  { %v5050_v46 = vadd.f32 %v5049_v55, %v4994_v28 }
 0x88c   :  { %v5012_v44 = vpop.f32.mrf.mxu0 }
 0x892   :  { %v5051_v61 = vpop.f32.mrf.mxu3  ;;  %v5354_v26 = vpop.f32.mrf.mxu1 }
 0x893   :  { %v5385_v17 = vadd.f32 %v5354_v26, %v5316_v3 }
 0x894   :  { %v5139_v35 = vpop.f32.mrf.mxu0 }
 0x895   :  { %v5182_v30 = vadd.f32 %v5139_v35, %v5011_v31 }
 0x897   :  { %v5165_v0 = vpop.f32.mrf.mxu2 }
 0x898   :  { %v5184_v52 = vadd.f32 %v5165_v0, %v5037_v53 }
 0x89a   :  { %v5178_v10 = vpop.f32.mrf.mxu3  ;;  %v5356_v43 = vpop.f32.mrf.mxu1 }
 0x89b   :  { %v5185_v15 = vadd.f32 %v5178_v10, %v5050_v46 }
 0x89c   :  { %v5141_v12 = vpop.f32.mrf.mxu0 }
 0x89f   :  { %v5167_v47 = vpop.f32.mrf.mxu2 }
 0x8a2   :  { %v5180_v18 = vpop.f32.mrf.mxu3 }
 0x8a4   :  { %v5272_v11 = vpop.f32.mrf.mxu0 }
 0x8a5   :  { %v5315_v8 = vadd.f32 %v5272_v11, %v5182_v30 }
 0x8a7   :  { %v5298_v29 = vpop.f32.mrf.mxu2 }
 0x8a8   :  { %v5317_v2 = vadd.f32 %v5298_v29, %v5184_v52 }
 0x8ab   :  { %v5311_v54 = vpop.f32.mrf.mxu3  ;;  %v5487_v1 = vpop.f32.mrf.mxu1 }
 0x8ac   :  { %v5318_v39 = vadd.f32 %v5311_v54, %v5185_v15  ;;  %v5274_v51 = vpop.f32.mrf.mxu0  ;;  %v5518_v34 = vadd.f32 %v5487_v1, %v5385_v17  ;;  %v5924_v17 = vpop.permute.xlu0 %5923 }
 0x8af   :  { %v5300_v14 = vpop.f32.mrf.mxu2 }
 0x8b3   :  { %v5313_v42 = vpop.f32.mrf.mxu3  ;;  %v5489_v40 = vpop.f32.mrf.mxu1 }
 0x8b4   :  { %v5341_v57 = vpop.f32.mrf.mxu0 }
 0x8b5   :  { %v5384_v56 = vadd.f32 %v5341_v57, %v5315_v8 }
 0x8b7   :  { %v5367_v60 = vpop.f32.mrf.mxu2 }
 0x8b8   :  { %v5386_v20 = vadd.f32 %v5367_v60, %v5317_v2 }
 0x8bb   :  { %v5380_v6 = vpop.f32.mrf.mxu3 }
 0x8bc   :  { %v5343_v13 = vpop.f32.mrf.mxu0  ;;  %v5387_v50 = vadd.f32 %v5380_v6, %v5318_v39 }
 0x8bf   :  { %v5369_v5 = vpop.f32.mrf.mxu2 }
 0x8c3   :  { %v5382_v36 = vpop.f32.mrf.mxu3 }
 0x8c4   :  { %v5474_v41 = vpop.f32.mrf.mxu0 }
 0x8c5   :  { %v5517_v31 = vadd.f32 %v5474_v41, %v5384_v56 }
 0x8c9   :  { %v5500_v16 = vpop.f32.mrf.mxu2  ;;  %v5620_v37 = vpop.f32.mrf.mxu1 }
 0x8ca   :  { %v5519_v48 = vadd.f32 %v5500_v16, %v5386_v20  ;;  %v5651_v46 = vadd.f32 %v5620_v37, %v5518_v34 }
 0x8cc   :  { %v5513_v49 = vpop.f32.mrf.mxu3  ;;  %v5476_v24 = vpop.f32.mrf.mxu0 }
 0x8cd   :  { %v5520_v3 = vadd.f32 %v5513_v49, %v5387_v50 }
 0x8d1   :  { %v5502_v32 = vpop.f32.mrf.mxu2  ;;  %v5622_v19 = vpop.f32.mrf.mxu1 }
 0x8d4   :  { %v5515_v38 = vpop.f32.mrf.mxu3  ;;  %v5607_v28 = vpop.f32.mrf.mxu0 }
 0x8d5   :  { %v5650_v59 = vadd.f32 %v5607_v28, %v5517_v31 }
 0x8d9   :  { %v5633_v45 = vpop.f32.mrf.mxu2 }
 0x8da   :  { %v5652_v25 = vadd.f32 %v5633_v45, %v5519_v48 }
 0x8dc   :  { %v5646_v33 = vpop.f32.mrf.mxu3  ;;  %v5609_v7 = vpop.f32.mrf.mxu0 }
 0x8dd   :  { %v5653_v55 = vadd.f32 %v5646_v33, %v5520_v3 }
 0x8e1   :  { %v5635_v63 = vpop.f32.mrf.mxu2 }
 0x8e3   :  { %v5753_v4 = vpop.f32.mrf.mxu1 }
 0x8e4   :  { %v5648_v27 = vpop.f32.mrf.mxu3  ;;  %v5740_v23 = vpop.f32.mrf.mxu0  ;;  %v5784_v0 = vadd.f32 %v5753_v4, %v5651_v46 }
 0x8e5   :  { %v5783_v30 = vadd.f32 %v5740_v23, %v5650_v59 }
 0x8e9   :  { %v5766_v58 = vpop.f32.mrf.mxu2 }
 0x8ea   :  { %v5785_v44 = vadd.f32 %v5766_v58, %v5652_v25 }
 0x8eb   :  { %v5755_v22 = vpop.f32.mrf.mxu1 }
 0x8ec   :  { %v5779_v21 = vpop.f32.mrf.mxu3  ;;  %v5742_v62 = vpop.f32.mrf.mxu0 }
 0x8ed   :  { %v5786_v61 = vadd.f32 %v5779_v21, %v5653_v55 }
 0x8f1   :  { %v5768_v9 = vpop.f32.mrf.mxu2 }
 0x8f4   :  { %v5781_v53 = vpop.f32.mrf.mxu3 }
 0x8ff   :  { %v5899_v26 = vpop.f32.mrf.mxu2  ;;  %v5912_v35 = vpop.f32.mrf.mxu3 }
 0x900   :  { %v5918_v52 = vadd.f32 %v5899_v26, %v5785_v44  ;;  %v5919_v10 = vadd.f32 %v5912_v35, %v5786_v61 }
 0x901   :  { %v5873_v15 = vpop.f32.mrf.mxu0  ;;  %v5886_v43 = vpop.f32.mrf.mxu1 }
 0x902   :  { %v5928_v12 = vadd.f32 %v5924_v17, %v5918_v52  ;;  %v5929_v47 = vadd.f32 %v5924_v17, %v5919_v10  ;;  %v5916_v18 = vadd.f32 %v5873_v15, %v5783_v30  ;;  %v5917_v11 = vadd.f32 %v5886_v43, %v5784_v0 }
 0x904   :  { %v5932_v8 = vmax.f32 %v5928_v12, 0.0  ;;  %v5933_v29 = vmax.f32 %v5929_v47, 0.0  ;;  %v5926_v2 = vadd.f32 %v5924_v17, %v5916_v18  ;;  %v5927_v54 = vadd.f32 %v5924_v17, %v5917_v11 }
 0x906   :  { %5936 = vst [vmem:[%s11692_s10 + $0x10] sm:$0xff] %v5932_v8  ;;  %v5930_v39 = vmax.f32 %v5926_v2, 0.0  ;;  %v5931_v51 = vmax.f32 %v5927_v54, 0.0 }
 0x907   :  { %5937 = vst [vmem:[%s11692_s10 + $0x18] sm:$0xff] %v5933_v29  ;;  %v5901_v1 = vpop.f32.mrf.mxu2  ;;  %v5914_v34 = vpop.f32.mrf.mxu3 }
 0x908   :  { %5934 = vst [vmem:[%s11692_s10] sm:$0xff] %v5930_v39 }
 0x909   :  { %5935 = vst [vmem:[%s11692_s10 + $0x8] sm:$0xff] %v5931_v51  ;;  %v5875_v14 = vpop.f32.mrf.mxu0  ;;  %v5888_v42 = vpop.f32.mrf.mxu1 }

</bundles_post_ra>
